<compile_context>
chip_gen: v7x
topology: tpu7x:2x2x1
jax: 0.10.0
libtpu: 0.0.40
codegen_flags: <defaults>
</compile_context>

<pallas_src>
import functools

import jax
import jax.numpy as jnp
from jax import lax
from jax.experimental import pallas as pl
from jax.experimental.pallas import tpu as pltpu

BN_EPS = 1e-5
GROWTH = 32
BLOCK_CONFIG = (6, 12, 32, 32)   # DenseNet-169
NUM_INIT = 64
BN_SIZE = 4

VMEM_LIMIT = 32 * 1024 * 1024


def _ru(x, m):
    return ((x + m - 1) // m) * m


def _pad_rows(m):
    # rows padded to 8; large row counts padded to 256 so a 256-deep M tile fits.
    return _ru(m, 8) if m <= 256 else _ru(m, 256)


# ----------------------------- Pallas kernels ------------------------------

def _mm_kernel(x_ref, w_ref, o_ref, acc_ref):
    @pl.when(pl.program_id(2) == 0)
    def _():
        acc_ref[...] = jnp.zeros_like(acc_ref)
    acc_ref[...] += jnp.dot(x_ref[...].astype(jnp.bfloat16), w_ref[...],
                            preferred_element_type=jnp.float32)

    @pl.when(pl.program_id(2) == pl.num_programs(2) - 1)
    def _():
        o_ref[...] = acc_ref[...]


def _bnrelu_mm_kernel(x_ref, s1_ref, t1_ref, w_ref, o_ref, acc_ref):
    # relu(x*scale+shift) @ W  (transition / generic pre-activation 1x1 conv)
    @pl.when(pl.program_id(2) == 0)
    def _():
        acc_ref[...] = jnp.zeros_like(acc_ref)
    xn = jnp.maximum(x_ref[...] * s1_ref[...] + t1_ref[...], 0.0)
    acc_ref[...] += jnp.dot(xn.astype(jnp.bfloat16), w_ref[...],
                            preferred_element_type=jnp.float32)

    @pl.when(pl.program_id(2) == pl.num_programs(2) - 1)
    def _():
        o_ref[...] = acc_ref[...]


def _bnrelu_mm_bnrelu_kernel(x_ref, s1_ref, t1_ref, w_ref, s2_ref, t2_ref,
                             o_ref, acc_ref):
    # relu(bn2( relu(bn1(x)) @ W1 ))  -- whole dense-layer bottleneck fused
    @pl.when(pl.program_id(2) == 0)
    def _():
        acc_ref[...] = jnp.zeros_like(acc_ref)
    xn = jnp.maximum(x_ref[...] * s1_ref[...] + t1_ref[...], 0.0)
    acc_ref[...] += jnp.dot(xn.astype(jnp.bfloat16), w_ref[...],
                            preferred_element_type=jnp.float32)

    @pl.when(pl.program_id(2) == pl.num_programs(2) - 1)
    def _():
        o_ref[...] = jnp.maximum(acc_ref[...] * s2_ref[...] + t2_ref[...], 0.0)


def _scale_shift_kernel(x_ref, s_ref, t_ref, o_ref, *, relu):
    y = x_ref[...] * s_ref[...] + t_ref[...]
    if relu:
        y = jnp.maximum(y, 0.0)
    o_ref[...] = y


def _relu_kernel(x_ref, o_ref):
    o_ref[...] = jnp.maximum(x_ref[...], 0.0)


def _pool_kernel(x_ref, o_ref, *, op):
    # x_ref: (P, M, C) window taps, reduce over P
    taps = x_ref.shape[0]
    r = x_ref[0]
    for p in range(1, taps):
        r = jnp.maximum(r, x_ref[p]) if op == "max" else r + x_ref[p]
    if op == "avg":
        r = r * (1.0 / taps)
    o_ref[...] = r


# --------------------------- pallas_call wrappers ---------------------------

def _gemm(x, w, s1=None, t1=None, s2=None, t2=None):
    """Gridded matmul with optional fused BN+ReLU prologue/epilogue.

    x: (Mp, Kp) f32 or bf16; w: (Kp, Np) bf16; s1/t1: (1, Kp) f32;
    s2/t2: (1, Np) f32.  Returns (Mp, Np) f32.
    """
    Mp, Kp = x.shape
    Np = w.shape[1]
    tm = 256 if Mp % 256 == 0 else Mp
    tn = 256 if Np % 256 == 0 else 128
    tk = 256 if Kp % 256 == 0 else 128
    grid = (Mp // tm, Np // tn, Kp // tk)

    x_spec = pl.BlockSpec((tm, tk), lambda i, j, k: (i, k))
    w_spec = pl.BlockSpec((tk, tn), lambda i, j, k: (k, j))
    kvec = pl.BlockSpec((1, tk), lambda i, j, k: (0, k))
    nvec = pl.BlockSpec((1, tn), lambda i, j, k: (0, j))
    o_spec = pl.BlockSpec((tm, tn), lambda i, j, k: (i, j))

    if s1 is None:
        kernel, args, in_specs = _mm_kernel, (x, w), [x_spec, w_spec]
    elif s2 is None:
        kernel = _bnrelu_mm_kernel
        args = (x, s1, t1, w)
        in_specs = [x_spec, kvec, kvec, w_spec]
    else:
        kernel = _bnrelu_mm_bnrelu_kernel
        args = (x, s1, t1, w, s2, t2)
        in_specs = [x_spec, kvec, kvec, w_spec, nvec, nvec]

    return pl.pallas_call(
        kernel,
        out_shape=jax.ShapeDtypeStruct((Mp, Np), jnp.float32),
        grid=grid,
        in_specs=in_specs,
        out_specs=o_spec,
        scratch_shapes=[pltpu.VMEM((tm, tn), jnp.float32)],
        compiler_params=pltpu.CompilerParams(
            dimension_semantics=("parallel", "parallel", "arbitrary"),
            vmem_limit_bytes=VMEM_LIMIT),
    )(*args)


def _bn_apply(x2d, s, t, relu=False):
    Mp, Cp = x2d.shape
    tm = 256 if Mp % 256 == 0 else Mp
    return pl.pallas_call(
        functools.partial(_scale_shift_kernel, relu=relu),
        out_shape=jax.ShapeDtypeStruct((Mp, Cp), jnp.float32),
        grid=(Mp // tm,),
        in_specs=[pl.BlockSpec((tm, Cp), lambda i: (i, 0)),
                  pl.BlockSpec((1, Cp), lambda i: (0, 0)),
                  pl.BlockSpec((1, Cp), lambda i: (0, 0))],
        out_specs=pl.BlockSpec((tm, Cp), lambda i: (i, 0)),
        compiler_params=pltpu.CompilerParams(
            dimension_semantics=("parallel",),
            vmem_limit_bytes=VMEM_LIMIT),
    )(x2d, s, t)


def _relu_apply(x2d):
    Mp, Cp = x2d.shape
    tm = 256 if Mp % 256 == 0 else Mp
    return pl.pallas_call(
        _relu_kernel,
        out_shape=jax.ShapeDtypeStruct((Mp, Cp), jnp.float32),
        grid=(Mp // tm,),
        in_specs=[pl.BlockSpec((tm, Cp), lambda i: (i, 0))],
        out_specs=pl.BlockSpec((tm, Cp), lambda i: (i, 0)),
        compiler_params=pltpu.CompilerParams(
            dimension_semantics=("parallel",),
            vmem_limit_bytes=VMEM_LIMIT),
    )(x2d)


def _pool_apply(patches, op):
    _, Mp, Cp = patches.shape
    return pl.pallas_call(
        functools.partial(_pool_kernel, op=op),
        out_shape=jax.ShapeDtypeStruct((Mp, Cp), jnp.float32),
        in_specs=[pl.BlockSpec(memory_space=pltpu.MemorySpace.VMEM)],
        out_specs=pl.BlockSpec(memory_space=pltpu.MemorySpace.VMEM),
    )(patches)


# ------------------------------- glue ops -----------------------------------

def _im2col(x, kh, kw, stride, padding):
    # x: NHWC -> (B*Ho*Wo, kh*kw*C), patch layout (dy, dx, c)
    B, H, W, C = x.shape
    Ho = (H + 2 * padding - kh) // stride + 1
    Wo = (W + 2 * padding - kw) // stride + 1
    xp = jnp.pad(x, ((0, 0), (padding, padding), (padding, padding), (0, 0)))
    slabs = [xp[:, dy:dy + stride * Ho:stride, dx:dx + stride * Wo:stride, :]
             for dy in range(kh) for dx in range(kw)]
    cols = jnp.concatenate(slabs, axis=-1).reshape(B * Ho * Wo, kh * kw * C)
    return cols, (B, Ho, Wo)


def _conv_gemm(x, w_pad, kh, kw, stride, padding):
    # x NHWC f32, w_pad (Kp, Np) bf16 (zero-padded). Returns padded (Mp, Np) f32.
    cols, (B, Ho, Wo) = _im2col(x, kh, kw, stride, padding)
    M, K = cols.shape
    Mp, Kp = _pad_rows(M), w_pad.shape[0]
    cols = jnp.pad(cols.astype(jnp.bfloat16), ((0, Mp - M), (0, Kp - K)))
    return _gemm(cols, w_pad), (B, Ho, Wo, M)


def _pool2d(x, k, stride, padding, op):
    B, H, W, C = x.shape
    Ho = (H + 2 * padding - k) // stride + 1
    Wo = (W + 2 * padding - k) // stride + 1
    pad_val = -jnp.inf if op == "max" else 0.0
    xp = jnp.pad(x, ((0, 0), (padding, padding), (padding, padding), (0, 0)),
                 constant_values=pad_val)
    slabs = [xp[:, dy:dy + stride * Ho:stride, dx:dx + stride * Wo:stride, :]
             for dy in range(k) for dx in range(k)]
    patches = jnp.stack(slabs, axis=0).reshape(k * k, B * Ho * Wo, C)
    M = B * Ho * Wo
    Mp, Cp = _ru(M, 8), _ru(C, 128)
    patches = jnp.pad(patches, ((0, 0), (0, Mp - M), (0, Cp - C)))
    out = _pool_apply(patches, op)[:M, :C]
    return out.reshape(B, Ho, Wo, C)


# ------------------------------ parameters ----------------------------------

def _conv_init(key, kh, kw, cin, cout):
    fan_in = kh * kw * cin
    return (jax.random.normal(key, (kh, kw, cin, cout), jnp.float32)
            * jnp.sqrt(2.0 / fan_in))


def _bn_init(key, c):
    k1, k2, k3, k4 = jax.random.split(key, 4)
    return dict(
        gamma=1.0 + 0.1 * jax.random.normal(k1, (c,), jnp.float32),
        beta=0.1 * jax.random.normal(k2, (c,), jnp.float32),
        mean=0.1 * jax.random.normal(k3, (c,), jnp.float32),
        var=1.0 + 0.1 * jax.random.uniform(k4, (c,), jnp.float32),
    )


def init_densenet169_params(key):
    keys = iter(jax.random.split(key, 512))
    p = {}
    p["conv0"] = _conv_init(next(keys), 7, 7, 3, NUM_INIT)
    p["norm0"] = _bn_init(next(keys), NUM_INIT)
    ch = NUM_INIT
    p["blocks"] = []
    p["transitions"] = []
    for bi, num_layers in enumerate(BLOCK_CONFIG):
        layers = []
        for li in range(num_layers):
            cin = ch + li * GROWTH
            layers.append(dict(
                norm1=_bn_init(next(keys), cin),
                conv1=_conv_init(next(keys), 1, 1, cin,
                                 BN_SIZE * GROWTH)[0, 0],          # (cin, 128)
                norm2=_bn_init(next(keys), BN_SIZE * GROWTH),
                conv2=_conv_init(next(keys), 3, 3, BN_SIZE * GROWTH, GROWTH),
            ))
        p["blocks"].append(layers)
        ch = ch + num_layers * GROWTH
        if bi != len(BLOCK_CONFIG) - 1:
            p["transitions"].append(dict(
                norm=_bn_init(next(keys), ch),
                conv=_conv_init(next(keys), 1, 1, ch, ch // 2)[0, 0],
            ))
            ch = ch // 2
    p["norm5"] = _bn_init(next(keys), ch)
    return p


def _scale_shift(bn):
    s = bn["gamma"] * lax.rsqrt(bn["var"] + BN_EPS)
    t = bn["beta"] - bn["mean"] * s
    return s, t


def _pad_vec(v, n):
    return jnp.pad(v, (0, n - v.shape[0])).reshape(1, n).astype(jnp.float32)


def prepare_params(p):
    """One-time parameter prep: fold BN to scale/shift, pad + cast weights to bf16."""
    q = {}
    k0 = 7 * 7 * 3
    w0 = p["conv0"].reshape(k0, NUM_INIT)
    q["conv0_w"] = jnp.pad(
        w0, ((0, _ru(k0, 128) - k0), (0, _ru(NUM_INIT, 128) - NUM_INIT))
    ).astype(jnp.bfloat16)
    s, t = _scale_shift(p["norm0"])
    q["norm0"] = (_pad_vec(s, _ru(NUM_INIT, 128)), _pad_vec(t, _ru(NUM_INIT, 128)))

    ch = NUM_INIT
    q["blocks"] = []
    q["transitions"] = []
    for bi, num_layers in enumerate(BLOCK_CONFIG):
        ctot = ch + num_layers * GROWTH        # always a multiple of 128
        layers = []
        for li in range(num_layers):
            cin = ch + li * GROWTH
            lp = p["blocks"][bi][li]
            s1, t1 = _scale_shift(lp["norm1"])
            s2, t2 = _scale_shift(lp["norm2"])
            w1 = jnp.pad(lp["conv1"], ((0, ctot - cin), (0, 0))).astype(jnp.bfloat16)
            w2 = lp["conv2"].reshape(9 * BN_SIZE * GROWTH, GROWTH)
            w2 = jnp.pad(w2, ((0, 0), (0, 128 - GROWTH))).astype(jnp.bfloat16)
            layers.append(dict(
                s1=_pad_vec(s1, ctot), t1=_pad_vec(t1, ctot), w1=w1,
                s2=s2.reshape(1, -1).astype(jnp.float32),
                t2=t2.reshape(1, -1).astype(jnp.float32),
                w2=w2))
        q["blocks"].append(layers)
        ch = ctot
        if bi != len(BLOCK_CONFIG) - 1:
            tp = p["transitions"][bi]
            s, t = _scale_shift(tp["norm"])
            q["transitions"].append(dict(
                s=_pad_vec(s, ctot), t=_pad_vec(t, ctot),
                w=tp["conv"].astype(jnp.bfloat16)))
            ch = ch // 2
    s, t = _scale_shift(p["norm5"])
    q["norm5"] = (s.reshape(1, -1).astype(jnp.float32),
                  t.reshape(1, -1).astype(jnp.float32))
    return q


# ------------------------------- encoder ------------------------------------

def _encoder_forward(x_nchw, q):
    """Returns [x, conv0, norm0, relu0, pool0, db1, tr1, db2, tr2, db3, tr3,
    db4, norm5], all in NCHW."""
    feats = []                                                    # NHWC
    x = jnp.transpose(x_nchw, (0, 2, 3, 1)).astype(jnp.float32)   # -> NHWC

    # conv0 (7x7 s2 p3)
    out, (B, Ho, Wo, M) = _conv_gemm(x, q["conv0_w"], 7, 7, 2, 3)
    y = out[:M, :NUM_INIT].reshape(B, Ho, Wo, NUM_INIT)
    feats.append(y)

    # norm0 / relu0 (both emitted)
    C = NUM_INIT
    Mp, Cp = _pad_rows(M), _ru(C, 128)
    y2 = jnp.pad(y.reshape(M, C), ((0, Mp - M), (0, Cp - C)))
    s0, t0 = q["norm0"]
    n0 = _bn_apply(y2, s0, t0, relu=False)
    feats.append(n0[:M, :C].reshape(B, Ho, Wo, C))
    r0 = _relu_apply(n0)
    r0v = r0[:M, :C].reshape(B, Ho, Wo, C)
    feats.append(r0v)

    # pool0 (3x3 max, s2, p1)
    x = _pool2d(r0v, 3, 2, 1, "max")
    feats.append(x)

    ch = NUM_INIT
    for bi, num_layers in enumerate(BLOCK_CONFIG):
        ctot = ch + num_layers * GROWTH
        B, H, W, _ = x.shape
        M = B * H * W
        Mp = _pad_rows(M)
        # full-channel activation buffer for this dense block (in-place growth)
        buf = jnp.zeros((Mp, ctot), jnp.float32)
        buf = buf.at[:M, :ch].set(x.reshape(M, ch))
        for li, lp in enumerate(q["blocks"][bi]):
            cin = ch + li * GROWTH
            # fused norm1 + relu1 + conv1(1x1) + norm2 + relu2
            ybn = _gemm(buf, lp["w1"], lp["s1"], lp["t1"], lp["s2"], lp["t2"])
            # conv2: 3x3 s1 p1 on the post-activation bottleneck output
            yb = ybn[:M, :BN_SIZE * GROWTH].reshape(B, H, W, BN_SIZE * GROWTH)
            new, _ = _conv_gemm(yb, lp["w2"], 3, 3, 1, 1)          # (Mp, 128)
            buf = buf.at[:, cin:cin + GROWTH].set(new[:, :GROWTH])
        feats.append(buf[:M, :ctot].reshape(B, H, W, ctot))        # denseblockN
        ch = ctot
        if bi != len(BLOCK_CONFIG) - 1:
            tp = q["transitions"][bi]
            ytr = _gemm(buf, tp["w"], tp["s"], tp["t"])            # bn+relu+1x1
            cout = ctot // 2
            ytr = ytr[:M, :cout].reshape(B, H, W, cout)
            x = _pool2d(ytr, 2, 2, 0, "avg")
            feats.append(x)                                        # transitionN
            ch = cout

    # norm5 (no relu) on the final block buffer
    s5, t5 = q["norm5"]
    n5 = _bn_apply(buf, s5, t5, relu=False)
    feats.append(n5[:M, :ch].reshape(B, H, W, ch))

    # transpose to NCHW once, at the end
    return tuple([x_nchw] + [jnp.transpose(f, (0, 3, 1, 2)) for f in feats])


encoder_forward = jax.jit(_encoder_forward)


# --------------------------------- main --------------------------------------

if __name__ == "__main__":
    key = jax.random.PRNGKey(0)
    k_param, k_x = jax.random.split(key)
    params = init_densenet169_params(k_param)
    prepared = prepare_params(params)
    x = jax.random.normal(k_x, (2, 3, 32, 32), jnp.float32)

    feats = encoder_forward(x, prepared)
    jax.block_until_ready(feats)

    # sanity: 12 feature-extractor modules + the input itself
    assert len(feats) == 13
    assert feats[0].shape == (2, 3, 32, 32)
    assert feats[1].shape == (2, 64, 16, 16)     # conv0
    assert feats[4].shape == (2, 64, 8, 8)       # pool0
    assert feats[5].shape == (2, 256, 8, 8)      # denseblock1
    assert feats[6].shape == (2, 128, 4, 4)      # transition1
    assert feats[9].shape == (2, 1280, 2, 2)     # denseblock3
    assert feats[12].shape == (2, 1664, 1, 1)    # norm5
    assert bool(jnp.all(jnp.isfinite(feats[12])))

    print("KERNEL_OK")
</pallas_src>

<mosaic_0001>
module attributes {stable_mosaic.version = 11 : i64} {
  func.func @_mm_kernel(%arg0: i32, %arg1: i32, %arg2: i32, %arg3: memref<256x256xbf16, #tpu.memory_space<vmem>>, %arg4: memref<256x128xbf16, #tpu.memory_space<vmem>>, %arg5: memref<256x128xf32, #tpu.memory_space<vmem>>, %arg6: memref<256x128xf32, #tpu.memory_space<vmem>>) attributes {dimension_semantics = [#tpu.dimension_semantics<parallel>, #tpu.dimension_semantics<parallel>, #tpu.dimension_semantics<arbitrary>], iteration_bounds = array<i64: 2, 1, 1>, scalar_prefetch = 0 : i64, scratch_operands = 1 : i64, tpu.core_type = #tpu.core_type<tc>, window_params = [{transform_indices = @transform_0, window_bounds = array<i64: 256, 256>}, {transform_indices = @transform_1, window_bounds = array<i64: 256, 128>}, {transform_indices = @transform_2, window_bounds = array<i64: 256, 128>}]} {
    %c0_i32 = arith.constant 0 : i32
    %0 = arith.cmpi eq, %arg2, %c0_i32 : i32
    %1 = arith.extui %0 : i1 to i32
    %c0_i32_0 = arith.constant 0 : i32
    %2 = arith.cmpi ne, %1, %c0_i32_0 : i32
    scf.if %2 {
      %cst_10 = arith.constant 0.000000e+00 : f32
      %12 = vector.broadcast %cst_10 : f32 to vector<256x128xf32>
      %c0_11 = arith.constant 0 : index
      %c0_12 = arith.constant 0 : index
      %13 = vector.load %arg6[%c0_11, %c0_12] : memref<256x128xf32, #tpu.memory_space<vmem>>, vector<256x128xf32>
      tpu.vector_store %arg6[%c0_11, %c0_12], %12 {strides = array<i32>} : memref<256x128xf32, #tpu.memory_space<vmem>>, vector<256x128xf32>,
    } else {
    }
    %c0 = arith.constant 0 : index
    %c0_1 = arith.constant 0 : index
    %3 = vector.load %arg6[%c0, %c0_1] : memref<256x128xf32, #tpu.memory_space<vmem>>, vector<256x128xf32>
    %c0_2 = arith.constant 0 : index
    %c0_3 = arith.constant 0 : index
    %4 = vector.load %arg3[%c0_2, %c0_3] : memref<256x256xbf16, #tpu.memory_space<vmem>>, vector<256x256xbf16>
    %c0_4 = arith.constant 0 : index
    %c0_5 = arith.constant 0 : index
    %5 = vector.load %arg4[%c0_4, %c0_5] : memref<256x128xbf16, #tpu.memory_space<vmem>>, vector<256x128xbf16>
    %cst = arith.constant dense<0.000000e+00> : vector<256x128xf32>
    %6 = tpu.matmul %4, %5, %cst {dimension_numbers = #tpu.dot_dimension_numbers<[1], [0], [0], [1], [0, 0, 1, 1], [], []>} : vector<256x256xbf16>, vector<256x128xbf16>, vector<256x128xf32> -> vector<256x128xf32>
    %7 = arith.addf %3, %6 : vector<256x128xf32>
    %c0_6 = arith.constant 0 : index
    %c0_7 = arith.constant 0 : index
    %8 = vector.load %arg6[%c0_6, %c0_7] : memref<256x128xf32, #tpu.memory_space<vmem>>, vector<256x128xf32>
    tpu.vector_store %arg6[%c0_6, %c0_7], %7 {strides = array<i32>} : memref<256x128xf32, #tpu.memory_space<vmem>>, vector<256x128xf32>,
    %c0_i32_8 = arith.constant 0 : i32
    %9 = arith.cmpi eq, %arg2, %c0_i32_8 : i32
    %10 = arith.extui %9 : i1 to i32
    %c0_i32_9 = arith.constant 0 : i32
    %11 = arith.cmpi ne, %10, %c0_i32_9 : i32
    scf.if %11 {
      %c0_10 = arith.constant 0 : index
      %c0_11 = arith.constant 0 : index
      %12 = vector.load %arg6[%c0_10, %c0_11] : memref<256x128xf32, #tpu.memory_space<vmem>>, vector<256x128xf32>
      %c0_12 = arith.constant 0 : index
      %c0_13 = arith.constant 0 : index
      %13 = vector.load %arg5[%c0_12, %c0_13] : memref<256x128xf32, #tpu.memory_space<vmem>>, vector<256x128xf32>
      tpu.vector_store %arg5[%c0_12, %c0_13], %12 {strides = array<i32>} : memref<256x128xf32, #tpu.memory_space<vmem>>, vector<256x128xf32>,
    } else {
    }
    return
  }
  func.func @transform_0(%arg0: i32, %arg1: i32, %arg2: i32) -> (i32, i32) {
    %c0_i32 = arith.constant 0 : i32
    return %arg0, %arg2 : i32, i32
  }
  func.func @transform_1(%arg0: i32, %arg1: i32, %arg2: i32) -> (i32, i32) {
    %c0_i32 = arith.constant 0 : i32
    return %arg2, %arg1 : i32, i32
  }
  func.func @transform_2(%arg0: i32, %arg1: i32, %arg2: i32) -> (i32, i32) {
    %c0_i32 = arith.constant 0 : i32
    return %arg0, %arg1 : i32, i32
  }
}

module attributes {stable_mosaic.version = 11 : i64} {
  func.func @_scale_shift_kernel(%arg0: i32, %arg1: memref<256x128xf32, #tpu.memory_space<vmem>>, %arg2: memref<1x128xf32, #tpu.memory_space<vmem>>, %arg3: memref<1x128xf32, #tpu.memory_space<vmem>>, %arg4: memref<256x128xf32, #tpu.memory_space<vmem>>) attributes {dimension_semantics = [#tpu.dimension_semantics<parallel>], iteration_bounds = array<i64: 2>, scalar_prefetch = 0 : i64, scratch_operands = 0 : i64, tpu.core_type = #tpu.core_type<tc>, window_params = [{transform_indices = @transform_0, window_bounds = array<i64: 256, 128>}, {pipeline_mode = #tpu.pipeline_mode<synchronous>, transform_indices = @transform_1, window_bounds = array<i64: 1, 128>}, {pipeline_mode = #tpu.pipeline_mode<synchronous>, transform_indices = @transform_2, window_bounds = array<i64: 1, 128>}, {transform_indices = @transform_3, window_bounds = array<i64: 256, 128>}]} {
    %c0 = arith.constant 0 : index
    %c0_0 = arith.constant 0 : index
    %0 = vector.load %arg1[%c0, %c0_0] : memref<256x128xf32, #tpu.memory_space<vmem>>, vector<256x128xf32>
    %c0_1 = arith.constant 0 : index
    %c0_2 = arith.constant 0 : index
    %1 = vector.load %arg2[%c0_1, %c0_2] : memref<1x128xf32, #tpu.memory_space<vmem>>, vector<1x128xf32>
    %2 = vector.broadcast %1 : vector<1x128xf32> to vector<256x128xf32>
    %3 = arith.mulf %0, %2 : vector<256x128xf32>
    %c0_3 = arith.constant 0 : index
    %c0_4 = arith.constant 0 : index
    %4 = vector.load %arg3[%c0_3, %c0_4] : memref<1x128xf32, #tpu.memory_space<vmem>>, vector<1x128xf32>
    %5 = vector.broadcast %4 : vector<1x128xf32> to vector<256x128xf32>
    %6 = arith.addf %3, %5 : vector<256x128xf32>
    %c0_5 = arith.constant 0 : index
    %c0_6 = arith.constant 0 : index
    %7 = vector.load %arg4[%c0_5, %c0_6] : memref<256x128xf32, #tpu.memory_space<vmem>>, vector<256x128xf32>
    tpu.vector_store %arg4[%c0_5, %c0_6], %6 {strides = array<i32>} : memref<256x128xf32, #tpu.memory_space<vmem>>, vector<256x128xf32>,
    return
  }
  func.func @transform_0(%arg0: i32) -> (i32, i32) {
    %c0_i32 = arith.constant 0 : i32
    %c0_i32_0 = arith.constant 0 : i32
    return %arg0, %c0_i32 : i32, i32
  }
  func.func @transform_1(%arg0: i32) -> (i32, i32) {
    %c0_i32 = arith.constant 0 : i32
    %c0_i32_0 = arith.constant 0 : i32
    %c0_i32_1 = arith.constant 0 : i32
    return %c0_i32, %c0_i32_0 : i32, i32
  }
  func.func @transform_2(%arg0: i32) -> (i32, i32) {
    %c0_i32 = arith.constant 0 : i32
    %c0_i32_0 = arith.constant 0 : i32
    %c0_i32_1 = arith.constant 0 : i32
    return %c0_i32, %c0_i32_0 : i32, i32
  }
  func.func @transform_3(%arg0: i32) -> (i32, i32) {
    %c0_i32 = arith.constant 0 : i32
    %c0_i32_0 = arith.constant 0 : i32
    return %arg0, %c0_i32 : i32, i32
  }
}

module attributes {stable_mosaic.version = 11 : i64} {
  func.func @_relu_kernel(%arg0: i32, %arg1: memref<256x128xf32, #tpu.memory_space<vmem>>, %arg2: memref<256x128xf32, #tpu.memory_space<vmem>>) attributes {dimension_semantics = [#tpu.dimension_semantics<parallel>], iteration_bounds = array<i64: 2>, scalar_prefetch = 0 : i64, scratch_operands = 0 : i64, tpu.core_type = #tpu.core_type<tc>, window_params = [{transform_indices = @transform_0, window_bounds = array<i64: 256, 128>}, {transform_indices = @transform_1, window_bounds = array<i64: 256, 128>}]} {
    %c0 = arith.constant 0 : index
    %c0_0 = arith.constant 0 : index
    %0 = vector.load %arg1[%c0, %c0_0] : memref<256x128xf32, #tpu.memory_space<vmem>>, vector<256x128xf32>
    %cst = arith.constant 0.000000e+00 : f32
    %1 = vector.broadcast %cst : f32 to vector<256x128xf32>
    %2 = arith.maximumf %0, %1 : vector<256x128xf32>
    %c0_1 = arith.constant 0 : index
    %c0_2 = arith.constant 0 : index
    %3 = vector.load %arg2[%c0_1, %c0_2] : memref<256x128xf32, #tpu.memory_space<vmem>>, vector<256x128xf32>
    tpu.vector_store %arg2[%c0_1, %c0_2], %2 {strides = array<i32>} : memref<256x128xf32, #tpu.memory_space<vmem>>, vector<256x128xf32>,
    return
  }
  func.func @transform_0(%arg0: i32) -> (i32, i32) {
    %c0_i32 = arith.constant 0 : i32
    %c0_i32_0 = arith.constant 0 : i32
    return %arg0, %c0_i32 : i32, i32
  }
  func.func @transform_1(%arg0: i32) -> (i32, i32) {
    %c0_i32 = arith.constant 0 : i32
    %c0_i32_0 = arith.constant 0 : i32
    return %arg0, %c0_i32 : i32, i32
  }
}

module attributes {stable_mosaic.version = 11 : i64} {
  func.func @_pool_kernel(%arg0: memref<9x128x128xf32, #tpu.memory_space<vmem>>, %arg1: memref<128x128xf32, #tpu.memory_space<vmem>>) attributes {dimension_semantics = [], scalar_prefetch = 0 : i64, scratch_operands = 0 : i64, tpu.core_type = #tpu.core_type<tc>} {
    %c0 = arith.constant 0 : index
    %c0_0 = arith.constant 0 : index
    %c0_1 = arith.constant 0 : index
    %0 = vector.load %arg0[%c0, %c0_0, %c0_1] : memref<9x128x128xf32, #tpu.memory_space<vmem>>, vector<1x128x128xf32>
    %1 = vector.shape_cast %0 : vector<1x128x128xf32> to vector<128x128xf32>
    %c1 = arith.constant 1 : index
    %c0_2 = arith.constant 0 : index
    %c0_3 = arith.constant 0 : index
    %2 = vector.load %arg0[%c1, %c0_2, %c0_3] : memref<9x128x128xf32, #tpu.memory_space<vmem>>, vector<1x128x128xf32>
    %3 = vector.shape_cast %2 : vector<1x128x128xf32> to vector<128x128xf32>
    %4 = arith.maximumf %1, %3 : vector<128x128xf32>
    %c2 = arith.constant 2 : index
    %c0_4 = arith.constant 0 : index
    %c0_5 = arith.constant 0 : index
    %5 = vector.load %arg0[%c2, %c0_4, %c0_5] : memref<9x128x128xf32, #tpu.memory_space<vmem>>, vector<1x128x128xf32>
    %6 = vector.shape_cast %5 : vector<1x128x128xf32> to vector<128x128xf32>
    %7 = arith.maximumf %4, %6 : vector<128x128xf32>
    %c3 = arith.constant 3 : index
    %c0_6 = arith.constant 0 : index
    %c0_7 = arith.constant 0 : index
    %8 = vector.load %arg0[%c3, %c0_6, %c0_7] : memref<9x128x128xf32, #tpu.memory_space<vmem>>, vector<1x128x128xf32>
    %9 = vector.shape_cast %8 : vector<1x128x128xf32> to vector<128x128xf32>
    %10 = arith.maximumf %7, %9 : vector<128x128xf32>
    %c4 = arith.constant 4 : index
    %c0_8 = arith.constant 0 : index
    %c0_9 = arith.constant 0 : index
    %11 = vector.load %arg0[%c4, %c0_8, %c0_9] : memref<9x128x128xf32, #tpu.memory_space<vmem>>, vector<1x128x128xf32>
    %12 = vector.shape_cast %11 : vector<1x128x128xf32> to vector<128x128xf32>
    %13 = arith.maximumf %10, %12 : vector<128x128xf32>
    %c5 = arith.constant 5 : index
    %c0_10 = arith.constant 0 : index
    %c0_11 = arith.constant 0 : index
    %14 = vector.load %arg0[%c5, %c0_10, %c0_11] : memref<9x128x128xf32, #tpu.memory_space<vmem>>, vector<1x128x128xf32>
    %15 = vector.shape_cast %14 : vector<1x128x128xf32> to vector<128x128xf32>
    %16 = arith.maximumf %13, %15 : vector<128x128xf32>
    %c6 = arith.constant 6 : index
    %c0_12 = arith.constant 0 : index
    %c0_13 = arith.constant 0 : index
    %17 = vector.load %arg0[%c6, %c0_12, %c0_13] : memref<9x128x128xf32, #tpu.memory_space<vmem>>, vector<1x128x128xf32>
    %18 = vector.shape_cast %17 : vector<1x128x128xf32> to vector<128x128xf32>
    %19 = arith.maximumf %16, %18 : vector<128x128xf32>
    %c7 = arith.constant 7 : index
    %c0_14 = arith.constant 0 : index
    %c0_15 = arith.constant 0 : index
    %20 = vector.load %arg0[%c7, %c0_14, %c0_15] : memref<9x128x128xf32, #tpu.memory_space<vmem>>, vector<1x128x128xf32>
    %21 = vector.shape_cast %20 : vector<1x128x128xf32> to vector<128x128xf32>
    %22 = arith.maximumf %19, %21 : vector<128x128xf32>
    %c8 = arith.constant 8 : index
    %c0_16 = arith.constant 0 : index
    %c0_17 = arith.constant 0 : index
    %23 = vector.load %arg0[%c8, %c0_16, %c0_17] : memref<9x128x128xf32, #tpu.memory_space<vmem>>, vector<1x128x128xf32>
    %24 = vector.shape_cast %23 : vector<1x128x128xf32> to vector<128x128xf32>
    %25 = arith.maximumf %22, %24 : vector<128x128xf32>
    %c0_18 = arith.constant 0 : index
    %c0_19 = arith.constant 0 : index
    %26 = vector.load %arg1[%c0_18, %c0_19] : memref<128x128xf32, #tpu.memory_space<vmem>>, vector<128x128xf32>
    tpu.vector_store %arg1[%c0_18, %c0_19], %25 {strides = array<i32>} : memref<128x128xf32, #tpu.memory_space<vmem>>, vector<128x128xf32>,
    return
  }
}

module attributes {stable_mosaic.version = 11 : i64} {
  func.func @_bnrelu_mm_bnrelu_kernel(%arg0: i32, %arg1: i32, %arg2: i32, %arg3: memref<128x256xf32, #tpu.memory_space<vmem>>, %arg4: memref<1x256xf32, #tpu.memory_space<vmem>>, %arg5: memref<1x256xf32, #tpu.memory_space<vmem>>, %arg6: memref<256x128xbf16, #tpu.memory_space<vmem>>, %arg7: memref<1x128xf32, #tpu.memory_space<vmem>>, %arg8: memref<1x128xf32, #tpu.memory_space<vmem>>, %arg9: memref<128x128xf32, #tpu.memory_space<vmem>>, %arg10: memref<128x128xf32, #tpu.memory_space<vmem>>) attributes {dimension_semantics = [#tpu.dimension_semantics<parallel>, #tpu.dimension_semantics<parallel>, #tpu.dimension_semantics<arbitrary>], iteration_bounds = array<i64: 1, 1, 1>, scalar_prefetch = 0 : i64, scratch_operands = 1 : i64, tpu.core_type = #tpu.core_type<tc>, window_params = [{transform_indices = @transform_0, window_bounds = array<i64: 128, 256>}, {transform_indices = @transform_1, window_bounds = array<i64: 1, 256>}, {transform_indices = @transform_2, window_bounds = array<i64: 1, 256>}, {transform_indices = @transform_3, window_bounds = array<i64: 256, 128>}, {transform_indices = @transform_4, window_bounds = array<i64: 1, 128>}, {transform_indices = @transform_5, window_bounds = array<i64: 1, 128>}, {transform_indices = @transform_6, window_bounds = array<i64: 128, 128>}]} {
    %c0_i32 = arith.constant 0 : i32
    %0 = arith.cmpi eq, %arg2, %c0_i32 : i32
    %1 = arith.extui %0 : i1 to i32
    %c0_i32_0 = arith.constant 0 : i32
    %2 = arith.cmpi ne, %1, %c0_i32_0 : i32
    scf.if %2 {
      %cst_15 = arith.constant 0.000000e+00 : f32
      %21 = vector.broadcast %cst_15 : f32 to vector<128x128xf32>
      %c0_16 = arith.constant 0 : index
      %c0_17 = arith.constant 0 : index
      %22 = vector.load %arg10[%c0_16, %c0_17] : memref<128x128xf32, #tpu.memory_space<vmem>>, vector<128x128xf32>
      tpu.vector_store %arg10[%c0_16, %c0_17], %21 {strides = array<i32>} : memref<128x128xf32, #tpu.memory_space<vmem>>, vector<128x128xf32>,
    } else {
    }
    %c0 = arith.constant 0 : index
    %c0_1 = arith.constant 0 : index
    %3 = vector.load %arg3[%c0, %c0_1] : memref<128x256xf32, #tpu.memory_space<vmem>>, vector<128x256xf32>
    %c0_2 = arith.constant 0 : index
    %c0_3 = arith.constant 0 : index
    %4 = vector.load %arg4[%c0_2, %c0_3] : memref<1x256xf32, #tpu.memory_space<vmem>>, vector<1x256xf32>
    %5 = vector.broadcast %4 : vector<1x256xf32> to vector<128x256xf32>
    %6 = arith.mulf %3, %5 : vector<128x256xf32>
    %c0_4 = arith.constant 0 : index
    %c0_5 = arith.constant 0 : index
    %7 = vector.load %arg5[%c0_4, %c0_5] : memref<1x256xf32, #tpu.memory_space<vmem>>, vector<1x256xf32>
    %8 = vector.broadcast %7 : vector<1x256xf32> to vector<128x256xf32>
    %9 = arith.addf %6, %8 : vector<128x256xf32>
    %cst = arith.constant 0.000000e+00 : f32
    %10 = vector.broadcast %cst : f32 to vector<128x256xf32>
    %11 = arith.maximumf %9, %10 : vector<128x256xf32>
    %c0_6 = arith.constant 0 : index
    %c0_7 = arith.constant 0 : index
    %12 = vector.load %arg10[%c0_6, %c0_7] : memref<128x128xf32, #tpu.memory_space<vmem>>, vector<128x128xf32>
    %13 = arith.truncf %11 : vector<128x256xf32> to vector<128x256xbf16>
    %c0_8 = arith.constant 0 : index
    %c0_9 = arith.constant 0 : index
    %14 = vector.load %arg6[%c0_8, %c0_9] : memref<256x128xbf16, #tpu.memory_space<vmem>>, vector<256x128xbf16>
    %cst_10 = arith.constant dense<0.000000e+00> : vector<128x128xf32>
    %15 = tpu.matmul %13, %14, %cst_10 {dimension_numbers = #tpu.dot_dimension_numbers<[1], [0], [0], [1], [0, 0, 1, 1], [], []>} : vector<128x256xbf16>, vector<256x128xbf16>, vector<128x128xf32> -> vector<128x128xf32>
    %16 = arith.addf %12, %15 : vector<128x128xf32>
    %c0_11 = arith.constant 0 : index
    %c0_12 = arith.constant 0 : index
    %17 = vector.load %arg10[%c0_11, %c0_12] : memref<128x128xf32, #tpu.memory_space<vmem>>, vector<128x128xf32>
    tpu.vector_store %arg10[%c0_11, %c0_12], %16 {strides = array<i32>} : memref<128x128xf32, #tpu.memory_space<vmem>>, vector<128x128xf32>,
    %c0_i32_13 = arith.constant 0 : i32
    %18 = arith.cmpi eq, %arg2, %c0_i32_13 : i32
    %19 = arith.extui %18 : i1 to i32
    %c0_i32_14 = arith.constant 0 : i32
    %20 = arith.cmpi ne, %19, %c0_i32_14 : i32
    scf.if %20 {
      %c0_15 = arith.constant 0 : index
      %c0_16 = arith.constant 0 : index
      %21 = vector.load %arg10[%c0_15, %c0_16] : memref<128x128xf32, #tpu.memory_space<vmem>>, vector<128x128xf32>
      %c0_17 = arith.constant 0 : index
      %c0_18 = arith.constant 0 : index
      %22 = vector.load %arg7[%c0_17, %c0_18] : memref<1x128xf32, #tpu.memory_space<vmem>>, vector<1x128xf32>
      %23 = vector.broadcast %22 : vector<1x128xf32> to vector<128x128xf32>
      %24 = arith.mulf %21, %23 : vector<128x128xf32>
      %c0_19 = arith.constant 0 : index
      %c0_20 = arith.constant 0 : index
      %25 = vector.load %arg8[%c0_19, %c0_20] : memref<1x128xf32, #tpu.memory_space<vmem>>, vector<1x128xf32>
      %26 = vector.broadcast %25 : vector<1x128xf32> to vector<128x128xf32>
      %27 = arith.addf %24, %26 : vector<128x128xf32>
      %cst_21 = arith.constant 0.000000e+00 : f32
      %28 = vector.broadcast %cst_21 : f32 to vector<128x128xf32>
      %29 = arith.maximumf %27, %28 : vector<128x128xf32>
      %c0_22 = arith.constant 0 : index
      %c0_23 = arith.constant 0 : index
      %30 = vector.load %arg9[%c0_22, %c0_23] : memref<128x128xf32, #tpu.memory_space<vmem>>, vector<128x128xf32>
      tpu.vector_store %arg9[%c0_22, %c0_23], %29 {strides = array<i32>} : memref<128x128xf32, #tpu.memory_space<vmem>>, vector<128x128xf32>,
    } else {
    }
    return
  }
  func.func @transform_0(%arg0: i32, %arg1: i32, %arg2: i32) -> (i32, i32) {
    %c0_i32 = arith.constant 0 : i32
    return %arg0, %arg2 : i32, i32
  }
  func.func @transform_1(%arg0: i32, %arg1: i32, %arg2: i32) -> (i32, i32) {
    %c0_i32 = arith.constant 0 : i32
    %c0_i32_0 = arith.constant 0 : i32
    return %c0_i32, %arg2 : i32, i32
  }
  func.func @transform_2(%arg0: i32, %arg1: i32, %arg2: i32) -> (i32, i32) {
    %c0_i32 = arith.constant 0 : i32
    %c0_i32_0 = arith.constant 0 : i32
    return %c0_i32, %arg2 : i32, i32
  }
  func.func @transform_3(%arg0: i32, %arg1: i32, %arg2: i32) -> (i32, i32) {
    %c0_i32 = arith.constant 0 : i32
    return %arg2, %arg1 : i32, i32
  }
  func.func @transform_4(%arg0: i32, %arg1: i32, %arg2: i32) -> (i32, i32) {
    %c0_i32 = arith.constant 0 : i32
    %c0_i32_0 = arith.constant 0 : i32
    return %c0_i32, %arg1 : i32, i32
  }
  func.func @transform_5(%arg0: i32, %arg1: i32, %arg2: i32) -> (i32, i32) {
    %c0_i32 = arith.constant 0 : i32
    %c0_i32_0 = arith.constant 0 : i32
    return %c0_i32, %arg1 : i32, i32
  }
  func.func @transform_6(%arg0: i32, %arg1: i32, %arg2: i32) -> (i32, i32) {
    %c0_i32 = arith.constant 0 : i32
    return %arg0, %arg1 : i32, i32
  }
}

module attributes {stable_mosaic.version = 11 : i64} {
  func.func @_mm_kernel(%arg0: i32, %arg1: i32, %arg2: i32, %arg3: memref<128x128xbf16, #tpu.memory_space<vmem>>, %arg4: memref<128x128xbf16, #tpu.memory_space<vmem>>, %arg5: memref<128x128xf32, #tpu.memory_space<vmem>>, %arg6: memref<128x128xf32, #tpu.memory_space<vmem>>) attributes {dimension_semantics = [#tpu.dimension_semantics<parallel>, #tpu.dimension_semantics<parallel>, #tpu.dimension_semantics<arbitrary>], iteration_bounds = array<i64: 1, 1, 9>, scalar_prefetch = 0 : i64, scratch_operands = 1 : i64, tpu.core_type = #tpu.core_type<tc>, window_params = [{transform_indices = @transform_0, window_bounds = array<i64: 128, 128>}, {transform_indices = @transform_1, window_bounds = array<i64: 128, 128>}, {transform_indices = @transform_2, window_bounds = array<i64: 128, 128>}]} {
    %c0_i32 = arith.constant 0 : i32
    %0 = arith.cmpi eq, %arg2, %c0_i32 : i32
    %1 = arith.extui %0 : i1 to i32
    %c0_i32_0 = arith.constant 0 : i32
    %2 = arith.cmpi ne, %1, %c0_i32_0 : i32
    scf.if %2 {
      %cst_9 = arith.constant 0.000000e+00 : f32
      %12 = vector.broadcast %cst_9 : f32 to vector<128x128xf32>
      %c0_10 = arith.constant 0 : index
      %c0_11 = arith.constant 0 : index
      %13 = vector.load %arg6[%c0_10, %c0_11] : memref<128x128xf32, #tpu.memory_space<vmem>>, vector<128x128xf32>
      tpu.vector_store %arg6[%c0_10, %c0_11], %12 {strides = array<i32>} : memref<128x128xf32, #tpu.memory_space<vmem>>, vector<128x128xf32>,
    } else {
    }
    %c0 = arith.constant 0 : index
    %c0_1 = arith.constant 0 : index
    %3 = vector.load %arg6[%c0, %c0_1] : memref<128x128xf32, #tpu.memory_space<vmem>>, vector<128x128xf32>
    %c0_2 = arith.constant 0 : index
    %c0_3 = arith.constant 0 : index
    %4 = vector.load %arg3[%c0_2, %c0_3] : memref<128x128xbf16, #tpu.memory_space<vmem>>, vector<128x128xbf16>
    %c0_4 = arith.constant 0 : index
    %c0_5 = arith.constant 0 : index
    %5 = vector.load %arg4[%c0_4, %c0_5] : memref<128x128xbf16, #tpu.memory_space<vmem>>, vector<128x128xbf16>
    %cst = arith.constant dense<0.000000e+00> : vector<128x128xf32>
    %6 = tpu.matmul %4, %5, %cst {dimension_numbers = #tpu.dot_dimension_numbers<[1], [0], [0], [1], [0, 0, 1, 1], [], []>} : vector<128x128xbf16>, vector<128x128xbf16>, vector<128x128xf32> -> vector<128x128xf32>
    %7 = arith.addf %3, %6 : vector<128x128xf32>
    %c0_6 = arith.constant 0 : index
    %c0_7 = arith.constant 0 : index
    %8 = vector.load %arg6[%c0_6, %c0_7] : memref<128x128xf32, #tpu.memory_space<vmem>>, vector<128x128xf32>
    tpu.vector_store %arg6[%c0_6, %c0_7], %7 {strides = array<i32>} : memref<128x128xf32, #tpu.memory_space<vmem>>, vector<128x128xf32>,
    %c8_i32 = arith.constant 8 : i32
    %9 = arith.cmpi eq, %arg2, %c8_i32 : i32
    %10 = arith.extui %9 : i1 to i32
    %c0_i32_8 = arith.constant 0 : i32
    %11 = arith.cmpi ne, %10, %c0_i32_8 : i32
    scf.if %11 {
      %c0_9 = arith.constant 0 : index
      %c0_10 = arith.constant 0 : index
      %12 = vector.load %arg6[%c0_9, %c0_10] : memref<128x128xf32, #tpu.memory_space<vmem>>, vector<128x128xf32>
      %c0_11 = arith.constant 0 : index
      %c0_12 = arith.constant 0 : index
      %13 = vector.load %arg5[%c0_11, %c0_12] : memref<128x128xf32, #tpu.memory_space<vmem>>, vector<128x128xf32>
      tpu.vector_store %arg5[%c0_11, %c0_12], %12 {strides = array<i32>} : memref<128x128xf32, #tpu.memory_space<vmem>>, vector<128x128xf32>,
    } else {
    }
    return
  }
  func.func @transform_0(%arg0: i32, %arg1: i32, %arg2: i32) -> (i32, i32) {
    %c0_i32 = arith.constant 0 : i32
    return %arg0, %arg2 : i32, i32
  }
  func.func @transform_1(%arg0: i32, %arg1: i32, %arg2: i32) -> (i32, i32) {
    %c0_i32 = arith.constant 0 : i32
    return %arg2, %arg1 : i32, i32
  }
  func.func @transform_2(%arg0: i32, %arg1: i32, %arg2: i32) -> (i32, i32) {
    %c0_i32 = arith.constant 0 : i32
    return %arg0, %arg1 : i32, i32
  }
}

module attributes {stable_mosaic.version = 11 : i64} {
  func.func @_bnrelu_mm_kernel(%arg0: i32, %arg1: i32, %arg2: i32, %arg3: memref<128x256xf32, #tpu.memory_space<vmem>>, %arg4: memref<1x256xf32, #tpu.memory_space<vmem>>, %arg5: memref<1x256xf32, #tpu.memory_space<vmem>>, %arg6: memref<256x128xbf16, #tpu.memory_space<vmem>>, %arg7: memref<128x128xf32, #tpu.memory_space<vmem>>, %arg8: memref<128x128xf32, #tpu.memory_space<vmem>>) attributes {dimension_semantics = [#tpu.dimension_semantics<parallel>, #tpu.dimension_semantics<parallel>, #tpu.dimension_semantics<arbitrary>], iteration_bounds = array<i64: 1, 1, 1>, scalar_prefetch = 0 : i64, scratch_operands = 1 : i64, tpu.core_type = #tpu.core_type<tc>, window_params = [{transform_indices = @transform_0, window_bounds = array<i64: 128, 256>}, {transform_indices = @transform_1, window_bounds = array<i64: 1, 256>}, {transform_indices = @transform_2, window_bounds = array<i64: 1, 256>}, {transform_indices = @transform_3, window_bounds = array<i64: 256, 128>}, {transform_indices = @transform_4, window_bounds = array<i64: 128, 128>}]} {
    %c0_i32 = arith.constant 0 : i32
    %0 = arith.cmpi eq, %arg2, %c0_i32 : i32
    %1 = arith.extui %0 : i1 to i32
    %c0_i32_0 = arith.constant 0 : i32
    %2 = arith.cmpi ne, %1, %c0_i32_0 : i32
    scf.if %2 {
      %cst_15 = arith.constant 0.000000e+00 : f32
      %21 = vector.broadcast %cst_15 : f32 to vector<128x128xf32>
      %c0_16 = arith.constant 0 : index
      %c0_17 = arith.constant 0 : index
      %22 = vector.load %arg8[%c0_16, %c0_17] : memref<128x128xf32, #tpu.memory_space<vmem>>, vector<128x128xf32>
      tpu.vector_store %arg8[%c0_16, %c0_17], %21 {strides = array<i32>} : memref<128x128xf32, #tpu.memory_space<vmem>>, vector<128x128xf32>,
    } else {
    }
    %c0 = arith.constant 0 : index
    %c0_1 = arith.constant 0 : index
    %3 = vector.load %arg3[%c0, %c0_1] : memref<128x256xf32, #tpu.memory_space<vmem>>, vector<128x256xf32>
    %c0_2 = arith.constant 0 : index
    %c0_3 = arith.constant 0 : index
    %4 = vector.load %arg4[%c0_2, %c0_3] : memref<1x256xf32, #tpu.memory_space<vmem>>, vector<1x256xf32>
    %5 = vector.broadcast %4 : vector<1x256xf32> to vector<128x256xf32>
    %6 = arith.mulf %3, %5 : vector<128x256xf32>
    %c0_4 = arith.constant 0 : index
    %c0_5 = arith.constant 0 : index
    %7 = vector.load %arg5[%c0_4, %c0_5] : memref<1x256xf32, #tpu.memory_space<vmem>>, vector<1x256xf32>
    %8 = vector.broadcast %7 : vector<1x256xf32> to vector<128x256xf32>
    %9 = arith.addf %6, %8 : vector<128x256xf32>
    %cst = arith.constant 0.000000e+00 : f32
    %10 = vector.broadcast %cst : f32 to vector<128x256xf32>
    %11 = arith.maximumf %9, %10 : vector<128x256xf32>
    %c0_6 = arith.constant 0 : index
    %c0_7 = arith.constant 0 : index
    %12 = vector.load %arg8[%c0_6, %c0_7] : memref<128x128xf32, #tpu.memory_space<vmem>>, vector<128x128xf32>
    %13 = arith.truncf %11 : vector<128x256xf32> to vector<128x256xbf16>
    %c0_8 = arith.constant 0 : index
    %c0_9 = arith.constant 0 : index
    %14 = vector.load %arg6[%c0_8, %c0_9] : memref<256x128xbf16, #tpu.memory_space<vmem>>, vector<256x128xbf16>
    %cst_10 = arith.constant dense<0.000000e+00> : vector<128x128xf32>
    %15 = tpu.matmul %13, %14, %cst_10 {dimension_numbers = #tpu.dot_dimension_numbers<[1], [0], [0], [1], [0, 0, 1, 1], [], []>} : vector<128x256xbf16>, vector<256x128xbf16>, vector<128x128xf32> -> vector<128x128xf32>
    %16 = arith.addf %12, %15 : vector<128x128xf32>
    %c0_11 = arith.constant 0 : index
    %c0_12 = arith.constant 0 : index
    %17 = vector.load %arg8[%c0_11, %c0_12] : memref<128x128xf32, #tpu.memory_space<vmem>>, vector<128x128xf32>
    tpu.vector_store %arg8[%c0_11, %c0_12], %16 {strides = array<i32>} : memref<128x128xf32, #tpu.memory_space<vmem>>, vector<128x128xf32>,
    %c0_i32_13 = arith.constant 0 : i32
    %18 = arith.cmpi eq, %arg2, %c0_i32_13 : i32
    %19 = arith.extui %18 : i1 to i32
    %c0_i32_14 = arith.constant 0 : i32
    %20 = arith.cmpi ne, %19, %c0_i32_14 : i32
    scf.if %20 {
      %c0_15 = arith.constant 0 : index
      %c0_16 = arith.constant 0 : index
      %21 = vector.load %arg8[%c0_15, %c0_16] : memref<128x128xf32, #tpu.memory_space<vmem>>, vector<128x128xf32>
      %c0_17 = arith.constant 0 : index
      %c0_18 = arith.constant 0 : index
      %22 = vector.load %arg7[%c0_17, %c0_18] : memref<128x128xf32, #tpu.memory_space<vmem>>, vector<128x128xf32>
      tpu.vector_store %arg7[%c0_17, %c0_18], %21 {strides = array<i32>} : memref<128x128xf32, #tpu.memory_space<vmem>>, vector<128x128xf32>,
    } else {
    }
    return
  }
  func.func @transform_0(%arg0: i32, %arg1: i32, %arg2: i32) -> (i32, i32) {
    %c0_i32 = arith.constant 0 : i32
    return %arg0, %arg2 : i32, i32
  }
  func.func @transform_1(%arg0: i32, %arg1: i32, %arg2: i32) -> (i32, i32) {
    %c0_i32 = arith.constant 0 : i32
    %c0_i32_0 = arith.constant 0 : i32
    return %c0_i32, %arg2 : i32, i32
  }
  func.func @transform_2(%arg0: i32, %arg1: i32, %arg2: i32) -> (i32, i32) {
    %c0_i32 = arith.constant 0 : i32
    %c0_i32_0 = arith.constant 0 : i32
    return %c0_i32, %arg2 : i32, i32
  }
  func.func @transform_3(%arg0: i32, %arg1: i32, %arg2: i32) -> (i32, i32) {
    %c0_i32 = arith.constant 0 : i32
    return %arg2, %arg1 : i32, i32
  }
  func.func @transform_4(%arg0: i32, %arg1: i32, %arg2: i32) -> (i32, i32) {
    %c0_i32 = arith.constant 0 : i32
    return %arg0, %arg1 : i32, i32
  }
}

module attributes {stable_mosaic.version = 11 : i64} {
  func.func @_pool_kernel(%arg0: memref<4x32x128xf32, #tpu.memory_space<vmem>>, %arg1: memref<32x128xf32, #tpu.memory_space<vmem>>) attributes {dimension_semantics = [], scalar_prefetch = 0 : i64, scratch_operands = 0 : i64, tpu.core_type = #tpu.core_type<tc>} {
    %c0 = arith.constant 0 : index
    %c0_0 = arith.constant 0 : index
    %c0_1 = arith.constant 0 : index
    %0 = vector.load %arg0[%c0, %c0_0, %c0_1] : memref<4x32x128xf32, #tpu.memory_space<vmem>>, vector<1x32x128xf32>
    %1 = vector.shape_cast %0 : vector<1x32x128xf32> to vector<32x128xf32>
    %c1 = arith.constant 1 : index
    %c0_2 = arith.constant 0 : index
    %c0_3 = arith.constant 0 : index
    %2 = vector.load %arg0[%c1, %c0_2, %c0_3] : memref<4x32x128xf32, #tpu.memory_space<vmem>>, vector<1x32x128xf32>
    %3 = vector.shape_cast %2 : vector<1x32x128xf32> to vector<32x128xf32>
    %4 = arith.addf %1, %3 : vector<32x128xf32>
    %c2 = arith.constant 2 : index
    %c0_4 = arith.constant 0 : index
    %c0_5 = arith.constant 0 : index
    %5 = vector.load %arg0[%c2, %c0_4, %c0_5] : memref<4x32x128xf32, #tpu.memory_space<vmem>>, vector<1x32x128xf32>
    %6 = vector.shape_cast %5 : vector<1x32x128xf32> to vector<32x128xf32>
    %7 = arith.addf %4, %6 : vector<32x128xf32>
    %c3 = arith.constant 3 : index
    %c0_6 = arith.constant 0 : index
    %c0_7 = arith.constant 0 : index
    %8 = vector.load %arg0[%c3, %c0_6, %c0_7] : memref<4x32x128xf32, #tpu.memory_space<vmem>>, vector<1x32x128xf32>
    %9 = vector.shape_cast %8 : vector<1x32x128xf32> to vector<32x128xf32>
    %10 = arith.addf %7, %9 : vector<32x128xf32>
    %cst = arith.constant 2.500000e-01 : f32
    %11 = vector.broadcast %cst : f32 to vector<32x128xf32>
    %12 = arith.mulf %10, %11 : vector<32x128xf32>
    %c0_8 = arith.constant 0 : index
    %c0_9 = arith.constant 0 : index
    %13 = vector.load %arg1[%c0_8, %c0_9] : memref<32x128xf32, #tpu.memory_space<vmem>>, vector<32x128xf32>
    tpu.vector_store %arg1[%c0_8, %c0_9], %12 {strides = array<i32>} : memref<32x128xf32, #tpu.memory_space<vmem>>, vector<32x128xf32>,
    return
  }
}

module attributes {stable_mosaic.version = 11 : i64} {
  func.func @_bnrelu_mm_bnrelu_kernel(%arg0: i32, %arg1: i32, %arg2: i32, %arg3: memref<32x256xf32, #tpu.memory_space<vmem>>, %arg4: memref<1x256xf32, #tpu.memory_space<vmem>>, %arg5: memref<1x256xf32, #tpu.memory_space<vmem>>, %arg6: memref<256x128xbf16, #tpu.memory_space<vmem>>, %arg7: memref<1x128xf32, #tpu.memory_space<vmem>>, %arg8: memref<1x128xf32, #tpu.memory_space<vmem>>, %arg9: memref<32x128xf32, #tpu.memory_space<vmem>>, %arg10: memref<32x128xf32, #tpu.memory_space<vmem>>) attributes {dimension_semantics = [#tpu.dimension_semantics<parallel>, #tpu.dimension_semantics<parallel>, #tpu.dimension_semantics<arbitrary>], iteration_bounds = array<i64: 1, 1, 2>, scalar_prefetch = 0 : i64, scratch_operands = 1 : i64, tpu.core_type = #tpu.core_type<tc>, window_params = [{transform_indices = @transform_0, window_bounds = array<i64: 32, 256>}, {transform_indices = @transform_1, window_bounds = array<i64: 1, 256>}, {transform_indices = @transform_2, window_bounds = array<i64: 1, 256>}, {transform_indices = @transform_3, window_bounds = array<i64: 256, 128>}, {transform_indices = @transform_4, window_bounds = array<i64: 1, 128>}, {transform_indices = @transform_5, window_bounds = array<i64: 1, 128>}, {transform_indices = @transform_6, window_bounds = array<i64: 32, 128>}]} {
    %c0_i32 = arith.constant 0 : i32
    %0 = arith.cmpi eq, %arg2, %c0_i32 : i32
    %1 = arith.extui %0 : i1 to i32
    %c0_i32_0 = arith.constant 0 : i32
    %2 = arith.cmpi ne, %1, %c0_i32_0 : i32
    scf.if %2 {
      %cst_14 = arith.constant 0.000000e+00 : f32
      %21 = vector.broadcast %cst_14 : f32 to vector<32x128xf32>
      %c0_15 = arith.constant 0 : index
      %c0_16 = arith.constant 0 : index
      %22 = vector.load %arg10[%c0_15, %c0_16] : memref<32x128xf32, #tpu.memory_space<vmem>>, vector<32x128xf32>
      tpu.vector_store %arg10[%c0_15, %c0_16], %21 {strides = array<i32>} : memref<32x128xf32, #tpu.memory_space<vmem>>, vector<32x128xf32>,
    } else {
    }
    %c0 = arith.constant 0 : index
    %c0_1 = arith.constant 0 : index
    %3 = vector.load %arg3[%c0, %c0_1] : memref<32x256xf32, #tpu.memory_space<vmem>>, vector<32x256xf32>
    %c0_2 = arith.constant 0 : index
    %c0_3 = arith.constant 0 : index
    %4 = vector.load %arg4[%c0_2, %c0_3] : memref<1x256xf32, #tpu.memory_space<vmem>>, vector<1x256xf32>
    %5 = vector.broadcast %4 : vector<1x256xf32> to vector<32x256xf32>
    %6 = arith.mulf %3, %5 : vector<32x256xf32>
    %c0_4 = arith.constant 0 : index
    %c0_5 = arith.constant 0 : index
    %7 = vector.load %arg5[%c0_4, %c0_5] : memref<1x256xf32, #tpu.memory_space<vmem>>, vector<1x256xf32>
    %8 = vector.broadcast %7 : vector<1x256xf32> to vector<32x256xf32>
    %9 = arith.addf %6, %8 : vector<32x256xf32>
    %cst = arith.constant 0.000000e+00 : f32
    %10 = vector.broadcast %cst : f32 to vector<32x256xf32>
    %11 = arith.maximumf %9, %10 : vector<32x256xf32>
    %c0_6 = arith.constant 0 : index
    %c0_7 = arith.constant 0 : index
    %12 = vector.load %arg10[%c0_6, %c0_7] : memref<32x128xf32, #tpu.memory_space<vmem>>, vector<32x128xf32>
    %13 = arith.truncf %11 : vector<32x256xf32> to vector<32x256xbf16>
    %c0_8 = arith.constant 0 : index
    %c0_9 = arith.constant 0 : index
    %14 = vector.load %arg6[%c0_8, %c0_9] : memref<256x128xbf16, #tpu.memory_space<vmem>>, vector<256x128xbf16>
    %cst_10 = arith.constant dense<0.000000e+00> : vector<32x128xf32>
    %15 = tpu.matmul %13, %14, %cst_10 {dimension_numbers = #tpu.dot_dimension_numbers<[1], [0], [0], [1], [0, 0, 1, 1], [], []>} : vector<32x256xbf16>, vector<256x128xbf16>, vector<32x128xf32> -> vector<32x128xf32>
    %16 = arith.addf %12, %15 : vector<32x128xf32>
    %c0_11 = arith.constant 0 : index
    %c0_12 = arith.constant 0 : index
    %17 = vector.load %arg10[%c0_11, %c0_12] : memref<32x128xf32, #tpu.memory_space<vmem>>, vector<32x128xf32>
    tpu.vector_store %arg10[%c0_11, %c0_12], %16 {strides = array<i32>} : memref<32x128xf32, #tpu.memory_space<vmem>>, vector<32x128xf32>,
    %c1_i32 = arith.constant 1 : i32
    %18 = arith.cmpi eq, %arg2, %c1_i32 : i32
    %19 = arith.extui %18 : i1 to i32
    %c0_i32_13 = arith.constant 0 : i32
    %20 = arith.cmpi ne, %19, %c0_i32_13 : i32
    scf.if %20 {
      %c0_14 = arith.constant 0 : index
      %c0_15 = arith.constant 0 : index
      %21 = vector.load %arg10[%c0_14, %c0_15] : memref<32x128xf32, #tpu.memory_space<vmem>>, vector<32x128xf32>
      %c0_16 = arith.constant 0 : index
      %c0_17 = arith.constant 0 : index
      %22 = vector.load %arg7[%c0_16, %c0_17] : memref<1x128xf32, #tpu.memory_space<vmem>>, vector<1x128xf32>
      %23 = vector.broadcast %22 : vector<1x128xf32> to vector<32x128xf32>
      %24 = arith.mulf %21, %23 : vector<32x128xf32>
      %c0_18 = arith.constant 0 : index
      %c0_19 = arith.constant 0 : index
      %25 = vector.load %arg8[%c0_18, %c0_19] : memref<1x128xf32, #tpu.memory_space<vmem>>, vector<1x128xf32>
      %26 = vector.broadcast %25 : vector<1x128xf32> to vector<32x128xf32>
      %27 = arith.addf %24, %26 : vector<32x128xf32>
      %cst_20 = arith.constant 0.000000e+00 : f32
      %28 = vector.broadcast %cst_20 : f32 to vector<32x128xf32>
      %29 = arith.maximumf %27, %28 : vector<32x128xf32>
      %c0_21 = arith.constant 0 : index
      %c0_22 = arith.constant 0 : index
      %30 = vector.load %arg9[%c0_21, %c0_22] : memref<32x128xf32, #tpu.memory_space<vmem>>, vector<32x128xf32>
      tpu.vector_store %arg9[%c0_21, %c0_22], %29 {strides = array<i32>} : memref<32x128xf32, #tpu.memory_space<vmem>>, vector<32x128xf32>,
    } else {
    }
    return
  }
  func.func @transform_0(%arg0: i32, %arg1: i32, %arg2: i32) -> (i32, i32) {
    %c0_i32 = arith.constant 0 : i32
    return %arg0, %arg2 : i32, i32
  }
  func.func @transform_1(%arg0: i32, %arg1: i32, %arg2: i32) -> (i32, i32) {
    %c0_i32 = arith.constant 0 : i32
    %c0_i32_0 = arith.constant 0 : i32
    return %c0_i32, %arg2 : i32, i32
  }
  func.func @transform_2(%arg0: i32, %arg1: i32, %arg2: i32) -> (i32, i32) {
    %c0_i32 = arith.constant 0 : i32
    %c0_i32_0 = arith.constant 0 : i32
    return %c0_i32, %arg2 : i32, i32
  }
  func.func @transform_3(%arg0: i32, %arg1: i32, %arg2: i32) -> (i32, i32) {
    %c0_i32 = arith.constant 0 : i32
    return %arg2, %arg1 : i32, i32
  }
  func.func @transform_4(%arg0: i32, %arg1: i32, %arg2: i32) -> (i32, i32) {
    %c0_i32 = arith.constant 0 : i32
    %c0_i32_0 = arith.constant 0 : i32
    return %c0_i32, %arg1 : i32, i32
  }
  func.func @transform_5(%arg0: i32, %arg1: i32, %arg2: i32) -> (i32, i32) {
    %c0_i32 = arith.constant 0 : i32
    %c0_i32_0 = arith.constant 0 : i32
    return %c0_i32, %arg1 : i32, i32
  }
  func.func @transform_6(%arg0: i32, %arg1: i32, %arg2: i32) -> (i32, i32) {
    %c0_i32 = arith.constant 0 : i32
    return %arg0, %arg1 : i32, i32
  }
}

module attributes {stable_mosaic.version = 11 : i64} {
  func.func @_mm_kernel(%arg0: i32, %arg1: i32, %arg2: i32, %arg3: memref<32x128xbf16, #tpu.memory_space<vmem>>, %arg4: memref<128x128xbf16, #tpu.memory_space<vmem>>, %arg5: memref<32x128xf32, #tpu.memory_space<vmem>>, %arg6: memref<32x128xf32, #tpu.memory_space<vmem>>) attributes {dimension_semantics = [#tpu.dimension_semantics<parallel>, #tpu.dimension_semantics<parallel>, #tpu.dimension_semantics<arbitrary>], iteration_bounds = array<i64: 1, 1, 9>, scalar_prefetch = 0 : i64, scratch_operands = 1 : i64, tpu.core_type = #tpu.core_type<tc>, window_params = [{transform_indices = @transform_0, window_bounds = array<i64: 32, 128>}, {transform_indices = @transform_1, window_bounds = array<i64: 128, 128>}, {transform_indices = @transform_2, window_bounds = array<i64: 32, 128>}]} {
    %c0_i32 = arith.constant 0 : i32
    %0 = arith.cmpi eq, %arg2, %c0_i32 : i32
    %1 = arith.extui %0 : i1 to i32
    %c0_i32_0 = arith.constant 0 : i32
    %2 = arith.cmpi ne, %1, %c0_i32_0 : i32
    scf.if %2 {
      %cst_9 = arith.constant 0.000000e+00 : f32
      %12 = vector.broadcast %cst_9 : f32 to vector<32x128xf32>
      %c0_10 = arith.constant 0 : index
      %c0_11 = arith.constant 0 : index
      %13 = vector.load %arg6[%c0_10, %c0_11] : memref<32x128xf32, #tpu.memory_space<vmem>>, vector<32x128xf32>
      tpu.vector_store %arg6[%c0_10, %c0_11], %12 {strides = array<i32>} : memref<32x128xf32, #tpu.memory_space<vmem>>, vector<32x128xf32>,
    } else {
    }
    %c0 = arith.constant 0 : index
    %c0_1 = arith.constant 0 : index
    %3 = vector.load %arg6[%c0, %c0_1] : memref<32x128xf32, #tpu.memory_space<vmem>>, vector<32x128xf32>
    %c0_2 = arith.constant 0 : index
    %c0_3 = arith.constant 0 : index
    %4 = vector.load %arg3[%c0_2, %c0_3] : memref<32x128xbf16, #tpu.memory_space<vmem>>, vector<32x128xbf16>
    %c0_4 = arith.constant 0 : index
    %c0_5 = arith.constant 0 : index
    %5 = vector.load %arg4[%c0_4, %c0_5] : memref<128x128xbf16, #tpu.memory_space<vmem>>, vector<128x128xbf16>
    %cst = arith.constant dense<0.000000e+00> : vector<32x128xf32>
    %6 = tpu.matmul %4, %5, %cst {dimension_numbers = #tpu.dot_dimension_numbers<[1], [0], [0], [1], [0, 0, 1, 1], [], []>} : vector<32x128xbf16>, vector<128x128xbf16>, vector<32x128xf32> -> vector<32x128xf32>
    %7 = arith.addf %3, %6 : vector<32x128xf32>
    %c0_6 = arith.constant 0 : index
    %c0_7 = arith.constant 0 : index
    %8 = vector.load %arg6[%c0_6, %c0_7] : memref<32x128xf32, #tpu.memory_space<vmem>>, vector<32x128xf32>
    tpu.vector_store %arg6[%c0_6, %c0_7], %7 {strides = array<i32>} : memref<32x128xf32, #tpu.memory_space<vmem>>, vector<32x128xf32>,
    %c8_i32 = arith.constant 8 : i32
    %9 = arith.cmpi eq, %arg2, %c8_i32 : i32
    %10 = arith.extui %9 : i1 to i32
    %c0_i32_8 = arith.constant 0 : i32
    %11 = arith.cmpi ne, %10, %c0_i32_8 : i32
    scf.if %11 {
      %c0_9 = arith.constant 0 : index
      %c0_10 = arith.constant 0 : index
      %12 = vector.load %arg6[%c0_9, %c0_10] : memref<32x128xf32, #tpu.memory_space<vmem>>, vector<32x128xf32>
      %c0_11 = arith.constant 0 : index
      %c0_12 = arith.constant 0 : index
      %13 = vector.load %arg5[%c0_11, %c0_12] : memref<32x128xf32, #tpu.memory_space<vmem>>, vector<32x128xf32>
      tpu.vector_store %arg5[%c0_11, %c0_12], %12 {strides = array<i32>} : memref<32x128xf32, #tpu.memory_space<vmem>>, vector<32x128xf32>,
    } else {
    }
    return
  }
  func.func @transform_0(%arg0: i32, %arg1: i32, %arg2: i32) -> (i32, i32) {
    %c0_i32 = arith.constant 0 : i32
    return %arg0, %arg2 : i32, i32
  }
  func.func @transform_1(%arg0: i32, %arg1: i32, %arg2: i32) -> (i32, i32) {
    %c0_i32 = arith.constant 0 : i32
    return %arg2, %arg1 : i32, i32
  }
  func.func @transform_2(%arg0: i32, %arg1: i32, %arg2: i32) -> (i32, i32) {
    %c0_i32 = arith.constant 0 : i32
    return %arg0, %arg1 : i32, i32
  }
}

module attributes {stable_mosaic.version = 11 : i64} {
  func.func @_mm_kernel(%arg0: i32, %arg1: i32, %arg2: i32, %arg3: memref<32x128xbf16, #tpu.memory_space<vmem>>, %arg4: memref<128x128xbf16, #tpu.memory_space<vmem>>, %arg5: memref<32x128xf32, #tpu.memory_space<vmem>>, %arg6: memref<32x128xf32, #tpu.memory_space<vmem>>) attributes {dimension_semantics = [#tpu.dimension_semantics<parallel>, #tpu.dimension_semantics<parallel>, #tpu.dimension_semantics<arbitrary>], iteration_bounds = array<i64: 1, 1, 9>, scalar_prefetch = 0 : i64, scratch_operands = 1 : i64, tpu.core_type = #tpu.core_type<tc>, window_params = [{transform_indices = @transform_0, window_bounds = array<i64: 32, 128>}, {transform_indices = @transform_1, window_bounds = array<i64: 128, 128>}, {transform_indices = @transform_2, window_bounds = array<i64: 32, 128>}]} {
    %c0_i32 = arith.constant 0 : i32
    %0 = arith.cmpi eq, %arg2, %c0_i32 : i32
    %1 = arith.extui %0 : i1 to i32
    %c0_i32_0 = arith.constant 0 : i32
    %2 = arith.cmpi ne, %1, %c0_i32_0 : i32
    scf.if %2 {
      %cst_9 = arith.constant 0.000000e+00 : f32
      %12 = vector.broadcast %cst_9 : f32 to vector<32x128xf32>
      %c0_10 = arith.constant 0 : index
      %c0_11 = arith.constant 0 : index
      %13 = vector.load %arg6[%c0_10, %c0_11] : memref<32x128xf32, #tpu.memory_space<vmem>>, vector<32x128xf32>
      tpu.vector_store %arg6[%c0_10, %c0_11], %12 {strides = array<i32>} : memref<32x128xf32, #tpu.memory_space<vmem>>, vector<32x128xf32>,
    } else {
    }
    %c0 = arith.constant 0 : index
    %c0_1 = arith.constant 0 : index
    %3 = vector.load %arg6[%c0, %c0_1] : memref<32x128xf32, #tpu.memory_space<vmem>>, vector<32x128xf32>
    %c0_2 = arith.constant 0 : index
    %c0_3 = arith.constant 0 : index
    %4 = vector.load %arg3[%c0_2, %c0_3] : memref<32x128xbf16, #tpu.memory_space<vmem>>, vector<32x128xbf16>
    %c0_4 = arith.constant 0 : index
    %c0_5 = arith.constant 0 : index
    %5 = vector.load %arg4[%c0_4, %c0_5] : memref<128x128xbf16, #tpu.memory_space<vmem>>, vector<128x128xbf16>
    %cst = arith.constant dense<0.000000e+00> : vector<32x128xf32>
    %6 = tpu.matmul %4, %5, %cst {dimension_numbers = #tpu.dot_dimension_numbers<[1], [0], [0], [1], [0, 0, 1, 1], [], []>} : vector<32x128xbf16>, vector<128x128xbf16>, vector<32x128xf32> -> vector<32x128xf32>
    %7 = arith.addf %3, %6 : vector<32x128xf32>
    %c0_6 = arith.constant 0 : index
    %c0_7 = arith.constant 0 : index
    %8 = vector.load %arg6[%c0_6, %c0_7] : memref<32x128xf32, #tpu.memory_space<vmem>>, vector<32x128xf32>
    tpu.vector_store %arg6[%c0_6, %c0_7], %7 {strides = array<i32>} : memref<32x128xf32, #tpu.memory_space<vmem>>, vector<32x128xf32>,
    %c8_i32 = arith.constant 8 : i32
    %9 = arith.cmpi eq, %arg2, %c8_i32 : i32
    %10 = arith.extui %9 : i1 to i32
    %c0_i32_8 = arith.constant 0 : i32
    %11 = arith.cmpi ne, %10, %c0_i32_8 : i32
    scf.if %11 {
      %c0_9 = arith.constant 0 : index
      %c0_10 = arith.constant 0 : index
      %12 = vector.load %arg6[%c0_9, %c0_10] : memref<32x128xf32, #tpu.memory_space<vmem>>, vector<32x128xf32>
      %c0_11 = arith.constant 0 : index
      %c0_12 = arith.constant 0 : index
      %13 = vector.load %arg5[%c0_11, %c0_12] : memref<32x128xf32, #tpu.memory_space<vmem>>, vector<32x128xf32>
      tpu.vector_store %arg5[%c0_11, %c0_12], %12 {strides = array<i32>} : memref<32x128xf32, #tpu.memory_space<vmem>>, vector<32x128xf32>,
    } else {
    }
    return
  }
  func.func @transform_0(%arg0: i32, %arg1: i32, %arg2: i32) -> (i32, i32) {
    %c0_i32 = arith.constant 0 : i32
    return %arg0, %arg2 : i32, i32
  }
  func.func @transform_1(%arg0: i32, %arg1: i32, %arg2: i32) -> (i32, i32) {
    %c0_i32 = arith.constant 0 : i32
    return %arg2, %arg1 : i32, i32
  }
  func.func @transform_2(%arg0: i32, %arg1: i32, %arg2: i32) -> (i32, i32) {
    %c0_i32 = arith.constant 0 : i32
    return %arg0, %arg1 : i32, i32
  }
}

module attributes {stable_mosaic.version = 11 : i64} {
  func.func @_bnrelu_mm_kernel(%arg0: i32, %arg1: i32, %arg2: i32, %arg3: memref<32x256xf32, #tpu.memory_space<vmem>>, %arg4: memref<1x256xf32, #tpu.memory_space<vmem>>, %arg5: memref<1x256xf32, #tpu.memory_space<vmem>>, %arg6: memref<256x256xbf16, #tpu.memory_space<vmem>>, %arg7: memref<32x256xf32, #tpu.memory_space<vmem>>, %arg8: memref<32x256xf32, #tpu.memory_space<vmem>>) attributes {dimension_semantics = [#tpu.dimension_semantics<parallel>, #tpu.dimension_semantics<parallel>, #tpu.dimension_semantics<arbitrary>], iteration_bounds = array<i64: 1, 1, 2>, scalar_prefetch = 0 : i64, scratch_operands = 1 : i64, tpu.core_type = #tpu.core_type<tc>, window_params = [{transform_indices = @transform_0, window_bounds = array<i64: 32, 256>}, {transform_indices = @transform_1, window_bounds = array<i64: 1, 256>}, {transform_indices = @transform_2, window_bounds = array<i64: 1, 256>}, {transform_indices = @transform_3, window_bounds = array<i64: 256, 256>}, {transform_indices = @transform_4, window_bounds = array<i64: 32, 256>}]} {
    %c0_i32 = arith.constant 0 : i32
    %0 = arith.cmpi eq, %arg2, %c0_i32 : i32
    %1 = arith.extui %0 : i1 to i32
    %c0_i32_0 = arith.constant 0 : i32
    %2 = arith.cmpi ne, %1, %c0_i32_0 : i32
    scf.if %2 {
      %cst_14 = arith.constant 0.000000e+00 : f32
      %21 = vector.broadcast %cst_14 : f32 to vector<32x256xf32>
      %c0_15 = arith.constant 0 : index
      %c0_16 = arith.constant 0 : index
      %22 = vector.load %arg8[%c0_15, %c0_16] : memref<32x256xf32, #tpu.memory_space<vmem>>, vector<32x256xf32>
      tpu.vector_store %arg8[%c0_15, %c0_16], %21 {strides = array<i32>} : memref<32x256xf32, #tpu.memory_space<vmem>>, vector<32x256xf32>,
    } else {
    }
    %c0 = arith.constant 0 : index
    %c0_1 = arith.constant 0 : index
    %3 = vector.load %arg3[%c0, %c0_1] : memref<32x256xf32, #tpu.memory_space<vmem>>, vector<32x256xf32>
    %c0_2 = arith.constant 0 : index
    %c0_3 = arith.constant 0 : index
    %4 = vector.load %arg4[%c0_2, %c0_3] : memref<1x256xf32, #tpu.memory_space<vmem>>, vector<1x256xf32>
    %5 = vector.broadcast %4 : vector<1x256xf32> to vector<32x256xf32>
    %6 = arith.mulf %3, %5 : vector<32x256xf32>
    %c0_4 = arith.constant 0 : index
    %c0_5 = arith.constant 0 : index
    %7 = vector.load %arg5[%c0_4, %c0_5] : memref<1x256xf32, #tpu.memory_space<vmem>>, vector<1x256xf32>
    %8 = vector.broadcast %7 : vector<1x256xf32> to vector<32x256xf32>
    %9 = arith.addf %6, %8 : vector<32x256xf32>
    %cst = arith.constant 0.000000e+00 : f32
    %10 = vector.broadcast %cst : f32 to vector<32x256xf32>
    %11 = arith.maximumf %9, %10 : vector<32x256xf32>
    %c0_6 = arith.constant 0 : index
    %c0_7 = arith.constant 0 : index
    %12 = vector.load %arg8[%c0_6, %c0_7] : memref<32x256xf32, #tpu.memory_space<vmem>>, vector<32x256xf32>
    %13 = arith.truncf %11 : vector<32x256xf32> to vector<32x256xbf16>
    %c0_8 = arith.constant 0 : index
    %c0_9 = arith.constant 0 : index
    %14 = vector.load %arg6[%c0_8, %c0_9] : memref<256x256xbf16, #tpu.memory_space<vmem>>, vector<256x256xbf16>
    %cst_10 = arith.constant dense<0.000000e+00> : vector<32x256xf32>
    %15 = tpu.matmul %13, %14, %cst_10 {dimension_numbers = #tpu.dot_dimension_numbers<[1], [0], [0], [1], [0, 0, 1, 1], [], []>} : vector<32x256xbf16>, vector<256x256xbf16>, vector<32x256xf32> -> vector<32x256xf32>
    %16 = arith.addf %12, %15 : vector<32x256xf32>
    %c0_11 = arith.constant 0 : index
    %c0_12 = arith.constant 0 : index
    %17 = vector.load %arg8[%c0_11, %c0_12] : memref<32x256xf32, #tpu.memory_space<vmem>>, vector<32x256xf32>
    tpu.vector_store %arg8[%c0_11, %c0_12], %16 {strides = array<i32>} : memref<32x256xf32, #tpu.memory_space<vmem>>, vector<32x256xf32>,
    %c1_i32 = arith.constant 1 : i32
    %18 = arith.cmpi eq, %arg2, %c1_i32 : i32
    %19 = arith.extui %18 : i1 to i32
    %c0_i32_13 = arith.constant 0 : i32
    %20 = arith.cmpi ne, %19, %c0_i32_13 : i32
    scf.if %20 {
      %c0_14 = arith.constant 0 : index
      %c0_15 = arith.constant 0 : index
      %21 = vector.load %arg8[%c0_14, %c0_15] : memref<32x256xf32, #tpu.memory_space<vmem>>, vector<32x256xf32>
      %c0_16 = arith.constant 0 : index
      %c0_17 = arith.constant 0 : index
      %22 = vector.load %arg7[%c0_16, %c0_17] : memref<32x256xf32, #tpu.memory_space<vmem>>, vector<32x256xf32>
      tpu.vector_store %arg7[%c0_16, %c0_17], %21 {strides = array<i32>} : memref<32x256xf32, #tpu.memory_space<vmem>>, vector<32x256xf32>,
    } else {
    }
    return
  }
  func.func @transform_0(%arg0: i32, %arg1: i32, %arg2: i32) -> (i32, i32) {
    %c0_i32 = arith.constant 0 : i32
    return %arg0, %arg2 : i32, i32
  }
  func.func @transform_1(%arg0: i32, %arg1: i32, %arg2: i32) -> (i32, i32) {
    %c0_i32 = arith.constant 0 : i32
    %c0_i32_0 = arith.constant 0 : i32
    return %c0_i32, %arg2 : i32, i32
  }
  func.func @transform_2(%arg0: i32, %arg1: i32, %arg2: i32) -> (i32, i32) {
    %c0_i32 = arith.constant 0 : i32
    %c0_i32_0 = arith.constant 0 : i32
    return %c0_i32, %arg2 : i32, i32
  }
  func.func @transform_3(%arg0: i32, %arg1: i32, %arg2: i32) -> (i32, i32) {
    %c0_i32 = arith.constant 0 : i32
    return %arg2, %arg1 : i32, i32
  }
  func.func @transform_4(%arg0: i32, %arg1: i32, %arg2: i32) -> (i32, i32) {
    %c0_i32 = arith.constant 0 : i32
    return %arg0, %arg1 : i32, i32
  }
}

module attributes {stable_mosaic.version = 11 : i64} {
  func.func @_pool_kernel(%arg0: memref<4x8x256xf32, #tpu.memory_space<vmem>>, %arg1: memref<8x256xf32, #tpu.memory_space<vmem>>) attributes {dimension_semantics = [], scalar_prefetch = 0 : i64, scratch_operands = 0 : i64, tpu.core_type = #tpu.core_type<tc>} {
    %c0 = arith.constant 0 : index
    %c0_0 = arith.constant 0 : index
    %c0_1 = arith.constant 0 : index
    %0 = vector.load %arg0[%c0, %c0_0, %c0_1] : memref<4x8x256xf32, #tpu.memory_space<vmem>>, vector<1x8x256xf32>
    %1 = vector.shape_cast %0 : vector<1x8x256xf32> to vector<8x256xf32>
    %c1 = arith.constant 1 : index
    %c0_2 = arith.constant 0 : index
    %c0_3 = arith.constant 0 : index
    %2 = vector.load %arg0[%c1, %c0_2, %c0_3] : memref<4x8x256xf32, #tpu.memory_space<vmem>>, vector<1x8x256xf32>
    %3 = vector.shape_cast %2 : vector<1x8x256xf32> to vector<8x256xf32>
    %4 = arith.addf %1, %3 : vector<8x256xf32>
    %c2 = arith.constant 2 : index
    %c0_4 = arith.constant 0 : index
    %c0_5 = arith.constant 0 : index
    %5 = vector.load %arg0[%c2, %c0_4, %c0_5] : memref<4x8x256xf32, #tpu.memory_space<vmem>>, vector<1x8x256xf32>
    %6 = vector.shape_cast %5 : vector<1x8x256xf32> to vector<8x256xf32>
    %7 = arith.addf %4, %6 : vector<8x256xf32>
    %c3 = arith.constant 3 : index
    %c0_6 = arith.constant 0 : index
    %c0_7 = arith.constant 0 : index
    %8 = vector.load %arg0[%c3, %c0_6, %c0_7] : memref<4x8x256xf32, #tpu.memory_space<vmem>>, vector<1x8x256xf32>
    %9 = vector.shape_cast %8 : vector<1x8x256xf32> to vector<8x256xf32>
    %10 = arith.addf %7, %9 : vector<8x256xf32>
    %cst = arith.constant 2.500000e-01 : f32
    %11 = vector.broadcast %cst : f32 to vector<8x256xf32>
    %12 = arith.mulf %10, %11 : vector<8x256xf32>
    %c0_8 = arith.constant 0 : index
    %c0_9 = arith.constant 0 : index
    %13 = vector.load %arg1[%c0_8, %c0_9] : memref<8x256xf32, #tpu.memory_space<vmem>>, vector<8x256xf32>
    tpu.vector_store %arg1[%c0_8, %c0_9], %12 {strides = array<i32>} : memref<8x256xf32, #tpu.memory_space<vmem>>, vector<8x256xf32>,
    return
  }
}

module attributes {stable_mosaic.version = 11 : i64} {
  func.func @_mm_kernel(%arg0: i32, %arg1: i32, %arg2: i32, %arg3: memref<8x128xbf16, #tpu.memory_space<vmem>>, %arg4: memref<128x128xbf16, #tpu.memory_space<vmem>>, %arg5: memref<8x128xf32, #tpu.memory_space<vmem>>, %arg6: memref<8x128xf32, #tpu.memory_space<vmem>>) attributes {dimension_semantics = [#tpu.dimension_semantics<parallel>, #tpu.dimension_semantics<parallel>, #tpu.dimension_semantics<arbitrary>], iteration_bounds = array<i64: 1, 1, 9>, scalar_prefetch = 0 : i64, scratch_operands = 1 : i64, tpu.core_type = #tpu.core_type<tc>, window_params = [{transform_indices = @transform_0, window_bounds = array<i64: 8, 128>}, {transform_indices = @transform_1, window_bounds = array<i64: 128, 128>}, {transform_indices = @transform_2, window_bounds = array<i64: 8, 128>}]} {
    %c0_i32 = arith.constant 0 : i32
    %0 = arith.cmpi eq, %arg2, %c0_i32 : i32
    %1 = arith.extui %0 : i1 to i32
    %c0_i32_0 = arith.constant 0 : i32
    %2 = arith.cmpi ne, %1, %c0_i32_0 : i32
    scf.if %2 {
      %cst_9 = arith.constant 0.000000e+00 : f32
      %12 = vector.broadcast %cst_9 : f32 to vector<8x128xf32>
      %c0_10 = arith.constant 0 : index
      %c0_11 = arith.constant 0 : index
      %13 = vector.load %arg6[%c0_10, %c0_11] : memref<8x128xf32, #tpu.memory_space<vmem>>, vector<8x128xf32>
      tpu.vector_store %arg6[%c0_10, %c0_11], %12 {strides = array<i32>} : memref<8x128xf32, #tpu.memory_space<vmem>>, vector<8x128xf32>,
    } else {
    }
    %c0 = arith.constant 0 : index
    %c0_1 = arith.constant 0 : index
    %3 = vector.load %arg6[%c0, %c0_1] : memref<8x128xf32, #tpu.memory_space<vmem>>, vector<8x128xf32>
    %c0_2 = arith.constant 0 : index
    %c0_3 = arith.constant 0 : index
    %4 = vector.load %arg3[%c0_2, %c0_3] : memref<8x128xbf16, #tpu.memory_space<vmem>>, vector<8x128xbf16>
    %c0_4 = arith.constant 0 : index
    %c0_5 = arith.constant 0 : index
    %5 = vector.load %arg4[%c0_4, %c0_5] : memref<128x128xbf16, #tpu.memory_space<vmem>>, vector<128x128xbf16>
    %cst = arith.constant dense<0.000000e+00> : vector<8x128xf32>
    %6 = tpu.matmul %4, %5, %cst {dimension_numbers = #tpu.dot_dimension_numbers<[1], [0], [0], [1], [0, 0, 1, 1], [], []>} : vector<8x128xbf16>, vector<128x128xbf16>, vector<8x128xf32> -> vector<8x128xf32>
    %7 = arith.addf %3, %6 : vector<8x128xf32>
    %c0_6 = arith.constant 0 : index
    %c0_7 = arith.constant 0 : index
    %8 = vector.load %arg6[%c0_6, %c0_7] : memref<8x128xf32, #tpu.memory_space<vmem>>, vector<8x128xf32>
    tpu.vector_store %arg6[%c0_6, %c0_7], %7 {strides = array<i32>} : memref<8x128xf32, #tpu.memory_space<vmem>>, vector<8x128xf32>,
    %c8_i32 = arith.constant 8 : i32
    %9 = arith.cmpi eq, %arg2, %c8_i32 : i32
    %10 = arith.extui %9 : i1 to i32
    %c0_i32_8 = arith.constant 0 : i32
    %11 = arith.cmpi ne, %10, %c0_i32_8 : i32
    scf.if %11 {
      %c0_9 = arith.constant 0 : index
      %c0_10 = arith.constant 0 : index
      %12 = vector.load %arg6[%c0_9, %c0_10] : memref<8x128xf32, #tpu.memory_space<vmem>>, vector<8x128xf32>
      %c0_11 = arith.constant 0 : index
      %c0_12 = arith.constant 0 : index
      %13 = vector.load %arg5[%c0_11, %c0_12] : memref<8x128xf32, #tpu.memory_space<vmem>>, vector<8x128xf32>
      tpu.vector_store %arg5[%c0_11, %c0_12], %12 {strides = array<i32>} : memref<8x128xf32, #tpu.memory_space<vmem>>, vector<8x128xf32>,
    } else {
    }
    return
  }
  func.func @transform_0(%arg0: i32, %arg1: i32, %arg2: i32) -> (i32, i32) {
    %c0_i32 = arith.constant 0 : i32
    return %arg0, %arg2 : i32, i32
  }
  func.func @transform_1(%arg0: i32, %arg1: i32, %arg2: i32) -> (i32, i32) {
    %c0_i32 = arith.constant 0 : i32
    return %arg2, %arg1 : i32, i32
  }
  func.func @transform_2(%arg0: i32, %arg1: i32, %arg2: i32) -> (i32, i32) {
    %c0_i32 = arith.constant 0 : i32
    return %arg0, %arg1 : i32, i32
  }
}

module attributes {stable_mosaic.version = 11 : i64} {
  func.func @_bnrelu_mm_bnrelu_kernel(%arg0: i32, %arg1: i32, %arg2: i32, %arg3: memref<8x256xf32, #tpu.memory_space<vmem>>, %arg4: memref<1x256xf32, #tpu.memory_space<vmem>>, %arg5: memref<1x256xf32, #tpu.memory_space<vmem>>, %arg6: memref<256x128xbf16, #tpu.memory_space<vmem>>, %arg7: memref<1x128xf32, #tpu.memory_space<vmem>>, %arg8: memref<1x128xf32, #tpu.memory_space<vmem>>, %arg9: memref<8x128xf32, #tpu.memory_space<vmem>>, %arg10: memref<8x128xf32, #tpu.memory_space<vmem>>) attributes {dimension_semantics = [#tpu.dimension_semantics<parallel>, #tpu.dimension_semantics<parallel>, #tpu.dimension_semantics<arbitrary>], iteration_bounds = array<i64: 1, 1, 5>, scalar_prefetch = 0 : i64, scratch_operands = 1 : i64, tpu.core_type = #tpu.core_type<tc>, window_params = [{transform_indices = @transform_0, window_bounds = array<i64: 8, 256>}, {transform_indices = @transform_1, window_bounds = array<i64: 1, 256>}, {transform_indices = @transform_2, window_bounds = array<i64: 1, 256>}, {transform_indices = @transform_3, window_bounds = array<i64: 256, 128>}, {transform_indices = @transform_4, window_bounds = array<i64: 1, 128>}, {transform_indices = @transform_5, window_bounds = array<i64: 1, 128>}, {transform_indices = @transform_6, window_bounds = array<i64: 8, 128>}]} {
    %c0_i32 = arith.constant 0 : i32
    %0 = arith.cmpi eq, %arg2, %c0_i32 : i32
    %1 = arith.extui %0 : i1 to i32
    %c0_i32_0 = arith.constant 0 : i32
    %2 = arith.cmpi ne, %1, %c0_i32_0 : i32
    scf.if %2 {
      %cst_14 = arith.constant 0.000000e+00 : f32
      %21 = vector.broadcast %cst_14 : f32 to vector<8x128xf32>
      %c0_15 = arith.constant 0 : index
      %c0_16 = arith.constant 0 : index
      %22 = vector.load %arg10[%c0_15, %c0_16] : memref<8x128xf32, #tpu.memory_space<vmem>>, vector<8x128xf32>
      tpu.vector_store %arg10[%c0_15, %c0_16], %21 {strides = array<i32>} : memref<8x128xf32, #tpu.memory_space<vmem>>, vector<8x128xf32>,
    } else {
    }
    %c0 = arith.constant 0 : index
    %c0_1 = arith.constant 0 : index
    %3 = vector.load %arg3[%c0, %c0_1] : memref<8x256xf32, #tpu.memory_space<vmem>>, vector<8x256xf32>
    %c0_2 = arith.constant 0 : index
    %c0_3 = arith.constant 0 : index
    %4 = vector.load %arg4[%c0_2, %c0_3] : memref<1x256xf32, #tpu.memory_space<vmem>>, vector<1x256xf32>
    %5 = vector.broadcast %4 : vector<1x256xf32> to vector<8x256xf32>
    %6 = arith.mulf %3, %5 : vector<8x256xf32>
    %c0_4 = arith.constant 0 : index
    %c0_5 = arith.constant 0 : index
    %7 = vector.load %arg5[%c0_4, %c0_5] : memref<1x256xf32, #tpu.memory_space<vmem>>, vector<1x256xf32>
    %8 = vector.broadcast %7 : vector<1x256xf32> to vector<8x256xf32>
    %9 = arith.addf %6, %8 : vector<8x256xf32>
    %cst = arith.constant 0.000000e+00 : f32
    %10 = vector.broadcast %cst : f32 to vector<8x256xf32>
    %11 = arith.maximumf %9, %10 : vector<8x256xf32>
    %c0_6 = arith.constant 0 : index
    %c0_7 = arith.constant 0 : index
    %12 = vector.load %arg10[%c0_6, %c0_7] : memref<8x128xf32, #tpu.memory_space<vmem>>, vector<8x128xf32>
    %13 = arith.truncf %11 : vector<8x256xf32> to vector<8x256xbf16>
    %c0_8 = arith.constant 0 : index
    %c0_9 = arith.constant 0 : index
    %14 = vector.load %arg6[%c0_8, %c0_9] : memref<256x128xbf16, #tpu.memory_space<vmem>>, vector<256x128xbf16>
    %cst_10 = arith.constant dense<0.000000e+00> : vector<8x128xf32>
    %15 = tpu.matmul %13, %14, %cst_10 {dimension_numbers = #tpu.dot_dimension_numbers<[1], [0], [0], [1], [0, 0, 1, 1], [], []>} : vector<8x256xbf16>, vector<256x128xbf16>, vector<8x128xf32> -> vector<8x128xf32>
    %16 = arith.addf %12, %15 : vector<8x128xf32>
    %c0_11 = arith.constant 0 : index
    %c0_12 = arith.constant 0 : index
    %17 = vector.load %arg10[%c0_11, %c0_12] : memref<8x128xf32, #tpu.memory_space<vmem>>, vector<8x128xf32>
    tpu.vector_store %arg10[%c0_11, %c0_12], %16 {strides = array<i32>} : memref<8x128xf32, #tpu.memory_space<vmem>>, vector<8x128xf32>,
    %c4_i32 = arith.constant 4 : i32
    %18 = arith.cmpi eq, %arg2, %c4_i32 : i32
    %19 = arith.extui %18 : i1 to i32
    %c0_i32_13 = arith.constant 0 : i32
    %20 = arith.cmpi ne, %19, %c0_i32_13 : i32
    scf.if %20 {
      %c0_14 = arith.constant 0 : index
      %c0_15 = arith.constant 0 : index
      %21 = vector.load %arg10[%c0_14, %c0_15] : memref<8x128xf32, #tpu.memory_space<vmem>>, vector<8x128xf32>
      %c0_16 = arith.constant 0 : index
      %c0_17 = arith.constant 0 : index
      %22 = vector.load %arg7[%c0_16, %c0_17] : memref<1x128xf32, #tpu.memory_space<vmem>>, vector<1x128xf32>
      %23 = vector.broadcast %22 : vector<1x128xf32> to vector<8x128xf32>
      %24 = arith.mulf %21, %23 : vector<8x128xf32>
      %c0_18 = arith.constant 0 : index
      %c0_19 = arith.constant 0 : index
      %25 = vector.load %arg8[%c0_18, %c0_19] : memref<1x128xf32, #tpu.memory_space<vmem>>, vector<1x128xf32>
      %26 = vector.broadcast %25 : vector<1x128xf32> to vector<8x128xf32>
      %27 = arith.addf %24, %26 : vector<8x128xf32>
      %cst_20 = arith.constant 0.000000e+00 : f32
      %28 = vector.broadcast %cst_20 : f32 to vector<8x128xf32>
      %29 = arith.maximumf %27, %28 : vector<8x128xf32>
      %c0_21 = arith.constant 0 : index
      %c0_22 = arith.constant 0 : index
      %30 = vector.load %arg9[%c0_21, %c0_22] : memref<8x128xf32, #tpu.memory_space<vmem>>, vector<8x128xf32>
      tpu.vector_store %arg9[%c0_21, %c0_22], %29 {strides = array<i32>} : memref<8x128xf32, #tpu.memory_space<vmem>>, vector<8x128xf32>,
    } else {
    }
    return
  }
  func.func @transform_0(%arg0: i32, %arg1: i32, %arg2: i32) -> (i32, i32) {
    %c0_i32 = arith.constant 0 : i32
    return %arg0, %arg2 : i32, i32
  }
  func.func @transform_1(%arg0: i32, %arg1: i32, %arg2: i32) -> (i32, i32) {
    %c0_i32 = arith.constant 0 : i32
    %c0_i32_0 = arith.constant 0 : i32
    return %c0_i32, %arg2 : i32, i32
  }
  func.func @transform_2(%arg0: i32, %arg1: i32, %arg2: i32) -> (i32, i32) {
    %c0_i32 = arith.constant 0 : i32
    %c0_i32_0 = arith.constant 0 : i32
    return %c0_i32, %arg2 : i32, i32
  }
  func.func @transform_3(%arg0: i32, %arg1: i32, %arg2: i32) -> (i32, i32) {
    %c0_i32 = arith.constant 0 : i32
    return %arg2, %arg1 : i32, i32
  }
  func.func @transform_4(%arg0: i32, %arg1: i32, %arg2: i32) -> (i32, i32) {
    %c0_i32 = arith.constant 0 : i32
    %c0_i32_0 = arith.constant 0 : i32
    return %c0_i32, %arg1 : i32, i32
  }
  func.func @transform_5(%arg0: i32, %arg1: i32, %arg2: i32) -> (i32, i32) {
    %c0_i32 = arith.constant 0 : i32
    %c0_i32_0 = arith.constant 0 : i32
    return %c0_i32, %arg1 : i32, i32
  }
  func.func @transform_6(%arg0: i32, %arg1: i32, %arg2: i32) -> (i32, i32) {
    %c0_i32 = arith.constant 0 : i32
    return %arg0, %arg1 : i32, i32
  }
}

module attributes {stable_mosaic.version = 11 : i64} {
  func.func @_mm_kernel(%arg0: i32, %arg1: i32, %arg2: i32, %arg3: memref<8x128xbf16, #tpu.memory_space<vmem>>, %arg4: memref<128x128xbf16, #tpu.memory_space<vmem>>, %arg5: memref<8x128xf32, #tpu.memory_space<vmem>>, %arg6: memref<8x128xf32, #tpu.memory_space<vmem>>) attributes {dimension_semantics = [#tpu.dimension_semantics<parallel>, #tpu.dimension_semantics<parallel>, #tpu.dimension_semantics<arbitrary>], iteration_bounds = array<i64: 1, 1, 9>, scalar_prefetch = 0 : i64, scratch_operands = 1 : i64, tpu.core_type = #tpu.core_type<tc>, window_params = [{transform_indices = @transform_0, window_bounds = array<i64: 8, 128>}, {transform_indices = @transform_1, window_bounds = array<i64: 128, 128>}, {transform_indices = @transform_2, window_bounds = array<i64: 8, 128>}]} {
    %c0_i32 = arith.constant 0 : i32
    %0 = arith.cmpi eq, %arg2, %c0_i32 : i32
    %1 = arith.extui %0 : i1 to i32
    %c0_i32_0 = arith.constant 0 : i32
    %2 = arith.cmpi ne, %1, %c0_i32_0 : i32
    scf.if %2 {
      %cst_9 = arith.constant 0.000000e+00 : f32
      %12 = vector.broadcast %cst_9 : f32 to vector<8x128xf32>
      %c0_10 = arith.constant 0 : index
      %c0_11 = arith.constant 0 : index
      %13 = vector.load %arg6[%c0_10, %c0_11] : memref<8x128xf32, #tpu.memory_space<vmem>>, vector<8x128xf32>
      tpu.vector_store %arg6[%c0_10, %c0_11], %12 {strides = array<i32>} : memref<8x128xf32, #tpu.memory_space<vmem>>, vector<8x128xf32>,
    } else {
    }
    %c0 = arith.constant 0 : index
    %c0_1 = arith.constant 0 : index
    %3 = vector.load %arg6[%c0, %c0_1] : memref<8x128xf32, #tpu.memory_space<vmem>>, vector<8x128xf32>
    %c0_2 = arith.constant 0 : index
    %c0_3 = arith.constant 0 : index
    %4 = vector.load %arg3[%c0_2, %c0_3] : memref<8x128xbf16, #tpu.memory_space<vmem>>, vector<8x128xbf16>
    %c0_4 = arith.constant 0 : index
    %c0_5 = arith.constant 0 : index
    %5 = vector.load %arg4[%c0_4, %c0_5] : memref<128x128xbf16, #tpu.memory_space<vmem>>, vector<128x128xbf16>
    %cst = arith.constant dense<0.000000e+00> : vector<8x128xf32>
    %6 = tpu.matmul %4, %5, %cst {dimension_numbers = #tpu.dot_dimension_numbers<[1], [0], [0], [1], [0, 0, 1, 1], [], []>} : vector<8x128xbf16>, vector<128x128xbf16>, vector<8x128xf32> -> vector<8x128xf32>
    %7 = arith.addf %3, %6 : vector<8x128xf32>
    %c0_6 = arith.constant 0 : index
    %c0_7 = arith.constant 0 : index
    %8 = vector.load %arg6[%c0_6, %c0_7] : memref<8x128xf32, #tpu.memory_space<vmem>>, vector<8x128xf32>
    tpu.vector_store %arg6[%c0_6, %c0_7], %7 {strides = array<i32>} : memref<8x128xf32, #tpu.memory_space<vmem>>, vector<8x128xf32>,
    %c8_i32 = arith.constant 8 : i32
    %9 = arith.cmpi eq, %arg2, %c8_i32 : i32
    %10 = arith.extui %9 : i1 to i32
    %c0_i32_8 = arith.constant 0 : i32
    %11 = arith.cmpi ne, %10, %c0_i32_8 : i32
    scf.if %11 {
      %c0_9 = arith.constant 0 : index
      %c0_10 = arith.constant 0 : index
      %12 = vector.load %arg6[%c0_9, %c0_10] : memref<8x128xf32, #tpu.memory_space<vmem>>, vector<8x128xf32>
      %c0_11 = arith.constant 0 : index
      %c0_12 = arith.constant 0 : index
      %13 = vector.load %arg5[%c0_11, %c0_12] : memref<8x128xf32, #tpu.memory_space<vmem>>, vector<8x128xf32>
      tpu.vector_store %arg5[%c0_11, %c0_12], %12 {strides = array<i32>} : memref<8x128xf32, #tpu.memory_space<vmem>>, vector<8x128xf32>,
    } else {
    }
    return
  }
  func.func @transform_0(%arg0: i32, %arg1: i32, %arg2: i32) -> (i32, i32) {
    %c0_i32 = arith.constant 0 : i32
    return %arg0, %arg2 : i32, i32
  }
  func.func @transform_1(%arg0: i32, %arg1: i32, %arg2: i32) -> (i32, i32) {
    %c0_i32 = arith.constant 0 : i32
    return %arg2, %arg1 : i32, i32
  }
  func.func @transform_2(%arg0: i32, %arg1: i32, %arg2: i32) -> (i32, i32) {
    %c0_i32 = arith.constant 0 : i32
    return %arg0, %arg1 : i32, i32
  }
}

module attributes {stable_mosaic.version = 11 : i64} {
  func.func @_pool_kernel(%arg0: memref<4x8x640xf32, #tpu.memory_space<vmem>>, %arg1: memref<8x640xf32, #tpu.memory_space<vmem>>) attributes {dimension_semantics = [], scalar_prefetch = 0 : i64, scratch_operands = 0 : i64, tpu.core_type = #tpu.core_type<tc>} {
    %c0 = arith.constant 0 : index
    %c0_0 = arith.constant 0 : index
    %c0_1 = arith.constant 0 : index
    %0 = vector.load %arg0[%c0, %c0_0, %c0_1] : memref<4x8x640xf32, #tpu.memory_space<vmem>>, vector<1x8x640xf32>
    %1 = vector.shape_cast %0 : vector<1x8x640xf32> to vector<8x640xf32>
    %c1 = arith.constant 1 : index
    %c0_2 = arith.constant 0 : index
    %c0_3 = arith.constant 0 : index
    %2 = vector.load %arg0[%c1, %c0_2, %c0_3] : memref<4x8x640xf32, #tpu.memory_space<vmem>>, vector<1x8x640xf32>
    %3 = vector.shape_cast %2 : vector<1x8x640xf32> to vector<8x640xf32>
    %4 = arith.addf %1, %3 : vector<8x640xf32>
    %c2 = arith.constant 2 : index
    %c0_4 = arith.constant 0 : index
    %c0_5 = arith.constant 0 : index
    %5 = vector.load %arg0[%c2, %c0_4, %c0_5] : memref<4x8x640xf32, #tpu.memory_space<vmem>>, vector<1x8x640xf32>
    %6 = vector.shape_cast %5 : vector<1x8x640xf32> to vector<8x640xf32>
    %7 = arith.addf %4, %6 : vector<8x640xf32>
    %c3 = arith.constant 3 : index
    %c0_6 = arith.constant 0 : index
    %c0_7 = arith.constant 0 : index
    %8 = vector.load %arg0[%c3, %c0_6, %c0_7] : memref<4x8x640xf32, #tpu.memory_space<vmem>>, vector<1x8x640xf32>
    %9 = vector.shape_cast %8 : vector<1x8x640xf32> to vector<8x640xf32>
    %10 = arith.addf %7, %9 : vector<8x640xf32>
    %cst = arith.constant 2.500000e-01 : f32
    %11 = vector.broadcast %cst : f32 to vector<8x640xf32>
    %12 = arith.mulf %10, %11 : vector<8x640xf32>
    %c0_8 = arith.constant 0 : index
    %c0_9 = arith.constant 0 : index
    %13 = vector.load %arg1[%c0_8, %c0_9] : memref<8x640xf32, #tpu.memory_space<vmem>>, vector<8x640xf32>
    tpu.vector_store %arg1[%c0_8, %c0_9], %12 {strides = array<i32>} : memref<8x640xf32, #tpu.memory_space<vmem>>, vector<8x640xf32>,
    return
  }
}

module attributes {stable_mosaic.version = 11 : i64} {
  func.func @_bnrelu_mm_kernel(%arg0: i32, %arg1: i32, %arg2: i32, %arg3: memref<8x256xf32, #tpu.memory_space<vmem>>, %arg4: memref<1x256xf32, #tpu.memory_space<vmem>>, %arg5: memref<1x256xf32, #tpu.memory_space<vmem>>, %arg6: memref<256x128xbf16, #tpu.memory_space<vmem>>, %arg7: memref<8x128xf32, #tpu.memory_space<vmem>>, %arg8: memref<8x128xf32, #tpu.memory_space<vmem>>) attributes {dimension_semantics = [#tpu.dimension_semantics<parallel>, #tpu.dimension_semantics<parallel>, #tpu.dimension_semantics<arbitrary>], iteration_bounds = array<i64: 1, 5, 5>, scalar_prefetch = 0 : i64, scratch_operands = 1 : i64, tpu.core_type = #tpu.core_type<tc>, window_params = [{transform_indices = @transform_0, window_bounds = array<i64: 8, 256>}, {transform_indices = @transform_1, window_bounds = array<i64: 1, 256>}, {transform_indices = @transform_2, window_bounds = array<i64: 1, 256>}, {transform_indices = @transform_3, window_bounds = array<i64: 256, 128>}, {transform_indices = @transform_4, window_bounds = array<i64: 8, 128>}]} {
    %c0_i32 = arith.constant 0 : i32
    %0 = arith.cmpi eq, %arg2, %c0_i32 : i32
    %1 = arith.extui %0 : i1 to i32
    %c0_i32_0 = arith.constant 0 : i32
    %2 = arith.cmpi ne, %1, %c0_i32_0 : i32
    scf.if %2 {
      %cst_14 = arith.constant 0.000000e+00 : f32
      %21 = vector.broadcast %cst_14 : f32 to vector<8x128xf32>
      %c0_15 = arith.constant 0 : index
      %c0_16 = arith.constant 0 : index
      %22 = vector.load %arg8[%c0_15, %c0_16] : memref<8x128xf32, #tpu.memory_space<vmem>>, vector<8x128xf32>
      tpu.vector_store %arg8[%c0_15, %c0_16], %21 {strides = array<i32>} : memref<8x128xf32, #tpu.memory_space<vmem>>, vector<8x128xf32>,
    } else {
    }
    %c0 = arith.constant 0 : index
    %c0_1 = arith.constant 0 : index
    %3 = vector.load %arg3[%c0, %c0_1] : memref<8x256xf32, #tpu.memory_space<vmem>>, vector<8x256xf32>
    %c0_2 = arith.constant 0 : index
    %c0_3 = arith.constant 0 : index
    %4 = vector.load %arg4[%c0_2, %c0_3] : memref<1x256xf32, #tpu.memory_space<vmem>>, vector<1x256xf32>
    %5 = vector.broadcast %4 : vector<1x256xf32> to vector<8x256xf32>
    %6 = arith.mulf %3, %5 : vector<8x256xf32>
    %c0_4 = arith.constant 0 : index
    %c0_5 = arith.constant 0 : index
    %7 = vector.load %arg5[%c0_4, %c0_5] : memref<1x256xf32, #tpu.memory_space<vmem>>, vector<1x256xf32>
    %8 = vector.broadcast %7 : vector<1x256xf32> to vector<8x256xf32>
    %9 = arith.addf %6, %8 : vector<8x256xf32>
    %cst = arith.constant 0.000000e+00 : f32
    %10 = vector.broadcast %cst : f32 to vector<8x256xf32>
    %11 = arith.maximumf %9, %10 : vector<8x256xf32>
    %c0_6 = arith.constant 0 : index
    %c0_7 = arith.constant 0 : index
    %12 = vector.load %arg8[%c0_6, %c0_7] : memref<8x128xf32, #tpu.memory_space<vmem>>, vector<8x128xf32>
    %13 = arith.truncf %11 : vector<8x256xf32> to vector<8x256xbf16>
    %c0_8 = arith.constant 0 : index
    %c0_9 = arith.constant 0 : index
    %14 = vector.load %arg6[%c0_8, %c0_9] : memref<256x128xbf16, #tpu.memory_space<vmem>>, vector<256x128xbf16>
    %cst_10 = arith.constant dense<0.000000e+00> : vector<8x128xf32>
    %15 = tpu.matmul %13, %14, %cst_10 {dimension_numbers = #tpu.dot_dimension_numbers<[1], [0], [0], [1], [0, 0, 1, 1], [], []>} : vector<8x256xbf16>, vector<256x128xbf16>, vector<8x128xf32> -> vector<8x128xf32>
    %16 = arith.addf %12, %15 : vector<8x128xf32>
    %c0_11 = arith.constant 0 : index
    %c0_12 = arith.constant 0 : index
    %17 = vector.load %arg8[%c0_11, %c0_12] : memref<8x128xf32, #tpu.memory_space<vmem>>, vector<8x128xf32>
    tpu.vector_store %arg8[%c0_11, %c0_12], %16 {strides = array<i32>} : memref<8x128xf32, #tpu.memory_space<vmem>>, vector<8x128xf32>,
    %c4_i32 = arith.constant 4 : i32
    %18 = arith.cmpi eq, %arg2, %c4_i32 : i32
    %19 = arith.extui %18 : i1 to i32
    %c0_i32_13 = arith.constant 0 : i32
    %20 = arith.cmpi ne, %19, %c0_i32_13 : i32
    scf.if %20 {
      %c0_14 = arith.constant 0 : index
      %c0_15 = arith.constant 0 : index
      %21 = vector.load %arg8[%c0_14, %c0_15] : memref<8x128xf32, #tpu.memory_space<vmem>>, vector<8x128xf32>
      %c0_16 = arith.constant 0 : index
      %c0_17 = arith.constant 0 : index
      %22 = vector.load %arg7[%c0_16, %c0_17] : memref<8x128xf32, #tpu.memory_space<vmem>>, vector<8x128xf32>
      tpu.vector_store %arg7[%c0_16, %c0_17], %21 {strides = array<i32>} : memref<8x128xf32, #tpu.memory_space<vmem>>, vector<8x128xf32>,
    } else {
    }
    return
  }
  func.func @transform_0(%arg0: i32, %arg1: i32, %arg2: i32) -> (i32, i32) {
    %c0_i32 = arith.constant 0 : i32
    return %arg0, %arg2 : i32, i32
  }
  func.func @transform_1(%arg0: i32, %arg1: i32, %arg2: i32) -> (i32, i32) {
    %c0_i32 = arith.constant 0 : i32
    %c0_i32_0 = arith.constant 0 : i32
    return %c0_i32, %arg2 : i32, i32
  }
  func.func @transform_2(%arg0: i32, %arg1: i32, %arg2: i32) -> (i32, i32) {
    %c0_i32 = arith.constant 0 : i32
    %c0_i32_0 = arith.constant 0 : i32
    return %c0_i32, %arg2 : i32, i32
  }
  func.func @transform_3(%arg0: i32, %arg1: i32, %arg2: i32) -> (i32, i32) {
    %c0_i32 = arith.constant 0 : i32
    return %arg2, %arg1 : i32, i32
  }
  func.func @transform_4(%arg0: i32, %arg1: i32, %arg2: i32) -> (i32, i32) {
    %c0_i32 = arith.constant 0 : i32
    return %arg0, %arg1 : i32, i32
  }
}

module attributes {stable_mosaic.version = 11 : i64} {
  func.func @_bnrelu_mm_bnrelu_kernel(%arg0: i32, %arg1: i32, %arg2: i32, %arg3: memref<8x128xf32, #tpu.memory_space<vmem>>, %arg4: memref<1x128xf32, #tpu.memory_space<vmem>>, %arg5: memref<1x128xf32, #tpu.memory_space<vmem>>, %arg6: memref<128x128xbf16, #tpu.memory_space<vmem>>, %arg7: memref<1x128xf32, #tpu.memory_space<vmem>>, %arg8: memref<1x128xf32, #tpu.memory_space<vmem>>, %arg9: memref<8x128xf32, #tpu.memory_space<vmem>>, %arg10: memref<8x128xf32, #tpu.memory_space<vmem>>) attributes {dimension_semantics = [#tpu.dimension_semantics<parallel>, #tpu.dimension_semantics<parallel>, #tpu.dimension_semantics<arbitrary>], iteration_bounds = array<i64: 1, 1, 13>, scalar_prefetch = 0 : i64, scratch_operands = 1 : i64, tpu.core_type = #tpu.core_type<tc>, window_params = [{transform_indices = @transform_0, window_bounds = array<i64: 8, 128>}, {transform_indices = @transform_1, window_bounds = array<i64: 1, 128>}, {transform_indices = @transform_2, window_bounds = array<i64: 1, 128>}, {transform_indices = @transform_3, window_bounds = array<i64: 128, 128>}, {transform_indices = @transform_4, window_bounds = array<i64: 1, 128>}, {transform_indices = @transform_5, window_bounds = array<i64: 1, 128>}, {transform_indices = @transform_6, window_bounds = array<i64: 8, 128>}]} {
    %c0_i32 = arith.constant 0 : i32
    %0 = arith.cmpi eq, %arg2, %c0_i32 : i32
    %1 = arith.extui %0 : i1 to i32
    %c0_i32_0 = arith.constant 0 : i32
    %2 = arith.cmpi ne, %1, %c0_i32_0 : i32
    scf.if %2 {
      %cst_14 = arith.constant 0.000000e+00 : f32
      %21 = vector.broadcast %cst_14 : f32 to vector<8x128xf32>
      %c0_15 = arith.constant 0 : index
      %c0_16 = arith.constant 0 : index
      %22 = vector.load %arg10[%c0_15, %c0_16] : memref<8x128xf32, #tpu.memory_space<vmem>>, vector<8x128xf32>
      tpu.vector_store %arg10[%c0_15, %c0_16], %21 {strides = array<i32>} : memref<8x128xf32, #tpu.memory_space<vmem>>, vector<8x128xf32>,
    } else {
    }
    %c0 = arith.constant 0 : index
    %c0_1 = arith.constant 0 : index
    %3 = vector.load %arg3[%c0, %c0_1] : memref<8x128xf32, #tpu.memory_space<vmem>>, vector<8x128xf32>
    %c0_2 = arith.constant 0 : index
    %c0_3 = arith.constant 0 : index
    %4 = vector.load %arg4[%c0_2, %c0_3] : memref<1x128xf32, #tpu.memory_space<vmem>>, vector<1x128xf32>
    %5 = vector.broadcast %4 : vector<1x128xf32> to vector<8x128xf32>
    %6 = arith.mulf %3, %5 : vector<8x128xf32>
    %c0_4 = arith.constant 0 : index
    %c0_5 = arith.constant 0 : index
    %7 = vector.load %arg5[%c0_4, %c0_5] : memref<1x128xf32, #tpu.memory_space<vmem>>, vector<1x128xf32>
    %8 = vector.broadcast %7 : vector<1x128xf32> to vector<8x128xf32>
    %9 = arith.addf %6, %8 : vector<8x128xf32>
    %cst = arith.constant 0.000000e+00 : f32
    %10 = vector.broadcast %cst : f32 to vector<8x128xf32>
    %11 = arith.maximumf %9, %10 : vector<8x128xf32>
    %c0_6 = arith.constant 0 : index
    %c0_7 = arith.constant 0 : index
    %12 = vector.load %arg10[%c0_6, %c0_7] : memref<8x128xf32, #tpu.memory_space<vmem>>, vector<8x128xf32>
    %13 = arith.truncf %11 : vector<8x128xf32> to vector<8x128xbf16>
    %c0_8 = arith.constant 0 : index
    %c0_9 = arith.constant 0 : index
    %14 = vector.load %arg6[%c0_8, %c0_9] : memref<128x128xbf16, #tpu.memory_space<vmem>>, vector<128x128xbf16>
    %cst_10 = arith.constant dense<0.000000e+00> : vector<8x128xf32>
    %15 = tpu.matmul %13, %14, %cst_10 {dimension_numbers = #tpu.dot_dimension_numbers<[1], [0], [0], [1], [0, 0, 1, 1], [], []>} : vector<8x128xbf16>, vector<128x128xbf16>, vector<8x128xf32> -> vector<8x128xf32>
    %16 = arith.addf %12, %15 : vector<8x128xf32>
    %c0_11 = arith.constant 0 : index
    %c0_12 = arith.constant 0 : index
    %17 = vector.load %arg10[%c0_11, %c0_12] : memref<8x128xf32, #tpu.memory_space<vmem>>, vector<8x128xf32>
    tpu.vector_store %arg10[%c0_11, %c0_12], %16 {strides = array<i32>} : memref<8x128xf32, #tpu.memory_space<vmem>>, vector<8x128xf32>,
    %c12_i32 = arith.constant 12 : i32
    %18 = arith.cmpi eq, %arg2, %c12_i32 : i32
    %19 = arith.extui %18 : i1 to i32
    %c0_i32_13 = arith.constant 0 : i32
    %20 = arith.cmpi ne, %19, %c0_i32_13 : i32
    scf.if %20 {
      %c0_14 = arith.constant 0 : index
      %c0_15 = arith.constant 0 : index
      %21 = vector.load %arg10[%c0_14, %c0_15] : memref<8x128xf32, #tpu.memory_space<vmem>>, vector<8x128xf32>
      %c0_16 = arith.constant 0 : index
      %c0_17 = arith.constant 0 : index
      %22 = vector.load %arg7[%c0_16, %c0_17] : memref<1x128xf32, #tpu.memory_space<vmem>>, vector<1x128xf32>
      %23 = vector.broadcast %22 : vector<1x128xf32> to vector<8x128xf32>
      %24 = arith.mulf %21, %23 : vector<8x128xf32>
      %c0_18 = arith.constant 0 : index
      %c0_19 = arith.constant 0 : index
      %25 = vector.load %arg8[%c0_18, %c0_19] : memref<1x128xf32, #tpu.memory_space<vmem>>, vector<1x128xf32>
      %26 = vector.broadcast %25 : vector<1x128xf32> to vector<8x128xf32>
      %27 = arith.addf %24, %26 : vector<8x128xf32>
      %cst_20 = arith.constant 0.000000e+00 : f32
      %28 = vector.broadcast %cst_20 : f32 to vector<8x128xf32>
      %29 = arith.maximumf %27, %28 : vector<8x128xf32>
      %c0_21 = arith.constant 0 : index
      %c0_22 = arith.constant 0 : index
      %30 = vector.load %arg9[%c0_21, %c0_22] : memref<8x128xf32, #tpu.memory_space<vmem>>, vector<8x128xf32>
      tpu.vector_store %arg9[%c0_21, %c0_22], %29 {strides = array<i32>} : memref<8x128xf32, #tpu.memory_space<vmem>>, vector<8x128xf32>,
    } else {
    }
    return
  }
  func.func @transform_0(%arg0: i32, %arg1: i32, %arg2: i32) -> (i32, i32) {
    %c0_i32 = arith.constant 0 : i32
    return %arg0, %arg2 : i32, i32
  }
  func.func @transform_1(%arg0: i32, %arg1: i32, %arg2: i32) -> (i32, i32) {
    %c0_i32 = arith.constant 0 : i32
    %c0_i32_0 = arith.constant 0 : i32
    return %c0_i32, %arg2 : i32, i32
  }
  func.func @transform_2(%arg0: i32, %arg1: i32, %arg2: i32) -> (i32, i32) {
    %c0_i32 = arith.constant 0 : i32
    %c0_i32_0 = arith.constant 0 : i32
    return %c0_i32, %arg2 : i32, i32
  }
  func.func @transform_3(%arg0: i32, %arg1: i32, %arg2: i32) -> (i32, i32) {
    %c0_i32 = arith.constant 0 : i32
    return %arg2, %arg1 : i32, i32
  }
  func.func @transform_4(%arg0: i32, %arg1: i32, %arg2: i32) -> (i32, i32) {
    %c0_i32 = arith.constant 0 : i32
    %c0_i32_0 = arith.constant 0 : i32
    return %c0_i32, %arg1 : i32, i32
  }
  func.func @transform_5(%arg0: i32, %arg1: i32, %arg2: i32) -> (i32, i32) {
    %c0_i32 = arith.constant 0 : i32
    %c0_i32_0 = arith.constant 0 : i32
    return %c0_i32, %arg1 : i32, i32
  }
  func.func @transform_6(%arg0: i32, %arg1: i32, %arg2: i32) -> (i32, i32) {
    %c0_i32 = arith.constant 0 : i32
    return %arg0, %arg1 : i32, i32
  }
}

module attributes {stable_mosaic.version = 11 : i64} {
  func.func @_scale_shift_kernel(%arg0: i32, %arg1: memref<8x1664xf32, #tpu.memory_space<vmem>>, %arg2: memref<1x1664xf32, #tpu.memory_space<vmem>>, %arg3: memref<1x1664xf32, #tpu.memory_space<vmem>>, %arg4: memref<8x1664xf32, #tpu.memory_space<vmem>>) attributes {dimension_semantics = [#tpu.dimension_semantics<parallel>], iteration_bounds = array<i64: 1>, scalar_prefetch = 0 : i64, scratch_operands = 0 : i64, tpu.core_type = #tpu.core_type<tc>, window_params = [{transform_indices = @transform_0, window_bounds = array<i64: 8, 1664>}, {pipeline_mode = #tpu.pipeline_mode<synchronous>, transform_indices = @transform_1, window_bounds = array<i64: 1, 1664>}, {pipeline_mode = #tpu.pipeline_mode<synchronous>, transform_indices = @transform_2, window_bounds = array<i64: 1, 1664>}, {transform_indices = @transform_3, window_bounds = array<i64: 8, 1664>}]} {
    %c0 = arith.constant 0 : index
    %c0_0 = arith.constant 0 : index
    %0 = vector.load %arg1[%c0, %c0_0] : memref<8x1664xf32, #tpu.memory_space<vmem>>, vector<8x1664xf32>
    %c0_1 = arith.constant 0 : index
    %c0_2 = arith.constant 0 : index
    %1 = vector.load %arg2[%c0_1, %c0_2] : memref<1x1664xf32, #tpu.memory_space<vmem>>, vector<1x1664xf32>
    %2 = vector.broadcast %1 : vector<1x1664xf32> to vector<8x1664xf32>
    %3 = arith.mulf %0, %2 : vector<8x1664xf32>
    %c0_3 = arith.constant 0 : index
    %c0_4 = arith.constant 0 : index
    %4 = vector.load %arg3[%c0_3, %c0_4] : memref<1x1664xf32, #tpu.memory_space<vmem>>, vector<1x1664xf32>
    %5 = vector.broadcast %4 : vector<1x1664xf32> to vector<8x1664xf32>
    %6 = arith.addf %3, %5 : vector<8x1664xf32>
    %c0_5 = arith.constant 0 : index
    %c0_6 = arith.constant 0 : index
    %7 = vector.load %arg4[%c0_5, %c0_6] : memref<8x1664xf32, #tpu.memory_space<vmem>>, vector<8x1664xf32>
    tpu.vector_store %arg4[%c0_5, %c0_6], %6 {strides = array<i32>} : memref<8x1664xf32, #tpu.memory_space<vmem>>, vector<8x1664xf32>,
    return
  }
  func.func @transform_0(%arg0: i32) -> (i32, i32) {
    %c0_i32 = arith.constant 0 : i32
    %c0_i32_0 = arith.constant 0 : i32
    return %arg0, %c0_i32 : i32, i32
  }
  func.func @transform_1(%arg0: i32) -> (i32, i32) {
    %c0_i32 = arith.constant 0 : i32
    %c0_i32_0 = arith.constant 0 : i32
    %c0_i32_1 = arith.constant 0 : i32
    return %c0_i32, %c0_i32_0 : i32, i32
  }
  func.func @transform_2(%arg0: i32) -> (i32, i32) {
    %c0_i32 = arith.constant 0 : i32
    %c0_i32_0 = arith.constant 0 : i32
    %c0_i32_1 = arith.constant 0 : i32
    return %c0_i32, %c0_i32_0 : i32, i32
  }
  func.func @transform_3(%arg0: i32) -> (i32, i32) {
    %c0_i32 = arith.constant 0 : i32
    %c0_i32_0 = arith.constant 0 : i32
    return %arg0, %c0_i32 : i32, i32
  }
}

</mosaic_0001>

<bundles_post_ra>
// kernel: _encoder_forward.177
= control target key start
LH: loop header
LB: loop body
LE: loop exit
PB: predicated region body
PF: predicated region fallthrough
CT: control target
= control target key end

     0   :  { %s309_s6 = smov 0   ;;  %s394_s0 = inlined_call_operand.vmem [shape: f32[512,128], index: 0, kind: input, shape index: {}]   ;;  %s395_s1 = inlined_call_operand.vmem [shape: f32[512,128], index: 1, kind: output, shape index: {}]  }
   0x1 LB: > { %s272_s7 = sadd.s32 4294967295, %s297_s6   ;;  %p276_p0 = scmp.ge.s32.totalorder %s297_s6, 1  ;;  %s297_s6 = sphi %s309_s6, %s11_s6  }
   0x2   : > { %p88_p1 = scmp.lt.s32.totalorder %s297_s6, 3 }
   0x4   : > { %p89_p2 = pnand %p276_p0, %p88_p1 }
   0x5   : > { %s277_s8 = sshll.u32 (!%p89_p2), %s272_s7, 5 }
   0x6   : > { %92 = sbr.rel (%p89_p2) target bundleno = 35 (0x23), region = 24  ;;  %p109_p3 = scmp.lt.s32.totalorder (!%p89_p2), %s277_s8, 63 }
   0xd   : > { %s397_s8 = smov (!%p109_p3, %s277_s8), 63 }
   0xe   : > { %s278_s9 = sshll.u32 %s397_s8, 3 }
   0xf   : > { %s320_s12 = scalar_lea.vmem %s394_s0, %s278_s9  ;;  %s325_s15 = scalar_lea.vmem %s395_s1, %s278_s9 }
  0x10   : > { %v120_v0 = vld [vmem:[%s320_s12] sm:$0xff]  ;;  %v121_v1 = vld [vmem:[%s320_s12 + $0x8] sm:$0xff]  ;;  %v122_v2 = vld [vmem:[%s320_s12 + $0x10] sm:$0xff] }
  0x11   : > { %v152_v3 = vmax.f32 %v120_v0, 0.0  ;;  %v153_v4 = vmax.f32 %v121_v1, 0.0  ;;  %v154_v5 = vmax.f32 %v122_v2, 0.0  ;;  %v123_v6 = vld [vmem:[%s320_s12 + $0x18] sm:$0xff]  ;;  %v124_v7 = vld [vmem:[%s320_s12 + $0x20] sm:$0xff]  ;;  %v125_v8 = vld [vmem:[%s320_s12 + $0x28] sm:$0xff] }
  0x12   : > { %v155_v9 = vmax.f32 %v123_v6, 0.0  ;;  %v156_v10 = vmax.f32 %v124_v7, 0.0  ;;  %v157_v11 = vmax.f32 %v125_v8, 0.0  ;;  %v126_v12 = vld [vmem:[%s320_s12 + $0x30] sm:$0xff]  ;;  %v127_v13 = vld [vmem:[%s320_s12 + $0x38] sm:$0xff]  ;;  %v128_v14 = vld [vmem:[%s320_s12 + $0x40] sm:$0xff] }
  0x13   : > { %184 = vst [vmem:[%s325_s15] sm:$0xff] %v152_v3  ;;  %185 = vst [vmem:[%s325_s15 + $0x8] sm:$0xff] %v153_v4  ;;  %v158_v15 = vmax.f32 %v126_v12, 0.0  ;;  %v159_v16 = vmax.f32 %v127_v13, 0.0  ;;  %v160_v17 = vmax.f32 %v128_v14, 0.0  ;;  %v129_v18 = vld [vmem:[%s320_s12 + $0x48] sm:$0xff]  ;;  %v130_v19 = vld [vmem:[%s320_s12 + $0x50] sm:$0xff] }
  0x14   : > { %186 = vst [vmem:[%s325_s15 + $0x10] sm:$0xff] %v154_v5  ;;  %v131_v20 = vld [vmem:[%s320_s12 + $0x58] sm:$0xff]  ;;  %187 = vst [vmem:[%s325_s15 + $0x18] sm:$0xff] %v155_v9  ;;  %v161_v21 = vmax.f32 %v129_v18, 0.0  ;;  %v162_v22 = vmax.f32 %v130_v19, 0.0  ;;  %v132_v24 = vld [vmem:[%s320_s12 + $0x60] sm:$0xff] }
  0x15   : > { %188 = vst [vmem:[%s325_s15 + $0x20] sm:$0xff] %v156_v10  ;;  %189 = vst [vmem:[%s325_s15 + $0x28] sm:$0xff] %v157_v11  ;;  %v163_v23 = vmax.f32 %v131_v20, 0.0  ;;  %v133_v25 = vld [vmem:[%s320_s12 + $0x68] sm:$0xff]  ;;  %v134_v26 = vld [vmem:[%s320_s12 + $0x70] sm:$0xff]  ;;  %v164_v27 = vmax.f32 %v132_v24, 0.0 }
  0x16   : > { %190 = vst [vmem:[%s325_s15 + $0x30] sm:$0xff] %v158_v15  ;;  %191 = vst [vmem:[%s325_s15 + $0x38] sm:$0xff] %v159_v16  ;;  %v165_v28 = vmax.f32 %v133_v25, 0.0  ;;  %v166_v29 = vmax.f32 %v134_v26, 0.0  ;;  %v135_v30 = vld [vmem:[%s320_s12 + $0x78] sm:$0xff]  ;;  %v136_v31 = vld [vmem:[%s320_s12 + $0x80] sm:$0xff] }
  0x17   : > { %192 = vst [vmem:[%s325_s15 + $0x40] sm:$0xff] %v160_v17  ;;  %v137_v32 = vld [vmem:[%s320_s12 + $0x88] sm:$0xff]  ;;  %193 = vst [vmem:[%s325_s15 + $0x48] sm:$0xff] %v161_v21  ;;  %v167_v33 = vmax.f32 %v135_v30, 0.0  ;;  %v168_v34 = vmax.f32 %v136_v31, 0.0  ;;  %v138_v36 = vld [vmem:[%s320_s12 + $0x90] sm:$0xff] }
  0x18   : > { %194 = vst [vmem:[%s325_s15 + $0x50] sm:$0xff] %v162_v22  ;;  %195 = vst [vmem:[%s325_s15 + $0x58] sm:$0xff] %v163_v23  ;;  %v169_v35 = vmax.f32 %v137_v32, 0.0  ;;  %v139_v37 = vld [vmem:[%s320_s12 + $0x98] sm:$0xff]  ;;  %v140_v38 = vld [vmem:[%s320_s12 + $0xa0] sm:$0xff]  ;;  %v170_v39 = vmax.f32 %v138_v36, 0.0 }
  0x19   : > { %196 = vst [vmem:[%s325_s15 + $0x60] sm:$0xff] %v164_v27  ;;  %197 = vst [vmem:[%s325_s15 + $0x68] sm:$0xff] %v165_v28  ;;  %v171_v40 = vmax.f32 %v139_v37, 0.0  ;;  %v172_v41 = vmax.f32 %v140_v38, 0.0  ;;  %v141_v42 = vld [vmem:[%s320_s12 + $0xa8] sm:$0xff]  ;;  %v142_v43 = vld [vmem:[%s320_s12 + $0xb0] sm:$0xff] }
  0x1a   : > { %198 = vst [vmem:[%s325_s15 + $0x70] sm:$0xff] %v166_v29  ;;  %v143_v44 = vld [vmem:[%s320_s12 + $0xb8] sm:$0xff]  ;;  %199 = vst [vmem:[%s325_s15 + $0x78] sm:$0xff] %v167_v33  ;;  %v173_v45 = vmax.f32 %v141_v42, 0.0  ;;  %v174_v46 = vmax.f32 %v142_v43, 0.0  ;;  %v144_v48 = vld [vmem:[%s320_s12 + $0xc0] sm:$0xff] }
  0x1b   : > { %200 = vst [vmem:[%s325_s15 + $0x80] sm:$0xff] %v168_v34  ;;  %201 = vst [vmem:[%s325_s15 + $0x88] sm:$0xff] %v169_v35  ;;  %v175_v47 = vmax.f32 %v143_v44, 0.0  ;;  %v145_v49 = vld [vmem:[%s320_s12 + $0xc8] sm:$0xff]  ;;  %v146_v50 = vld [vmem:[%s320_s12 + $0xd0] sm:$0xff]  ;;  %v176_v51 = vmax.f32 %v144_v48, 0.0 }
  0x1c   : > { %202 = vst [vmem:[%s325_s15 + $0x90] sm:$0xff] %v170_v39  ;;  %203 = vst [vmem:[%s325_s15 + $0x98] sm:$0xff] %v171_v40  ;;  %v177_v52 = vmax.f32 %v145_v49, 0.0  ;;  %v178_v53 = vmax.f32 %v146_v50, 0.0  ;;  %v147_v54 = vld [vmem:[%s320_s12 + $0xd8] sm:$0xff]  ;;  %v148_v55 = vld [vmem:[%s320_s12 + $0xe0] sm:$0xff] }
  0x1d   : > { %204 = vst [vmem:[%s325_s15 + $0xa0] sm:$0xff] %v172_v41  ;;  %v149_v56 = vld [vmem:[%s320_s12 + $0xe8] sm:$0xff]  ;;  %205 = vst [vmem:[%s325_s15 + $0xa8] sm:$0xff] %v173_v45  ;;  %v179_v57 = vmax.f32 %v147_v54, 0.0  ;;  %v180_v58 = vmax.f32 %v148_v55, 0.0  ;;  %v150_v60 = vld [vmem:[%s320_s12 + $0xf0] sm:$0xff] }
  0x1e   : > { %206 = vst [vmem:[%s325_s15 + $0xb0] sm:$0xff] %v174_v46  ;;  %207 = vst [vmem:[%s325_s15 + $0xb8] sm:$0xff] %v175_v47  ;;  %v181_v59 = vmax.f32 %v149_v56, 0.0  ;;  %v151_v61 = vld [vmem:[%s320_s12 + $0xf8] sm:$0xff]  ;;  %v182_v62 = vmax.f32 %v150_v60, 0.0 }
  0x1f   : > { %208 = vst [vmem:[%s325_s15 + $0xc0] sm:$0xff] %v176_v51  ;;  %209 = vst [vmem:[%s325_s15 + $0xc8] sm:$0xff] %v177_v52  ;;  %v183_v63 = vmax.f32 %v151_v61, 0.0 }
  0x20   : > { %210 = vst [vmem:[%s325_s15 + $0xd0] sm:$0xff] %v178_v53  ;;  %211 = vst [vmem:[%s325_s15 + $0xd8] sm:$0xff] %v179_v57 }
  0x21   : > { %212 = vst [vmem:[%s325_s15 + $0xe0] sm:$0xff] %v180_v58  ;;  %213 = vst [vmem:[%s325_s15 + $0xe8] sm:$0xff] %v181_v59 }
  0x22   : > { %214 = vst [vmem:[%s325_s15 + $0xf0] sm:$0xff] %v182_v62  ;;  %215 = vst [vmem:[%s325_s15 + $0xf8] sm:$0xff] %v183_v63 }
  0x23 PF: > { %s11_s6 = sadd.s32 1, %s297_s6  }
  0x24   : > { %p8_p4 = scmp.ge.s32.totalorder %s11_s6, 4  }
  0x26   :  { %10 = sbr.rel (!%p8_p4) target bundleno = 1 (0x1), region = 54 }

// kernel: _encoder_forward.176
= control target key start
LH: loop header
LB: loop body
LE: loop exit
PB: predicated region body
PF: predicated region fallthrough
CT: control target
= control target key end

     0   :  { %s421_s12 = smov 0   ;;  %s580_s0 = inlined_call_operand.vmem [shape: f32[512,128], index: 0, kind: input, shape index: {}]   ;;  %s581_s1 = inlined_call_operand.vmem [shape: f32[1,128], index: 1, kind: input, shape index: {}]   ;;  %s582_s2 = inlined_call_operand.vmem [shape: f32[1,128], index: 2, kind: input, shape index: {}]   ;;  %s583_s3 = inlined_call_operand.vmem [shape: f32[512,128], index: 3, kind: output, shape index: {}]  }
   0x1 LB: > { %s372_s13 = sadd.s32 4294967295, %s399_s12   ;;  %p376_p0 = scmp.ge.s32.totalorder %s399_s12, 1  ;;  %s399_s12 = sphi %s421_s12, %s13_s12  }
   0x2   : > { %p138_p1 = scmp.lt.s32.totalorder %s399_s12, 3 }
   0x4   : > { %p139_p2 = pnand %p376_p0, %p138_p1 }
   0x5   : > { %s377_s14 = sshll.u32 (!%p139_p2), %s372_s13, 5  ;;  %v432_v0 = vld [vmem:[%s581_s1] ss:$0 sm:$0xff] (!%p139_p2) }
   0x6   : > { %142 = sbr.rel (%p139_p2) target bundleno = 40 (0x28), region = 32  ;;  %p163_p3 = scmp.lt.s32.totalorder (!%p139_p2), %s377_s14, 63  ;;  %v442_v1 = vld [vmem:[%s582_s2] ss:$0 sm:$0xff] (!%p139_p2) }
   0xd   : > { %s585_s14 = smov (!%p163_p3, %s377_s14), 63 }
   0xe   : > { %s378_s15 = sshll.u32 %s585_s14, 3 }
   0xf   : > { %s437_s20 = scalar_lea.vmem %s580_s0, %s378_s15  ;;  %s456_s25 = scalar_lea.vmem %s583_s3, %s378_s15 }
  0x10   : > { %v174_v2 = vld [vmem:[%s437_s20] sm:$0xff]  ;;  %v175_v3 = vld [vmem:[%s437_s20 + $0x8] sm:$0xff]  ;;  %v176_v4 = vld [vmem:[%s437_s20 + $0x10] sm:$0xff] }
  0x11   : > { %v213_v5 = vmul.f32 %v432_v0, %v174_v2  ;;  %v214_v6 = vmul.f32 %v432_v0, %v175_v3  ;;  %v215_v7 = vmul.f32 %v432_v0, %v176_v4  ;;  %v177_v8 = vld [vmem:[%s437_s20 + $0x18] sm:$0xff]  ;;  %v178_v9 = vld [vmem:[%s437_s20 + $0x20] sm:$0xff]  ;;  %v179_v10 = vld [vmem:[%s437_s20 + $0x28] sm:$0xff] }
  0x12   : > { %v216_v11 = vmul.f32 %v432_v0, %v177_v8  ;;  %v217_v12 = vmul.f32 %v432_v0, %v178_v9  ;;  %v218_v13 = vmul.f32 %v432_v0, %v179_v10  ;;  %v180_v14 = vld [vmem:[%s437_s20 + $0x30] sm:$0xff]  ;;  %v181_v15 = vld [vmem:[%s437_s20 + $0x38] sm:$0xff]  ;;  %v182_v16 = vld [vmem:[%s437_s20 + $0x40] sm:$0xff] }
  0x13   : > { %v252_v17 = vadd.f32 %v442_v1, %v213_v5  ;;  %v253_v18 = vadd.f32 %v442_v1, %v214_v6  ;;  %v254_v19 = vadd.f32 %v442_v1, %v215_v7  ;;  %v219_v20 = vmul.f32 %v432_v0, %v180_v14  ;;  %v183_v21 = vld [vmem:[%s437_s20 + $0x48] sm:$0xff]  ;;  %v184_v22 = vld [vmem:[%s437_s20 + $0x50] sm:$0xff]  ;;  %v185_v23 = vld [vmem:[%s437_s20 + $0x58] sm:$0xff] }
  0x14   : > { %v255_v24 = vadd.f32 %v442_v1, %v216_v11  ;;  %v256_v25 = vadd.f32 %v442_v1, %v217_v12  ;;  %v257_v26 = vadd.f32 %v442_v1, %v218_v13  ;;  %v220_v27 = vmul.f32 %v432_v0, %v181_v15  ;;  %v186_v28 = vld [vmem:[%s437_s20 + $0x60] sm:$0xff]  ;;  %v187_v29 = vld [vmem:[%s437_s20 + $0x68] sm:$0xff]  ;;  %v188_v30 = vld [vmem:[%s437_s20 + $0x70] sm:$0xff] }
  0x15   : > { %284 = vst [vmem:[%s456_s25] sm:$0xff] %v252_v17  ;;  %285 = vst [vmem:[%s456_s25 + $0x8] sm:$0xff] %v253_v18  ;;  %v258_v31 = vadd.f32 %v442_v1, %v219_v20  ;;  %v221_v32 = vmul.f32 %v432_v0, %v182_v16  ;;  %v222_v33 = vmul.f32 %v432_v0, %v183_v21  ;;  %v189_v35 = vld [vmem:[%s437_s20 + $0x78] sm:$0xff]  ;;  %v190_v40 = vld [vmem:[%s437_s20 + $0x80] sm:$0xff] }
  0x16   : > { %286 = vst [vmem:[%s456_s25 + $0x10] sm:$0xff] %v254_v19  ;;  %v223_v34 = vmul.f32 %v432_v0, %v184_v22  ;;  %287 = vst [vmem:[%s456_s25 + $0x18] sm:$0xff] %v255_v24  ;;  %v259_v36 = vadd.f32 %v442_v1, %v220_v27  ;;  %v224_v37 = vmul.f32 %v432_v0, %v185_v23  ;;  %v191_v41 = vld [vmem:[%s437_s20 + $0x88] sm:$0xff]  ;;  %v192_v42 = vld [vmem:[%s437_s20 + $0x90] sm:$0xff] }
  0x17   : > { %288 = vst [vmem:[%s456_s25 + $0x20] sm:$0xff] %v256_v25  ;;  %289 = vst [vmem:[%s456_s25 + $0x28] sm:$0xff] %v257_v26  ;;  %v225_v38 = vmul.f32 %v432_v0, %v186_v28  ;;  %v226_v39 = vmul.f32 %v432_v0, %v187_v29  ;;  %v260_v43 = vadd.f32 %v442_v1, %v221_v32  ;;  %v193_v47 = vld [vmem:[%s437_s20 + $0x98] sm:$0xff]  ;;  %v194_v48 = vld [vmem:[%s437_s20 + $0xa0] sm:$0xff] }
  0x18   : > { %290 = vst [vmem:[%s456_s25 + $0x30] sm:$0xff] %v258_v31  ;;  %v261_v44 = vadd.f32 %v442_v1, %v222_v33  ;;  %v262_v45 = vadd.f32 %v442_v1, %v223_v34  ;;  %v227_v46 = vmul.f32 %v432_v0, %v188_v30  ;;  %v195_v49 = vld [vmem:[%s437_s20 + $0xa8] sm:$0xff]  ;;  %291 = vst [vmem:[%s456_s25 + $0x38] sm:$0xff] %v259_v36  ;;  %v196_v54 = vld [vmem:[%s437_s20 + $0xb0] sm:$0xff] }
  0x19   : > { %v263_v50 = vadd.f32 %v442_v1, %v224_v37  ;;  %v264_v51 = vadd.f32 %v442_v1, %v225_v38  ;;  %v265_v52 = vadd.f32 %v442_v1, %v226_v39  ;;  %v228_v53 = vmul.f32 %v432_v0, %v189_v35  ;;  %292 = vst [vmem:[%s456_s25 + $0x40] sm:$0xff] %v260_v43  ;;  %v197_v59 = vld [vmem:[%s437_s20 + $0xb8] sm:$0xff]  ;;  %v198_v2 = vld [vmem:[%s437_s20 + $0xc0] sm:$0xff]  ;;  %v199_v3 = vld [vmem:[%s437_s20 + $0xc8] sm:$0xff] }
  0x1a   : > { %293 = vst [vmem:[%s456_s25 + $0x48] sm:$0xff] %v261_v44  ;;  %294 = vst [vmem:[%s456_s25 + $0x50] sm:$0xff] %v262_v45  ;;  %v266_v55 = vadd.f32 %v442_v1, %v227_v46  ;;  %v229_v56 = vmul.f32 %v432_v0, %v190_v40  ;;  %v230_v57 = vmul.f32 %v432_v0, %v191_v41  ;;  %v200_v4 = vld [vmem:[%s437_s20 + $0xd0] sm:$0xff]  ;;  %v201_v9 = vld [vmem:[%s437_s20 + $0xd8] sm:$0xff] }
  0x1b   : > { %v231_v58 = vmul.f32 %v432_v0, %v192_v42  ;;  %295 = vst [vmem:[%s456_s25 + $0x58] sm:$0xff] %v263_v50  ;;  %296 = vst [vmem:[%s456_s25 + $0x60] sm:$0xff] %v264_v51  ;;  %v267_v60 = vadd.f32 %v442_v1, %v228_v53  ;;  %v232_v61 = vmul.f32 %v432_v0, %v193_v47  ;;  %v202_v10 = vld [vmem:[%s437_s20 + $0xe0] sm:$0xff]  ;;  %v203_v11 = vld [vmem:[%s437_s20 + $0xe8] sm:$0xff] }
  0x1c   : > { %297 = vst [vmem:[%s456_s25 + $0x68] sm:$0xff] %v265_v52  ;;  %v233_v62 = vmul.f32 %v432_v0, %v194_v48  ;;  %v234_v63 = vmul.f32 %v432_v0, %v195_v49  ;;  %298 = vst [vmem:[%s456_s25 + $0x70] sm:$0xff] %v266_v55  ;;  %v268_v5 = vadd.f32 %v442_v1, %v229_v56  ;;  %v204_v16 = vld [vmem:[%s437_s20 + $0xf0] sm:$0xff]  ;;  %v205_v21 = vld [vmem:[%s437_s20 + $0xf8] sm:$0xff] }
  0x1d   : > { %v269_v6 = vadd.f32 %v442_v1, %v230_v57  ;;  %v270_v7 = vadd.f32 %v442_v1, %v231_v58  ;;  %v235_v8 = vmul.f32 %v432_v0, %v196_v54  ;;  %299 = vst [vmem:[%s456_s25 + $0x78] sm:$0xff] %v267_v60  ;;  %v271_v12 = vadd.f32 %v442_v1, %v232_v61 }
  0x1e   : > { %v272_v13 = vadd.f32 %v442_v1, %v233_v62  ;;  %v273_v14 = vadd.f32 %v442_v1, %v234_v63  ;;  %v236_v15 = vmul.f32 %v432_v0, %v197_v59  ;;  %300 = vst [vmem:[%s456_s25 + $0x80] sm:$0xff] %v268_v5  ;;  %v237_v18 = vmul.f32 %v432_v0, %v198_v2 }
  0x1f   : > { %301 = vst [vmem:[%s456_s25 + $0x88] sm:$0xff] %v269_v6  ;;  %302 = vst [vmem:[%s456_s25 + $0x90] sm:$0xff] %v270_v7  ;;  %v274_v17 = vadd.f32 %v442_v1, %v235_v8  ;;  %v238_v19 = vmul.f32 %v432_v0, %v199_v3  ;;  %v239_v20 = vmul.f32 %v432_v0, %v200_v4 }
  0x20   : > { %303 = vst [vmem:[%s456_s25 + $0x98] sm:$0xff] %v271_v12  ;;  %304 = vst [vmem:[%s456_s25 + $0xa0] sm:$0xff] %v272_v13  ;;  %v275_v22 = vadd.f32 %v442_v1, %v236_v15  ;;  %v240_v23 = vmul.f32 %v432_v0, %v201_v9  ;;  %v241_v24 = vmul.f32 %v432_v0, %v202_v10 }
  0x21   : > { %305 = vst [vmem:[%s456_s25 + $0xa8] sm:$0xff] %v273_v14  ;;  %v242_v25 = vmul.f32 %v432_v0, %v203_v11  ;;  %306 = vst [vmem:[%s456_s25 + $0xb0] sm:$0xff] %v274_v17  ;;  %v276_v26 = vadd.f32 %v442_v1, %v237_v18  ;;  %v277_v27 = vadd.f32 %v442_v1, %v238_v19 }
  0x22   : > { %v278_v28 = vadd.f32 %v442_v1, %v239_v20  ;;  %v243_v29 = vmul.f32 %v432_v0, %v204_v16  ;;  %307 = vst [vmem:[%s456_s25 + $0xb8] sm:$0xff] %v275_v22  ;;  %v279_v30 = vadd.f32 %v442_v1, %v240_v23  ;;  %v280_v31 = vadd.f32 %v442_v1, %v241_v24 }
  0x23   : > { %v281_v32 = vadd.f32 %v442_v1, %v242_v25  ;;  %v244_v33 = vmul.f32 %v432_v0, %v205_v21  ;;  %308 = vst [vmem:[%s456_s25 + $0xc0] sm:$0xff] %v276_v26  ;;  %309 = vst [vmem:[%s456_s25 + $0xc8] sm:$0xff] %v277_v27 }
  0x24   : > { %310 = vst [vmem:[%s456_s25 + $0xd0] sm:$0xff] %v278_v28  ;;  %v282_v34 = vadd.f32 %v442_v1, %v243_v29  ;;  %311 = vst [vmem:[%s456_s25 + $0xd8] sm:$0xff] %v279_v30 }
  0x25   : > { %312 = vst [vmem:[%s456_s25 + $0xe0] sm:$0xff] %v280_v31  ;;  %313 = vst [vmem:[%s456_s25 + $0xe8] sm:$0xff] %v281_v32  ;;  %v283_v35 = vadd.f32 %v442_v1, %v244_v33 }
  0x26   : > { %314 = vst [vmem:[%s456_s25 + $0xf0] sm:$0xff] %v282_v34 }
  0x27   : > { %315 = vst [vmem:[%s456_s25 + $0xf8] sm:$0xff] %v283_v35 }
  0x28 PF: > { %s13_s12 = sadd.s32 1, %s399_s12  }
  0x29   : > { %p10_p4 = scmp.ge.s32.totalorder %s13_s12, 4  }
  0x2b   :  { %12 = sbr.rel (!%p10_p4) target bundleno = 1 (0x1), region = 62 }

// kernel: _encoder_forward.175
= control target key start
LH: loop header
LB: loop body
LE: loop exit
PB: predicated region body
PF: predicated region fallthrough
CT: control target
= control target key end

     0   :  { %s1326_s9 = smov 0   ;;  %s1328_s10 = smov 0   ;;  %s1482_s0 = inlined_call_operand.vmem [shape: bf16[512,256], index: 0, kind: input, shape index: {}]   ;;  %s1483_s1 = inlined_call_operand.vmem [shape: bf16[256,128], index: 1, kind: input, shape index: {}]   ;;  %s1484_s2 = inlined_call_operand.vmem [shape: f32[512,128], index: 2, kind: output, shape index: {}]  }
   0x1   :  { %s1330_s11 = smov 0  }
   0x2 LB: > { %s31_s12 = sadd.s32 1, %s1305_s10  ;;  %p1014_p0 = scmp.ge.s32.totalorder %s1309_s11, 1  ;;  %s1309_s11 = sphi %s1330_s11, %s12_s11   ;;  %s1305_s10 = sphi %s1328_s10, %s1486_s10   ;;  %s1301_s9 = sphi %s1326_s9, %s1485_s9  }
   0x3   : > { %p33_p1 = scmp.ge.s32.totalorder %s31_s12, 2  ;;  %p158_p2 = scmp.lt.s32.totalorder %s1309_s11, 3 }
   0x5   : > { %s1488_s12 = smov (%p33_p1, %s31_s12), 0  ;;  %p159_p3 = pnand %p1014_p0, %p158_p2 }
   0x6   : > { %v1223_v0 = vld [vmem:[%s1483_s1 + $0x40] sm:$0xff] (!%p159_p3)   ;;  %s1015_s15 = sshll.u32 (!%p159_p3), %s1301_s9, 5  ;;  %v1225_v2 = vld [vmem:[%s1483_s1 + $0x48] sm:$0xff] (!%p159_p3)   ;;  %v1227_v4 = vld [vmem:[%s1483_s1 + $0x50] sm:$0xff] (!%p159_p3)  }
   0x7   : > { %162 = sbr.rel (%p159_p3) target bundleno = 313 (0x139), region = 28  ;;  %v1224_v1 = vld [vmem:[%s1483_s1] sm:$0xff] (!%p159_p3)   ;;  %1071 = vmatprep.subr.bf16.mxu0 (!%p159_p3), %v1223_v0  ;;  %1183 = vmatprep.subr.bf16.mxu1 (!%p159_p3), %v1223_v0  ;;  %v1226_v3 = vld [vmem:[%s1483_s1 + $0x8] sm:$0xff] (!%p159_p3)   ;;  %p198_p4 = scmp.lt.s32.totalorder (!%p159_p3), %s1015_s15, 63  ;;  %v1228_v5 = vld [vmem:[%s1483_s1 + $0x10] sm:$0xff] (!%p159_p3)  }
   0x8   : > { %1072 = vmatpush3.bf16.msra.mxu0 (!%p159_p3), %v1224_v1  ;;  %1191 = vmatpush3.bf16.msra.mxu1 (!%p159_p3), %v1224_v1  ;;  %v1229_v6 = vld [vmem:[%s1483_s1 + $0x58] sm:$0xff] (!%p159_p3)   ;;  %v1231_v8 = vld [vmem:[%s1483_s1 + $0x60] sm:$0xff] (!%p159_p3)   ;;  %v1233_v10 = vld [vmem:[%s1483_s1 + $0x68] sm:$0xff] (!%p159_p3)  }
   0x9   : > { %1073 = vmatprep.subr.bf16.mxu0 (!%p159_p3), %v1225_v2  ;;  %1184 = vmatprep.subr.bf16.mxu1 (!%p159_p3), %v1225_v2  ;;  %v1230_v7 = vld [vmem:[%s1483_s1 + $0x18] sm:$0xff] (!%p159_p3)   ;;  %v1232_v9 = vld [vmem:[%s1483_s1 + $0x20] sm:$0xff] (!%p159_p3)   ;;  %v1234_v13 = vld [vmem:[%s1483_s1 + $0x28] sm:$0xff] (!%p159_p3)  }
   0xa   : > { %v1235_v14 = vld [vmem:[%s1483_s1 + $0x70] sm:$0xff] (!%p159_p3)   ;;  %v1237_v16 = vld [vmem:[%s1483_s1 + $0x78] sm:$0xff] (!%p159_p3)  }
   0xb   : > { %v1236_v15 = vld [vmem:[%s1483_s1 + $0x30] sm:$0xff] (!%p159_p3)   ;;  %v1238_v17 = vld [vmem:[%s1483_s1 + $0x38] sm:$0xff] (!%p159_p3)  }
   0xc   : > { %1074 = vmatpush3.bf16.msra.mxu0 (!%p159_p3), %v1226_v3  ;;  %1192 = vmatpush3.bf16.msra.mxu1 (!%p159_p3), %v1226_v3 }
   0xd   : > { %1075 = vmatprep.subr.bf16.mxu0 (!%p159_p3), %v1227_v4  ;;  %1185 = vmatprep.subr.bf16.mxu1 (!%p159_p3), %v1227_v4 }
   0xe   : > { %s1490_s15 = smov (!%p198_p4, %s1015_s15), 63 }
   0xf   : > { %s1070_s30 = sshll.u32 %s1490_s15, 3 }
  0x10   : > { %1076 = vmatpush3.bf16.msra.mxu0 %v1228_v5  ;;  %1193 = vmatpush3.bf16.msra.mxu1 %v1228_v5  ;;  %s1379_s7 = scalar_lea.vmem %s1482_s0, %s1070_s30  ;;  %s1439_s28 = scalar_lea.vmem %s1484_s2, %s1070_s30 }
  0x11   : > { %1077 = vmatprep.subr.bf16.mxu0 %v1229_v6  ;;  %1186 = vmatprep.subr.bf16.mxu1 %v1229_v6  ;;  %v1241_v11 = vld [vmem:[%s1379_s7 + $0x4] ss:$8 sps:$4 sm:$0xff]   ;;  %v1239_v18 = vld [vmem:[%s1379_s7] ss:$8 sps:$4 sm:$0xff]   ;;  %v1245_v20 = vld [vmem:[%s1379_s7 + $0x14] ss:$8 sps:$4 sm:$0xff]  }
  0x12   : > { %v1244_v12 = vld [vmem:[%s1379_s7 + $0x84] ss:$8 sps:$4 sm:$0xff]   ;;  %647 = vmatprep.mubr.bf16.mxu0 %v1241_v11  ;;  %v1242_v19 = vld [vmem:[%s1379_s7 + $0x80] ss:$8 sps:$4 sm:$0xff]   ;;  %v1247_v21 = vld [vmem:[%s1379_s7 + $0x94] ss:$8 sps:$4 sm:$0xff]  }
  0x13   : > { %711 = vmatprep.mubr.bf16.mxu1 %v1244_v12  ;;  %v1249_v22 = vld [vmem:[%s1379_s7 + $0x10] ss:$8 sps:$4 sm:$0xff]   ;;  %v1251_v24 = vld [vmem:[%s1379_s7 + $0x24] ss:$8 sps:$4 sm:$0xff]   ;;  %v1255_v26 = vld [vmem:[%s1379_s7 + $0x20] ss:$8 sps:$4 sm:$0xff]  }
  0x14   : > { %1078 = vmatpush3.bf16.msra.mxu0 %v1230_v7  ;;  %1194 = vmatpush3.bf16.msra.mxu1 %v1230_v7  ;;  %v1250_v23 = vld [vmem:[%s1379_s7 + $0x90] ss:$8 sps:$4 sm:$0xff]   ;;  %v1253_v25 = vld [vmem:[%s1379_s7 + $0xa4] ss:$8 sps:$4 sm:$0xff]   ;;  %v1256_v27 = vld [vmem:[%s1379_s7 + $0xa0] ss:$8 sps:$4 sm:$0xff]  }
  0x15   : > { %1079 = vmatprep.subr.bf16.mxu0 %v1231_v8  ;;  %1187 = vmatprep.subr.bf16.mxu1 %v1231_v8  ;;  %v1257_v28 = vld [vmem:[%s1379_s7 + $0x34] ss:$8 sps:$4 sm:$0xff]   ;;  %v1261_v30 = vld [vmem:[%s1379_s7 + $0x30] ss:$8 sps:$4 sm:$0xff]   ;;  %v1263_v32 = vld [vmem:[%s1379_s7 + $0x44] ss:$8 sps:$4 sm:$0xff]  }
  0x16   : > { %v1259_v29 = vld [vmem:[%s1379_s7 + $0xb4] ss:$8 sps:$4 sm:$0xff]   ;;  %v1262_v31 = vld [vmem:[%s1379_s7 + $0xb0] ss:$8 sps:$4 sm:$0xff]   ;;  %v1265_v33 = vld [vmem:[%s1379_s7 + $0xc4] ss:$8 sps:$4 sm:$0xff]  }
  0x17   : > { %v1267_v34 = vld [vmem:[%s1379_s7 + $0x40] ss:$8 sps:$4 sm:$0xff]   ;;  %v1269_v36 = vld [vmem:[%s1379_s7 + $0x54] ss:$8 sps:$4 sm:$0xff]   ;;  %v1273_v38 = vld [vmem:[%s1379_s7 + $0x50] ss:$8 sps:$4 sm:$0xff]  }
  0x18   : > { %1080 = vmatpush3.bf16.msra.mxu0 %v1232_v9  ;;  %1195 = vmatpush3.bf16.msra.mxu1 %v1232_v9  ;;  %v1268_v35 = vld [vmem:[%s1379_s7 + $0xc0] ss:$8 sps:$4 sm:$0xff]   ;;  %v1271_v37 = vld [vmem:[%s1379_s7 + $0xd4] ss:$8 sps:$4 sm:$0xff]   ;;  %v1274_v39 = vld [vmem:[%s1379_s7 + $0xd0] ss:$8 sps:$4 sm:$0xff]  }
  0x19   : > { %1081 = vmatprep.subr.bf16.mxu0 %v1233_v10  ;;  %1188 = vmatprep.subr.bf16.mxu1 %v1233_v10  ;;  %v1275_v40 = vld [vmem:[%s1379_s7 + $0x64] ss:$8 sps:$4 sm:$0xff]   ;;  %v1279_v42 = vld [vmem:[%s1379_s7 + $0x60] ss:$8 sps:$4 sm:$0xff]   ;;  %v1281_v44 = vld [vmem:[%s1379_s7 + $0x74] ss:$8 sps:$4 sm:$0xff]  }
  0x1a   : > { %v1277_v41 = vld [vmem:[%s1379_s7 + $0xe4] ss:$8 sps:$4 sm:$0xff]   ;;  %v1280_v43 = vld [vmem:[%s1379_s7 + $0xe0] ss:$8 sps:$4 sm:$0xff]   ;;  %v1283_v45 = vld [vmem:[%s1379_s7 + $0xf4] ss:$8 sps:$4 sm:$0xff]  }
  0x1b   : > { %v1285_v46 = vld [vmem:[%s1379_s7 + $0x70] ss:$8 sps:$4 sm:$0xff]  }
  0x1c   : > { %1082 = vmatpush3.bf16.msra.mxu0 %v1234_v13  ;;  %1196 = vmatpush3.bf16.msra.mxu1 %v1234_v13  ;;  %v1286_v47 = vld [vmem:[%s1379_s7 + $0xf0] ss:$8 sps:$4 sm:$0xff]  }
  0x1d   : > { %1083 = vmatprep.subr.bf16.mxu0 %v1235_v14  ;;  %1189 = vmatprep.subr.bf16.mxu1 %v1235_v14 }
  0x20   : > { %1084 = vmatpush3.bf16.msra.mxu0 %v1236_v15  ;;  %1197 = vmatpush3.bf16.msra.mxu1 %v1236_v15 }
  0x21   : > { %1085 = vmatprep.subr.bf16.mxu0 %v1237_v16  ;;  %1190 = vmatprep.subr.bf16.mxu1 %v1237_v16 }
  0x24   : > { %1086 = vmatpush3.bf16.msra.mxu0 %v1238_v17  ;;  %1198 = vmatpush3.bf16.msra.mxu1 %v1238_v17 }
  0x27   : > { %648 = vmatmul.mubr.bf16.vlgmr.msra.gmra.mrb[0].mxu0 %v1239_v18  ;;  %712 = vmatmul.mubr.bf16.vlgmr.msra.gmra.mrb[0].mxu1 %v1242_v19 }
  0x28   : > { %655 = vmatprep.mubr.bf16.mxu0 %v1245_v20  ;;  %719 = vmatprep.mubr.bf16.mxu1 %v1247_v21 }
  0x2f   : > { %656 = vmatmul.mubr.bf16.gmra.mrb[4].mxu0 %v1249_v22  ;;  %720 = vmatmul.mubr.bf16.gmra.mrb[4].mxu1 %v1250_v23 }
  0x30   : > { %663 = vmatprep.mubr.bf16.mxu0 %v1251_v24  ;;  %727 = vmatprep.mubr.bf16.mxu1 %v1253_v25 }
  0x37   : > { %664 = vmatmul.mubr.bf16.gmra.mrb[8].mxu0 %v1255_v26  ;;  %728 = vmatmul.mubr.bf16.gmra.mrb[8].mxu1 %v1256_v27 }
  0x38   : > { %671 = vmatprep.mubr.bf16.mxu0 %v1257_v28  ;;  %735 = vmatprep.mubr.bf16.mxu1 %v1259_v29 }
  0x3f   : > { %672 = vmatmul.mubr.bf16.gmra.mrb[12].mxu0 %v1261_v30  ;;  %736 = vmatmul.mubr.bf16.gmra.mrb[12].mxu1 %v1262_v31 }
  0x40   : > { %679 = vmatprep.mubr.bf16.mxu0 %v1263_v32  ;;  %743 = vmatprep.mubr.bf16.mxu1 %v1265_v33 }
  0x47   : > { %680 = vmatmul.mubr.bf16.gmra.mrb[16].mxu0 %v1267_v34  ;;  %744 = vmatmul.mubr.bf16.gmra.mrb[16].mxu1 %v1268_v35 }
  0x48   : > { %687 = vmatprep.mubr.bf16.mxu0 %v1269_v36  ;;  %751 = vmatprep.mubr.bf16.mxu1 %v1271_v37 }
  0x4f   : > { %688 = vmatmul.mubr.bf16.gmra.mrb[20].mxu0 %v1273_v38  ;;  %752 = vmatmul.mubr.bf16.gmra.mrb[20].mxu1 %v1274_v39 }
  0x50   : > { %695 = vmatprep.mubr.bf16.mxu0 %v1275_v40  ;;  %759 = vmatprep.mubr.bf16.mxu1 %v1277_v41 }
  0x57   : > { %696 = vmatmul.mubr.bf16.gmra.mrb[24].mxu0 %v1279_v42  ;;  %760 = vmatmul.mubr.bf16.gmra.mrb[24].mxu1 %v1280_v43 }
  0x58   : > { %703 = vmatprep.mubr.bf16.mxu0 %v1281_v44  ;;  %767 = vmatprep.mubr.bf16.mxu1 %v1283_v45 }
  0x5f   : > { %704 = vmatmul.mubr.bf16.gmra.mrb[28].mxu0 %v1285_v46  ;;  %768 = vmatmul.mubr.bf16.gmra.mrb[28].mxu1 %v1286_v47 }
  0xfa   : > { %v1087_v48 = vpop.f32.mrb[0].mxu0  ;;  %v1135_v49 = vpop.f32.mrb[0].mxu1 }
  0xfb   : > { %v1088_v50 = vpop.f32.mrb[1].mxu0  ;;  %v1136_v51 = vpop.f32.mrb[1].mxu1 }
  0xfc   : > { %v1089_v52 = vadd.f32 %v1088_v50, %v1087_v48  ;;  %v1137_v53 = vadd.f32 %v1136_v51, %v1135_v49  ;;  %v1090_v54 = vpop.f32.mrb[2].mxu0  ;;  %v1138_v55 = vpop.f32.mrb[2].mxu1 }
  0xfd   : > { %v1091_v56 = vpop.f32.mrb[3].mxu0  ;;  %v1139_v57 = vpop.f32.mrb[3].mxu1 }
  0xfe   : > { %875 = vst [vmem:[%s1439_s28] sm:$0xff] %v1089_v52  ;;  %891 = vst [vmem:[%s1439_s28 + $0x80] sm:$0xff] %v1137_v53  ;;  %v1092_v58 = vadd.f32 %v1091_v56, %v1090_v54  ;;  %v1140_v59 = vadd.f32 %v1139_v57, %v1138_v55 }
 0x100   : > { %876 = vst [vmem:[%s1439_s28 + $0x8] sm:$0xff] %v1092_v58  ;;  %892 = vst [vmem:[%s1439_s28 + $0x88] sm:$0xff] %v1140_v59 }
 0x102   : > { %v1093_v60 = vpop.f32.mrb[4].mxu0  ;;  %v1141_v61 = vpop.f32.mrb[4].mxu1 }
 0x103   : > { %v1094_v62 = vpop.f32.mrb[5].mxu0  ;;  %v1142_v63 = vpop.f32.mrb[5].mxu1 }
 0x104   : > { %v1095_v0 = vadd.f32 %v1094_v62, %v1093_v60  ;;  %v1143_v1 = vadd.f32 %v1142_v63, %v1141_v61  ;;  %v1096_v2 = vpop.f32.mrb[6].mxu0  ;;  %v1144_v3 = vpop.f32.mrb[6].mxu1 }
 0x105   : > { %v1097_v4 = vpop.f32.mrb[7].mxu0  ;;  %v1145_v5 = vpop.f32.mrb[7].mxu1 }
 0x106   : > { %877 = vst [vmem:[%s1439_s28 + $0x10] sm:$0xff] %v1095_v0  ;;  %893 = vst [vmem:[%s1439_s28 + $0x90] sm:$0xff] %v1143_v1  ;;  %v1098_v6 = vadd.f32 %v1097_v4, %v1096_v2  ;;  %v1146_v7 = vadd.f32 %v1145_v5, %v1144_v3 }
 0x108   : > { %878 = vst [vmem:[%s1439_s28 + $0x18] sm:$0xff] %v1098_v6  ;;  %894 = vst [vmem:[%s1439_s28 + $0x98] sm:$0xff] %v1146_v7 }
 0x10a   : > { %v1099_v8 = vpop.f32.mrb[8].mxu0  ;;  %v1147_v9 = vpop.f32.mrb[8].mxu1 }
 0x10b   : > { %v1100_v10 = vpop.f32.mrb[9].mxu0  ;;  %v1148_v11 = vpop.f32.mrb[9].mxu1 }
 0x10c   : > { %v1101_v12 = vadd.f32 %v1100_v10, %v1099_v8  ;;  %v1149_v13 = vadd.f32 %v1148_v11, %v1147_v9  ;;  %v1102_v14 = vpop.f32.mrb[10].mxu0  ;;  %v1150_v15 = vpop.f32.mrb[10].mxu1 }
 0x10d   : > { %v1103_v16 = vpop.f32.mrb[11].mxu0  ;;  %v1151_v17 = vpop.f32.mrb[11].mxu1 }
 0x10e   : > { %879 = vst [vmem:[%s1439_s28 + $0x20] sm:$0xff] %v1101_v12  ;;  %895 = vst [vmem:[%s1439_s28 + $0xa0] sm:$0xff] %v1149_v13  ;;  %v1104_v18 = vadd.f32 %v1103_v16, %v1102_v14  ;;  %v1152_v19 = vadd.f32 %v1151_v17, %v1150_v15 }
 0x110   : > { %880 = vst [vmem:[%s1439_s28 + $0x28] sm:$0xff] %v1104_v18  ;;  %896 = vst [vmem:[%s1439_s28 + $0xa8] sm:$0xff] %v1152_v19 }
 0x112   : > { %v1105_v20 = vpop.f32.mrb[12].mxu0  ;;  %v1153_v21 = vpop.f32.mrb[12].mxu1 }
 0x113   : > { %v1106_v22 = vpop.f32.mrb[13].mxu0  ;;  %v1154_v23 = vpop.f32.mrb[13].mxu1 }
 0x114   : > { %v1107_v24 = vadd.f32 %v1106_v22, %v1105_v20  ;;  %v1155_v25 = vadd.f32 %v1154_v23, %v1153_v21  ;;  %v1108_v26 = vpop.f32.mrb[14].mxu0  ;;  %v1156_v27 = vpop.f32.mrb[14].mxu1 }
 0x115   : > { %v1109_v28 = vpop.f32.mrb[15].mxu0  ;;  %v1157_v29 = vpop.f32.mrb[15].mxu1 }
 0x116   : > { %881 = vst [vmem:[%s1439_s28 + $0x30] sm:$0xff] %v1107_v24  ;;  %897 = vst [vmem:[%s1439_s28 + $0xb0] sm:$0xff] %v1155_v25  ;;  %v1110_v30 = vadd.f32 %v1109_v28, %v1108_v26  ;;  %v1158_v31 = vadd.f32 %v1157_v29, %v1156_v27 }
 0x118   : > { %882 = vst [vmem:[%s1439_s28 + $0x38] sm:$0xff] %v1110_v30  ;;  %898 = vst [vmem:[%s1439_s28 + $0xb8] sm:$0xff] %v1158_v31 }
 0x11a   : > { %v1111_v32 = vpop.f32.mrb[16].mxu0  ;;  %v1159_v33 = vpop.f32.mrb[16].mxu1 }
 0x11b   : > { %v1112_v34 = vpop.f32.mrb[17].mxu0  ;;  %v1160_v35 = vpop.f32.mrb[17].mxu1 }
 0x11c   : > { %v1113_v36 = vadd.f32 %v1112_v34, %v1111_v32  ;;  %v1161_v37 = vadd.f32 %v1160_v35, %v1159_v33  ;;  %v1114_v38 = vpop.f32.mrb[18].mxu0  ;;  %v1162_v39 = vpop.f32.mrb[18].mxu1 }
 0x11d   : > { %v1115_v40 = vpop.f32.mrb[19].mxu0  ;;  %v1163_v41 = vpop.f32.mrb[19].mxu1 }
 0x11e   : > { %883 = vst [vmem:[%s1439_s28 + $0x40] sm:$0xff] %v1113_v36  ;;  %899 = vst [vmem:[%s1439_s28 + $0xc0] sm:$0xff] %v1161_v37  ;;  %v1116_v42 = vadd.f32 %v1115_v40, %v1114_v38  ;;  %v1164_v43 = vadd.f32 %v1163_v41, %v1162_v39 }
 0x120   : > { %884 = vst [vmem:[%s1439_s28 + $0x48] sm:$0xff] %v1116_v42  ;;  %900 = vst [vmem:[%s1439_s28 + $0xc8] sm:$0xff] %v1164_v43 }
 0x122   : > { %v1117_v44 = vpop.f32.mrb[20].mxu0  ;;  %v1165_v45 = vpop.f32.mrb[20].mxu1 }
 0x123   : > { %v1118_v46 = vpop.f32.mrb[21].mxu0  ;;  %v1166_v47 = vpop.f32.mrb[21].mxu1 }
 0x124   : > { %v1119_v48 = vadd.f32 %v1118_v46, %v1117_v44  ;;  %v1167_v49 = vadd.f32 %v1166_v47, %v1165_v45  ;;  %v1120_v50 = vpop.f32.mrb[22].mxu0  ;;  %v1168_v51 = vpop.f32.mrb[22].mxu1 }
 0x125   : > { %v1121_v52 = vpop.f32.mrb[23].mxu0  ;;  %v1169_v53 = vpop.f32.mrb[23].mxu1 }
 0x126   : > { %885 = vst [vmem:[%s1439_s28 + $0x50] sm:$0xff] %v1119_v48  ;;  %901 = vst [vmem:[%s1439_s28 + $0xd0] sm:$0xff] %v1167_v49  ;;  %v1122_v54 = vadd.f32 %v1121_v52, %v1120_v50  ;;  %v1170_v55 = vadd.f32 %v1169_v53, %v1168_v51 }
 0x128   : > { %886 = vst [vmem:[%s1439_s28 + $0x58] sm:$0xff] %v1122_v54  ;;  %902 = vst [vmem:[%s1439_s28 + $0xd8] sm:$0xff] %v1170_v55 }
 0x12a   : > { %v1123_v56 = vpop.f32.mrb[24].mxu0  ;;  %v1171_v57 = vpop.f32.mrb[24].mxu1 }
 0x12b   : > { %v1124_v58 = vpop.f32.mrb[25].mxu0  ;;  %v1172_v59 = vpop.f32.mrb[25].mxu1 }
 0x12c   : > { %v1125_v60 = vadd.f32 %v1124_v58, %v1123_v56  ;;  %v1173_v61 = vadd.f32 %v1172_v59, %v1171_v57  ;;  %v1126_v62 = vpop.f32.mrb[26].mxu0  ;;  %v1174_v63 = vpop.f32.mrb[26].mxu1 }
 0x12d   : > { %v1127_v0 = vpop.f32.mrb[27].mxu0  ;;  %v1175_v1 = vpop.f32.mrb[27].mxu1 }
 0x12e   : > { %887 = vst [vmem:[%s1439_s28 + $0x60] sm:$0xff] %v1125_v60  ;;  %903 = vst [vmem:[%s1439_s28 + $0xe0] sm:$0xff] %v1173_v61  ;;  %v1128_v2 = vadd.f32 %v1127_v0, %v1126_v62  ;;  %v1176_v3 = vadd.f32 %v1175_v1, %v1174_v63 }
 0x130   : > { %888 = vst [vmem:[%s1439_s28 + $0x68] sm:$0xff] %v1128_v2  ;;  %904 = vst [vmem:[%s1439_s28 + $0xe8] sm:$0xff] %v1176_v3 }
 0x132   : > { %v1129_v4 = vpop.f32.mrb[28].mxu0  ;;  %v1177_v5 = vpop.f32.mrb[28].mxu1 }
 0x133   : > { %v1130_v6 = vpop.f32.mrb[29].mxu0  ;;  %v1178_v7 = vpop.f32.mrb[29].mxu1 }
 0x134   : > { %v1131_v8 = vadd.f32 %v1130_v6, %v1129_v4  ;;  %v1179_v9 = vadd.f32 %v1178_v7, %v1177_v5  ;;  %v1132_v10 = vpop.f32.mrb[30].mxu0  ;;  %v1180_v11 = vpop.f32.mrb[30].mxu1 }
 0x135   : > { %v1133_v12 = vpop.f32.mrb[31].mxu0  ;;  %v1181_v13 = vpop.f32.mrb[31].mxu1 }
 0x136   : > { %889 = vst [vmem:[%s1439_s28 + $0x70] sm:$0xff] %v1131_v8  ;;  %905 = vst [vmem:[%s1439_s28 + $0xf0] sm:$0xff] %v1179_v9  ;;  %v1134_v14 = vadd.f32 %v1133_v12, %v1132_v10  ;;  %v1182_v15 = vadd.f32 %v1181_v13, %v1180_v11 }
 0x138   : > { %890 = vst [vmem:[%s1439_s28 + $0x78] sm:$0xff] %v1134_v14  ;;  %906 = vst [vmem:[%s1439_s28 + $0xf8] sm:$0xff] %v1182_v15 }
 0x139 PF: > { %s12_s11 = sadd.s32 1, %s1309_s11   ;;  %s1485_s9 = smov %s1305_s10 }
 0x13a   : > { %p9_p5 = scmp.ge.s32.totalorder %s12_s11, 4   ;;  %s1486_s10 = smov %s1488_s12 }
 0x13c   :  { %11 = sbr.rel (!%p9_p5) target bundleno = 2 (0x2), region = 69 }

// kernel: _encoder_forward.178
= control target key start
LH: loop header
LB: loop body
LE: loop exit
PB: predicated region body
PF: predicated region fallthrough
CT: control target
= control target key end

     0   :  { %s926_s0 = inlined_call_operand.vmem [shape: f32[9,128,128], index: 0, kind: input, shape index: {}]   ;;  %s927_s1 = inlined_call_operand.vmem [shape: f32[128,128], index: 1, kind: output, shape index: {}]  }
   0x1   :  { %v8_v0 = vld [vmem:[%s926_s0] sm:$0xff]  ;;  %v9_v6 = vld [vmem:[%s926_s0 + $0x8] sm:$0xff]  ;;  %v10_v15 = vld [vmem:[%s926_s0 + $0x10] sm:$0xff] }
   0x2   :  { %v308_v1 = vld [vmem:[%s926_s0 + $0x80] sm:$0xff]  ;;  %v309_v7 = vld [vmem:[%s926_s0 + $0x88] sm:$0xff]  ;;  %v310_v16 = vld [vmem:[%s926_s0 + $0x90] sm:$0xff] }
   0x3   :  { %v324_v2 = vld [vmem:[%s926_s0 + $0x100] sm:$0xff]  ;;  %v41_v3 = vmax.f32 %v8_v0, %v308_v1  ;;  %v325_v8 = vld [vmem:[%s926_s0 + $0x108] sm:$0xff]  ;;  %v42_v10 = vmax.f32 %v9_v6, %v309_v7  ;;  %v326_v17 = vld [vmem:[%s926_s0 + $0x110] sm:$0xff]  ;;  %v43_v20 = vmax.f32 %v10_v15, %v310_v16 }
   0x4   :  { %v340_v4 = vld [vmem:[%s926_s0 + $0x180] sm:$0xff]  ;;  %v341_v13 = vld [vmem:[%s926_s0 + $0x188] sm:$0xff]  ;;  %v342_v24 = vld [vmem:[%s926_s0 + $0x190] sm:$0xff] }
   0x5   :  { %v74_v5 = vmax.f32 %v41_v3, %v324_v2  ;;  %v356_v9 = vld [vmem:[%s926_s0 + $0x200] sm:$0xff]  ;;  %v75_v14 = vmax.f32 %v42_v10, %v325_v8  ;;  %v357_v19 = vld [vmem:[%s926_s0 + $0x208] sm:$0xff]  ;;  %v76_v26 = vmax.f32 %v43_v20, %v326_v17  ;;  %v11_v27 = vld [vmem:[%s926_s0 + $0x18] sm:$0xff] }
   0x6   :  { %v372_v12 = vld [vmem:[%s926_s0 + $0x280] sm:$0xff]  ;;  %v373_v23 = vld [vmem:[%s926_s0 + $0x288] sm:$0xff]  ;;  %v311_v28 = vld [vmem:[%s926_s0 + $0x98] sm:$0xff] }
   0x7   :  { %v107_v11 = vmax.f32 %v74_v5, %v340_v4  ;;  %v388_v21 = vld [vmem:[%s926_s0 + $0x300] sm:$0xff]  ;;  %v108_v22 = vmax.f32 %v75_v14, %v341_v13  ;;  %v327_v29 = vld [vmem:[%s926_s0 + $0x118] sm:$0xff]  ;;  %v358_v33 = vld [vmem:[%s926_s0 + $0x210] sm:$0xff]  ;;  %v44_v34 = vmax.f32 %v11_v27, %v311_v28  ;;  %v109_v37 = vmax.f32 %v76_v26, %v342_v24 }
   0x8   :  { %v404_v30 = vld [vmem:[%s926_s0 + $0x380] sm:$0xff]  ;;  %v389_v36 = vld [vmem:[%s926_s0 + $0x308] sm:$0xff]  ;;  %v374_v38 = vld [vmem:[%s926_s0 + $0x290] sm:$0xff] }
   0x9   :  { %v140_v18 = vmax.f32 %v107_v11, %v356_v9  ;;  %v420_v31 = vld [vmem:[%s926_s0 + $0x400] sm:$0xff]  ;;  %v141_v32 = vmax.f32 %v108_v22, %v357_v19  ;;  %v343_v39 = vld [vmem:[%s926_s0 + $0x198] sm:$0xff]  ;;  %v77_v41 = vmax.f32 %v44_v34, %v327_v29  ;;  %v405_v46 = vld [vmem:[%s926_s0 + $0x388] sm:$0xff]  ;;  %v142_v48 = vmax.f32 %v109_v37, %v358_v33 }
   0xa   :  { %v12_v42 = vld [vmem:[%s926_s0 + $0x20] sm:$0xff]  ;;  %v421_v47 = vld [vmem:[%s926_s0 + $0x408] sm:$0xff]  ;;  %v359_v49 = vld [vmem:[%s926_s0 + $0x218] sm:$0xff] }
   0xb   :  { %v173_v25 = vmax.f32 %v140_v18, %v372_v12  ;;  %v174_v40 = vmax.f32 %v141_v32, %v373_v23  ;;  %v312_v43 = vld [vmem:[%s926_s0 + $0xa0] sm:$0xff]  ;;  %v390_v52 = vld [vmem:[%s926_s0 + $0x310] sm:$0xff]  ;;  %v110_v53 = vmax.f32 %v77_v41, %v343_v39  ;;  %v375_v54 = vld [vmem:[%s926_s0 + $0x298] sm:$0xff]  ;;  %v175_v57 = vmax.f32 %v142_v48, %v374_v38 }
   0xc   :  { %v328_v44 = vld [vmem:[%s926_s0 + $0x120] sm:$0xff]  ;;  %v45_v50 = vmax.f32 %v12_v42, %v312_v43  ;;  %v13_v59 = vld [vmem:[%s926_s0 + $0x28] sm:$0xff]  ;;  %v406_v63 = vld [vmem:[%s926_s0 + $0x390] sm:$0xff] }
   0xd   :  { %v206_v35 = vmax.f32 %v173_v25, %v388_v21  ;;  %v207_v51 = vmax.f32 %v174_v40, %v389_v36  ;;  %v344_v55 = vld [vmem:[%s926_s0 + $0x1a0] sm:$0xff]  ;;  %v313_v60 = vld [vmem:[%s926_s0 + $0xa8] sm:$0xff]  ;;  %v422_v0 = vld [vmem:[%s926_s0 + $0x410] sm:$0xff]  ;;  %v143_v1 = vmax.f32 %v110_v53, %v359_v49  ;;  %v208_v4 = vmax.f32 %v175_v57, %v390_v52 }
   0xe   :  { %v78_v58 = vmax.f32 %v45_v50, %v328_v44  ;;  %v329_v61 = vld [vmem:[%s926_s0 + $0x128] sm:$0xff]  ;;  %v360_v2 = vld [vmem:[%s926_s0 + $0x220] sm:$0xff]  ;;  %v46_v3 = vmax.f32 %v13_v59, %v313_v60  ;;  %v391_v5 = vld [vmem:[%s926_s0 + $0x318] sm:$0xff] }
   0xf   :  { %v239_v45 = vmax.f32 %v206_v35, %v404_v30  ;;  %v240_v62 = vmax.f32 %v207_v51, %v405_v46  ;;  %v376_v7 = vld [vmem:[%s926_s0 + $0x2a0] sm:$0xff]  ;;  %v345_v8 = vld [vmem:[%s926_s0 + $0x1a8] sm:$0xff]  ;;  %v176_v10 = vmax.f32 %v143_v1, %v375_v54  ;;  %v14_v12 = vld [vmem:[%s926_s0 + $0x30] sm:$0xff]  ;;  %v241_v15 = vmax.f32 %v208_v4, %v406_v63 }
  0x10   :  { %v111_v6 = vmax.f32 %v78_v58, %v344_v55  ;;  %v79_v11 = vmax.f32 %v46_v3, %v329_v61  ;;  %v314_v13 = vld [vmem:[%s926_s0 + $0xb0] sm:$0xff]  ;;  %v407_v16 = vld [vmem:[%s926_s0 + $0x398] sm:$0xff]  ;;  %v361_v19 = vld [vmem:[%s926_s0 + $0x228] sm:$0xff] }
  0x11   :  { %v272_v56 = vmax.f32 %v239_v45, %v420_v31  ;;  %v273_v9 = vmax.f32 %v240_v62, %v421_v47  ;;  %v330_v14 = vld [vmem:[%s926_s0 + $0x130] sm:$0xff]  ;;  %v423_v17 = vld [vmem:[%s926_s0 + $0x418] sm:$0xff]  ;;  %v47_v20 = vmax.f32 %v14_v12, %v314_v13  ;;  %v209_v21 = vmax.f32 %v176_v10, %v391_v5  ;;  %v392_v22 = vld [vmem:[%s926_s0 + $0x320] sm:$0xff] }
  0x12   :  { %v144_v18 = vmax.f32 %v111_v6, %v360_v2  ;;  %v112_v23 = vmax.f32 %v79_v11, %v345_v8  ;;  %v377_v24 = vld [vmem:[%s926_s0 + $0x2a8] sm:$0xff]  ;;  %v346_v25 = vld [vmem:[%s926_s0 + $0x1b0] sm:$0xff]  ;;  %v274_v26 = vmax.f32 %v241_v15, %v422_v0  ;;  %v15_v29 = vld [vmem:[%s926_s0 + $0x38] sm:$0xff] }
  0x13   :  { %288 = vst [vmem:[%s927_s1] sm:$0xff] %v272_v56  ;;  %289 = vst [vmem:[%s927_s1 + $0x8] sm:$0xff] %v273_v9  ;;  %v80_v28 = vmax.f32 %v47_v20, %v330_v14  ;;  %v315_v30 = vld [vmem:[%s926_s0 + $0xb8] sm:$0xff]  ;;  %v242_v32 = vmax.f32 %v209_v21, %v407_v16  ;;  %v408_v33 = vld [vmem:[%s926_s0 + $0x3a0] sm:$0xff] }
  0x14   :  { %v177_v27 = vmax.f32 %v144_v18, %v376_v7  ;;  %v331_v31 = vld [vmem:[%s926_s0 + $0x138] sm:$0xff]  ;;  %v424_v34 = vld [vmem:[%s926_s0 + $0x420] sm:$0xff]  ;;  %v145_v35 = vmax.f32 %v112_v23, %v361_v19  ;;  %v362_v36 = vld [vmem:[%s926_s0 + $0x230] sm:$0xff]  ;;  %v48_v37 = vmax.f32 %v15_v29, %v315_v30  ;;  %290 = vst [vmem:[%s927_s1 + $0x10] sm:$0xff] %v274_v26 }
  0x15   :  { %v393_v39 = vld [vmem:[%s926_s0 + $0x328] sm:$0xff]  ;;  %v113_v40 = vmax.f32 %v80_v28, %v346_v25  ;;  %v378_v41 = vld [vmem:[%s926_s0 + $0x2b0] sm:$0xff]  ;;  %v347_v42 = vld [vmem:[%s926_s0 + $0x1b8] sm:$0xff]  ;;  %v275_v43 = vmax.f32 %v242_v32, %v423_v17 }
  0x16   :  { %v210_v38 = vmax.f32 %v177_v27, %v392_v22  ;;  %v178_v44 = vmax.f32 %v145_v35, %v377_v24  ;;  %v81_v45 = vmax.f32 %v48_v37, %v331_v31  ;;  %v16_v46 = vld [vmem:[%s926_s0 + $0x40] sm:$0xff]  ;;  %v409_v50 = vld [vmem:[%s926_s0 + $0x3a8] sm:$0xff]  ;;  %v363_v53 = vld [vmem:[%s926_s0 + $0x238] sm:$0xff] }
  0x17   :  { %v316_v47 = vld [vmem:[%s926_s0 + $0xc0] sm:$0xff]  ;;  %v425_v51 = vld [vmem:[%s926_s0 + $0x428] sm:$0xff]  ;;  %v146_v52 = vmax.f32 %v113_v40, %v362_v36  ;;  %291 = vst [vmem:[%s927_s1 + $0x18] sm:$0xff] %v275_v43  ;;  %v394_v56 = vld [vmem:[%s926_s0 + $0x330] sm:$0xff] }
  0x18   :  { %v332_v48 = vld [vmem:[%s926_s0 + $0x140] sm:$0xff]  ;;  %v243_v49 = vmax.f32 %v210_v38, %v408_v33  ;;  %v49_v54 = vmax.f32 %v16_v46, %v316_v47  ;;  %v211_v55 = vmax.f32 %v178_v44, %v393_v39  ;;  %v114_v57 = vmax.f32 %v81_v45, %v347_v42  ;;  %v379_v58 = vld [vmem:[%s926_s0 + $0x2b8] sm:$0xff]  ;;  %v17_v63 = vld [vmem:[%s926_s0 + $0x48] sm:$0xff] }
  0x19   :  { %v348_v59 = vld [vmem:[%s926_s0 + $0x1c0] sm:$0xff]  ;;  %v179_v61 = vmax.f32 %v146_v52, %v378_v41  ;;  %v317_v0 = vld [vmem:[%s926_s0 + $0xc8] sm:$0xff]  ;;  %v410_v3 = vld [vmem:[%s926_s0 + $0x3b0] sm:$0xff] }
  0x1a   :  { %v276_v60 = vmax.f32 %v243_v49, %v424_v34  ;;  %v82_v62 = vmax.f32 %v49_v54, %v332_v48  ;;  %v333_v1 = vld [vmem:[%s926_s0 + $0x148] sm:$0xff]  ;;  %v244_v2 = vmax.f32 %v211_v55, %v409_v50  ;;  %v426_v4 = vld [vmem:[%s926_s0 + $0x430] sm:$0xff]  ;;  %v147_v5 = vmax.f32 %v114_v57, %v363_v53  ;;  %v364_v6 = vld [vmem:[%s926_s0 + $0x240] sm:$0xff] }
  0x1b   :  { %v50_v7 = vmax.f32 %v17_v63, %v317_v0  ;;  %v212_v8 = vmax.f32 %v179_v61, %v394_v56  ;;  %v395_v9 = vld [vmem:[%s926_s0 + $0x338] sm:$0xff]  ;;  %v380_v11 = vld [vmem:[%s926_s0 + $0x2c0] sm:$0xff]  ;;  %v349_v12 = vld [vmem:[%s926_s0 + $0x1c8] sm:$0xff] }
  0x1c   :  { %292 = vst [vmem:[%s927_s1 + $0x20] sm:$0xff] %v276_v60  ;;  %v115_v10 = vmax.f32 %v82_v62, %v348_v59  ;;  %v277_v13 = vmax.f32 %v244_v2, %v425_v51  ;;  %v180_v14 = vmax.f32 %v147_v5, %v379_v58  ;;  %v18_v16 = vld [vmem:[%s926_s0 + $0x50] sm:$0xff]  ;;  %v411_v20 = vld [vmem:[%s926_s0 + $0x3b8] sm:$0xff]  ;;  %v365_v23 = vld [vmem:[%s926_s0 + $0x248] sm:$0xff] }
  0x1d   :  { %v83_v15 = vmax.f32 %v50_v7, %v333_v1  ;;  %v318_v17 = vld [vmem:[%s926_s0 + $0xd0] sm:$0xff]  ;;  %v245_v19 = vmax.f32 %v212_v8, %v410_v3  ;;  %v427_v21 = vld [vmem:[%s926_s0 + $0x438] sm:$0xff]  ;;  %v396_v26 = vld [vmem:[%s926_s0 + $0x340] sm:$0xff] }
  0x1e   :  { %v334_v18 = vld [vmem:[%s926_s0 + $0x150] sm:$0xff]  ;;  %v148_v22 = vmax.f32 %v115_v10, %v364_v6  ;;  %v51_v24 = vmax.f32 %v18_v16, %v318_v17  ;;  %293 = vst [vmem:[%s927_s1 + $0x28] sm:$0xff] %v277_v13  ;;  %v213_v25 = vmax.f32 %v180_v14, %v395_v9  ;;  %v381_v28 = vld [vmem:[%s926_s0 + $0x2c8] sm:$0xff]  ;;  %v19_v33 = vld [vmem:[%s926_s0 + $0x58] sm:$0xff] }
  0x1f   :  { %v116_v27 = vmax.f32 %v83_v15, %v349_v12  ;;  %v350_v29 = vld [vmem:[%s926_s0 + $0x1d0] sm:$0xff]  ;;  %v278_v30 = vmax.f32 %v245_v19, %v426_v4  ;;  %v319_v34 = vld [vmem:[%s926_s0 + $0xd8] sm:$0xff]  ;;  %v412_v37 = vld [vmem:[%s926_s0 + $0x3c0] sm:$0xff] }
  0x20   :  { %v181_v31 = vmax.f32 %v148_v22, %v380_v11  ;;  %v84_v32 = vmax.f32 %v51_v24, %v334_v18  ;;  %v335_v35 = vld [vmem:[%s926_s0 + $0x158] sm:$0xff]  ;;  %v246_v36 = vmax.f32 %v213_v25, %v411_v20  ;;  %v428_v38 = vld [vmem:[%s926_s0 + $0x440] sm:$0xff]  ;;  %v366_v40 = vld [vmem:[%s926_s0 + $0x250] sm:$0xff]  ;;  %v52_v41 = vmax.f32 %v19_v33, %v319_v34 }
  0x21   :  { %v149_v39 = vmax.f32 %v116_v27, %v365_v23  ;;  %294 = vst [vmem:[%s927_s1 + $0x30] sm:$0xff] %v278_v30  ;;  %v397_v43 = vld [vmem:[%s926_s0 + $0x348] sm:$0xff]  ;;  %v382_v45 = vld [vmem:[%s926_s0 + $0x2d0] sm:$0xff]  ;;  %v351_v46 = vld [vmem:[%s926_s0 + $0x1d8] sm:$0xff] }
  0x22   :  { %v214_v42 = vmax.f32 %v181_v31, %v396_v26  ;;  %v117_v44 = vmax.f32 %v84_v32, %v350_v29  ;;  %v279_v47 = vmax.f32 %v246_v36, %v427_v21  ;;  %v85_v49 = vmax.f32 %v52_v41, %v335_v35  ;;  %v20_v50 = vld [vmem:[%s926_s0 + $0x60] sm:$0xff]  ;;  %v413_v54 = vld [vmem:[%s926_s0 + $0x3c8] sm:$0xff]  ;;  %v367_v57 = vld [vmem:[%s926_s0 + $0x258] sm:$0xff] }
  0x23   :  { %v182_v48 = vmax.f32 %v149_v39, %v381_v28  ;;  %v320_v51 = vld [vmem:[%s926_s0 + $0xe0] sm:$0xff]  ;;  %v429_v55 = vld [vmem:[%s926_s0 + $0x448] sm:$0xff]  ;;  %v398_v60 = vld [vmem:[%s926_s0 + $0x350] sm:$0xff] }
  0x24   :  { %v336_v52 = vld [vmem:[%s926_s0 + $0x160] sm:$0xff]  ;;  %v247_v53 = vmax.f32 %v214_v42, %v412_v37  ;;  %v150_v56 = vmax.f32 %v117_v44, %v366_v40  ;;  %v53_v58 = vmax.f32 %v20_v50, %v320_v51  ;;  %295 = vst [vmem:[%s927_s1 + $0x38] sm:$0xff] %v279_v47  ;;  %v118_v61 = vmax.f32 %v85_v49, %v351_v46  ;;  %v383_v62 = vld [vmem:[%s926_s0 + $0x2d8] sm:$0xff]  ;;  %v21_v3 = vld [vmem:[%s926_s0 + $0x68] sm:$0xff] }
  0x25   :  { %v215_v59 = vmax.f32 %v182_v48, %v397_v43  ;;  %v352_v63 = vld [vmem:[%s926_s0 + $0x1e0] sm:$0xff]  ;;  %v321_v4 = vld [vmem:[%s926_s0 + $0xe8] sm:$0xff]  ;;  %v414_v7 = vld [vmem:[%s926_s0 + $0x3d0] sm:$0xff] }
  0x26   :  { %v280_v0 = vmax.f32 %v247_v53, %v428_v38  ;;  %v183_v1 = vmax.f32 %v150_v56, %v382_v45  ;;  %v86_v2 = vmax.f32 %v53_v58, %v336_v52  ;;  %v337_v5 = vld [vmem:[%s926_s0 + $0x168] sm:$0xff]  ;;  %v430_v8 = vld [vmem:[%s926_s0 + $0x450] sm:$0xff]  ;;  %v151_v9 = vmax.f32 %v118_v61, %v367_v57  ;;  %v368_v10 = vld [vmem:[%s926_s0 + $0x260] sm:$0xff] }
  0x27   :  { %v248_v6 = vmax.f32 %v215_v59, %v413_v54  ;;  %v54_v11 = vmax.f32 %v21_v3, %v321_v4  ;;  %v399_v13 = vld [vmem:[%s926_s0 + $0x358] sm:$0xff]  ;;  %v384_v15 = vld [vmem:[%s926_s0 + $0x2e0] sm:$0xff]  ;;  %v353_v16 = vld [vmem:[%s926_s0 + $0x1e8] sm:$0xff] }
  0x28   :  { %296 = vst [vmem:[%s927_s1 + $0x40] sm:$0xff] %v280_v0  ;;  %v216_v12 = vmax.f32 %v183_v1, %v398_v60  ;;  %v119_v14 = vmax.f32 %v86_v2, %v352_v63  ;;  %v184_v18 = vmax.f32 %v151_v9, %v383_v62  ;;  %v22_v20 = vld [vmem:[%s926_s0 + $0x70] sm:$0xff]  ;;  %v415_v24 = vld [vmem:[%s926_s0 + $0x3d8] sm:$0xff]  ;;  %v369_v27 = vld [vmem:[%s926_s0 + $0x268] sm:$0xff] }
  0x29   :  { %v281_v17 = vmax.f32 %v248_v6, %v429_v55  ;;  %v87_v19 = vmax.f32 %v54_v11, %v337_v5  ;;  %v322_v21 = vld [vmem:[%s926_s0 + $0xf0] sm:$0xff]  ;;  %v431_v25 = vld [vmem:[%s926_s0 + $0x458] sm:$0xff]  ;;  %v400_v30 = vld [vmem:[%s926_s0 + $0x360] sm:$0xff] }
  0x2a   :  { %v338_v22 = vld [vmem:[%s926_s0 + $0x170] sm:$0xff]  ;;  %v249_v23 = vmax.f32 %v216_v12, %v414_v7  ;;  %v152_v26 = vmax.f32 %v119_v14, %v368_v10  ;;  %v55_v28 = vmax.f32 %v22_v20, %v322_v21  ;;  %v217_v29 = vmax.f32 %v184_v18, %v399_v13  ;;  %v385_v32 = vld [vmem:[%s926_s0 + $0x2e8] sm:$0xff]  ;;  %v23_v37 = vld [vmem:[%s926_s0 + $0x78] sm:$0xff] }
  0x2b   :  { %297 = vst [vmem:[%s927_s1 + $0x48] sm:$0xff] %v281_v17  ;;  %v120_v31 = vmax.f32 %v87_v19, %v353_v16  ;;  %v354_v33 = vld [vmem:[%s926_s0 + $0x1f0] sm:$0xff]  ;;  %v323_v38 = vld [vmem:[%s926_s0 + $0xf8] sm:$0xff]  ;;  %v416_v41 = vld [vmem:[%s926_s0 + $0x3e0] sm:$0xff] }
  0x2c   :  { %v282_v34 = vmax.f32 %v249_v23, %v430_v8  ;;  %v185_v35 = vmax.f32 %v152_v26, %v384_v15  ;;  %v88_v36 = vmax.f32 %v55_v28, %v338_v22  ;;  %v339_v39 = vld [vmem:[%s926_s0 + $0x178] sm:$0xff]  ;;  %v250_v40 = vmax.f32 %v217_v29, %v415_v24  ;;  %v370_v43 = vld [vmem:[%s926_s0 + $0x270] sm:$0xff]  ;;  %v401_v46 = vld [vmem:[%s926_s0 + $0x368] sm:$0xff] }
  0x2d   :  { %v153_v42 = vmax.f32 %v120_v31, %v369_v27  ;;  %v56_v44 = vmax.f32 %v23_v37, %v323_v38  ;;  %v355_v48 = vld [vmem:[%s926_s0 + $0x1f8] sm:$0xff]  ;;  %v432_v50 = vld [vmem:[%s926_s0 + $0x460] sm:$0xff]  ;;  %v386_v52 = vld [vmem:[%s926_s0 + $0x2f0] sm:$0xff] }
  0x2e   :  { %298 = vst [vmem:[%s927_s1 + $0x50] sm:$0xff] %v282_v34  ;;  %v218_v45 = vmax.f32 %v185_v35, %v400_v30  ;;  %v121_v47 = vmax.f32 %v88_v36, %v354_v33  ;;  %v283_v49 = vmax.f32 %v250_v40, %v431_v25  ;;  %v417_v55 = vld [vmem:[%s926_s0 + $0x3e8] sm:$0xff]  ;;  %v371_v57 = vld [vmem:[%s926_s0 + $0x278] sm:$0xff]  ;;  %v402_v59 = vld [vmem:[%s926_s0 + $0x370] sm:$0xff] }
  0x2f   :  { %v186_v51 = vmax.f32 %v153_v42, %v385_v32  ;;  %v89_v53 = vmax.f32 %v56_v44, %v339_v39  ;;  %v433_v62 = vld [vmem:[%s926_s0 + $0x468] sm:$0xff]  ;;  %v387_v0 = vld [vmem:[%s926_s0 + $0x2f8] sm:$0xff]  ;;  %v418_v2 = vld [vmem:[%s926_s0 + $0x3f0] sm:$0xff] }
  0x30   :  { %v251_v54 = vmax.f32 %v218_v45, %v416_v41  ;;  %v154_v56 = vmax.f32 %v121_v47, %v370_v43  ;;  %299 = vst [vmem:[%s927_s1 + $0x58] sm:$0xff] %v283_v49  ;;  %v403_v5 = vld [vmem:[%s926_s0 + $0x378] sm:$0xff]  ;;  %v434_v7 = vld [vmem:[%s926_s0 + $0x470] sm:$0xff] }
  0x31   :  { %v219_v58 = vmax.f32 %v186_v51, %v401_v46  ;;  %v122_v60 = vmax.f32 %v89_v53, %v355_v48  ;;  %v419_v10 = vld [vmem:[%s926_s0 + $0x3f8] sm:$0xff] }
  0x32   :  { %v284_v61 = vmax.f32 %v251_v54, %v432_v50  ;;  %v187_v63 = vmax.f32 %v154_v56, %v386_v52  ;;  %v435_v13 = vld [vmem:[%s926_s0 + $0x478] sm:$0xff] }
  0x33   :  { %v252_v1 = vmax.f32 %v219_v58, %v417_v55  ;;  %v155_v3 = vmax.f32 %v122_v60, %v371_v57 }
  0x34   :  { %300 = vst [vmem:[%s927_s1 + $0x60] sm:$0xff] %v284_v61  ;;  %v220_v4 = vmax.f32 %v187_v63, %v402_v59 }
  0x35   :  { %v285_v6 = vmax.f32 %v252_v1, %v433_v62  ;;  %v188_v8 = vmax.f32 %v155_v3, %v387_v0 }
  0x36   :  { %v253_v9 = vmax.f32 %v220_v4, %v418_v2 }
  0x37   :  { %301 = vst [vmem:[%s927_s1 + $0x68] sm:$0xff] %v285_v6  ;;  %v221_v11 = vmax.f32 %v188_v8, %v403_v5 }
  0x38   :  { %v286_v12 = vmax.f32 %v253_v9, %v434_v7 }
  0x39   :  { %v254_v14 = vmax.f32 %v221_v11, %v419_v10 }
  0x3a   :  { %302 = vst [vmem:[%s927_s1 + $0x70] sm:$0xff] %v286_v12 }
  0x3b   :  { %v287_v15 = vmax.f32 %v254_v14, %v435_v13 }
  0x3d   :  { %303 = vst [vmem:[%s927_s1 + $0x78] sm:$0xff] %v287_v15 }

// kernel: _encoder_forward.179
= control target key start
LH: loop header
LB: loop body
LE: loop exit
PB: predicated region body
PF: predicated region fallthrough
CT: control target
= control target key end

     0   :  { %v78_v5 = vlaneseq  ;;  %s1047_s3 = inlined_call_operand.vmem [shape: bf16[256,128], index: 3, kind: input, shape index: {}]   ;;  %s1048_s0 = inlined_call_operand.vmem [shape: f32[128,256], index: 0, kind: input, shape index: {}]   ;;  %s1049_s1 = inlined_call_operand.vmem [shape: f32[1,256], index: 1, kind: input, shape index: {}]   ;;  %s1050_s2 = inlined_call_operand.vmem [shape: f32[1,256], index: 2, kind: input, shape index: {}]   ;;  %s1051_s4 = inlined_call_operand.vmem [shape: f32[1,128], index: 4, kind: input, shape index: {}]   ;;  %s1052_s5 = inlined_call_operand.vmem [shape: f32[1,128], index: 5, kind: input, shape index: {}]   ;;  %s1053_s6 = inlined_call_operand.vmem [shape: f32[128,128], index: 6, kind: output, shape index: {}]  }
   0x1   :  { %v684_v0 = vld [vmem:[%s1047_s3 + $0x40] sm:$0xff]   ;;  %v686_v2 = vld [vmem:[%s1047_s3 + $0x48] sm:$0xff]   ;;  %v688_v4 = vld [vmem:[%s1047_s3 + $0x50] sm:$0xff]  }
   0x2   :  { %v685_v1 = vld [vmem:[%s1047_s3] sm:$0xff]   ;;  %604 = vmatprep.subr.bf16.mxu0 %v684_v0  ;;  %668 = vmatprep.subr.bf16.mxu1 %v684_v0  ;;  %v687_v3 = vld [vmem:[%s1047_s3 + $0x8] sm:$0xff]   ;;  %v689_v6 = vld [vmem:[%s1047_s3 + $0x10] sm:$0xff]   ;;  %v79_v8 = vshrl.u32 %v78_v5, 7 }
   0x3   :  { %605 = vmatpush3.bf16.msra.mxu0 %v685_v1  ;;  %676 = vmatpush3.bf16.msra.mxu1 %v685_v1  ;;  %v690_v7 = vld [vmem:[%s1047_s3 + $0x58] sm:$0xff]   ;;  %v692_v10 = vld [vmem:[%s1047_s3 + $0x60] sm:$0xff]   ;;  %v694_v14 = vld [vmem:[%s1047_s3 + $0x68] sm:$0xff]  }
   0x4   :  { %606 = vmatprep.subr.bf16.mxu0 %v686_v2  ;;  %669 = vmatprep.subr.bf16.mxu1 %v686_v2  ;;  %v691_v9 = vld [vmem:[%s1047_s3 + $0x18] sm:$0xff]   ;;  %v80_v11 = vsub.s32 0, %v79_v8  ;;  %v84_v12 = vsub.s32 1, %v79_v8  ;;  %v693_v13 = vld [vmem:[%s1047_s3 + $0x20] sm:$0xff]   ;;  %v45_v15 = vld [vmem:[%s1048_s0 + $0x8] sm:$0xff] }
   0x5   :  { %v47_v16 = vld [vmem:[%s1048_s0 + $0x18] sm:$0xff]  ;;  %v76_v17 = vld [vmem:[%s1049_s1] sm:$0x3]  ;;  %v61_v21 = vld [vmem:[%s1048_s0 + $0x88] sm:$0xff] }
   0x6   :  { %v777_v18 = vrot.slane %v76_v17, %v80_v11  ;;  %v779_v19 = vrot.slane %v76_v17, %v84_v12  ;;  %v120_v20 = vld [vmem:[%s1050_s2] sm:$0x3]  ;;  %v63_v22 = vld [vmem:[%s1048_s0 + $0x98] sm:$0xff]  ;;  %v46_v26 = vld [vmem:[%s1048_s0 + $0x10] sm:$0xff] }
   0x7   :  { %607 = vmatpush3.bf16.msra.mxu0 %v687_v3  ;;  %677 = vmatpush3.bf16.msra.mxu1 %v687_v3  ;;  %v790_v23 = vrot.slane %v120_v20, %v80_v11  ;;  %v792_v24 = vrot.slane %v120_v20, %v84_v12  ;;  %v44_v25 = vld [vmem:[%s1048_s0] sm:$0xff]  ;;  %v695_v28 = vld [vmem:[%s1047_s3 + $0x28] sm:$0xff]   ;;  %v62_v32 = vld [vmem:[%s1048_s0 + $0x90] sm:$0xff] }
   0x8   :  { %608 = vmatprep.subr.bf16.mxu0 %v688_v4  ;;  %670 = vmatprep.subr.bf16.mxu1 %v688_v4  ;;  %v60_v27 = vld [vmem:[%s1048_s0 + $0x80] sm:$0xff]  ;;  %v89_v29 = vmul.f32 %v779_v19, %v45_v15  ;;  %v91_v30 = vmul.f32 %v779_v19, %v47_v16  ;;  %v105_v31 = vmul.f32 %v779_v19, %v61_v21  ;;  %v696_v33 = vld [vmem:[%s1047_s3 + $0x70] sm:$0xff]   ;;  %v49_v45 = vld [vmem:[%s1048_s0 + $0x28] sm:$0xff] }
   0x9   :  { %v107_v34 = vmul.f32 %v779_v19, %v63_v22  ;;  %v88_v35 = vmul.f32 %v777_v18, %v44_v25  ;;  %v90_v36 = vmul.f32 %v777_v18, %v46_v26  ;;  %v104_v40 = vmul.f32 %v777_v18, %v60_v27  ;;  %v51_v46 = vld [vmem:[%s1048_s0 + $0x38] sm:$0xff]  ;;  %v697_v47 = vld [vmem:[%s1047_s3 + $0x30] sm:$0xff]   ;;  %v65_v52 = vld [vmem:[%s1048_s0 + $0xa8] sm:$0xff] }
   0xa   :  { %v133_v37 = vadd.f32 %v792_v24, %v89_v29  ;;  %v135_v38 = vadd.f32 %v792_v24, %v91_v30  ;;  %v149_v39 = vadd.f32 %v792_v24, %v105_v31  ;;  %v106_v44 = vmul.f32 %v777_v18, %v62_v32  ;;  %v698_v53 = vld [vmem:[%s1047_s3 + $0x78] sm:$0xff]   ;;  %v48_v63 = vld [vmem:[%s1048_s0 + $0x20] sm:$0xff]  ;;  %v50_v4 = vld [vmem:[%s1048_s0 + $0x30] sm:$0xff] }
   0xb   :  { %609 = vmatpush3.bf16.msra.mxu0 %v689_v6  ;;  %678 = vmatpush3.bf16.msra.mxu1 %v689_v6  ;;  %v151_v41 = vadd.f32 %v792_v24, %v107_v34  ;;  %v132_v42 = vadd.f32 %v790_v23, %v88_v35  ;;  %v134_v43 = vadd.f32 %v790_v23, %v90_v36  ;;  %v67_v58 = vld [vmem:[%s1048_s0 + $0xb8] sm:$0xff] }
   0xc   :  { %610 = vmatprep.subr.bf16.mxu0 %v690_v7  ;;  %671 = vmatprep.subr.bf16.mxu1 %v690_v7  ;;  %v165_v48 = vmax.f32 %v133_v37, 0.0  ;;  %v167_v49 = vmax.f32 %v135_v38, 0.0  ;;  %v181_v50 = vmax.f32 %v149_v39, 0.0  ;;  %v148_v51 = vadd.f32 %v790_v23, %v104_v40  ;;  %v699_v5 = vld [vmem:[%s1047_s3 + $0x38] sm:$0xff]   ;;  %v52_v38 = vld [vmem:[%s1048_s0 + $0x40] sm:$0xff] }
   0xd   :  { %v183_v54 = vmax.f32 %v151_v41, 0.0  ;;  %v164_v55 = vmax.f32 %v132_v42, 0.0  ;;  %v166_v56 = vmax.f32 %v134_v43, 0.0  ;;  %v150_v57 = vadd.f32 %v790_v23, %v106_v44  ;;  %v55_v21 = vld [vmem:[%s1048_s0 + $0x58] sm:$0xff]  ;;  %v54_v43 = vld [vmem:[%s1048_s0 + $0x50] sm:$0xff] }
   0xe   :  { %v213_v59 = vpack.c.bf16 %v167_v49, %v165_v48  ;;  %v180_v60 = vmax.f32 %v148_v51, 0.0  ;;  %v93_v61 = vmul.f32 %v779_v19, %v49_v45  ;;  %v95_v62 = vmul.f32 %v779_v19, %v51_v46  ;;  %v68_v48 = vld [vmem:[%s1048_s0 + $0xc0] sm:$0xff]  ;;  %v70_v49 = vld [vmem:[%s1048_s0 + $0xd0] sm:$0xff] }
   0xf   :  { %611 = vmatpush3.bf16.msra.mxu0 %v691_v9  ;;  %679 = vmatpush3.bf16.msra.mxu1 %v691_v9  ;;  %v221_v0 = vpack.c.bf16 %v183_v54, %v181_v50  ;;  %v212_v1 = vpack.c.bf16 %v166_v56, %v164_v55  ;;  %v182_v2 = vmax.f32 %v150_v57, 0.0  ;;  %v109_v3 = vmul.f32 %v779_v19, %v65_v52  ;;  %v64_v9 = vld [vmem:[%s1048_s0 + $0xa0] sm:$0xff]  ;;  %v57_v54 = vld [vmem:[%s1048_s0 + $0x68] sm:$0xff] }
  0x10   :  { %612 = vmatprep.subr.bf16.mxu0 %v692_v10  ;;  %672 = vmatprep.subr.bf16.mxu1 %v692_v10  ;;  %v137_v6 = vadd.f32 %v792_v24, %v93_v61  ;;  %v139_v7 = vadd.f32 %v792_v24, %v95_v62  ;;  %v111_v8 = vmul.f32 %v779_v19, %v67_v58  ;;  %v66_v10 = vld [vmem:[%s1048_s0 + $0xb0] sm:$0xff] }
  0x11   :  { %v220_v11 = vpack.c.bf16 %v182_v2, %v180_v60  ;;  %v153_v12 = vadd.f32 %v792_v24, %v109_v3  ;;  %388 = vmatprep.mubr.bf16.mxu0 %v213_v59  ;;  %420 = vmatprep.mubr.bf16.mxu1 %v221_v0  ;;  %v94_v20 = vmul.f32 %v777_v18, %v50_v4  ;;  %v59_v59 = vld [vmem:[%s1048_s0 + $0x78] sm:$0xff]  ;;  %v73_v0 = vld [vmem:[%s1048_s0 + $0xe8] sm:$0xff] }
  0x12   :  { %v169_v15 = vmax.f32 %v137_v6, 0.0  ;;  %v171_v16 = vmax.f32 %v139_v7, 0.0  ;;  %v155_v17 = vadd.f32 %v792_v24, %v111_v8  ;;  %v108_v26 = vmul.f32 %v777_v18, %v64_v9 }
  0x13   :  { %613 = vmatpush3.bf16.msra.mxu0 %v693_v13  ;;  %680 = vmatpush3.bf16.msra.mxu1 %v693_v13  ;;  %v92_v13 = vmul.f32 %v777_v18, %v48_v63  ;;  %v185_v22 = vmax.f32 %v153_v12, 0.0  ;;  %v110_v27 = vmul.f32 %v777_v18, %v66_v10  ;;  %v138_v31 = vadd.f32 %v790_v23, %v94_v20  ;;  %v56_v10 = vld [vmem:[%s1048_s0 + $0x60] sm:$0xff] }
  0x14   :  { %614 = vmatprep.subr.bf16.mxu0 %v694_v14  ;;  %673 = vmatprep.subr.bf16.mxu1 %v694_v14  ;;  %v53_v14 = vld [vmem:[%s1048_s0 + $0x48] sm:$0xff]  ;;  %v215_v29 = vpack.c.bf16 %v171_v16, %v169_v15  ;;  %v187_v30 = vmax.f32 %v155_v17, 0.0  ;;  %v152_v35 = vadd.f32 %v790_v23, %v108_v26  ;;  %v99_v37 = vmul.f32 %v779_v19, %v55_v21  ;;  %v58_v15 = vld [vmem:[%s1048_s0 + $0x70] sm:$0xff] }
  0x15   :  { %v136_v25 = vadd.f32 %v790_v23, %v92_v13  ;;  %v97_v32 = vmul.f32 %v779_v19, %v53_v14  ;;  %v154_v36 = vadd.f32 %v790_v23, %v110_v27  ;;  %v170_v40 = vmax.f32 %v138_v31, 0.0 }
  0x16   :  { %v223_v39 = vpack.c.bf16 %v187_v30, %v185_v22  ;;  %v184_v44 = vmax.f32 %v152_v35, 0.0  ;;  %v143_v46 = vadd.f32 %v792_v24, %v99_v37  ;;  %v98_v58 = vmul.f32 %v777_v18, %v54_v43  ;;  %v72_v22 = vld [vmem:[%s1048_s0 + $0xe0] sm:$0xff] }
  0x17   :  { %615 = vmatpush3.bf16.msra.mxu0 %v695_v28  ;;  %681 = vmatpush3.bf16.msra.mxu1 %v695_v28  ;;  %v69_v28 = vld [vmem:[%s1048_s0 + $0xc8] sm:$0xff]  ;;  %v168_v34 = vmax.f32 %v136_v25, 0.0  ;;  %v141_v41 = vadd.f32 %v792_v24, %v97_v32  ;;  %v186_v45 = vmax.f32 %v154_v36, 0.0  ;;  %v112_v62 = vmul.f32 %v777_v18, %v68_v48  ;;  %v74_v25 = vld [vmem:[%s1048_s0 + $0xf0] sm:$0xff] }
  0x18   :  { %616 = vmatprep.subr.bf16.mxu0 %v696_v33  ;;  %674 = vmatprep.subr.bf16.mxu1 %v696_v33  ;;  %v71_v33 = vld [vmem:[%s1048_s0 + $0xd8] sm:$0xff]  ;;  %v113_v42 = vmul.f32 %v779_v19, %v69_v28  ;;  %v175_v56 = vmax.f32 %v143_v46, 0.0  ;;  %v114_v63 = vmul.f32 %v777_v18, %v70_v49  ;;  %v142_v3 = vadd.f32 %v790_v23, %v98_v58 }
  0x19   :  { %v214_v50 = vpack.c.bf16 %v170_v40, %v168_v34  ;;  %v173_v51 = vmax.f32 %v141_v41, 0.0  ;;  %v222_v55 = vpack.c.bf16 %v186_v45, %v184_v44  ;;  %v101_v4 = vmul.f32 %v779_v19, %v57_v54 }
  0x1a   :  { %v157_v52 = vadd.f32 %v792_v24, %v113_v42  ;;  %v156_v7 = vadd.f32 %v790_v23, %v112_v62  ;;  %v158_v8 = vadd.f32 %v790_v23, %v114_v63  ;;  %v103_v9 = vmul.f32 %v779_v19, %v59_v59 }
  0x1b   :  { %617 = vmatpush3.bf16.msra.mxu0 %v697_v47  ;;  %682 = vmatpush3.bf16.msra.mxu1 %v697_v47  ;;  %v115_v47 = vmul.f32 %v779_v19, %v71_v33  ;;  %v174_v12 = vmax.f32 %v142_v3, 0.0  ;;  %v145_v13 = vadd.f32 %v792_v24, %v101_v4  ;;  %v117_v14 = vmul.f32 %v779_v19, %v73_v0 }
  0x1c   :  { %618 = vmatprep.subr.bf16.mxu0 %v698_v53  ;;  %675 = vmatprep.subr.bf16.mxu1 %v698_v53  ;;  %v96_v53 = vmul.f32 %v777_v18, %v52_v38  ;;  %v189_v60 = vmax.f32 %v157_v52, 0.0  ;;  %v188_v16 = vmax.f32 %v156_v7, 0.0  ;;  %v190_v17 = vmax.f32 %v158_v8, 0.0 }
  0x1d   :  { %v159_v57 = vadd.f32 %v792_v24, %v115_v47  ;;  %v147_v20 = vadd.f32 %v792_v24, %v103_v9  ;;  %v161_v26 = vadd.f32 %v792_v24, %v117_v14  ;;  %v100_v27 = vmul.f32 %v777_v18, %v56_v10 }
  0x1e   :  { %v140_v61 = vadd.f32 %v790_v23, %v96_v53  ;;  %v177_v28 = vmax.f32 %v145_v13, 0.0  ;;  %v102_v30 = vmul.f32 %v777_v18, %v58_v15  ;;  %v116_v32 = vmul.f32 %v777_v18, %v72_v22 }
  0x1f   :  { %619 = vmatpush3.bf16.msra.mxu0 %v699_v5  ;;  %683 = vmatpush3.bf16.msra.mxu1 %v699_v5  ;;  %v191_v2 = vmax.f32 %v159_v57, 0.0  ;;  %v75_v5 = vld [vmem:[%s1048_s0 + $0xf8] sm:$0xff]  ;;  %v193_v31 = vmax.f32 %v161_v26, 0.0  ;;  %v118_v33 = vmul.f32 %v777_v18, %v74_v25  ;;  %v224_v35 = vpack.c.bf16 %v190_v17, %v188_v16 }
  0x20   :  { %v172_v6 = vmax.f32 %v140_v61, 0.0  ;;  %v119_v21 = vmul.f32 %v779_v19, %v75_v5  ;;  %v144_v37 = vadd.f32 %v790_v23, %v100_v27  ;;  %v146_v38 = vadd.f32 %v790_v23, %v102_v30 }
  0x21   :  { %v162_v40 = vadd.f32 %v790_v23, %v118_v33 }
  0x22   :  { %389 = vmatmul.mubr.bf16.vlgmr.msra.gmra.mrb[0].mxu0 %v212_v1  ;;  %421 = vmatmul.mubr.bf16.vlgmr.msra.gmra.mrb[0].mxu1 %v220_v11  ;;  %v217_v1 = vpack.c.bf16 %v175_v56, %v173_v51  ;;  %v225_v11 = vpack.c.bf16 %v191_v2, %v189_v60  ;;  %v163_v19 = vadd.f32 %v792_v24, %v119_v21  ;;  %v176_v42 = vmax.f32 %v144_v37, 0.0 }
  0x23   :  { %396 = vmatprep.mubr.bf16.mxu0 %v215_v29  ;;  %428 = vmatprep.mubr.bf16.mxu1 %v223_v39  ;;  %v179_v29 = vmax.f32 %v147_v20, 0.0  ;;  %v216_v34 = vpack.c.bf16 %v174_v12, %v172_v6  ;;  %v160_v39 = vadd.f32 %v790_v23, %v116_v32  ;;  %v178_v43 = vmax.f32 %v146_v38, 0.0  ;;  %v960_v23 = vld [vmem:[%s1051_s4] ss:$0 sm:$0xff] }
  0x24   :  { %v195_v36 = vmax.f32 %v163_v19, 0.0  ;;  %v194_v45 = vmax.f32 %v162_v40, 0.0 }
  0x25   :  { %v219_v41 = vpack.c.bf16 %v179_v29, %v177_v28  ;;  %v192_v44 = vmax.f32 %v160_v39, 0.0  ;;  %v218_v18 = vpack.c.bf16 %v178_v43, %v176_v42 }
  0x26   :  { %v227_v24 = vpack.c.bf16 %v195_v36, %v193_v31 }
  0x27   :  { %v226_v46 = vpack.c.bf16 %v194_v45, %v192_v44 }
  0x2a   :  { %397 = vmatmul.mubr.bf16.gmra.mrb[4].mxu0 %v214_v50  ;;  %429 = vmatmul.mubr.bf16.gmra.mrb[4].mxu1 %v222_v55  ;;  %v965_v55 = vld [vmem:[%s1052_s5] ss:$0 sm:$0xff] }
  0x2b   :  { %404 = vmatprep.mubr.bf16.mxu0 %v217_v1  ;;  %436 = vmatprep.mubr.bf16.mxu1 %v225_v11 }
  0x32   :  { %405 = vmatmul.mubr.bf16.gmra.mrb[8].mxu0 %v216_v34  ;;  %437 = vmatmul.mubr.bf16.gmra.mrb[8].mxu1 %v224_v35 }
  0x33   :  { %412 = vmatprep.mubr.bf16.mxu0 %v219_v41  ;;  %444 = vmatprep.mubr.bf16.mxu1 %v227_v24 }
  0x3a   :  { %413 = vmatmul.mubr.bf16.gmra.mrb[12].mxu0 %v218_v18  ;;  %445 = vmatmul.mubr.bf16.gmra.mrb[12].mxu1 %v226_v46 }
  0xf5   :  { %v620_v47 = vpop.f32.mrb[0].mxu0  ;;  %v644_v48 = vpop.f32.mrb[0].mxu1 }
  0xf6   :  { %v621_v49 = vpop.f32.mrb[1].mxu0  ;;  %v645_v50 = vpop.f32.mrb[1].mxu1 }
  0xf7   :  { %v622_v51 = vadd.f32 %v621_v49, %v620_v47  ;;  %v646_v52 = vadd.f32 %v645_v50, %v644_v48  ;;  %v623_v53 = vpop.f32.mrb[2].mxu0  ;;  %v647_v54 = vpop.f32.mrb[2].mxu1 }
  0xf8   :  { %v624_v56 = vpop.f32.mrb[3].mxu0  ;;  %v648_v57 = vpop.f32.mrb[3].mxu1 }
  0xf9   :  { %v511_v58 = vmul.f32 %v622_v51, %v960_v23  ;;  %v519_v59 = vmul.f32 %v646_v52, %v960_v23  ;;  %v625_v60 = vadd.f32 %v624_v56, %v623_v53  ;;  %v649_v61 = vadd.f32 %v648_v57, %v647_v54 }
  0xfb   :  { %v534_v62 = vadd.f32 %v965_v55, %v511_v58  ;;  %v542_v63 = vadd.f32 %v965_v55, %v519_v59  ;;  %v512_v0 = vmul.f32 %v625_v60, %v960_v23  ;;  %v520_v1 = vmul.f32 %v649_v61, %v960_v23 }
  0xfd   :  { %v550_v2 = vmax.f32 %v534_v62, 0.0  ;;  %v558_v3 = vmax.f32 %v542_v63, 0.0  ;;  %v535_v4 = vadd.f32 %v965_v55, %v512_v0  ;;  %v543_v5 = vadd.f32 %v965_v55, %v520_v1  ;;  %v626_v6 = vpop.f32.mrb[4].mxu0  ;;  %v650_v7 = vpop.f32.mrb[4].mxu1 }
  0xfe   :  { %v627_v8 = vpop.f32.mrb[5].mxu0  ;;  %v651_v9 = vpop.f32.mrb[5].mxu1 }
  0xff   :  { %566 = vst [vmem:[%s1053_s6] sm:$0xff] %v550_v2  ;;  %574 = vst [vmem:[%s1053_s6 + $0x40] sm:$0xff] %v558_v3  ;;  %v551_v10 = vmax.f32 %v535_v4, 0.0  ;;  %v559_v11 = vmax.f32 %v543_v5, 0.0  ;;  %v628_v12 = vadd.f32 %v627_v8, %v626_v6  ;;  %v652_v13 = vadd.f32 %v651_v9, %v650_v7  ;;  %v629_v14 = vpop.f32.mrb[6].mxu0  ;;  %v653_v15 = vpop.f32.mrb[6].mxu1 }
 0x100   :  { %v630_v16 = vpop.f32.mrb[7].mxu0  ;;  %v654_v17 = vpop.f32.mrb[7].mxu1 }
 0x101   :  { %567 = vst [vmem:[%s1053_s6 + $0x8] sm:$0xff] %v551_v10  ;;  %575 = vst [vmem:[%s1053_s6 + $0x48] sm:$0xff] %v559_v11  ;;  %v513_v20 = vmul.f32 %v628_v12, %v960_v23  ;;  %v521_v21 = vmul.f32 %v652_v13, %v960_v23  ;;  %v631_v22 = vadd.f32 %v630_v16, %v629_v14 }
 0x102   :  { %v655_v25 = vadd.f32 %v654_v17, %v653_v15 }
 0x103   :  { %v536_v26 = vadd.f32 %v965_v55, %v513_v20  ;;  %v544_v27 = vadd.f32 %v965_v55, %v521_v21  ;;  %v514_v28 = vmul.f32 %v631_v22, %v960_v23 }
 0x104   :  { %v522_v29 = vmul.f32 %v655_v25, %v960_v23 }
 0x105   :  { %v552_v19 = vmax.f32 %v536_v26, 0.0  ;;  %v560_v30 = vmax.f32 %v544_v27, 0.0  ;;  %v537_v31 = vadd.f32 %v965_v55, %v514_v28  ;;  %v632_v33 = vpop.f32.mrb[8].mxu0  ;;  %v656_v34 = vpop.f32.mrb[8].mxu1 }
 0x106   :  { %v545_v32 = vadd.f32 %v965_v55, %v522_v29  ;;  %v633_v35 = vpop.f32.mrb[9].mxu0  ;;  %v657_v36 = vpop.f32.mrb[9].mxu1 }
 0x107   :  { %568 = vst [vmem:[%s1053_s6 + $0x10] sm:$0xff] %v552_v19  ;;  %576 = vst [vmem:[%s1053_s6 + $0x50] sm:$0xff] %v560_v30  ;;  %v553_v37 = vmax.f32 %v537_v31, 0.0  ;;  %v634_v39 = vadd.f32 %v633_v35, %v632_v33  ;;  %v658_v40 = vadd.f32 %v657_v36, %v656_v34  ;;  %v635_v41 = vpop.f32.mrb[10].mxu0  ;;  %v659_v24 = vpop.f32.mrb[10].mxu1 }
 0x108   :  { %v561_v38 = vmax.f32 %v545_v32, 0.0  ;;  %v636_v42 = vpop.f32.mrb[11].mxu0  ;;  %v660_v43 = vpop.f32.mrb[11].mxu1 }
 0x109   :  { %569 = vst [vmem:[%s1053_s6 + $0x18] sm:$0xff] %v553_v37  ;;  %v515_v44 = vmul.f32 %v634_v39, %v960_v23  ;;  %v523_v45 = vmul.f32 %v658_v40, %v960_v23  ;;  %v637_v18 = vadd.f32 %v636_v42, %v635_v41  ;;  %v661_v46 = vadd.f32 %v660_v43, %v659_v24 }
 0x10a   :  { %577 = vst [vmem:[%s1053_s6 + $0x58] sm:$0xff] %v561_v38 }
 0x10b   :  { %v538_v47 = vadd.f32 %v965_v55, %v515_v44  ;;  %v546_v48 = vadd.f32 %v965_v55, %v523_v45  ;;  %v516_v49 = vmul.f32 %v637_v18, %v960_v23  ;;  %v524_v50 = vmul.f32 %v661_v46, %v960_v23 }
 0x10d   :  { %v554_v51 = vmax.f32 %v538_v47, 0.0  ;;  %v562_v52 = vmax.f32 %v546_v48, 0.0  ;;  %v539_v53 = vadd.f32 %v965_v55, %v516_v49  ;;  %v547_v54 = vadd.f32 %v965_v55, %v524_v50  ;;  %v638_v56 = vpop.f32.mrb[12].mxu0  ;;  %v662_v57 = vpop.f32.mrb[12].mxu1 }
 0x10e   :  { %v639_v58 = vpop.f32.mrb[13].mxu0  ;;  %v663_v59 = vpop.f32.mrb[13].mxu1 }
 0x10f   :  { %570 = vst [vmem:[%s1053_s6 + $0x20] sm:$0xff] %v554_v51  ;;  %578 = vst [vmem:[%s1053_s6 + $0x60] sm:$0xff] %v562_v52  ;;  %v555_v60 = vmax.f32 %v539_v53, 0.0  ;;  %v563_v61 = vmax.f32 %v547_v54, 0.0  ;;  %v640_v62 = vadd.f32 %v639_v58, %v638_v56  ;;  %v664_v63 = vadd.f32 %v663_v59, %v662_v57  ;;  %v641_v0 = vpop.f32.mrb[14].mxu0  ;;  %v665_v1 = vpop.f32.mrb[14].mxu1 }
 0x110   :  { %v642_v2 = vpop.f32.mrb[15].mxu0  ;;  %v666_v3 = vpop.f32.mrb[15].mxu1 }
 0x111   :  { %571 = vst [vmem:[%s1053_s6 + $0x28] sm:$0xff] %v555_v60  ;;  %579 = vst [vmem:[%s1053_s6 + $0x68] sm:$0xff] %v563_v61  ;;  %v517_v4 = vmul.f32 %v640_v62, %v960_v23  ;;  %v525_v5 = vmul.f32 %v664_v63, %v960_v23  ;;  %v643_v6 = vadd.f32 %v642_v2, %v641_v0 }
 0x112   :  { %v667_v7 = vadd.f32 %v666_v3, %v665_v1 }
 0x113   :  { %v540_v8 = vadd.f32 %v965_v55, %v517_v4  ;;  %v548_v9 = vadd.f32 %v965_v55, %v525_v5  ;;  %v518_v10 = vmul.f32 %v643_v6, %v960_v23 }
 0x114   :  { %v526_v11 = vmul.f32 %v667_v7, %v960_v23 }
 0x115   :  { %v556_v12 = vmax.f32 %v540_v8, 0.0  ;;  %v564_v13 = vmax.f32 %v548_v9, 0.0  ;;  %v541_v14 = vadd.f32 %v965_v55, %v518_v10 }
 0x116   :  { %v549_v15 = vadd.f32 %v965_v55, %v526_v11 }
 0x117   :  { %572 = vst [vmem:[%s1053_s6 + $0x30] sm:$0xff] %v556_v12  ;;  %580 = vst [vmem:[%s1053_s6 + $0x70] sm:$0xff] %v564_v13  ;;  %v557_v16 = vmax.f32 %v541_v14, 0.0 }
 0x118   :  { %v565_v17 = vmax.f32 %v549_v15, 0.0 }
 0x119   :  { %573 = vst [vmem:[%s1053_s6 + $0x38] sm:$0xff] %v557_v16 }
 0x11a   :  { %581 = vst [vmem:[%s1053_s6 + $0x78] sm:$0xff] %v565_v17 }

// kernel: _encoder_forward.180
= control target key start
LH: loop header
LB: loop body
LE: loop exit
PB: predicated region body
PF: predicated region fallthrough
CT: control target
= control target key end

     0   :  { %s948_s9 = smov 0   ;;  %s950_s10 = smov 0   ;;  %s1101_s0 = inlined_call_operand.vmem [shape: bf16[128,1152], index: 0, kind: input, shape index: {}]   ;;  %s1102_s1 = inlined_call_operand.vmem [shape: bf16[1152,128], index: 1, kind: input, shape index: {}]   ;;  %s1103_s2 = inlined_call_operand.vmem [shape: f32[128,128], index: 2, kind: output, shape index: {}]  }
   0x1   :  { %s952_s11 = smov 0   ;;  %s954_s12 = smov 0  }
   0x2   :  { %s956_s13 = smov 0  }
   0x3 LB: > { %s24_s14 = sadd.s32 1, %s926_s12  ;;  %p47_p1 = scmp.ne.s32.totalorder %s918_s10, %s914_s9  ;;  %s930_s13 = sphi %s956_s13, %s12_s13   ;;  %s926_s12 = sphi %s954_s12, %s1107_s12   ;;  %s922_s11 = sphi %s952_s11, %s1106_s11   ;;  %s918_s10 = sphi %s950_s10, %s1105_s10   ;;  %s914_s9 = sphi %s948_s9, %s1104_s9  }
   0x4   : > { %p25_p0 = scmp.ge.s32.totalorder %s24_s14, 9  ;;  %p48_p2 = scmp.eq.s32.totalorder %s930_s13, 0 }
   0x5   : > { %s40_s16 = sadd.s32 1, %s918_s10  ;;  %p742_p5 = scmp.ge.s32.totalorder %s930_s13, 9 }
   0x6   : > { %s1109_s14 = smov (%p25_p0, %s24_s14), 0  ;;  %p49_p3 = por %p48_p2, %p47_p1 }
   0x7   : > { %s36_s15 = ssub.s32 %s926_s12, %s1109_s14  ;;  %129 = sbr.rel (%p742_p5) target bundleno = 28 (0x1c), region = 16 }
   0x8   : > { %p38_p4 = scmp.eq.s32.totalorder %s36_s15, 0 }
   0xa   : > { %s983_s17 = scalar_select %p38_p4, %s918_s10, %s40_s16  }
   0xe   : > { %132 = sbr.rel (!%p49_p3) target bundleno = 28 (0x1c), region = 20  ;;  %s134_s18 = sand.u32 (%p49_p3), 1, %s918_s10  }
   0xf   : > { %s744_s19 = sshll.u32 (%p49_p3), %s926_s12, 2  ;;  %s743_s20 = sshll.u32 (%p49_p3), %s134_s18, 6 }
  0x10   : > { %s991_s23 = scalar_lea.vmem (%p49_p3), %s1101_s0, %s744_s19  ;;  %s136_s24 = scalar_lea.vmem (%p49_p3), [#allocation3], %s743_s20 }
  0x11   : > { %v157_v0 = vld [vmem:[%s991_s23] sm:$0xf] (%p49_p3)  ;;  %v159_v1 = vld [vmem:[%s991_s23 + $0x24] sm:$0xf] (%p49_p3)  ;;  %v161_v2 = vld [vmem:[%s991_s23 + $0x48] sm:$0xf] (%p49_p3) }
  0x12   : > { %158 = vst [vmem:[%s136_s24] sm:$0xf] (%p49_p3), %v157_v0  ;;  %160 = vst [vmem:[%s136_s24 + $0x4] sm:$0xf] (%p49_p3), %v159_v1  ;;  %v163_v3 = vld [vmem:[%s991_s23 + $0x6c] sm:$0xf] (%p49_p3) }
  0x13   : > { %v165_v4 = vld [vmem:[%s991_s23 + $0x90] sm:$0xf] (%p49_p3)  ;;  %162 = vst [vmem:[%s136_s24 + $0x8] sm:$0xf] (%p49_p3), %v161_v2  ;;  %164 = vst [vmem:[%s136_s24 + $0xc] sm:$0xf] (%p49_p3), %v163_v3 }
  0x14   : > { %166 = vst [vmem:[%s136_s24 + $0x10] sm:$0xf] (%p49_p3), %v165_v4  ;;  %v167_v5 = vld [vmem:[%s991_s23 + $0xb4] sm:$0xf] (%p49_p3)  ;;  %v169_v6 = vld [vmem:[%s991_s23 + $0xd8] sm:$0xf] (%p49_p3) }
  0x15   : > { %v171_v7 = vld [vmem:[%s991_s23 + $0xfc] sm:$0xf]  ;;  %168 = vst [vmem:[%s136_s24 + $0x14] sm:$0xf] %v167_v5  ;;  %170 = vst [vmem:[%s136_s24 + $0x18] sm:$0xf] %v169_v6 }
  0x16   : > { %172 = vst [vmem:[%s136_s24 + $0x1c] sm:$0xf] %v171_v7  ;;  %v173_v8 = vld [vmem:[%s991_s23 + $0x120] sm:$0xf]  ;;  %v175_v9 = vld [vmem:[%s991_s23 + $0x144] sm:$0xf] }
  0x17   : > { %v177_v10 = vld [vmem:[%s991_s23 + $0x168] sm:$0xf]  ;;  %174 = vst [vmem:[%s136_s24 + $0x20] sm:$0xf] %v173_v8  ;;  %176 = vst [vmem:[%s136_s24 + $0x24] sm:$0xf] %v175_v9 }
  0x18   : > { %178 = vst [vmem:[%s136_s24 + $0x28] sm:$0xf] %v177_v10  ;;  %v179_v11 = vld [vmem:[%s991_s23 + $0x18c] sm:$0xf]  ;;  %v181_v12 = vld [vmem:[%s991_s23 + $0x1b0] sm:$0xf] }
  0x19   : > { %v183_v13 = vld [vmem:[%s991_s23 + $0x1d4] sm:$0xf]  ;;  %180 = vst [vmem:[%s136_s24 + $0x2c] sm:$0xf] %v179_v11  ;;  %182 = vst [vmem:[%s136_s24 + $0x30] sm:$0xf] %v181_v12 }
  0x1a   : > { %184 = vst [vmem:[%s136_s24 + $0x34] sm:$0xf] %v183_v13  ;;  %v185_v14 = vld [vmem:[%s991_s23 + $0x1f8] sm:$0xf]  ;;  %v187_v15 = vld [vmem:[%s991_s23 + $0x21c] sm:$0xf] }
  0x1b   : > { %186 = vst [vmem:[%s136_s24 + $0x38] sm:$0xf] %v185_v14  ;;  %188 = vst [vmem:[%s136_s24 + $0x3c] sm:$0xf] %v187_v15 }
  0x1c PF: > { %p745_p6 = scmp.ge.s32.totalorder %s930_s13, 1  ;;  %p254_p7 = scmp.lt.s32.totalorder %s930_s13, 10 }
  0x1e   : > { %p255_p8 = pnand %p745_p6, %p254_p7 }
  0x1f   : > { %s261_s25 = sand.u32 (!%p255_p8), 1, %s914_s9   ;;  %s747_s26 = sshll.u32 (!%p255_p8), %s922_s11, 4 }
  0x20   : > { %258 = sbr.rel (%p255_p8) target bundleno = 317 (0x13d), region = 65  ;;  %s746_s27 = sshll.u32 (!%p255_p8), %s261_s25, 6 }
  0x21   : > { %p295_p9 = scmp.lt.s32.totalorder (!%p255_p8), %s747_s26, 143  ;;  %s1018_s4 = scalar_lea.vmem (!%p255_p8), [#allocation3], %s746_s27 }
  0x22   : > { %p749_p10 = scmp.ne.s32.totalorder (!%p255_p8), %s922_s11, 0 }
  0x27   : > { %s1111_s26 = smov (!%p295_p9, %s747_s26), 143  ;;  %316 = sbr.rel (%p749_p10) target bundleno = 49 (0x31), region = 73 }
  0x28   : > { %s748_s28 = sshll.u32 %s1111_s26, 2  ;;  %v932_v16 = vmov (!%p749_p10), 0.0  }
  0x29   : > { %s1016_s3 = scalar_lea.vmem %s1102_s1, %s748_s28  ;;  %317 = vst [vmem:[#allocation2] sm:$0xff] (!%p749_p10), %v932_v16  ;;  %318 = vst [vmem:[#allocation2 + $0x8] sm:$0xff] (!%p749_p10), %v932_v16 }
  0x2a   : > { %319 = vst [vmem:[#allocation2 + $0x10] sm:$0xff] (!%p749_p10), %v932_v16  ;;  %320 = vst [vmem:[#allocation2 + $0x18] sm:$0xff] (!%p749_p10), %v932_v16 }
  0x2b   : > { %321 = vst [vmem:[#allocation2 + $0x20] sm:$0xff] (!%p749_p10), %v932_v16  ;;  %322 = vst [vmem:[#allocation2 + $0x28] sm:$0xff] (!%p749_p10), %v932_v16 }
  0x2c   : > { %323 = vst [vmem:[#allocation2 + $0x30] sm:$0xff] (!%p749_p10), %v932_v16  ;;  %324 = vst [vmem:[#allocation2 + $0x38] sm:$0xff] (!%p749_p10), %v932_v16 }
  0x2d   : > { %325 = vst [vmem:[#allocation2 + $0x40] sm:$0xff] (!%p749_p10), %v932_v16  ;;  %326 = vst [vmem:[#allocation2 + $0x48] sm:$0xff] (!%p749_p10), %v932_v16 }
  0x2e   : > { %327 = vst [vmem:[#allocation2 + $0x50] sm:$0xff] %v932_v16  ;;  %328 = vst [vmem:[#allocation2 + $0x58] sm:$0xff] %v932_v16 }
  0x2f   : > { %329 = vst [vmem:[#allocation2 + $0x60] sm:$0xff] %v932_v16  ;;  %330 = vst [vmem:[#allocation2 + $0x68] sm:$0xff] %v932_v16 }
  0x30   : > { %331 = vst [vmem:[#allocation2 + $0x70] sm:$0xff] %v932_v16  ;;  %332 = vst [vmem:[#allocation2 + $0x78] sm:$0xff] %v932_v16 }
  0x31 PF: > { %v876_v17 = vld [vmem:[%s1016_s3] sm:$0xff]   ;;  %v877_v18 = vld [vmem:[%s1016_s3 + $0x8] sm:$0xff]   ;;  %v878_v19 = vld [vmem:[%s1016_s3 + $0x10] sm:$0xff]   ;;  %p766_p11 = scmp.ne.s32.totalorder %s922_s11, 8 }
  0x32   : > { %787 = vmatprep.subr.bf16.mxu0 %v876_v17  ;;  %819 = vmatprep.subr.bf16.mxu1 %v876_v17  ;;  %v879_v20 = vld [vmem:[%s1016_s3 + $0x18] sm:$0xff]   ;;  %v884_v21 = vld [vmem:[%s1018_s4] sm:$0xff]   ;;  %v881_v24 = vld [vmem:[%s1016_s3 + $0x28] sm:$0xff]  }
  0x33   : > { %788 = vmatpush3.bf16.msra.mxu0 %v876_v17  ;;  %827 = vmatpush3.bf16.msra.mxu1 %v876_v17  ;;  %v885_v22 = vld [vmem:[%s1018_s4 + $0x20] sm:$0xff]   ;;  %v882_v25 = vld [vmem:[%s1016_s3 + $0x30] sm:$0xff]   ;;  %v883_v26 = vld [vmem:[%s1016_s3 + $0x38] sm:$0xff]  }
  0x34   : > { %789 = vmatprep.subr.bf16.mxu0 %v877_v18  ;;  %820 = vmatprep.subr.bf16.mxu1 %v877_v18  ;;  %v880_v23 = vld [vmem:[%s1016_s3 + $0x20] sm:$0xff]   ;;  %v886_v27 = vld [vmem:[%s1018_s4 + $0x8] sm:$0xff]   ;;  %v888_v29 = vld [vmem:[%s1018_s4 + $0x10] sm:$0xff]  }
  0x35   : > { %803 = vmatprep.mubr.bf16.mxu0 %v884_v21  ;;  %811 = vmatprep.mubr.bf16.mxu1 %v885_v22  ;;  %v887_v28 = vld [vmem:[%s1018_s4 + $0x28] sm:$0xff]   ;;  %v889_v30 = vld [vmem:[%s1018_s4 + $0x30] sm:$0xff]   ;;  %v890_v31 = vld [vmem:[%s1018_s4 + $0x18] sm:$0xff]  }
  0x36   : > { %v891_v32 = vld [vmem:[%s1018_s4 + $0x38] sm:$0xff]   ;;  %v335_v33 = vld [vmem:[#allocation2 + $0x10] sm:$0xff]  ;;  %v333_v35 = vld [vmem:[#allocation2] sm:$0xff] }
  0x37   : > { %790 = vmatpush3.bf16.msra.mxu0 %v877_v18  ;;  %828 = vmatpush3.bf16.msra.mxu1 %v877_v18  ;;  %v343_v34 = vld [vmem:[#allocation2 + $0x50] sm:$0xff]  ;;  %v341_v36 = vld [vmem:[#allocation2 + $0x40] sm:$0xff]  ;;  %v336_v39 = vld [vmem:[#allocation2 + $0x18] sm:$0xff] }
  0x38   : > { %791 = vmatprep.subr.bf16.mxu0 %v878_v19  ;;  %821 = vmatprep.subr.bf16.mxu1 %v878_v19  ;;  %v344_v40 = vld [vmem:[#allocation2 + $0x58] sm:$0xff]  ;;  %v334_v45 = vld [vmem:[#allocation2 + $0x8] sm:$0xff]  ;;  %v339_v57 = vld [vmem:[#allocation2 + $0x30] sm:$0xff] }
  0x39   : > { %v342_v46 = vld [vmem:[#allocation2 + $0x48] sm:$0xff]  ;;  %v347_v58 = vld [vmem:[#allocation2 + $0x70] sm:$0xff]  ;;  %v337_v59 = vld [vmem:[#allocation2 + $0x20] sm:$0xff] }
  0x3a   : > { %v345_v60 = vld [vmem:[#allocation2 + $0x60] sm:$0xff]  ;;  %v340_v63 = vld [vmem:[#allocation2 + $0x38] sm:$0xff]  ;;  %v338_v5 = vld [vmem:[#allocation2 + $0x28] sm:$0xff] }
  0x3b   : > { %792 = vmatpush3.bf16.msra.mxu0 %v878_v19  ;;  %829 = vmatpush3.bf16.msra.mxu1 %v878_v19  ;;  %v348_v0 = vld [vmem:[#allocation2 + $0x78] sm:$0xff]  ;;  %v346_v6 = vld [vmem:[#allocation2 + $0x68] sm:$0xff] }
  0x3c   : > { %793 = vmatprep.subr.bf16.mxu0 %v879_v20  ;;  %822 = vmatprep.subr.bf16.mxu1 %v879_v20 }
  0x3f   : > { %794 = vmatpush3.bf16.msra.mxu0 %v879_v20  ;;  %830 = vmatpush3.bf16.msra.mxu1 %v879_v20 }
  0x40   : > { %795 = vmatprep.subr.bf16.mxu0 %v880_v23  ;;  %823 = vmatprep.subr.bf16.mxu1 %v880_v23 }
  0x43   : > { %796 = vmatpush3.bf16.msra.mxu0 %v880_v23  ;;  %831 = vmatpush3.bf16.msra.mxu1 %v880_v23 }
  0x44   : > { %797 = vmatprep.subr.bf16.mxu0 %v881_v24  ;;  %824 = vmatprep.subr.bf16.mxu1 %v881_v24 }
  0x47   : > { %798 = vmatpush3.bf16.msra.mxu0 %v881_v24  ;;  %832 = vmatpush3.bf16.msra.mxu1 %v881_v24 }
  0x48   : > { %799 = vmatprep.subr.bf16.mxu0 %v882_v25  ;;  %825 = vmatprep.subr.bf16.mxu1 %v882_v25 }
  0x4b   : > { %800 = vmatpush3.bf16.msra.mxu0 %v882_v25  ;;  %833 = vmatpush3.bf16.msra.mxu1 %v882_v25 }
  0x4c   : > { %801 = vmatprep.subr.bf16.mxu0 %v883_v26  ;;  %826 = vmatprep.subr.bf16.mxu1 %v883_v26 }
  0x4f   : > { %802 = vmatpush3.bf16.msra.mxu0 %v883_v26  ;;  %834 = vmatpush3.bf16.msra.mxu1 %v883_v26 }
  0x52   : > { %804 = vmatmul.mubr.bf16.vlgmr.msra.gmra.mrb[0].mxu0 %v886_v27  ;;  %812 = vmatmul.mubr.bf16.vlgmr.msra.gmra.mrb[0].mxu1 %v887_v28 }
  0x53   : > { %807 = vmatprep.mubr.bf16.mxu0 %v888_v29  ;;  %815 = vmatprep.mubr.bf16.mxu1 %v889_v30 }
  0x5a   : > { %808 = vmatmul.mubr.bf16.gmra.mrb[4].mxu0 %v890_v31  ;;  %816 = vmatmul.mubr.bf16.gmra.mrb[4].mxu1 %v891_v32 }
 0x125   : > { %v805_v37 = vpop.f32.mrb[0].mxu0  ;;  %v813_v38 = vpop.f32.mrb[0].mxu1 }
 0x126   : > { %v576_v41 = vadd.f32 %v805_v37, %v335_v33  ;;  %v584_v42 = vadd.f32 %v813_v38, %v343_v34  ;;  %v511_v43 = vpop.f32.mrb[1].mxu0  ;;  %v543_v44 = vpop.f32.mrb[1].mxu1 }
 0x127   : > { %v574_v47 = vadd.f32 %v511_v43, %v333_v35  ;;  %v582_v48 = vadd.f32 %v543_v44, %v341_v36  ;;  %v806_v49 = vpop.f32.mrb[2].mxu0  ;;  %v814_v50 = vpop.f32.mrb[2].mxu1 }
 0x128   : > { %592 = vst [vmem:[#allocation2 + $0x10] sm:$0xff] %v576_v41  ;;  %600 = vst [vmem:[#allocation2 + $0x50] sm:$0xff] %v584_v42  ;;  %v577_v51 = vadd.f32 %v806_v49, %v336_v39  ;;  %v585_v52 = vadd.f32 %v814_v50, %v344_v40  ;;  %v514_v53 = vpop.f32.mrb[3].mxu0  ;;  %v546_v54 = vpop.f32.mrb[3].mxu1 }
 0x129   : > { %590 = vst [vmem:[#allocation2] sm:$0xff] %v574_v47  ;;  %598 = vst [vmem:[#allocation2 + $0x40] sm:$0xff] %v582_v48  ;;  %v575_v55 = vadd.f32 %v514_v53, %v334_v45  ;;  %v583_v56 = vadd.f32 %v546_v54, %v342_v46 }
 0x12a   : > { %593 = vst [vmem:[#allocation2 + $0x18] sm:$0xff] %v577_v51  ;;  %601 = vst [vmem:[#allocation2 + $0x58] sm:$0xff] %v585_v52 }
 0x12b   : > { %591 = vst [vmem:[#allocation2 + $0x8] sm:$0xff] %v575_v55  ;;  %599 = vst [vmem:[#allocation2 + $0x48] sm:$0xff] %v583_v56 }
 0x12d   : > { %v809_v61 = vpop.f32.mrb[4].mxu0  ;;  %v817_v62 = vpop.f32.mrb[4].mxu1  ;;  %609 = sbr.rel (%p766_p11) target bundleno = 317 (0x13d), region = 77 }
 0x12e   : > { %v580_v1 = vadd.f32 %v809_v61, %v339_v57  ;;  %v588_v2 = vadd.f32 %v817_v62, %v347_v58  ;;  %v527_v3 = vpop.f32.mrb[5].mxu0  ;;  %v559_v4 = vpop.f32.mrb[5].mxu1 }
 0x12f   : > { %v578_v7 = vadd.f32 %v527_v3, %v337_v59  ;;  %v586_v8 = vadd.f32 %v559_v4, %v345_v60  ;;  %v810_v9 = vpop.f32.mrb[6].mxu0  ;;  %v818_v10 = vpop.f32.mrb[6].mxu1  ;;  %v612_v19 = vld [vmem:[#allocation2 + $0x10] sm:$0xff] (!%p766_p11) }
 0x130   : > { %596 = vst [vmem:[#allocation2 + $0x30] sm:$0xff] %v580_v1  ;;  %604 = vst [vmem:[#allocation2 + $0x70] sm:$0xff] %v588_v2  ;;  %v581_v11 = vadd.f32 %v810_v9, %v340_v63  ;;  %v589_v12 = vadd.f32 %v818_v10, %v348_v0  ;;  %v530_v13 = vpop.f32.mrb[7].mxu0  ;;  %v562_v14 = vpop.f32.mrb[7].mxu1  ;;  %v610_v17 = vld [vmem:[#allocation2] sm:$0xff] (!%p766_p11)  ;;  %v620_v27 = vld [vmem:[#allocation2 + $0x50] sm:$0xff] (!%p766_p11) }
 0x131   : > { %594 = vst [vmem:[#allocation2 + $0x20] sm:$0xff] %v578_v7  ;;  %602 = vst [vmem:[#allocation2 + $0x60] sm:$0xff] %v586_v8  ;;  %v579_v15 = vadd.f32 %v530_v13, %v338_v5  ;;  %v587_v16 = vadd.f32 %v562_v14, %v346_v6  ;;  %v613_v20 = vld [vmem:[#allocation2 + $0x18] sm:$0xff] (!%p766_p11)  ;;  %v618_v25 = vld [vmem:[#allocation2 + $0x40] sm:$0xff] (!%p766_p11) }
 0x132   : > { %597 = vst [vmem:[#allocation2 + $0x38] sm:$0xff] %v581_v11  ;;  %605 = vst [vmem:[#allocation2 + $0x78] sm:$0xff] %v589_v12  ;;  %v611_v18 = vld [vmem:[#allocation2 + $0x8] sm:$0xff] (!%p766_p11)  ;;  %v621_v28 = vld [vmem:[#allocation2 + $0x58] sm:$0xff] (!%p766_p11) }
 0x133   : > { %595 = vst [vmem:[#allocation2 + $0x28] sm:$0xff] %v579_v15  ;;  %603 = vst [vmem:[#allocation2 + $0x68] sm:$0xff] %v587_v16  ;;  %v619_v26 = vld [vmem:[#allocation2 + $0x48] sm:$0xff] (!%p766_p11) }
 0x134   : > { %626 = vst [vmem:[%s1103_s2] sm:$0xff] %v610_v17  ;;  %627 = vst [vmem:[%s1103_s2 + $0x8] sm:$0xff] %v611_v18 }
 0x135   : > { %628 = vst [vmem:[%s1103_s2 + $0x10] sm:$0xff] %v612_v19  ;;  %629 = vst [vmem:[%s1103_s2 + $0x18] sm:$0xff] %v613_v20 }
 0x136   : > { %634 = vst [vmem:[%s1103_s2 + $0x40] sm:$0xff] %v618_v25  ;;  %635 = vst [vmem:[%s1103_s2 + $0x48] sm:$0xff] %v619_v26 }
 0x137   : > { %v616_v23 = vld [vmem:[#allocation2 + $0x30] sm:$0xff]  ;;  %636 = vst [vmem:[%s1103_s2 + $0x50] sm:$0xff] %v620_v27  ;;  %637 = vst [vmem:[%s1103_s2 + $0x58] sm:$0xff] %v621_v28 }
 0x138   : > { %v614_v21 = vld [vmem:[#allocation2 + $0x20] sm:$0xff]  ;;  %632 = vst [vmem:[%s1103_s2 + $0x30] sm:$0xff] %v616_v23  ;;  %v624_v31 = vld [vmem:[#allocation2 + $0x70] sm:$0xff] }
 0x139   : > { %630 = vst [vmem:[%s1103_s2 + $0x20] sm:$0xff] %v614_v21  ;;  %v617_v24 = vld [vmem:[#allocation2 + $0x38] sm:$0xff]  ;;  %v622_v29 = vld [vmem:[#allocation2 + $0x60] sm:$0xff]  ;;  %640 = vst [vmem:[%s1103_s2 + $0x70] sm:$0xff] %v624_v31 }
 0x13a   : > { %v615_v22 = vld [vmem:[#allocation2 + $0x28] sm:$0xff]  ;;  %633 = vst [vmem:[%s1103_s2 + $0x38] sm:$0xff] %v617_v24  ;;  %638 = vst [vmem:[%s1103_s2 + $0x60] sm:$0xff] %v622_v29  ;;  %v625_v32 = vld [vmem:[#allocation2 + $0x78] sm:$0xff] }
 0x13b   : > { %631 = vst [vmem:[%s1103_s2 + $0x28] sm:$0xff] %v615_v22  ;;  %v623_v30 = vld [vmem:[#allocation2 + $0x68] sm:$0xff]  ;;  %641 = vst [vmem:[%s1103_s2 + $0x78] sm:$0xff] %v625_v32 }
 0x13c   : > { %639 = vst [vmem:[%s1103_s2 + $0x68] sm:$0xff] %v623_v30 }
 0x13d PF: > { %s12_s13 = sadd.s32 1, %s930_s13   ;;  %s1104_s9 = smov %s918_s10 }
 0x13e   : > { %p9_p12 = scmp.ge.s32.totalorder %s12_s13, 11   ;;  %s1105_s10 = smov %s983_s17 }
 0x13f   : > { %s1106_s11 = smov %s926_s12  ;;  %s1107_s12 = smov %s1109_s14 }
 0x140   :  { %11 = sbr.rel (!%p9_p12) target bundleno = 3 (0x3), region = 115 }

// kernel: _encoder_forward.192
= control target key start
LH: loop header
LB: loop body
LE: loop exit
PB: predicated region body
PF: predicated region fallthrough
CT: control target
= control target key end

     0   :  { %s133_s0 = inlined_call_operand.vmem [shape: f32[4,32,128], index: 0, kind: input, shape index: {}]   ;;  %s134_s1 = inlined_call_operand.vmem [shape: f32[32,128], index: 1, kind: output, shape index: {}]  }
   0x1   :  { %v8_v0 = vld [vmem:[%s133_s0] sm:$0xff]  ;;  %v9_v4 = vld [vmem:[%s133_s0 + $0x8] sm:$0xff]  ;;  %v10_v9 = vld [vmem:[%s133_s0 + $0x10] sm:$0xff] }
   0x2   :  { %v51_v1 = vld [vmem:[%s133_s0 + $0x20] sm:$0xff]  ;;  %v52_v5 = vld [vmem:[%s133_s0 + $0x28] sm:$0xff]  ;;  %v53_v12 = vld [vmem:[%s133_s0 + $0x30] sm:$0xff] }
   0x3   :  { %v55_v2 = vld [vmem:[%s133_s0 + $0x40] sm:$0xff]  ;;  %v17_v3 = vadd.f32 %v51_v1, %v8_v0  ;;  %v18_v7 = vadd.f32 %v52_v5, %v9_v4  ;;  %v56_v8 = vld [vmem:[%s133_s0 + $0x48] sm:$0xff]  ;;  %v57_v13 = vld [vmem:[%s133_s0 + $0x50] sm:$0xff]  ;;  %v19_v15 = vadd.f32 %v53_v12, %v10_v9 }
   0x4   :  { %v59_v6 = vld [vmem:[%s133_s0 + $0x60] sm:$0xff]  ;;  %v60_v11 = vld [vmem:[%s133_s0 + $0x68] sm:$0xff]  ;;  %v11_v16 = vld [vmem:[%s133_s0 + $0x18] sm:$0xff] }
   0x5   :  { %v26_v10 = vadd.f32 %v55_v2, %v17_v3  ;;  %v27_v14 = vadd.f32 %v56_v8, %v18_v7  ;;  %v54_v17 = vld [vmem:[%s133_s0 + $0x38] sm:$0xff]  ;;  %v61_v20 = vld [vmem:[%s133_s0 + $0x70] sm:$0xff]  ;;  %v28_v23 = vadd.f32 %v57_v13, %v19_v15 }
   0x6   :  { %v58_v18 = vld [vmem:[%s133_s0 + $0x58] sm:$0xff]  ;;  %v20_v21 = vadd.f32 %v54_v17, %v11_v16 }
   0x7   :  { %v35_v19 = vadd.f32 %v59_v6, %v26_v10  ;;  %v36_v22 = vadd.f32 %v60_v11, %v27_v14  ;;  %v62_v24 = vld [vmem:[%s133_s0 + $0x78] sm:$0xff]  ;;  %v37_v28 = vadd.f32 %v61_v20, %v28_v23 }
   0x8   :  { %v29_v26 = vadd.f32 %v58_v18, %v20_v21 }
   0x9   :  { %v39_v25 = vmul.f32 0.25, %v35_v19  ;;  %v40_v27 = vmul.f32 0.25, %v36_v22  ;;  %v41_v30 = vmul.f32 0.25, %v37_v28 }
   0xa   :  { %v38_v29 = vadd.f32 %v62_v24, %v29_v26 }
   0xb   :  { %43 = vst [vmem:[%s134_s1] sm:$0xff] %v39_v25  ;;  %44 = vst [vmem:[%s134_s1 + $0x8] sm:$0xff] %v40_v27 }
   0xc   :  { %v42_v31 = vmul.f32 0.25, %v38_v29  ;;  %45 = vst [vmem:[%s134_s1 + $0x10] sm:$0xff] %v41_v30 }
   0xe   :  { %46 = vst [vmem:[%s134_s1 + $0x18] sm:$0xff] %v42_v31 }

// kernel: _encoder_forward.191
= control target key start
LH: loop header
LB: loop body
LE: loop exit
PB: predicated region body
PF: predicated region fallthrough
CT: control target
= control target key end

     0   :  { %v72_v5 = vlaneseq  ;;  %s925_s3 = inlined_call_operand.vmem [shape: bf16[256,128], index: 3, kind: input, shape index: {}]   ;;  %s926_s0 = inlined_call_operand.vmem [shape: f32[128,256], index: 0, kind: input, shape index: {}]   ;;  %s927_s1 = inlined_call_operand.vmem [shape: f32[1,256], index: 1, kind: input, shape index: {}]   ;;  %s928_s2 = inlined_call_operand.vmem [shape: f32[1,256], index: 2, kind: input, shape index: {}]   ;;  %s929_s4 = inlined_call_operand.vmem [shape: f32[128,128], index: 4, kind: output, shape index: {}]  }
   0x1   :  { %v614_v0 = vld [vmem:[%s925_s3 + $0x40] sm:$0xff]   ;;  %v616_v2 = vld [vmem:[%s925_s3 + $0x48] sm:$0xff]   ;;  %v618_v4 = vld [vmem:[%s925_s3 + $0x50] sm:$0xff]  }
   0x2   :  { %v615_v1 = vld [vmem:[%s925_s3] sm:$0xff]   ;;  %534 = vmatprep.subr.bf16.mxu0 %v614_v0  ;;  %598 = vmatprep.subr.bf16.mxu1 %v614_v0  ;;  %v617_v3 = vld [vmem:[%s925_s3 + $0x8] sm:$0xff]   ;;  %v619_v6 = vld [vmem:[%s925_s3 + $0x10] sm:$0xff]   ;;  %v73_v8 = vshrl.u32 %v72_v5, 7 }
   0x3   :  { %535 = vmatpush3.bf16.msra.mxu0 %v615_v1  ;;  %606 = vmatpush3.bf16.msra.mxu1 %v615_v1  ;;  %v620_v7 = vld [vmem:[%s925_s3 + $0x58] sm:$0xff]   ;;  %v622_v10 = vld [vmem:[%s925_s3 + $0x60] sm:$0xff]   ;;  %v624_v14 = vld [vmem:[%s925_s3 + $0x68] sm:$0xff]  }
   0x4   :  { %536 = vmatprep.subr.bf16.mxu0 %v616_v2  ;;  %599 = vmatprep.subr.bf16.mxu1 %v616_v2  ;;  %v621_v9 = vld [vmem:[%s925_s3 + $0x18] sm:$0xff]   ;;  %v74_v11 = vsub.s32 0, %v73_v8  ;;  %v78_v12 = vsub.s32 1, %v73_v8  ;;  %v623_v13 = vld [vmem:[%s925_s3 + $0x20] sm:$0xff]   ;;  %v39_v15 = vld [vmem:[%s926_s0 + $0x8] sm:$0xff] }
   0x5   :  { %v41_v16 = vld [vmem:[%s926_s0 + $0x18] sm:$0xff]  ;;  %v70_v17 = vld [vmem:[%s927_s1] sm:$0x3]  ;;  %v55_v21 = vld [vmem:[%s926_s0 + $0x88] sm:$0xff] }
   0x6   :  { %v697_v18 = vrot.slane %v70_v17, %v74_v11  ;;  %v699_v19 = vrot.slane %v70_v17, %v78_v12  ;;  %v114_v20 = vld [vmem:[%s928_s2] sm:$0x3]  ;;  %v57_v22 = vld [vmem:[%s926_s0 + $0x98] sm:$0xff]  ;;  %v40_v26 = vld [vmem:[%s926_s0 + $0x10] sm:$0xff] }
   0x7   :  { %537 = vmatpush3.bf16.msra.mxu0 %v617_v3  ;;  %607 = vmatpush3.bf16.msra.mxu1 %v617_v3  ;;  %v710_v23 = vrot.slane %v114_v20, %v74_v11  ;;  %v712_v24 = vrot.slane %v114_v20, %v78_v12  ;;  %v38_v25 = vld [vmem:[%s926_s0] sm:$0xff]  ;;  %v625_v28 = vld [vmem:[%s925_s3 + $0x28] sm:$0xff]   ;;  %v56_v32 = vld [vmem:[%s926_s0 + $0x90] sm:$0xff] }
   0x8   :  { %538 = vmatprep.subr.bf16.mxu0 %v618_v4  ;;  %600 = vmatprep.subr.bf16.mxu1 %v618_v4  ;;  %v54_v27 = vld [vmem:[%s926_s0 + $0x80] sm:$0xff]  ;;  %v83_v29 = vmul.f32 %v699_v19, %v39_v15  ;;  %v85_v30 = vmul.f32 %v699_v19, %v41_v16  ;;  %v99_v31 = vmul.f32 %v699_v19, %v55_v21  ;;  %v626_v33 = vld [vmem:[%s925_s3 + $0x70] sm:$0xff]   ;;  %v43_v45 = vld [vmem:[%s926_s0 + $0x28] sm:$0xff] }
   0x9   :  { %v101_v34 = vmul.f32 %v699_v19, %v57_v22  ;;  %v82_v35 = vmul.f32 %v697_v18, %v38_v25  ;;  %v84_v36 = vmul.f32 %v697_v18, %v40_v26  ;;  %v98_v40 = vmul.f32 %v697_v18, %v54_v27  ;;  %v45_v46 = vld [vmem:[%s926_s0 + $0x38] sm:$0xff]  ;;  %v627_v47 = vld [vmem:[%s925_s3 + $0x30] sm:$0xff]   ;;  %v59_v52 = vld [vmem:[%s926_s0 + $0xa8] sm:$0xff] }
   0xa   :  { %v127_v37 = vadd.f32 %v712_v24, %v83_v29  ;;  %v129_v38 = vadd.f32 %v712_v24, %v85_v30  ;;  %v143_v39 = vadd.f32 %v712_v24, %v99_v31  ;;  %v100_v44 = vmul.f32 %v697_v18, %v56_v32  ;;  %v628_v53 = vld [vmem:[%s925_s3 + $0x78] sm:$0xff]   ;;  %v42_v63 = vld [vmem:[%s926_s0 + $0x20] sm:$0xff]  ;;  %v44_v4 = vld [vmem:[%s926_s0 + $0x30] sm:$0xff] }
   0xb   :  { %539 = vmatpush3.bf16.msra.mxu0 %v619_v6  ;;  %608 = vmatpush3.bf16.msra.mxu1 %v619_v6  ;;  %v145_v41 = vadd.f32 %v712_v24, %v101_v34  ;;  %v126_v42 = vadd.f32 %v710_v23, %v82_v35  ;;  %v128_v43 = vadd.f32 %v710_v23, %v84_v36  ;;  %v61_v58 = vld [vmem:[%s926_s0 + $0xb8] sm:$0xff] }
   0xc   :  { %540 = vmatprep.subr.bf16.mxu0 %v620_v7  ;;  %601 = vmatprep.subr.bf16.mxu1 %v620_v7  ;;  %v159_v48 = vmax.f32 %v127_v37, 0.0  ;;  %v161_v49 = vmax.f32 %v129_v38, 0.0  ;;  %v175_v50 = vmax.f32 %v143_v39, 0.0  ;;  %v142_v51 = vadd.f32 %v710_v23, %v98_v40  ;;  %v629_v5 = vld [vmem:[%s925_s3 + $0x38] sm:$0xff]   ;;  %v46_v38 = vld [vmem:[%s926_s0 + $0x40] sm:$0xff] }
   0xd   :  { %v177_v54 = vmax.f32 %v145_v41, 0.0  ;;  %v158_v55 = vmax.f32 %v126_v42, 0.0  ;;  %v160_v56 = vmax.f32 %v128_v43, 0.0  ;;  %v144_v57 = vadd.f32 %v710_v23, %v100_v44  ;;  %v49_v21 = vld [vmem:[%s926_s0 + $0x58] sm:$0xff]  ;;  %v48_v43 = vld [vmem:[%s926_s0 + $0x50] sm:$0xff] }
   0xe   :  { %v207_v59 = vpack.c.bf16 %v161_v49, %v159_v48  ;;  %v174_v60 = vmax.f32 %v142_v51, 0.0  ;;  %v87_v61 = vmul.f32 %v699_v19, %v43_v45  ;;  %v89_v62 = vmul.f32 %v699_v19, %v45_v46  ;;  %v62_v48 = vld [vmem:[%s926_s0 + $0xc0] sm:$0xff]  ;;  %v64_v49 = vld [vmem:[%s926_s0 + $0xd0] sm:$0xff] }
   0xf   :  { %541 = vmatpush3.bf16.msra.mxu0 %v621_v9  ;;  %609 = vmatpush3.bf16.msra.mxu1 %v621_v9  ;;  %v215_v0 = vpack.c.bf16 %v177_v54, %v175_v50  ;;  %v206_v1 = vpack.c.bf16 %v160_v56, %v158_v55  ;;  %v176_v2 = vmax.f32 %v144_v57, 0.0  ;;  %v103_v3 = vmul.f32 %v699_v19, %v59_v52  ;;  %v58_v9 = vld [vmem:[%s926_s0 + $0xa0] sm:$0xff]  ;;  %v51_v54 = vld [vmem:[%s926_s0 + $0x68] sm:$0xff] }
  0x10   :  { %542 = vmatprep.subr.bf16.mxu0 %v622_v10  ;;  %602 = vmatprep.subr.bf16.mxu1 %v622_v10  ;;  %v131_v6 = vadd.f32 %v712_v24, %v87_v61  ;;  %v133_v7 = vadd.f32 %v712_v24, %v89_v62  ;;  %v105_v8 = vmul.f32 %v699_v19, %v61_v58  ;;  %v60_v10 = vld [vmem:[%s926_s0 + $0xb0] sm:$0xff] }
  0x11   :  { %v214_v11 = vpack.c.bf16 %v176_v2, %v174_v60  ;;  %v147_v12 = vadd.f32 %v712_v24, %v103_v3  ;;  %382 = vmatprep.mubr.bf16.mxu0 %v207_v59  ;;  %414 = vmatprep.mubr.bf16.mxu1 %v215_v0  ;;  %v88_v20 = vmul.f32 %v697_v18, %v44_v4  ;;  %v53_v59 = vld [vmem:[%s926_s0 + $0x78] sm:$0xff]  ;;  %v67_v0 = vld [vmem:[%s926_s0 + $0xe8] sm:$0xff] }
  0x12   :  { %v163_v15 = vmax.f32 %v131_v6, 0.0  ;;  %v165_v16 = vmax.f32 %v133_v7, 0.0  ;;  %v149_v17 = vadd.f32 %v712_v24, %v105_v8  ;;  %v102_v26 = vmul.f32 %v697_v18, %v58_v9 }
  0x13   :  { %543 = vmatpush3.bf16.msra.mxu0 %v623_v13  ;;  %610 = vmatpush3.bf16.msra.mxu1 %v623_v13  ;;  %v86_v13 = vmul.f32 %v697_v18, %v42_v63  ;;  %v179_v22 = vmax.f32 %v147_v12, 0.0  ;;  %v104_v27 = vmul.f32 %v697_v18, %v60_v10  ;;  %v132_v31 = vadd.f32 %v710_v23, %v88_v20  ;;  %v50_v10 = vld [vmem:[%s926_s0 + $0x60] sm:$0xff] }
  0x14   :  { %544 = vmatprep.subr.bf16.mxu0 %v624_v14  ;;  %603 = vmatprep.subr.bf16.mxu1 %v624_v14  ;;  %v47_v14 = vld [vmem:[%s926_s0 + $0x48] sm:$0xff]  ;;  %v209_v29 = vpack.c.bf16 %v165_v16, %v163_v15  ;;  %v181_v30 = vmax.f32 %v149_v17, 0.0  ;;  %v146_v35 = vadd.f32 %v710_v23, %v102_v26  ;;  %v93_v37 = vmul.f32 %v699_v19, %v49_v21  ;;  %v52_v15 = vld [vmem:[%s926_s0 + $0x70] sm:$0xff] }
  0x15   :  { %v130_v25 = vadd.f32 %v710_v23, %v86_v13  ;;  %v91_v32 = vmul.f32 %v699_v19, %v47_v14  ;;  %v148_v36 = vadd.f32 %v710_v23, %v104_v27  ;;  %v164_v40 = vmax.f32 %v132_v31, 0.0 }
  0x16   :  { %v217_v39 = vpack.c.bf16 %v181_v30, %v179_v22  ;;  %v178_v44 = vmax.f32 %v146_v35, 0.0  ;;  %v137_v46 = vadd.f32 %v712_v24, %v93_v37  ;;  %v92_v58 = vmul.f32 %v697_v18, %v48_v43  ;;  %v66_v22 = vld [vmem:[%s926_s0 + $0xe0] sm:$0xff] }
  0x17   :  { %545 = vmatpush3.bf16.msra.mxu0 %v625_v28  ;;  %611 = vmatpush3.bf16.msra.mxu1 %v625_v28  ;;  %v63_v28 = vld [vmem:[%s926_s0 + $0xc8] sm:$0xff]  ;;  %v162_v34 = vmax.f32 %v130_v25, 0.0  ;;  %v135_v41 = vadd.f32 %v712_v24, %v91_v32  ;;  %v180_v45 = vmax.f32 %v148_v36, 0.0  ;;  %v106_v62 = vmul.f32 %v697_v18, %v62_v48  ;;  %v68_v25 = vld [vmem:[%s926_s0 + $0xf0] sm:$0xff] }
  0x18   :  { %546 = vmatprep.subr.bf16.mxu0 %v626_v33  ;;  %604 = vmatprep.subr.bf16.mxu1 %v626_v33  ;;  %v65_v33 = vld [vmem:[%s926_s0 + $0xd8] sm:$0xff]  ;;  %v107_v42 = vmul.f32 %v699_v19, %v63_v28  ;;  %v169_v56 = vmax.f32 %v137_v46, 0.0  ;;  %v108_v63 = vmul.f32 %v697_v18, %v64_v49  ;;  %v136_v3 = vadd.f32 %v710_v23, %v92_v58 }
  0x19   :  { %v208_v50 = vpack.c.bf16 %v164_v40, %v162_v34  ;;  %v167_v51 = vmax.f32 %v135_v41, 0.0  ;;  %v216_v55 = vpack.c.bf16 %v180_v45, %v178_v44  ;;  %v95_v4 = vmul.f32 %v699_v19, %v51_v54 }
  0x1a   :  { %v151_v52 = vadd.f32 %v712_v24, %v107_v42  ;;  %v150_v7 = vadd.f32 %v710_v23, %v106_v62  ;;  %v152_v8 = vadd.f32 %v710_v23, %v108_v63  ;;  %v97_v9 = vmul.f32 %v699_v19, %v53_v59 }
  0x1b   :  { %547 = vmatpush3.bf16.msra.mxu0 %v627_v47  ;;  %612 = vmatpush3.bf16.msra.mxu1 %v627_v47  ;;  %v109_v47 = vmul.f32 %v699_v19, %v65_v33  ;;  %v168_v12 = vmax.f32 %v136_v3, 0.0  ;;  %v139_v13 = vadd.f32 %v712_v24, %v95_v4  ;;  %v111_v14 = vmul.f32 %v699_v19, %v67_v0 }
  0x1c   :  { %548 = vmatprep.subr.bf16.mxu0 %v628_v53  ;;  %605 = vmatprep.subr.bf16.mxu1 %v628_v53  ;;  %v90_v53 = vmul.f32 %v697_v18, %v46_v38  ;;  %v183_v60 = vmax.f32 %v151_v52, 0.0  ;;  %v182_v16 = vmax.f32 %v150_v7, 0.0  ;;  %v184_v17 = vmax.f32 %v152_v8, 0.0 }
  0x1d   :  { %v153_v57 = vadd.f32 %v712_v24, %v109_v47  ;;  %v141_v20 = vadd.f32 %v712_v24, %v97_v9  ;;  %v155_v26 = vadd.f32 %v712_v24, %v111_v14  ;;  %v94_v27 = vmul.f32 %v697_v18, %v50_v10 }
  0x1e   :  { %v134_v61 = vadd.f32 %v710_v23, %v90_v53  ;;  %v171_v28 = vmax.f32 %v139_v13, 0.0  ;;  %v96_v30 = vmul.f32 %v697_v18, %v52_v15  ;;  %v110_v32 = vmul.f32 %v697_v18, %v66_v22 }
  0x1f   :  { %549 = vmatpush3.bf16.msra.mxu0 %v629_v5  ;;  %613 = vmatpush3.bf16.msra.mxu1 %v629_v5  ;;  %v185_v2 = vmax.f32 %v153_v57, 0.0  ;;  %v69_v5 = vld [vmem:[%s926_s0 + $0xf8] sm:$0xff]  ;;  %v187_v31 = vmax.f32 %v155_v26, 0.0  ;;  %v112_v33 = vmul.f32 %v697_v18, %v68_v25  ;;  %v218_v35 = vpack.c.bf16 %v184_v17, %v182_v16 }
  0x20   :  { %v166_v6 = vmax.f32 %v134_v61, 0.0  ;;  %v113_v21 = vmul.f32 %v699_v19, %v69_v5  ;;  %v138_v37 = vadd.f32 %v710_v23, %v94_v27  ;;  %v140_v38 = vadd.f32 %v710_v23, %v96_v30 }
  0x21   :  { %v156_v40 = vadd.f32 %v710_v23, %v112_v33 }
  0x22   :  { %383 = vmatmul.mubr.bf16.vlgmr.msra.gmra.mrb[0].mxu0 %v206_v1  ;;  %415 = vmatmul.mubr.bf16.vlgmr.msra.gmra.mrb[0].mxu1 %v214_v11  ;;  %v211_v1 = vpack.c.bf16 %v169_v56, %v167_v51  ;;  %v219_v11 = vpack.c.bf16 %v185_v2, %v183_v60  ;;  %v157_v19 = vadd.f32 %v712_v24, %v113_v21  ;;  %v170_v42 = vmax.f32 %v138_v37, 0.0 }
  0x23   :  { %390 = vmatprep.mubr.bf16.mxu0 %v209_v29  ;;  %422 = vmatprep.mubr.bf16.mxu1 %v217_v39  ;;  %v173_v29 = vmax.f32 %v141_v20, 0.0  ;;  %v210_v34 = vpack.c.bf16 %v168_v12, %v166_v6  ;;  %v154_v39 = vadd.f32 %v710_v23, %v110_v32  ;;  %v172_v43 = vmax.f32 %v140_v38, 0.0 }
  0x24   :  { %v189_v36 = vmax.f32 %v157_v19, 0.0  ;;  %v188_v45 = vmax.f32 %v156_v40, 0.0 }
  0x25   :  { %v213_v41 = vpack.c.bf16 %v173_v29, %v171_v28  ;;  %v186_v44 = vmax.f32 %v154_v39, 0.0  ;;  %v212_v18 = vpack.c.bf16 %v172_v43, %v170_v42 }
  0x26   :  { %v221_v24 = vpack.c.bf16 %v189_v36, %v187_v31 }
  0x27   :  { %v220_v46 = vpack.c.bf16 %v188_v45, %v186_v44 }
  0x2a   :  { %391 = vmatmul.mubr.bf16.gmra.mrb[4].mxu0 %v208_v50  ;;  %423 = vmatmul.mubr.bf16.gmra.mrb[4].mxu1 %v216_v55 }
  0x2b   :  { %398 = vmatprep.mubr.bf16.mxu0 %v211_v1  ;;  %430 = vmatprep.mubr.bf16.mxu1 %v219_v11 }
  0x32   :  { %399 = vmatmul.mubr.bf16.gmra.mrb[8].mxu0 %v210_v34  ;;  %431 = vmatmul.mubr.bf16.gmra.mrb[8].mxu1 %v218_v35 }
  0x33   :  { %406 = vmatprep.mubr.bf16.mxu0 %v213_v41  ;;  %438 = vmatprep.mubr.bf16.mxu1 %v221_v24 }
  0x3a   :  { %407 = vmatmul.mubr.bf16.gmra.mrb[12].mxu0 %v212_v18  ;;  %439 = vmatmul.mubr.bf16.gmra.mrb[12].mxu1 %v220_v46 }
  0xf5   :  { %v550_v47 = vpop.f32.mrb[0].mxu0  ;;  %v574_v48 = vpop.f32.mrb[0].mxu1 }
  0xf6   :  { %v551_v49 = vpop.f32.mrb[1].mxu0  ;;  %v575_v50 = vpop.f32.mrb[1].mxu1 }
  0xf7   :  { %v552_v51 = vadd.f32 %v551_v49, %v550_v47  ;;  %v576_v23 = vadd.f32 %v575_v50, %v574_v48  ;;  %v553_v52 = vpop.f32.mrb[2].mxu0  ;;  %v577_v53 = vpop.f32.mrb[2].mxu1 }
  0xf8   :  { %v554_v54 = vpop.f32.mrb[3].mxu0  ;;  %v578_v55 = vpop.f32.mrb[3].mxu1 }
  0xf9   :  { %498 = vst [vmem:[%s929_s4] sm:$0xff] %v552_v51  ;;  %506 = vst [vmem:[%s929_s4 + $0x40] sm:$0xff] %v576_v23  ;;  %v555_v56 = vadd.f32 %v554_v54, %v553_v52  ;;  %v579_v57 = vadd.f32 %v578_v55, %v577_v53 }
  0xfb   :  { %499 = vst [vmem:[%s929_s4 + $0x8] sm:$0xff] %v555_v56  ;;  %507 = vst [vmem:[%s929_s4 + $0x48] sm:$0xff] %v579_v57 }
  0xfd   :  { %v556_v58 = vpop.f32.mrb[4].mxu0  ;;  %v580_v59 = vpop.f32.mrb[4].mxu1 }
  0xfe   :  { %v557_v60 = vpop.f32.mrb[5].mxu0  ;;  %v581_v61 = vpop.f32.mrb[5].mxu1 }
  0xff   :  { %v558_v62 = vadd.f32 %v557_v60, %v556_v58  ;;  %v582_v63 = vadd.f32 %v581_v61, %v580_v59  ;;  %v559_v0 = vpop.f32.mrb[6].mxu0  ;;  %v583_v1 = vpop.f32.mrb[6].mxu1 }
 0x100   :  { %v560_v2 = vpop.f32.mrb[7].mxu0  ;;  %v584_v3 = vpop.f32.mrb[7].mxu1 }
 0x101   :  { %500 = vst [vmem:[%s929_s4 + $0x10] sm:$0xff] %v558_v62  ;;  %508 = vst [vmem:[%s929_s4 + $0x50] sm:$0xff] %v582_v63  ;;  %v561_v4 = vadd.f32 %v560_v2, %v559_v0  ;;  %v585_v5 = vadd.f32 %v584_v3, %v583_v1 }
 0x103   :  { %501 = vst [vmem:[%s929_s4 + $0x18] sm:$0xff] %v561_v4  ;;  %509 = vst [vmem:[%s929_s4 + $0x58] sm:$0xff] %v585_v5 }
 0x105   :  { %v562_v6 = vpop.f32.mrb[8].mxu0  ;;  %v586_v7 = vpop.f32.mrb[8].mxu1 }
 0x106   :  { %v563_v8 = vpop.f32.mrb[9].mxu0  ;;  %v587_v9 = vpop.f32.mrb[9].mxu1 }
 0x107   :  { %v564_v10 = vadd.f32 %v563_v8, %v562_v6  ;;  %v588_v11 = vadd.f32 %v587_v9, %v586_v7  ;;  %v565_v12 = vpop.f32.mrb[10].mxu0  ;;  %v589_v13 = vpop.f32.mrb[10].mxu1 }
 0x108   :  { %v566_v14 = vpop.f32.mrb[11].mxu0  ;;  %v590_v15 = vpop.f32.mrb[11].mxu1 }
 0x109   :  { %502 = vst [vmem:[%s929_s4 + $0x20] sm:$0xff] %v564_v10  ;;  %510 = vst [vmem:[%s929_s4 + $0x60] sm:$0xff] %v588_v11  ;;  %v567_v16 = vadd.f32 %v566_v14, %v565_v12  ;;  %v591_v17 = vadd.f32 %v590_v15, %v589_v13 }
 0x10b   :  { %503 = vst [vmem:[%s929_s4 + $0x28] sm:$0xff] %v567_v16  ;;  %511 = vst [vmem:[%s929_s4 + $0x68] sm:$0xff] %v591_v17 }
 0x10d   :  { %v568_v20 = vpop.f32.mrb[12].mxu0  ;;  %v592_v21 = vpop.f32.mrb[12].mxu1 }
 0x10e   :  { %v569_v22 = vpop.f32.mrb[13].mxu0  ;;  %v593_v25 = vpop.f32.mrb[13].mxu1 }
 0x10f   :  { %v570_v26 = vadd.f32 %v569_v22, %v568_v20  ;;  %v594_v27 = vadd.f32 %v593_v25, %v592_v21  ;;  %v571_v28 = vpop.f32.mrb[14].mxu0  ;;  %v595_v29 = vpop.f32.mrb[14].mxu1 }
 0x110   :  { %v572_v19 = vpop.f32.mrb[15].mxu0  ;;  %v596_v30 = vpop.f32.mrb[15].mxu1 }
 0x111   :  { %504 = vst [vmem:[%s929_s4 + $0x30] sm:$0xff] %v570_v26  ;;  %512 = vst [vmem:[%s929_s4 + $0x70] sm:$0xff] %v594_v27  ;;  %v573_v31 = vadd.f32 %v572_v19, %v571_v28  ;;  %v597_v32 = vadd.f32 %v596_v30, %v595_v29 }
 0x113   :  { %505 = vst [vmem:[%s929_s4 + $0x38] sm:$0xff] %v573_v31  ;;  %513 = vst [vmem:[%s929_s4 + $0x78] sm:$0xff] %v597_v32 }

// kernel: _encoder_forward.193
= control target key start
LH: loop header
LB: loop body
LE: loop exit
PB: predicated region body
PF: predicated region fallthrough
CT: control target
= control target key end

     0   :  { %s1073_s21 = smov 0   ;;  %s1075_s22 = smov 0   ;;  %s1207_s0 = inlined_call_operand.vmem [shape: f32[32,512], index: 0, kind: input, shape index: {}]   ;;  %s1208_s1 = inlined_call_operand.vmem [shape: f32[1,512], index: 1, kind: input, shape index: {}]   ;;  %s1209_s2 = inlined_call_operand.vmem [shape: f32[1,512], index: 2, kind: input, shape index: {}]   ;;  %s1210_s3 = inlined_call_operand.vmem [shape: bf16[512,128], index: 3, kind: input, shape index: {}]   ;;  %s1211_s4 = inlined_call_operand.vmem [shape: f32[1,128], index: 4, kind: input, shape index: {}]   ;;  %s1212_s5 = inlined_call_operand.vmem [shape: f32[1,128], index: 5, kind: input, shape index: {}]   ;;  %s1213_s6 = inlined_call_operand.vmem [shape: f32[32,128], index: 6, kind: output, shape index: {}]  }
   0x1   :  { %s1077_s23 = smov 0   ;;  %s1079_s24 = smov 0  }
   0x2   :  { %s1081_s25 = smov 0  }
   0x3 LB: > { %s28_s26 = sadd.s32 1, %s1031_s24  ;;  %p51_p1 = scmp.ne.s32.totalorder %s1023_s22, %s1019_s21  ;;  %s1035_s25 = sphi %s1081_s25, %s16_s25   ;;  %s1031_s24 = sphi %s1079_s24, %s1217_s24   ;;  %s1027_s23 = sphi %s1077_s23, %s1216_s23   ;;  %s1023_s22 = sphi %s1075_s22, %s1215_s22   ;;  %s1019_s21 = sphi %s1073_s21, %s1214_s21  }
   0x4   : > { %p29_p0 = scmp.ge.s32.totalorder %s28_s26, 2  ;;  %p52_p2 = scmp.eq.s32.totalorder %s1035_s25, 0 }
   0x5   : > { %s44_s28 = sadd.s32 1, %s1023_s22  ;;  %p861_p5 = scmp.ge.s32.totalorder %s1035_s25, 2 }
   0x6   : > { %s1219_s26 = smov (%p29_p0, %s28_s26), 0  ;;  %p53_p3 = por %p52_p2, %p51_p1 }
   0x7   : > { %s40_s27 = ssub.s32 %s1031_s24, %s1219_s26  ;;  %249 = sbr.rel (%p861_p5) target bundleno = 22 (0x16), region = 24 }
   0x8   : > { %p42_p4 = scmp.eq.s32.totalorder %s40_s27, 0 }
   0xa   : > { %s1108_s29 = scalar_select %p42_p4, %s1023_s22, %s44_s28  }
   0xe   : > { %252 = sbr.rel (!%p53_p3) target bundleno = 22 (0x16), region = 28  ;;  %s254_s30 = sand.u32 (%p53_p3), 1, %s1023_s22  }
   0xf   : > { %s895_s7 = sshll.u32 (%p53_p3), %s1031_s24, 4  ;;  %s862_s8 = sshll.u32 (%p53_p3), %s254_s30, 6 }
  0x10   : > { %s262_s11 = scalar_lea.vmem (%p53_p3), %s1207_s0, %s895_s7  ;;  %s256_s12 = scalar_lea.vmem (%p53_p3), [#allocation3], %s862_s8 }
  0x11   : > { %v275_v0 = vld [vmem:[%s262_s11] sm:$0xff] (%p53_p3)  ;;  %v277_v1 = vld [vmem:[%s262_s11 + $0x8] sm:$0xff] (%p53_p3) }
  0x12   : > { %v279_v2 = vld [vmem:[%s262_s11 + $0x20] sm:$0xff] (%p53_p3)  ;;  %276 = vst [vmem:[%s256_s12] sm:$0xff] (%p53_p3), %v275_v0  ;;  %278 = vst [vmem:[%s256_s12 + $0x8] sm:$0xff] (%p53_p3), %v277_v1  ;;  %v281_v3 = vld [vmem:[%s262_s11 + $0x28] sm:$0xff] (%p53_p3) }
  0x13   : > { %280 = vst [vmem:[%s256_s12 + $0x10] sm:$0xff] (%p53_p3), %v279_v2  ;;  %v283_v4 = vld [vmem:[%s262_s11 + $0x40] sm:$0xff] (%p53_p3)  ;;  %v285_v5 = vld [vmem:[%s262_s11 + $0x48] sm:$0xff] (%p53_p3)  ;;  %282 = vst [vmem:[%s256_s12 + $0x18] sm:$0xff] (%p53_p3), %v281_v3 }
  0x14   : > { %284 = vst [vmem:[%s256_s12 + $0x20] sm:$0xff] (%p53_p3), %v283_v4  ;;  %286 = vst [vmem:[%s256_s12 + $0x28] sm:$0xff] (%p53_p3), %v285_v5  ;;  %v287_v6 = vld [vmem:[%s262_s11 + $0x60] sm:$0xff] (%p53_p3)  ;;  %v289_v7 = vld [vmem:[%s262_s11 + $0x68] sm:$0xff] (%p53_p3) }
  0x15   : > { %288 = vst [vmem:[%s256_s12 + $0x30] sm:$0xff] %v287_v6  ;;  %290 = vst [vmem:[%s256_s12 + $0x38] sm:$0xff] %v289_v7 }
  0x16 PF: > { %p865_p6 = scmp.ge.s32.totalorder %s1035_s25, 1  ;;  %p323_p7 = scmp.lt.s32.totalorder %s1035_s25, 3 }
  0x18   : > { %p324_p8 = pnand %p865_p6, %p323_p7 }
  0x19   : > { %s330_s13 = sand.u32 (!%p324_p8), 1, %s1019_s21   ;;  %s867_s14 = sshll.u32 (!%p324_p8), %s1027_s23, 1 }
  0x1a   : > { %327 = sbr.rel (%p324_p8) target bundleno = 309 (0x135), region = 63  ;;  %s866_s15 = sshll.u32 (!%p324_p8), %s330_s13, 6 }
  0x1b   : > { %p387_p9 = scmp.lt.s32.totalorder (!%p324_p8), %s867_s14, 3  ;;  %s869_s16 = sshll.u32 (!%p324_p8), %s1027_s23, 5 }
  0x1c   : > { %p397_p10 = scmp.lt.s32.totalorder (!%p324_p8), %s869_s16, 63  ;;  %s1136_s9 = scalar_lea.vmem (!%p324_p8), [#allocation3], %s866_s15 }
  0x1d   : > { %p871_p11 = scmp.ne.s32.totalorder (!%p324_p8), %s1027_s23, 0 }
  0x21   : > { %s1221_s14 = smov (!%p387_p9, %s867_s14), 3  ;;  %s1223_s16 = smov (!%p397_p10, %s869_s16), 63 }
  0x22   : > { %s389_s19 = scalar_lea.vmem %s1208_s1, %s1221_s14  ;;  %s394_s28 = scalar_lea.vmem %s1209_s2, %s1221_s14  ;;  %v1037_v8 = vmov (!%p871_p11), 0.0  }
  0x23   : > { %s870_s30 = sshll.u32 %s1223_s16, 2  ;;  %424 = sbr.rel (%p871_p11) target bundleno = 42 (0x2a), region = 71  ;;  %425 = vst [vmem:[#allocation2] sm:$0xff] (!%p871_p11), %v1037_v8  ;;  %426 = vst [vmem:[#allocation2 + $0x8] sm:$0xff] (!%p871_p11), %v1037_v8 }
  0x24   : > { %s1134_s8 = scalar_lea.vmem %s1210_s3, %s870_s30  ;;  %427 = vst [vmem:[#allocation2 + $0x10] sm:$0xff] (!%p871_p11), %v1037_v8  ;;  %428 = vst [vmem:[#allocation2 + $0x18] sm:$0xff] (!%p871_p11), %v1037_v8 }
  0x2a PF: > { %v981_v9 = vld [vmem:[%s1134_s8 + $0x40] sm:$0xff]   ;;  %v983_v11 = vld [vmem:[%s1134_s8 + $0x48] sm:$0xff]   ;;  %v985_v13 = vld [vmem:[%s1134_s8 + $0x50] sm:$0xff]   ;;  %v439_v14 = vlaneseq  ;;  %p888_p12 = scmp.ne.s32.totalorder %s1027_s23, 1 }
  0x2b   : > { %v982_v10 = vld [vmem:[%s1134_s8] sm:$0xff]   ;;  %896 = vmatprep.subr.bf16.mxu0 %v981_v9  ;;  %924 = vmatprep.subr.bf16.mxu1 %v981_v9  ;;  %v984_v12 = vld [vmem:[%s1134_s8 + $0x8] sm:$0xff]   ;;  %v986_v15 = vld [vmem:[%s1134_s8 + $0x10] sm:$0xff]  }
  0x2c   : > { %897 = vmatpush3.bf16.msra.mxu0 %v982_v10  ;;  %932 = vmatpush3.bf16.msra.mxu1 %v982_v10  ;;  %v987_v16 = vld [vmem:[%s1134_s8 + $0x58] sm:$0xff]   ;;  %v440_v17 = vshrl.u32 %v439_v14, 7  ;;  %v989_v19 = vld [vmem:[%s1134_s8 + $0x60] sm:$0xff]   ;;  %v991_v23 = vld [vmem:[%s1134_s8 + $0x68] sm:$0xff]  }
  0x2d   : > { %898 = vmatprep.subr.bf16.mxu0 %v983_v11  ;;  %925 = vmatprep.subr.bf16.mxu1 %v983_v11  ;;  %v988_v18 = vld [vmem:[%s1134_s8 + $0x18] sm:$0xff]   ;;  %v990_v22 = vld [vmem:[%s1134_s8 + $0x20] sm:$0xff]   ;;  %v430_v24 = vld [vmem:[%s1136_s9 + $0x8] sm:$0xff] }
  0x2e   : > { %v441_v20 = vsub.s32 0, %v440_v17  ;;  %v445_v21 = vsub.s32 1, %v440_v17  ;;  %v432_v25 = vld [vmem:[%s1136_s9 + $0x18] sm:$0xff]  ;;  %v437_v26 = vld [vmem:[%s389_s19] sm:$0x3]  ;;  %v434_v30 = vld [vmem:[%s1136_s9 + $0x28] sm:$0xff] }
  0x2f   : > { %v457_v29 = vld [vmem:[%s394_s28] sm:$0x3]  ;;  %v436_v31 = vld [vmem:[%s1136_s9 + $0x38] sm:$0xff]  ;;  %v431_v35 = vld [vmem:[%s1136_s9 + $0x10] sm:$0xff] }
  0x30   : > { %899 = vmatpush3.bf16.msra.mxu0 %v984_v12  ;;  %933 = vmatpush3.bf16.msra.mxu1 %v984_v12  ;;  %v442_v27 = vrot.slane %v437_v26, %v441_v20  ;;  %v446_v28 = vrot.slane %v437_v26, %v445_v21  ;;  %v462_v32 = vrot.slane %v457_v29, %v441_v20  ;;  %v429_v34 = vld [vmem:[%s1136_s9] sm:$0xff]  ;;  %v992_v37 = vld [vmem:[%s1134_s8 + $0x28] sm:$0xff]   ;;  %v435_v41 = vld [vmem:[%s1136_s9 + $0x30] sm:$0xff] }
  0x31   : > { %900 = vmatprep.subr.bf16.mxu0 %v985_v13  ;;  %926 = vmatprep.subr.bf16.mxu1 %v985_v13  ;;  %v466_v33 = vrot.slane %v457_v29, %v445_v21  ;;  %v433_v36 = vld [vmem:[%s1136_s9 + $0x20] sm:$0xff]  ;;  %v993_v42 = vld [vmem:[%s1134_s8 + $0x70] sm:$0xff]   ;;  %v995_v59 = vld [vmem:[%s1134_s8 + $0x78] sm:$0xff]  }
  0x32   : > { %v450_v38 = vmul.f32 %v446_v28, %v430_v24  ;;  %v452_v39 = vmul.f32 %v446_v28, %v432_v25  ;;  %v454_v40 = vmul.f32 %v446_v28, %v434_v30  ;;  %v456_v43 = vmul.f32 %v446_v28, %v436_v31  ;;  %v994_v54 = vld [vmem:[%s1134_s8 + $0x30] sm:$0xff]   ;;  %v996_v4 = vld [vmem:[%s1134_s8 + $0x38] sm:$0xff]   ;;  %v485_v9 = vld [vmem:[#allocation2] sm:$0xff] }
  0x33   : > { %v449_v44 = vmul.f32 %v442_v27, %v429_v34  ;;  %v451_v45 = vmul.f32 %v442_v27, %v431_v35  ;;  %v453_v49 = vmul.f32 %v442_v27, %v433_v36  ;;  %v455_v53 = vmul.f32 %v442_v27, %v435_v41  ;;  %v487_v11 = vld [vmem:[#allocation2 + $0x10] sm:$0xff]  ;;  %v486_v17 = vld [vmem:[#allocation2 + $0x8] sm:$0xff]  ;;  %v889_v28 = vld [vmem:[%s1211_s4] ss:$0 sm:$0xff] (!%p888_p12) }
  0x34   : > { %901 = vmatpush3.bf16.msra.mxu0 %v986_v15  ;;  %934 = vmatpush3.bf16.msra.mxu1 %v986_v15  ;;  %v470_v46 = vadd.f32 %v466_v33, %v450_v38  ;;  %v472_v47 = vadd.f32 %v466_v33, %v452_v39  ;;  %v474_v48 = vadd.f32 %v466_v33, %v454_v40  ;;  %v890_v29 = vld [vmem:[%s1212_s5] ss:$0 sm:$0xff] (!%p888_p12) }
  0x35   : > { %902 = vmatprep.subr.bf16.mxu0 %v987_v16  ;;  %927 = vmatprep.subr.bf16.mxu1 %v987_v16  ;;  %v476_v50 = vadd.f32 %v466_v33, %v456_v43  ;;  %v469_v51 = vadd.f32 %v462_v32, %v449_v44  ;;  %v471_v52 = vadd.f32 %v462_v32, %v451_v45 }
  0x36   : > { %v478_v55 = vmax.f32 %v470_v46, 0.0  ;;  %v480_v56 = vmax.f32 %v472_v47, 0.0  ;;  %v482_v57 = vmax.f32 %v474_v48, 0.0  ;;  %v473_v58 = vadd.f32 %v462_v32, %v453_v49 }
  0x37   : > { %v484_v60 = vmax.f32 %v476_v50, 0.0  ;;  %v475_v61 = vadd.f32 %v462_v32, %v455_v53  ;;  %v477_v63 = vmax.f32 %v469_v51, 0.0  ;;  %v479_v1 = vmax.f32 %v471_v52, 0.0 }
  0x38   : > { %903 = vmatpush3.bf16.msra.mxu0 %v988_v18  ;;  %935 = vmatpush3.bf16.msra.mxu1 %v988_v18  ;;  %v490_v62 = vpack.c.bf16 %v480_v56, %v478_v55  ;;  %v481_v2 = vmax.f32 %v473_v58, 0.0 }
  0x39   : > { %904 = vmatprep.subr.bf16.mxu0 %v989_v19  ;;  %928 = vmatprep.subr.bf16.mxu1 %v989_v19  ;;  %v492_v0 = vpack.c.bf16 %v484_v60, %v482_v57  ;;  %v483_v3 = vmax.f32 %v475_v61, 0.0  ;;  %v489_v5 = vpack.c.bf16 %v479_v1, %v477_v63  ;;  %v488_v19 = vld [vmem:[#allocation2 + $0x18] sm:$0xff] }
  0x3a   : > { %653 = vmatprep.mubr.bf16.mxu0 %v490_v62 }
  0x3b   : > { %661 = vmatprep.mubr.bf16.mxu1 %v492_v0  ;;  %v491_v6 = vpack.c.bf16 %v483_v3, %v481_v2 }
  0x3c   : > { %905 = vmatpush3.bf16.msra.mxu0 %v990_v22  ;;  %936 = vmatpush3.bf16.msra.mxu1 %v990_v22 }
  0x3d   : > { %906 = vmatprep.subr.bf16.mxu0 %v991_v23  ;;  %929 = vmatprep.subr.bf16.mxu1 %v991_v23 }
  0x40   : > { %907 = vmatpush3.bf16.msra.mxu0 %v992_v37  ;;  %937 = vmatpush3.bf16.msra.mxu1 %v992_v37 }
  0x41   : > { %908 = vmatprep.subr.bf16.mxu0 %v993_v42  ;;  %930 = vmatprep.subr.bf16.mxu1 %v993_v42 }
  0x44   : > { %909 = vmatpush3.bf16.msra.mxu0 %v994_v54  ;;  %938 = vmatpush3.bf16.msra.mxu1 %v994_v54 }
  0x45   : > { %910 = vmatprep.subr.bf16.mxu0 %v995_v59  ;;  %931 = vmatprep.subr.bf16.mxu1 %v995_v59 }
  0x48   : > { %911 = vmatpush3.bf16.msra.mxu0 %v996_v4  ;;  %939 = vmatpush3.bf16.msra.mxu1 %v996_v4 }
  0x4b   : > { %654 = vmatmul.mubr.bf16.vlgmr.msra.gmra.mrb[0].mxu0 %v489_v5  ;;  %662 = vmatmul.mubr.bf16.vlgmr.msra.gmra.mrb[0].mxu1 %v491_v6 }
 0x11e   : > { %v912_v7 = vpop.f32.mrb[0].mxu0  ;;  %v918_v8 = vpop.f32.mrb[0].mxu1 }
 0x11f   : > { %v913_v10 = vpop.f32.mrb[1].mxu0  ;;  %v919_v12 = vpop.f32.mrb[1].mxu1 }
 0x120   : > { %v914_v13 = vadd.f32 %v913_v10, %v912_v7  ;;  %v920_v14 = vadd.f32 %v919_v12, %v918_v8  ;;  %v915_v15 = vpop.f32.mrb[2].mxu0  ;;  %v921_v16 = vpop.f32.mrb[2].mxu1  ;;  %681 = sbr.rel (%p888_p12) target bundleno = 309 (0x135), region = 75 }
 0x121   : > { %v916_v18 = vpop.f32.mrb[3].mxu0  ;;  %v922_v20 = vpop.f32.mrb[3].mxu1 }
 0x122   : > { %v670_v21 = vadd.f32 %v914_v13, %v485_v9  ;;  %v672_v22 = vadd.f32 %v920_v14, %v487_v11  ;;  %v917_v23 = vadd.f32 %v916_v18, %v915_v15  ;;  %v923_v24 = vadd.f32 %v922_v20, %v921_v16 }
 0x124   : > { %674 = vst [vmem:[#allocation2] sm:$0xff] %v670_v21  ;;  %676 = vst [vmem:[#allocation2 + $0x10] sm:$0xff] %v672_v22  ;;  %v671_v25 = vadd.f32 %v917_v23, %v486_v17  ;;  %v673_v26 = vadd.f32 %v923_v24, %v488_v19 }
 0x126   : > { %675 = vst [vmem:[#allocation2 + $0x8] sm:$0xff] %v671_v25  ;;  %677 = vst [vmem:[#allocation2 + $0x18] sm:$0xff] %v673_v26 }
 0x12b   : > { %v682_v27 = vld [vmem:[#allocation2] sm:$0xff]  ;;  %v684_v32 = vld [vmem:[#allocation2 + $0x10] sm:$0xff] }
 0x12c   : > { %v693_v30 = vmul.f32 %v889_v28, %v682_v27  ;;  %v695_v35 = vmul.f32 %v889_v28, %v684_v32 }
 0x12d   : > { %v683_v31 = vld [vmem:[#allocation2 + $0x8] sm:$0xff]  ;;  %v685_v33 = vld [vmem:[#allocation2 + $0x18] sm:$0xff] }
 0x12e   : > { %v694_v34 = vmul.f32 %v889_v28, %v683_v31  ;;  %v696_v36 = vmul.f32 %v889_v28, %v685_v33  ;;  %v704_v37 = vadd.f32 %v890_v29, %v693_v30  ;;  %v706_v39 = vadd.f32 %v890_v29, %v695_v35 }
 0x130   : > { %v705_v38 = vadd.f32 %v890_v29, %v694_v34  ;;  %v707_v40 = vadd.f32 %v890_v29, %v696_v36  ;;  %v708_v41 = vmax.f32 %v704_v37, 0.0  ;;  %v710_v43 = vmax.f32 %v706_v39, 0.0 }
 0x132   : > { %v709_v42 = vmax.f32 %v705_v38, 0.0  ;;  %v711_v44 = vmax.f32 %v707_v40, 0.0  ;;  %712 = vst [vmem:[%s1213_s6] sm:$0xff] %v708_v41  ;;  %714 = vst [vmem:[%s1213_s6 + $0x10] sm:$0xff] %v710_v43 }
 0x134   : > { %713 = vst [vmem:[%s1213_s6 + $0x8] sm:$0xff] %v709_v42  ;;  %715 = vst [vmem:[%s1213_s6 + $0x18] sm:$0xff] %v711_v44 }
 0x135 PF: > { %s16_s25 = sadd.s32 1, %s1035_s25   ;;  %s1214_s21 = smov %s1023_s22 }
 0x136   : > { %p13_p13 = scmp.ge.s32.totalorder %s16_s25, 4   ;;  %s1215_s22 = smov %s1108_s29 }
 0x137   : > { %s1216_s23 = smov %s1031_s24  ;;  %s1217_s24 = smov %s1219_s26 }
 0x138   :  { %15 = sbr.rel (!%p13_p13) target bundleno = 3 (0x3), region = 125 }

// kernel: _encoder_forward.194
= control target key start
LH: loop header
LB: loop body
LE: loop exit
PB: predicated region body
PF: predicated region fallthrough
CT: control target
= control target key end

     0   :  { %s686_s9 = smov 0   ;;  %s688_s10 = smov 0   ;;  %s782_s0 = inlined_call_operand.vmem [shape: bf16[32,1152], index: 0, kind: input, shape index: {}]   ;;  %s783_s1 = inlined_call_operand.vmem [shape: bf16[1152,128], index: 1, kind: input, shape index: {}]   ;;  %s784_s2 = inlined_call_operand.vmem [shape: f32[32,128], index: 2, kind: output, shape index: {}]  }
   0x1   :  { %s690_s11 = smov 0   ;;  %s692_s12 = smov 0  }
   0x2   :  { %s694_s13 = smov 0  }
   0x3 LB: > { %s24_s14 = sadd.s32 1, %s664_s12  ;;  %p47_p1 = scmp.ne.s32.totalorder %s656_s10, %s652_s9  ;;  %s668_s13 = sphi %s694_s13, %s12_s13   ;;  %s664_s12 = sphi %s692_s12, %s788_s12   ;;  %s660_s11 = sphi %s690_s11, %s787_s11   ;;  %s656_s10 = sphi %s688_s10, %s786_s10   ;;  %s652_s9 = sphi %s686_s9, %s785_s9  }
   0x4   : > { %p25_p0 = scmp.ge.s32.totalorder %s24_s14, 9  ;;  %p48_p2 = scmp.eq.s32.totalorder %s668_s13, 0 }
   0x5   : > { %s40_s16 = sadd.s32 1, %s656_s10  ;;  %p526_p5 = scmp.ge.s32.totalorder %s668_s13, 9 }
   0x6   : > { %s790_s14 = smov (%p25_p0, %s24_s14), 0  ;;  %p49_p3 = por %p48_p2, %p47_p1 }
   0x7   : > { %s36_s15 = ssub.s32 %s664_s12, %s790_s14  ;;  %129 = sbr.rel (%p526_p5) target bundleno = 21 (0x15), region = 16 }
   0x8   : > { %p38_p4 = scmp.eq.s32.totalorder %s36_s15, 0 }
   0xa   : > { %s721_s17 = scalar_select %p38_p4, %s656_s10, %s40_s16  }
   0xe   : > { %132 = sbr.rel (!%p49_p3) target bundleno = 21 (0x15), region = 20  ;;  %s134_s18 = sand.u32 (%p49_p3), 1, %s656_s10  }
   0xf   : > { %s528_s19 = sshll.u32 (%p49_p3), %s664_s12, 2  ;;  %s527_s20 = sshll.u32 (%p49_p3), %s134_s18, 4 }
  0x10   : > { %s141_s23 = scalar_lea.vmem (%p49_p3), %s782_s0, %s528_s19  ;;  %s136_s24 = scalar_lea.vmem (%p49_p3), [#allocation3], %s527_s20 }
  0x11   : > { %v157_v0 = vld [vmem:[%s141_s23] sm:$0xf] (%p49_p3)  ;;  %v159_v1 = vld [vmem:[%s141_s23 + $0x24] sm:$0xf] (%p49_p3)  ;;  %v161_v2 = vld [vmem:[%s141_s23 + $0x48] sm:$0xf] (%p49_p3) }
  0x12   : > { %158 = vst [vmem:[%s136_s24] sm:$0xf] (%p49_p3), %v157_v0  ;;  %160 = vst [vmem:[%s136_s24 + $0x4] sm:$0xf] (%p49_p3), %v159_v1  ;;  %v163_v3 = vld [vmem:[%s141_s23 + $0x6c] sm:$0xf] (%p49_p3) }
  0x13   : > { %162 = vst [vmem:[%s136_s24 + $0x8] sm:$0xf] (%p49_p3), %v161_v2  ;;  %164 = vst [vmem:[%s136_s24 + $0xc] sm:$0xf] (%p49_p3), %v163_v3 }
  0x15 PF: > { %p529_p6 = scmp.ge.s32.totalorder %s668_s13, 1  ;;  %p206_p7 = scmp.lt.s32.totalorder %s668_s13, 10 }
  0x17   : > { %p207_p8 = pnand %p529_p6, %p206_p7 }
  0x18   : > { %s213_s25 = sand.u32 (!%p207_p8), 1, %s652_s9   ;;  %s531_s26 = sshll.u32 (!%p207_p8), %s660_s11, 4 }
  0x19   : > { %210 = sbr.rel (%p207_p8) target bundleno = 298 (0x12a), region = 65  ;;  %s733_s27 = sshll.u32 (!%p207_p8), %s213_s25, 4 }
  0x1a   : > { %p247_p9 = scmp.lt.s32.totalorder (!%p207_p8), %s531_s26, 143  ;;  %s215_s4 = scalar_lea.vmem (!%p207_p8), [#allocation3], %s733_s27 }
  0x1b   : > { %p533_p10 = scmp.ne.s32.totalorder (!%p207_p8), %s660_s11, 0 }
  0x20   : > { %s792_s26 = smov (!%p247_p9, %s531_s26), 143  ;;  %268 = sbr.rel (%p533_p10) target bundleno = 39 (0x27), region = 73 }
  0x21   : > { %s532_s28 = sshll.u32 %s792_s26, 2  ;;  %v670_v4 = vmov (!%p533_p10), 0.0  }
  0x22   : > { %s738_s3 = scalar_lea.vmem %s783_s1, %s532_s28  ;;  %269 = vst [vmem:[#allocation2] sm:$0xff] (!%p533_p10), %v670_v4  ;;  %270 = vst [vmem:[#allocation2 + $0x8] sm:$0xff] (!%p533_p10), %v670_v4 }
  0x23   : > { %271 = vst [vmem:[#allocation2 + $0x10] sm:$0xff] (!%p533_p10), %v670_v4  ;;  %272 = vst [vmem:[#allocation2 + $0x18] sm:$0xff] (!%p533_p10), %v670_v4 }
  0x27 PF: > { %v620_v5 = vld [vmem:[%s738_s3] sm:$0xff]   ;;  %v621_v6 = vld [vmem:[%s738_s3 + $0x8] sm:$0xff]   ;;  %v622_v7 = vld [vmem:[%s738_s3 + $0x10] sm:$0xff]   ;;  %p544_p11 = scmp.ne.s32.totalorder %s660_s11, 8 }
  0x28   : > { %559 = vmatprep.subr.bf16.mxu0 %v620_v5  ;;  %v623_v8 = vld [vmem:[%s738_s3 + $0x18] sm:$0xff]   ;;  %v628_v9 = vld [vmem:[%s215_s4] sm:$0xff]   ;;  %v625_v11 = vld [vmem:[%s738_s3 + $0x28] sm:$0xff]  }
  0x29   : > { %560 = vmatpush3.bf16.msra.mxu0 %v620_v5  ;;  %575 = vmatprep.mubr.bf16.mxu0 %v628_v9  ;;  %v624_v10 = vld [vmem:[%s738_s3 + $0x20] sm:$0xff]   ;;  %v626_v12 = vld [vmem:[%s738_s3 + $0x30] sm:$0xff]   ;;  %v627_v13 = vld [vmem:[%s738_s3 + $0x38] sm:$0xff]  }
  0x2a   : > { %561 = vmatprep.subr.bf16.mxu0 %v621_v6  ;;  %v629_v14 = vld [vmem:[%s215_s4 + $0x8] sm:$0xff]   ;;  %v275_v15 = vld [vmem:[#allocation2 + $0x10] sm:$0xff]  ;;  %v273_v16 = vld [vmem:[#allocation2] sm:$0xff] }
  0x2b   : > { %v276_v18 = vld [vmem:[#allocation2 + $0x18] sm:$0xff]  ;;  %v274_v21 = vld [vmem:[#allocation2 + $0x8] sm:$0xff] }
  0x2d   : > { %562 = vmatpush3.bf16.msra.mxu0 %v621_v6 }
  0x2e   : > { %563 = vmatprep.subr.bf16.mxu0 %v622_v7 }
  0x31   : > { %564 = vmatpush3.bf16.msra.mxu0 %v622_v7 }
  0x32   : > { %565 = vmatprep.subr.bf16.mxu0 %v623_v8 }
  0x35   : > { %566 = vmatpush3.bf16.msra.mxu0 %v623_v8 }
  0x36   : > { %567 = vmatprep.subr.bf16.mxu0 %v624_v10 }
  0x39   : > { %568 = vmatpush3.bf16.msra.mxu0 %v624_v10 }
  0x3a   : > { %569 = vmatprep.subr.bf16.mxu0 %v625_v11 }
  0x3d   : > { %570 = vmatpush3.bf16.msra.mxu0 %v625_v11 }
  0x3e   : > { %571 = vmatprep.subr.bf16.mxu0 %v626_v12 }
  0x41   : > { %572 = vmatpush3.bf16.msra.mxu0 %v626_v12 }
  0x42   : > { %573 = vmatprep.subr.bf16.mxu0 %v627_v13 }
  0x45   : > { %574 = vmatpush3.bf16.msra.mxu0 %v627_v13 }
  0x48   : > { %576 = vmatmul.mubr.bf16.vlgmr.msra.gmra.mrb[0].mxu0 %v629_v14 }
 0x11b   : > { %v577_v17 = vpop.f32.mrb[0].mxu0  ;;  %417 = sbr.rel (%p544_p11) target bundleno = 298 (0x12a), region = 77 }
 0x11c   : > { %v408_v19 = vadd.f32 %v577_v17, %v275_v15  ;;  %v391_v20 = vpop.f32.mrb[1].mxu0 }
 0x11d   : > { %v406_v22 = vadd.f32 %v391_v20, %v273_v16  ;;  %v578_v23 = vpop.f32.mrb[2].mxu0 }
 0x11e   : > { %412 = vst [vmem:[#allocation2 + $0x10] sm:$0xff] %v408_v19  ;;  %v409_v24 = vadd.f32 %v578_v23, %v276_v18  ;;  %v394_v25 = vpop.f32.mrb[3].mxu0 }
 0x11f   : > { %410 = vst [vmem:[#allocation2] sm:$0xff] %v406_v22  ;;  %v407_v26 = vadd.f32 %v394_v25, %v274_v21 }
 0x120   : > { %413 = vst [vmem:[#allocation2 + $0x18] sm:$0xff] %v409_v24 }
 0x121   : > { %411 = vst [vmem:[#allocation2 + $0x8] sm:$0xff] %v407_v26 }
 0x125   : > { %v420_v29 = vld [vmem:[#allocation2 + $0x10] sm:$0xff] }
 0x126   : > { %v418_v27 = vld [vmem:[#allocation2] sm:$0xff]  ;;  %424 = vst [vmem:[%s784_s2 + $0x10] sm:$0xff] %v420_v29 }
 0x127   : > { %422 = vst [vmem:[%s784_s2] sm:$0xff] %v418_v27  ;;  %v421_v30 = vld [vmem:[#allocation2 + $0x18] sm:$0xff] }
 0x128   : > { %v419_v28 = vld [vmem:[#allocation2 + $0x8] sm:$0xff]  ;;  %425 = vst [vmem:[%s784_s2 + $0x18] sm:$0xff] %v421_v30 }
 0x129   : > { %423 = vst [vmem:[%s784_s2 + $0x8] sm:$0xff] %v419_v28 }
 0x12a PF: > { %s12_s13 = sadd.s32 1, %s668_s13   ;;  %s785_s9 = smov %s656_s10 }
 0x12b   : > { %p9_p12 = scmp.ge.s32.totalorder %s12_s13, 11   ;;  %s786_s10 = smov %s721_s17 }
 0x12c   : > { %s787_s11 = smov %s664_s12  ;;  %s788_s12 = smov %s790_s14 }
 0x12d   :  { %11 = sbr.rel (!%p9_p12) target bundleno = 3 (0x3), region = 115 }

// kernel: _encoder_forward.196
= control target key start
LH: loop header
LB: loop body
LE: loop exit
PB: predicated region body
PF: predicated region fallthrough
CT: control target
= control target key end

     0   :  { %7 = vsyncpa [#allocation4], 0  ;;  %s877_s0 = inlined_call_operand.hbm [shape: bf16[32,1152], index: 0, kind: input, shape index: {}]   ;;  %s878_s1 = inlined_call_operand.vmem [shape: bf16[1152,128], index: 1, kind: input, shape index: {}]   ;;  %s879_s2 = inlined_call_operand.vmem [shape: f32[32,128], index: 2, kind: output, shape index: {}]  }
   0x1   :  { %9 = vsyncpa [#allocation4 + $0x1], 0  ;;  %s721_s9 = smov 0   ;;  %s723_s10 = smov 0  }
   0x2   :  { %s725_s11 = smov 0   ;;  %s727_s12 = smov 0  }
   0x3   :  { %s729_s13 = smov 0   ;;  %s731_s14 = smov 0  }
   0x4 LB: > { %s495_s15 = sadd.s32 4294967295, %s699_s14   ;;  %s27_s16 = sadd.s32 1, %s695_s13  ;;  %s699_s14 = sphi %s731_s14, %s15_s14   ;;  %s695_s13 = sphi %s729_s13, %s888_s13   ;;  %s691_s12 = sphi %s727_s12, %s887_s12   ;;  %s687_s11 = sphi %s725_s11, %s886_s11   ;;  %s683_s10 = sphi %s723_s10, %s885_s10   ;;  %s679_s9 = sphi %s721_s9, %s884_s9  }
   0x5   : > { %p28_p0 = scmp.ge.s32.totalorder %s27_s16, 9  ;;  %s43_s17 = sadd.s32 1, %s687_s11 }
   0x6   : > { %p50_p1 = scmp.ne.s32.totalorder %s687_s11, %s683_s10  ;;  %p51_p2 = scmp.eq.s32.totalorder %s699_s14, 0 }
   0x7   : > { %s890_s16 = smov (%p28_p0, %s27_s16), 0  ;;  %p56_p4 = scmp.ne.s32.totalorder %s683_s10, %s679_s9 }
   0x8   : > { %p757_p3 = por %p51_p2, %p50_p1  ;;  %s39_s19 = ssub.s32 %s695_s13, %s890_s16 }
   0x9   : > { %p57_p5 = scmp.eq.s32.totalorder %s495_s15, 0  ;;  %p41_p6 = scmp.eq.s32.totalorder %s39_s19, 0 }
   0xa   : > { %p556_p8 = scmp.lt.s32.totalorder %s699_s14, 9  ;;  %s136_s22 = sand.u32 1, %s687_s11  }
   0xb   : > { %p764_p7 = por %p57_p5, %p56_p4  ;;  %s499_s23 = sshll.u32 %s695_s13, 6 }
   0xc   : > { %s770_s21 = scalar_select %p41_p6, %s687_s11, %s43_s17  }
   0xd   : > { %s498_s24 = sshll.u32 %s136_s22, 4  ;;  %s777_s27 = scalar_lea.hbm %s877_s0, %s499_s23 }
   0xe   : > { %s140_s28 = scalar_lea.vmem [#allocation3], %s498_s24  ;;  %p781_p9 = pnand %p556_p8, %p757_p3 }
   0xf   : > { %s149_s29 = sshll.u32 %s140_s28, 4  ;;  %s788_s3 = scalar_lea.sflag [#allocation4], %s136_s22  ;;  %s785_s29 = int_to_ptr.vmem [resolvable:$true] %s149_s29 }
  0x10   : > { %s619_s4 = scalar_lea.hbm %s777_s27, 256  ;;  %p621_p12 = pneg %p781_p9 }
  0x11   : > { %p620_p11 = scmp.ne.s32.totalorder %s777_s27, %s619_s4  ;;  %s624_s7 = scalar_lea.hbm %s877_s0, 2304 }
  0x12   : > { %p625_p1 = scmp.lt.u32.totalorder %s777_s27, %s877_s0  ;;  %p626_p2 = scmp.lt.u32.totalorder %s624_s7, %s619_s4 }
  0x13   : > { %p622_p13 = pnand %p621_p12, %p620_p11  ;;  %p628_p4 = scmp.lt.u32.totalorder %s619_s4, %s777_s27 }
  0x14   : > { %p627_p3 = por %p626_p2, %p625_p1 }
  0x15   : > { %p623_p0 = pneg %p622_p13 }
  0x16   : > { %p629_p5 = por %p628_p4, %p627_p3 }
  0x18   : > { %p630_p6 = pnand %p629_p5, %p623_p0 }
  0x1a   : > { %633 = shalt.err (!%p630_p6)
}
  0x1b   : > { %s634_s15 = scalar_lea.vmem %s785_s29, 256  ;;  %s701_s17 = smov [#allocation3]  }
  0x1c   : > { %p635_p8 = scmp.ne.s32.totalorder %s785_s29, %s634_s15  ;;  %s639_s18 = sshll.u32 %s701_s17, 4  ;;  %s640_s18 = int_to_ptr.vmem [resolvable:$false] %s639_s18 }
  0x1d   : > { %s641_s19 = scalar_lea.vmem %s640_s18, 512  ;;  %p642_p10 = scmp.lt.s32.totalorder %s785_s29, %s640_s18 }
  0x1e   : > { %p637_p11 = pnand %p635_p8, %p621_p12  ;;  %p643_p1 = scmp.lt.s32.totalorder %s641_s19, %s634_s15 }
  0x20   : > { %p638_p13 = pneg %p637_p11  ;;  %p644_p2 = por %p643_p1, %p642_p10 }
  0x22   : > { %p645_p3 = pnand %p644_p2, %p638_p13 }
  0x24   : > { %648 = shalt.err (!%p645_p3)
}
  0x25   : > { %s702_s22 = smov 576   ;;  %s703_s23 = smov 64  }
  0x26   : > { %s704_s24 = smov 4   ;;  %p169_p12 = scmp.lt.s32.totalorder %s699_s14, 10 }
  0x27   : > { %555 = dma.hbm_to_vmem [thread:$0]  (!%p781_p9), %s777_s27, 256, %s785_s29, %s788_s3, %s702_s22, %s703_s23, %s704_s24  }
  0x28   : > { %p883_p0 = scmp.ge.s32.totalorder %s699_s14, 1 }
  0x2a   : > { %p170_p4 = pnand %p883_p0, %p169_p12 }
  0x2b   : > { %s175_s25 = sand.u32 (!%p170_p4), 1, %s683_s10  }
  0x2c   : > { %173 = sbr.rel (%p170_p4) target bundleno = 320 (0x140), region = 28  ;;  %s820_s26 = sshll.u32 (!%p170_p4), %s175_s25, 4 }
  0x2d   : > { %s176_s28 = scalar_lea.sflag (!%p170_p4), [#allocation4], %s175_s25  ;;  %s179_s4 = scalar_lea.vmem (!%p170_p4), [#allocation3], %s820_s26 }
  0x33   : > { %674 = dma.done.wait (%p764_p7), %s176_s28, 256  }
  0x34   : > { %676 = vsyncadd (%p764_p7), %s176_s28, 4294967040  ;;  %s502_s30 = sshll.u32 %s691_s12, 4  ;;  %p504_p10 = scmp.ne.s32.totalorder %s691_s12, 0 }
  0x35   : > { %p213_p9 = scmp.lt.s32.totalorder %s502_s30, 143  ;;  %v705_v0 = vmov (!%p504_p10), 0.0  }
  0x36   : > { %234 = sbr.rel (%p504_p10) target bundleno = 61 (0x3d), region = 36  ;;  %235 = vst [vmem:[#allocation2] sm:$0xff] (!%p504_p10), %v705_v0  ;;  %236 = vst [vmem:[#allocation2 + $0x8] sm:$0xff] (!%p504_p10), %v705_v0 }
  0x37   : > { %s892_s30 = smov (!%p213_p9, %s502_s30), 143  ;;  %237 = vst [vmem:[#allocation2 + $0x10] sm:$0xff] (!%p504_p10), %v705_v0  ;;  %238 = vst [vmem:[#allocation2 + $0x18] sm:$0xff] (!%p504_p10), %v705_v0 }
  0x38   : > { %s503_s27 = sshll.u32 %s892_s30, 2 }
  0x39   : > { %s831_s5 = scalar_lea.vmem %s878_s1, %s503_s27 }
  0x3d PF: > { %v609_v1 = vld [vmem:[%s831_s5] sm:$0xff]   ;;  %v610_v2 = vld [vmem:[%s831_s5 + $0x8] sm:$0xff]   ;;  %v611_v3 = vld [vmem:[%s831_s5 + $0x10] sm:$0xff]   ;;  %p515_p7 = scmp.ne.s32.totalorder %s691_s12, 8 }
  0x3e   : > { %530 = vmatprep.subr.bf16.mxu0 %v609_v1  ;;  %v612_v4 = vld [vmem:[%s831_s5 + $0x18] sm:$0xff]   ;;  %v617_v5 = vld [vmem:[%s179_s4] sm:$0xff]   ;;  %v614_v7 = vld [vmem:[%s831_s5 + $0x28] sm:$0xff]  }
  0x3f   : > { %531 = vmatpush3.bf16.msra.mxu0 %v609_v1  ;;  %546 = vmatprep.mubr.bf16.mxu0 %v617_v5  ;;  %v613_v6 = vld [vmem:[%s831_s5 + $0x20] sm:$0xff]   ;;  %v615_v8 = vld [vmem:[%s831_s5 + $0x30] sm:$0xff]   ;;  %v616_v9 = vld [vmem:[%s831_s5 + $0x38] sm:$0xff]  }
  0x40   : > { %532 = vmatprep.subr.bf16.mxu0 %v610_v2  ;;  %v618_v10 = vld [vmem:[%s179_s4 + $0x8] sm:$0xff]   ;;  %v241_v11 = vld [vmem:[#allocation2 + $0x10] sm:$0xff]  ;;  %v239_v12 = vld [vmem:[#allocation2] sm:$0xff] }
  0x41   : > { %v242_v14 = vld [vmem:[#allocation2 + $0x18] sm:$0xff]  ;;  %v240_v17 = vld [vmem:[#allocation2 + $0x8] sm:$0xff] }
  0x43   : > { %533 = vmatpush3.bf16.msra.mxu0 %v610_v2 }
  0x44   : > { %534 = vmatprep.subr.bf16.mxu0 %v611_v3 }
  0x47   : > { %535 = vmatpush3.bf16.msra.mxu0 %v611_v3 }
  0x48   : > { %536 = vmatprep.subr.bf16.mxu0 %v612_v4 }
  0x4b   : > { %537 = vmatpush3.bf16.msra.mxu0 %v612_v4 }
  0x4c   : > { %538 = vmatprep.subr.bf16.mxu0 %v613_v6 }
  0x4f   : > { %539 = vmatpush3.bf16.msra.mxu0 %v613_v6 }
  0x50   : > { %540 = vmatprep.subr.bf16.mxu0 %v614_v7 }
  0x53   : > { %541 = vmatpush3.bf16.msra.mxu0 %v614_v7 }
  0x54   : > { %542 = vmatprep.subr.bf16.mxu0 %v615_v8 }
  0x57   : > { %543 = vmatpush3.bf16.msra.mxu0 %v615_v8 }
  0x58   : > { %544 = vmatprep.subr.bf16.mxu0 %v616_v9 }
  0x5b   : > { %545 = vmatpush3.bf16.msra.mxu0 %v616_v9 }
  0x5e   : > { %547 = vmatmul.mubr.bf16.vlgmr.msra.gmra.mrb[0].mxu0 %v618_v10 }
 0x131   : > { %v548_v13 = vpop.f32.mrb[0].mxu0  ;;  %383 = sbr.rel (%p515_p7) target bundleno = 320 (0x140), region = 40 }
 0x132   : > { %v374_v15 = vadd.f32 %v548_v13, %v241_v11  ;;  %v357_v16 = vpop.f32.mrb[1].mxu0 }
 0x133   : > { %v372_v18 = vadd.f32 %v357_v16, %v239_v12  ;;  %v549_v19 = vpop.f32.mrb[2].mxu0 }
 0x134   : > { %378 = vst [vmem:[#allocation2 + $0x10] sm:$0xff] %v374_v15  ;;  %v375_v20 = vadd.f32 %v549_v19, %v242_v14  ;;  %v360_v21 = vpop.f32.mrb[3].mxu0 }
 0x135   : > { %376 = vst [vmem:[#allocation2] sm:$0xff] %v372_v18  ;;  %v373_v22 = vadd.f32 %v360_v21, %v240_v17 }
 0x136   : > { %379 = vst [vmem:[#allocation2 + $0x18] sm:$0xff] %v375_v20 }
 0x137   : > { %377 = vst [vmem:[#allocation2 + $0x8] sm:$0xff] %v373_v22 }
 0x13b   : > { %v386_v25 = vld [vmem:[#allocation2 + $0x10] sm:$0xff] }
 0x13c   : > { %v384_v23 = vld [vmem:[#allocation2] sm:$0xff]  ;;  %390 = vst [vmem:[%s879_s2 + $0x10] sm:$0xff] %v386_v25 }
 0x13d   : > { %388 = vst [vmem:[%s879_s2] sm:$0xff] %v384_v23  ;;  %v387_v26 = vld [vmem:[#allocation2 + $0x18] sm:$0xff] }
 0x13e   : > { %v385_v24 = vld [vmem:[#allocation2 + $0x8] sm:$0xff]  ;;  %391 = vst [vmem:[%s879_s2 + $0x18] sm:$0xff] %v387_v26 }
 0x13f   : > { %389 = vst [vmem:[%s879_s2 + $0x8] sm:$0xff] %v385_v24 }
 0x140 PF: > { %s15_s14 = sadd.s32 1, %s699_s14   ;;  %s884_s9 = smov %s683_s10 }
 0x141   : > { %p12_p5 = scmp.ge.s32.totalorder %s15_s14, 11   ;;  %s885_s10 = smov %s687_s11 }
 0x142   : > { %s886_s11 = smov %s770_s21  ;;  %s887_s12 = smov %s695_s13 }
 0x143   : > { %s888_s13 = smov %s890_s16  ;;  %14 = sbr.rel (!%p12_p5) target bundleno = 4 (0x4), region = 79 }
 0x14a   :  { %420 = vsyncpa [#allocation4], 1 }
 0x14b   :  { %422 = vsyncpa [#allocation4 + $0x1], 1 }

// kernel: _encoder_forward.217
= control target key start
LH: loop header
LB: loop body
LE: loop exit
PB: predicated region body
PF: predicated region fallthrough
CT: control target
= control target key end

     0   :  { %s1081_s15 = smov 0   ;;  %s1083_s16 = smov 0   ;;  %s1245_s0 = inlined_call_operand.vmem [shape: f32[32,512], index: 0, kind: input, shape index: {}]   ;;  %s1246_s1 = inlined_call_operand.vmem [shape: f32[1,512], index: 1, kind: input, shape index: {}]   ;;  %s1247_s2 = inlined_call_operand.vmem [shape: f32[1,512], index: 2, kind: input, shape index: {}]   ;;  %s1248_s3 = inlined_call_operand.vmem [shape: bf16[512,256], index: 3, kind: input, shape index: {}]   ;;  %s1249_s4 = inlined_call_operand.vmem [shape: f32[32,256], index: 4, kind: output, shape index: {}]  }
   0x1   :  { %s1085_s17 = smov 0   ;;  %s1087_s18 = smov 0  }
   0x2   :  { %s1089_s19 = smov 0  }
   0x3 LB: > { %s26_s20 = sadd.s32 1, %s1049_s18  ;;  %p49_p1 = scmp.ne.s32.totalorder %s1041_s16, %s1037_s15  ;;  %s1053_s19 = sphi %s1089_s19, %s14_s19   ;;  %s1049_s18 = sphi %s1087_s18, %s1253_s18   ;;  %s1045_s17 = sphi %s1085_s17, %s1252_s17   ;;  %s1041_s16 = sphi %s1083_s16, %s1251_s16   ;;  %s1037_s15 = sphi %s1081_s15, %s1250_s15  }
   0x4   : > { %p27_p0 = scmp.ge.s32.totalorder %s26_s20, 2  ;;  %p50_p2 = scmp.eq.s32.totalorder %s1053_s19, 0 }
   0x5   : > { %s42_s22 = sadd.s32 1, %s1041_s16  ;;  %p843_p5 = scmp.ge.s32.totalorder %s1053_s19, 2 }
   0x6   : > { %s1255_s20 = smov (%p27_p0, %s26_s20), 0  ;;  %p51_p3 = por %p50_p2, %p49_p1 }
   0x7   : > { %s38_s21 = ssub.s32 %s1049_s18, %s1255_s20  ;;  %183 = sbr.rel (%p843_p5) target bundleno = 22 (0x16), region = 16 }
   0x8   : > { %p40_p4 = scmp.eq.s32.totalorder %s38_s21, 0 }
   0xa   : > { %s1116_s23 = scalar_select %p40_p4, %s1041_s16, %s42_s22  }
   0xe   : > { %186 = sbr.rel (!%p51_p3) target bundleno = 22 (0x16), region = 20  ;;  %s188_s24 = sand.u32 (%p51_p3), 1, %s1041_s16  }
   0xf   : > { %s892_s25 = sshll.u32 (%p51_p3), %s1049_s18, 4  ;;  %s844_s26 = sshll.u32 (%p51_p3), %s188_s24, 6 }
  0x10   : > { %s196_s29 = scalar_lea.vmem (%p51_p3), %s1245_s0, %s892_s25  ;;  %s190_s30 = scalar_lea.vmem (%p51_p3), [#allocation3], %s844_s26 }
  0x11   : > { %v209_v0 = vld [vmem:[%s196_s29] sm:$0xff] (%p51_p3)  ;;  %v211_v1 = vld [vmem:[%s196_s29 + $0x8] sm:$0xff] (%p51_p3) }
  0x12   : > { %v213_v2 = vld [vmem:[%s196_s29 + $0x20] sm:$0xff] (%p51_p3)  ;;  %210 = vst [vmem:[%s190_s30] sm:$0xff] (%p51_p3), %v209_v0  ;;  %212 = vst [vmem:[%s190_s30 + $0x8] sm:$0xff] (%p51_p3), %v211_v1  ;;  %v215_v3 = vld [vmem:[%s196_s29 + $0x28] sm:$0xff] (%p51_p3) }
  0x13   : > { %214 = vst [vmem:[%s190_s30 + $0x10] sm:$0xff] (%p51_p3), %v213_v2  ;;  %v217_v4 = vld [vmem:[%s196_s29 + $0x40] sm:$0xff] (%p51_p3)  ;;  %v219_v5 = vld [vmem:[%s196_s29 + $0x48] sm:$0xff] (%p51_p3)  ;;  %216 = vst [vmem:[%s190_s30 + $0x18] sm:$0xff] (%p51_p3), %v215_v3 }
  0x14   : > { %218 = vst [vmem:[%s190_s30 + $0x20] sm:$0xff] (%p51_p3), %v217_v4  ;;  %220 = vst [vmem:[%s190_s30 + $0x28] sm:$0xff] (%p51_p3), %v219_v5  ;;  %v221_v6 = vld [vmem:[%s196_s29 + $0x60] sm:$0xff] (%p51_p3)  ;;  %v223_v7 = vld [vmem:[%s196_s29 + $0x68] sm:$0xff] (%p51_p3) }
  0x15   : > { %222 = vst [vmem:[%s190_s30 + $0x30] sm:$0xff] %v221_v6  ;;  %224 = vst [vmem:[%s190_s30 + $0x38] sm:$0xff] %v223_v7 }
  0x16 PF: > { %p847_p6 = scmp.ge.s32.totalorder %s1053_s19, 1  ;;  %p260_p7 = scmp.lt.s32.totalorder %s1053_s19, 3 }
  0x18   : > { %p261_p8 = pnand %p847_p6, %p260_p7 }
  0x19   : > { %s267_s5 = sand.u32 (!%p261_p8), 1, %s1037_s15   ;;  %s849_s6 = sshll.u32 (!%p261_p8), %s1045_s17, 1 }
  0x1a   : > { %264 = sbr.rel (%p261_p8) target bundleno = 334 (0x14e), region = 55  ;;  %s848_s7 = sshll.u32 (!%p261_p8), %s267_s5, 6 }
  0x1b   : > { %p318_p9 = scmp.lt.s32.totalorder (!%p261_p8), %s849_s6, 3  ;;  %s851_s8 = sshll.u32 (!%p261_p8), %s1045_s17, 5 }
  0x1c   : > { %p329_p10 = scmp.lt.s32.totalorder (!%p261_p8), %s851_s8, 63  ;;  %s1144_s25 = scalar_lea.vmem (!%p261_p8), [#allocation3], %s848_s7 }
  0x1d   : > { %p854_p11 = scmp.ne.s32.totalorder (!%p261_p8), %s1045_s17, 0 }
  0x21   : > { %s1257_s6 = smov (!%p318_p9, %s849_s6), 3  ;;  %s1259_s8 = smov (!%p329_p10, %s851_s8), 63 }
  0x22   : > { %s320_s11 = scalar_lea.vmem %s1246_s1, %s1257_s6  ;;  %s325_s14 = scalar_lea.vmem %s1247_s2, %s1257_s6  ;;  %v1055_v8 = vmov (!%p854_p11), 0.0  }
  0x23   : > { %s893_s21 = sshll.u32 %s1259_s8, 3  ;;  %354 = sbr.rel (%p854_p11) target bundleno = 42 (0x2a), region = 63  ;;  %355 = vst [vmem:[#allocation2] sm:$0xff] (!%p854_p11), %v1055_v8  ;;  %356 = vst [vmem:[#allocation2 + $0x8] sm:$0xff] (!%p854_p11), %v1055_v8 }
  0x24   : > { %s1142_s24 = scalar_lea.vmem %s1248_s3, %s893_s21  ;;  %357 = vst [vmem:[#allocation2 + $0x10] sm:$0xff] (!%p854_p11), %v1055_v8  ;;  %358 = vst [vmem:[#allocation2 + $0x18] sm:$0xff] (!%p854_p11), %v1055_v8 }
  0x25   : > { %359 = vst [vmem:[#allocation2 + $0x20] sm:$0xff] (!%p854_p11), %v1055_v8  ;;  %360 = vst [vmem:[#allocation2 + $0x28] sm:$0xff] (!%p854_p11), %v1055_v8 }
  0x26   : > { %361 = vst [vmem:[#allocation2 + $0x30] sm:$0xff] (!%p854_p11), %v1055_v8  ;;  %362 = vst [vmem:[#allocation2 + $0x38] sm:$0xff] (!%p854_p11), %v1055_v8 }
  0x2a PF: > { %v967_v9 = vld [vmem:[%s1142_s24 + $0x4] ss:$8 sps:$4 sm:$0xff]   ;;  %v969_v10 = vld [vmem:[%s1142_s24] ss:$8 sps:$4 sm:$0xff]   ;;  %v970_v11 = vld [vmem:[%s1142_s24 + $0x14] ss:$8 sps:$4 sm:$0xff]   ;;  %v373_v17 = vlaneseq }
  0x2b   : > { %623 = vmatprep.subr.bf16.mxu0 %v967_v9  ;;  %894 = vmatprep.subr.bf16.mxu1 %v967_v9  ;;  %v972_v12 = vld [vmem:[%s1142_s24 + $0x10] ss:$8 sps:$4 sm:$0xff]   ;;  %v973_v13 = vld [vmem:[%s1142_s24 + $0x24] ss:$8 sps:$4 sm:$0xff]   ;;  %v975_v14 = vld [vmem:[%s1142_s24 + $0x20] ss:$8 sps:$4 sm:$0xff]  }
  0x2c   : > { %624 = vmatpush1.bf16.msra.mxu0 %v969_v10  ;;  %910 = vmatpush1.bf16.msra.mxu1 %v969_v10  ;;  %v976_v15 = vld [vmem:[%s1142_s24 + $0x34] ss:$8 sps:$4 sm:$0xff]   ;;  %v978_v16 = vld [vmem:[%s1142_s24 + $0x30] ss:$8 sps:$4 sm:$0xff]   ;;  %v979_v18 = vld [vmem:[%s1142_s24 + $0x44] ss:$8 sps:$4 sm:$0xff]  }
  0x2d   : > { %625 = vmatprep.subr.bf16.mxu0 %v970_v11  ;;  %895 = vmatprep.subr.bf16.mxu1 %v970_v11  ;;  %v981_v19 = vld [vmem:[%s1142_s24 + $0x40] ss:$8 sps:$4 sm:$0xff]   ;;  %v1157_v20 = vshrl.u32 %v373_v17, 7  ;;  %v982_v21 = vld [vmem:[%s1142_s24 + $0x54] ss:$8 sps:$4 sm:$0xff]   ;;  %p887_p12 = scmp.ne.s32.totalorder %s1045_s17, 1 }
  0x2e   : > { %v984_v22 = vld [vmem:[%s1142_s24 + $0x50] ss:$8 sps:$4 sm:$0xff]   ;;  %v985_v24 = vld [vmem:[%s1142_s24 + $0x64] ss:$8 sps:$4 sm:$0xff]   ;;  %v371_v27 = vld [vmem:[%s320_s11] sm:$0x3] }
  0x2f   : > { %v379_v23 = vsub.s32 1, %v1157_v20  ;;  %v364_v25 = vld [vmem:[%s1144_s25 + $0x8] sm:$0xff]  ;;  %v366_v26 = vld [vmem:[%s1144_s25 + $0x18] sm:$0xff]  ;;  %v1175_v28 = vld [vmem:[%s325_s14] sm:$0x3]  ;;  %v375_v57 = vsub.s32 0, %v1157_v20 }
  0x30   : > { %626 = vmatpush1.bf16.msra.mxu0 %v972_v12  ;;  %911 = vmatpush1.bf16.msra.mxu1 %v972_v12  ;;  %v368_v29 = vld [vmem:[%s1144_s25 + $0x28] sm:$0xff]  ;;  %v370_v32 = vld [vmem:[%s1144_s25 + $0x38] sm:$0xff]  ;;  %v363_v62 = vld [vmem:[%s1144_s25] sm:$0xff] }
  0x31   : > { %627 = vmatprep.subr.bf16.mxu0 %v973_v13  ;;  %896 = vmatprep.subr.bf16.mxu1 %v973_v13  ;;  %v987_v30 = vld [vmem:[%s1142_s24 + $0x60] ss:$8 sps:$4 sm:$0xff]   ;;  %v380_v31 = vrot.slane %v371_v27, %v379_v23  ;;  %v988_v33 = vld [vmem:[%s1142_s24 + $0x74] ss:$8 sps:$4 sm:$0xff]   ;;  %v400_v34 = vrot.slane %v1175_v28, %v379_v23  ;;  %v990_v39 = vld [vmem:[%s1142_s24 + $0x70] ss:$8 sps:$4 sm:$0xff]   ;;  %v376_v61 = vrot.slane %v371_v27, %v375_v57 }
  0x32   : > { %v991_v43 = vld [vmem:[%s1142_s24 + $0x84] ss:$8 sps:$4 sm:$0xff]   ;;  %v993_v49 = vld [vmem:[%s1142_s24 + $0x80] ss:$8 sps:$4 sm:$0xff]   ;;  %v994_v51 = vld [vmem:[%s1142_s24 + $0x94] ss:$8 sps:$4 sm:$0xff]   ;;  %v396_v3 = vrot.slane %v1175_v28, %v375_v57 }
  0x33   : > { %v384_v35 = vmul.f32 %v380_v31, %v364_v25  ;;  %v386_v36 = vmul.f32 %v380_v31, %v366_v26  ;;  %v388_v37 = vmul.f32 %v380_v31, %v368_v29  ;;  %v390_v38 = vmul.f32 %v380_v31, %v370_v32  ;;  %v996_v53 = vld [vmem:[%s1142_s24 + $0x90] ss:$8 sps:$4 sm:$0xff]   ;;  %v997_v54 = vld [vmem:[%s1142_s24 + $0xa4] ss:$8 sps:$4 sm:$0xff]   ;;  %v999_v55 = vld [vmem:[%s1142_s24 + $0xa0] ss:$8 sps:$4 sm:$0xff]  }
  0x34   : > { %628 = vmatpush1.bf16.msra.mxu0 %v975_v14  ;;  %912 = vmatpush1.bf16.msra.mxu1 %v975_v14  ;;  %v1000_v56 = vld [vmem:[%s1142_s24 + $0xb4] ss:$8 sps:$4 sm:$0xff]   ;;  %v1002_v58 = vld [vmem:[%s1142_s24 + $0xb0] ss:$8 sps:$4 sm:$0xff]   ;;  %v1003_v59 = vld [vmem:[%s1142_s24 + $0xc4] ss:$8 sps:$4 sm:$0xff]   ;;  %v383_v4 = vmul.f32 %v376_v61, %v363_v62 }
  0x35   : > { %629 = vmatprep.subr.bf16.mxu0 %v976_v15  ;;  %897 = vmatprep.subr.bf16.mxu1 %v976_v15  ;;  %v404_v40 = vadd.f32 %v400_v34, %v384_v35  ;;  %v406_v41 = vadd.f32 %v400_v34, %v386_v36  ;;  %v408_v42 = vadd.f32 %v400_v34, %v388_v37  ;;  %v1005_v60 = vld [vmem:[%s1142_s24 + $0xc0] ss:$8 sps:$4 sm:$0xff]   ;;  %v365_v63 = vld [vmem:[%s1144_s25 + $0x10] sm:$0xff]  ;;  %v1009_v9 = vld [vmem:[%s1142_s24 + $0xe4] ss:$8 sps:$4 sm:$0xff]  }
  0x36   : > { %v410_v44 = vadd.f32 %v400_v34, %v390_v38  ;;  %v367_v0 = vld [vmem:[%s1144_s25 + $0x20] sm:$0xff]  ;;  %v369_v1 = vld [vmem:[%s1144_s25 + $0x30] sm:$0xff]  ;;  %v385_v5 = vmul.f32 %v376_v61, %v365_v63  ;;  %v403_v10 = vadd.f32 %v396_v3, %v383_v4  ;;  %v420_v25 = vld [vmem:[#allocation2 + $0x8] sm:$0xff] }
  0x37   : > { %v412_v45 = vmax.f32 %v404_v40, 0.0  ;;  %v414_v46 = vmax.f32 %v406_v41, 0.0  ;;  %v416_v47 = vmax.f32 %v408_v42, 0.0  ;;  %v1006_v2 = vld [vmem:[%s1142_s24 + $0xd4] ss:$8 sps:$4 sm:$0xff]   ;;  %v387_v6 = vmul.f32 %v376_v61, %v367_v0  ;;  %v419_v23 = vld [vmem:[#allocation2] sm:$0xff] }
  0x38   : > { %630 = vmatpush1.bf16.msra.mxu0 %v978_v16  ;;  %913 = vmatpush1.bf16.msra.mxu1 %v978_v16  ;;  %v418_v48 = vmax.f32 %v410_v44, 0.0  ;;  %v389_v7 = vmul.f32 %v376_v61, %v369_v1  ;;  %v1008_v8 = vld [vmem:[%s1142_s24 + $0xd0] ss:$8 sps:$4 sm:$0xff]   ;;  %v405_v11 = vadd.f32 %v396_v3, %v385_v5  ;;  %v1011_v14 = vld [vmem:[%s1142_s24 + $0xe0] ss:$8 sps:$4 sm:$0xff]   ;;  %v411_v16 = vmax.f32 %v403_v10, 0.0 }
  0x39   : > { %631 = vmatprep.subr.bf16.mxu0 %v979_v18  ;;  %898 = vmatprep.subr.bf16.mxu1 %v979_v18  ;;  %v428_v50 = vpack.c.bf16 %v414_v46, %v412_v45  ;;  %v407_v12 = vadd.f32 %v396_v3, %v387_v6  ;;  %v1012_v15 = vld [vmem:[%s1142_s24 + $0xf4] ss:$8 sps:$4 sm:$0xff]   ;;  %v1014_v20 = vld [vmem:[%s1142_s24 + $0xf0] ss:$8 sps:$4 sm:$0xff]   ;;  %v424_v26 = vld [vmem:[#allocation2 + $0x28] sm:$0xff] }
  0x3a   : > { %v430_v52 = vpack.c.bf16 %v418_v48, %v416_v47  ;;  %v409_v13 = vadd.f32 %v396_v3, %v389_v7  ;;  %v413_v17 = vmax.f32 %v405_v11, 0.0  ;;  %v421_v29 = vld [vmem:[#allocation2 + $0x10] sm:$0xff]  ;;  %v422_v35 = vld [vmem:[#allocation2 + $0x18] sm:$0xff] }
  0x3b   : > { %655 = vmatprep.mubr.bf16.mxu0 %v428_v50  ;;  %v415_v18 = vmax.f32 %v407_v12, 0.0  ;;  %v426_v36 = vld [vmem:[#allocation2 + $0x38] sm:$0xff] }
  0x3c   : > { %632 = vmatpush1.bf16.msra.mxu0 %v981_v19  ;;  %914 = vmatpush1.bf16.msra.mxu1 %v981_v19  ;;  %v417_v19 = vmax.f32 %v409_v13, 0.0 }
  0x3d   : > { %633 = vmatprep.subr.bf16.mxu0 %v982_v21  ;;  %899 = vmatprep.subr.bf16.mxu1 %v982_v21  ;;  %v427_v21 = vpack.c.bf16 %v413_v17, %v411_v16 }
  0x3e   : > { %665 = vmatprep.mubr.bf16.mxu1 %v430_v52 }
  0x40   : > { %634 = vmatpush1.bf16.msra.mxu0 %v984_v22  ;;  %915 = vmatpush1.bf16.msra.mxu1 %v984_v22  ;;  %v429_v22 = vpack.c.bf16 %v417_v19, %v415_v18 }
  0x41   : > { %635 = vmatprep.subr.bf16.mxu0 %v985_v24  ;;  %900 = vmatprep.subr.bf16.mxu1 %v985_v24  ;;  %v423_v24 = vld [vmem:[#allocation2 + $0x20] sm:$0xff] }
  0x44   : > { %636 = vmatpush1.bf16.msra.mxu0 %v987_v30  ;;  %916 = vmatpush1.bf16.msra.mxu1 %v987_v30  ;;  %v425_v30 = vld [vmem:[#allocation2 + $0x30] sm:$0xff] }
  0x45   : > { %637 = vmatprep.subr.bf16.mxu0 %v988_v33  ;;  %901 = vmatprep.subr.bf16.mxu1 %v988_v33 }
  0x48   : > { %638 = vmatpush1.bf16.msra.mxu0 %v990_v39  ;;  %917 = vmatpush1.bf16.msra.mxu1 %v990_v39 }
  0x49   : > { %639 = vmatprep.subr.bf16.mxu0 %v991_v43  ;;  %902 = vmatprep.subr.bf16.mxu1 %v991_v43 }
  0x4c   : > { %640 = vmatpush1.bf16.msra.mxu0 %v993_v49  ;;  %918 = vmatpush1.bf16.msra.mxu1 %v993_v49 }
  0x4d   : > { %641 = vmatprep.subr.bf16.mxu0 %v994_v51  ;;  %903 = vmatprep.subr.bf16.mxu1 %v994_v51 }
  0x50   : > { %642 = vmatpush1.bf16.msra.mxu0 %v996_v53  ;;  %919 = vmatpush1.bf16.msra.mxu1 %v996_v53 }
  0x51   : > { %643 = vmatprep.subr.bf16.mxu0 %v997_v54  ;;  %904 = vmatprep.subr.bf16.mxu1 %v997_v54 }
  0x54   : > { %644 = vmatpush1.bf16.msra.mxu0 %v999_v55  ;;  %920 = vmatpush1.bf16.msra.mxu1 %v999_v55 }
  0x55   : > { %645 = vmatprep.subr.bf16.mxu0 %v1000_v56  ;;  %905 = vmatprep.subr.bf16.mxu1 %v1000_v56 }
  0x58   : > { %646 = vmatpush1.bf16.msra.mxu0 %v1002_v58  ;;  %921 = vmatpush1.bf16.msra.mxu1 %v1002_v58 }
  0x59   : > { %647 = vmatprep.subr.bf16.mxu0 %v1003_v59  ;;  %906 = vmatprep.subr.bf16.mxu1 %v1003_v59 }
  0x5c   : > { %648 = vmatpush1.bf16.msra.mxu0 %v1005_v60  ;;  %922 = vmatpush1.bf16.msra.mxu1 %v1005_v60 }
  0x5d   : > { %649 = vmatprep.subr.bf16.mxu0 %v1006_v2  ;;  %907 = vmatprep.subr.bf16.mxu1 %v1006_v2 }
  0x60   : > { %650 = vmatpush1.bf16.msra.mxu0 %v1008_v8  ;;  %923 = vmatpush1.bf16.msra.mxu1 %v1008_v8 }
  0x61   : > { %651 = vmatprep.subr.bf16.mxu0 %v1009_v9  ;;  %908 = vmatprep.subr.bf16.mxu1 %v1009_v9 }
  0x64   : > { %652 = vmatpush1.bf16.msra.mxu0 %v1011_v14  ;;  %924 = vmatpush1.bf16.msra.mxu1 %v1011_v14 }
  0x65   : > { %653 = vmatprep.subr.bf16.mxu0 %v1012_v15  ;;  %909 = vmatprep.subr.bf16.mxu1 %v1012_v15 }
  0x68   : > { %654 = vmatpush1.bf16.msra.mxu0 %v1014_v20  ;;  %925 = vmatpush1.bf16.msra.mxu1 %v1014_v20 }
  0x6b   : > { %656 = vmatmul.mubr.bf16.vlgmr.msra.gmra.mrb[0].mxu0 %v427_v21  ;;  %666 = vmatmul.mubr.bf16.vlgmr.msra.gmra.mrb[0].mxu1 %v429_v22 }
 0x13e   : > { %v657_v27 = vpop.f32.mrb[0].mxu0  ;;  %v667_v28 = vpop.f32.mrb[0].mxu1  ;;  %695 = sbr.rel (%p887_p12) target bundleno = 334 (0x14e), region = 67 }
 0x13f   : > { %v676_v31 = vadd.f32 %v657_v27, %v419_v23  ;;  %v680_v32 = vadd.f32 %v667_v28, %v423_v24  ;;  %v659_v33 = vpop.f32.mrb[1].mxu0  ;;  %v669_v34 = vpop.f32.mrb[1].mxu1 }
 0x140   : > { %v677_v37 = vadd.f32 %v659_v33, %v420_v25  ;;  %v681_v38 = vadd.f32 %v669_v34, %v424_v26  ;;  %v661_v39 = vpop.f32.mrb[2].mxu0  ;;  %v671_v40 = vpop.f32.mrb[2].mxu1 }
 0x141   : > { %684 = vst [vmem:[#allocation2] sm:$0xff] %v676_v31  ;;  %688 = vst [vmem:[#allocation2 + $0x20] sm:$0xff] %v680_v32  ;;  %v678_v41 = vadd.f32 %v661_v39, %v421_v29  ;;  %v682_v42 = vadd.f32 %v671_v40, %v425_v30  ;;  %v663_v43 = vpop.f32.mrb[3].mxu0  ;;  %v673_v44 = vpop.f32.mrb[3].mxu1 }
 0x142   : > { %685 = vst [vmem:[#allocation2 + $0x8] sm:$0xff] %v677_v37  ;;  %689 = vst [vmem:[#allocation2 + $0x28] sm:$0xff] %v681_v38  ;;  %v679_v45 = vadd.f32 %v663_v43, %v422_v35  ;;  %v683_v46 = vadd.f32 %v673_v44, %v426_v36 }
 0x143   : > { %686 = vst [vmem:[#allocation2 + $0x10] sm:$0xff] %v678_v41  ;;  %690 = vst [vmem:[#allocation2 + $0x30] sm:$0xff] %v682_v42 }
 0x144   : > { %687 = vst [vmem:[#allocation2 + $0x18] sm:$0xff] %v679_v45  ;;  %691 = vst [vmem:[#allocation2 + $0x38] sm:$0xff] %v683_v46 }
 0x148   : > { %v696_v47 = vld [vmem:[#allocation2] sm:$0xff] }
 0x149   : > { %v697_v48 = vld [vmem:[#allocation2 + $0x8] sm:$0xff]  ;;  %704 = vst [vmem:[%s1249_s4] sm:$0xff] %v696_v47  ;;  %v700_v51 = vld [vmem:[#allocation2 + $0x20] sm:$0xff] }
 0x14a   : > { %v698_v49 = vld [vmem:[#allocation2 + $0x10] sm:$0xff]  ;;  %705 = vst [vmem:[%s1249_s4 + $0x8] sm:$0xff] %v697_v48  ;;  %v701_v52 = vld [vmem:[#allocation2 + $0x28] sm:$0xff]  ;;  %708 = vst [vmem:[%s1249_s4 + $0x20] sm:$0xff] %v700_v51 }
 0x14b   : > { %706 = vst [vmem:[%s1249_s4 + $0x10] sm:$0xff] %v698_v49  ;;  %v699_v50 = vld [vmem:[#allocation2 + $0x18] sm:$0xff]  ;;  %709 = vst [vmem:[%s1249_s4 + $0x28] sm:$0xff] %v701_v52  ;;  %v702_v53 = vld [vmem:[#allocation2 + $0x30] sm:$0xff] }
 0x14c   : > { %707 = vst [vmem:[%s1249_s4 + $0x18] sm:$0xff] %v699_v50  ;;  %v703_v54 = vld [vmem:[#allocation2 + $0x38] sm:$0xff]  ;;  %710 = vst [vmem:[%s1249_s4 + $0x30] sm:$0xff] %v702_v53 }
 0x14d   : > { %711 = vst [vmem:[%s1249_s4 + $0x38] sm:$0xff] %v703_v54 }
 0x14e PF: > { %s14_s19 = sadd.s32 1, %s1053_s19   ;;  %s1250_s15 = smov %s1041_s16 }
 0x14f   : > { %p11_p13 = scmp.ge.s32.totalorder %s14_s19, 4   ;;  %s1251_s16 = smov %s1116_s23 }
 0x150   : > { %s1252_s17 = smov %s1049_s18  ;;  %s1253_s18 = smov %s1255_s20 }
 0x151   :  { %13 = sbr.rel (!%p11_p13) target bundleno = 3 (0x3), region = 111 }

// kernel: _encoder_forward.218
= control target key start
LH: loop header
LB: loop body
LE: loop exit
PB: predicated region body
PF: predicated region fallthrough
CT: control target
= control target key end

     0   :  { %s79_s0 = inlined_call_operand.vmem [shape: f32[4,8,256], index: 0, kind: input, shape index: {}]   ;;  %s80_s1 = inlined_call_operand.vmem [shape: f32[8,256], index: 1, kind: output, shape index: {}]  }
   0x1   :  { %v8_v0 = vld [vmem:[%s79_s0] sm:$0xff]  ;;  %v33_v1 = vld [vmem:[%s79_s0 + $0x10] sm:$0xff]  ;;  %v9_v4 = vld [vmem:[%s79_s0 + $0x8] sm:$0xff] }
   0x2   :  { %v35_v2 = vld [vmem:[%s79_s0 + $0x20] sm:$0xff]  ;;  %v13_v3 = vadd.f32 %v33_v1, %v8_v0  ;;  %v34_v5 = vld [vmem:[%s79_s0 + $0x18] sm:$0xff]  ;;  %v37_v6 = vld [vmem:[%s79_s0 + $0x30] sm:$0xff] }
   0x3   :  { %v14_v7 = vadd.f32 %v34_v5, %v9_v4  ;;  %v36_v8 = vld [vmem:[%s79_s0 + $0x28] sm:$0xff]  ;;  %v38_v10 = vld [vmem:[%s79_s0 + $0x38] sm:$0xff] }
   0x4   :  { %v18_v9 = vadd.f32 %v35_v2, %v13_v3 }
   0x5   :  { %v19_v11 = vadd.f32 %v36_v8, %v14_v7 }
   0x6   :  { %v23_v12 = vadd.f32 %v37_v6, %v18_v9 }
   0x7   :  { %v24_v13 = vadd.f32 %v38_v10, %v19_v11 }
   0x8   :  { %v25_v14 = vmul.f32 0.25, %v23_v12 }
   0x9   :  { %v26_v15 = vmul.f32 0.25, %v24_v13 }
   0xa   :  { %27 = vst [vmem:[%s80_s1] sm:$0xff] %v25_v14 }
   0xb   :  { %28 = vst [vmem:[%s80_s1 + $0x8] sm:$0xff] %v26_v15 }

// kernel: _encoder_forward.220
= control target key start
LH: loop header
LB: loop body
LE: loop exit
PB: predicated region body
PF: predicated region fallthrough
CT: control target
= control target key end

     0   :  { %s552_s9 = smov 0   ;;  %s554_s10 = smov 0   ;;  %s598_s0 = inlined_call_operand.vmem [shape: bf16[8,1152], index: 0, kind: input, shape index: {}]   ;;  %s599_s1 = inlined_call_operand.vmem [shape: bf16[1152,128], index: 1, kind: input, shape index: {}]   ;;  %s600_s2 = inlined_call_operand.vmem [shape: f32[8,128], index: 2, kind: output, shape index: {}]  }
   0x1   :  { %s556_s11 = smov 0  }
   0x2 LB: > { %s24_s12 = sadd.s32 1, %s528_s10  ;;  %p429_p0 = scmp.ge.s32.totalorder %s532_s11, 1  ;;  %s532_s11 = sphi %s556_s11, %s12_s11   ;;  %s528_s10 = sphi %s554_s10, %s602_s10   ;;  %s524_s9 = sphi %s552_s9, %s601_s9  }
   0x3   : > { %p25_p1 = scmp.ge.s32.totalorder %s24_s12, 9  ;;  %p154_p2 = scmp.lt.s32.totalorder %s532_s11, 10 }
   0x5   : > { %s604_s12 = smov (%p25_p1, %s24_s12), 0  ;;  %p155_p3 = pnand %p429_p0, %p154_p2 }
   0x6   : > { %p191_p4 = scmp.lt.s32.totalorder (!%p155_p3), %s524_s9, 8  ;;  %s431_s13 = sshll.u32 (!%p155_p3), %s524_s9, 4 }
   0x7   : > { %158 = sbr.rel (%p155_p3) target bundleno = 278 (0x116), region = 28  ;;  %p198_p5 = scmp.lt.s32.totalorder (!%p155_p3), %s431_s13, 143 }
   0x8   : > { %p433_p6 = scmp.ne.s32.totalorder (!%p155_p3), %s524_s9, 0 }
   0xe   : > { %s192_s14 = scalar_select %p191_p4, %s524_s9, 8 }
   0xf   : > { %s606_s13 = smov (!%p198_p5, %s431_s13), 143  ;;  %217 = sbr.rel (%p433_p6) target bundleno = 22 (0x16), region = 32 }
  0x10   : > { %s430_s15 = sshll.u32 %s192_s14, 2  ;;  %s432_s19 = sshll.u32 %s606_s13, 2  ;;  %v534_v0 = vmov (!%p433_p6), 0.0  }
  0x11   : > { %s578_s18 = scalar_lea.vmem %s598_s0, %s430_s15  ;;  %s204_s22 = scalar_lea.vmem %s599_s1, %s432_s19  ;;  %218 = vst [vmem:[#allocation2] sm:$0xff] (!%p433_p6), %v534_v0 }
  0x16 PF: > { %v502_v1 = vld [vmem:[%s204_s22] sm:$0xff]   ;;  %v535_v2 = vmov 0.0   ;;  %v503_v3 = vld [vmem:[%s204_s22 + $0x8] sm:$0xff]   ;;  %vm536_vm0 = vmmov 0   ;;  %v504_v4 = vld [vmem:[%s204_s22 + $0x10] sm:$0xff]   ;;  %p442_p7 = scmp.ne.s32.totalorder %s524_s9, 8 }
  0x17   : > { %455 = vmatprep.subr.bf16.mxu0 %v535_v2  ;;  %471 = vmatprep.mubr.msk.bf16.mxu0 %vm536_vm0, %v535_v2  ;;  %v505_v5 = vld [vmem:[%s204_s22 + $0x18] sm:$0xff]   ;;  %v506_v6 = vld [vmem:[%s204_s22 + $0x20] sm:$0xff]   ;;  %v507_v7 = vld [vmem:[%s204_s22 + $0x28] sm:$0xff]  }
  0x18   : > { %456 = vmatpush3.bf16.msra.mxu0 %v502_v1  ;;  %v508_v8 = vld [vmem:[%s204_s22 + $0x30] sm:$0xff]   ;;  %v509_v9 = vld [vmem:[%s204_s22 + $0x38] sm:$0xff]   ;;  %v220_v10 = vld [vmem:[%s578_s18] sm:$0xf] }
  0x19   : > { %457 = vmatprep.subr.bf16.mxu0 %v535_v2  ;;  %v219_v11 = vld [vmem:[#allocation2] sm:$0xff] }
  0x1c   : > { %458 = vmatpush3.bf16.msra.mxu0 %v503_v3 }
  0x1d   : > { %459 = vmatprep.subr.bf16.mxu0 %v535_v2 }
  0x20   : > { %460 = vmatpush3.bf16.msra.mxu0 %v504_v4 }
  0x21   : > { %461 = vmatprep.subr.bf16.mxu0 %v535_v2 }
  0x24   : > { %462 = vmatpush3.bf16.msra.mxu0 %v505_v5 }
  0x25   : > { %463 = vmatprep.subr.bf16.mxu0 %v535_v2 }
  0x28   : > { %464 = vmatpush3.bf16.msra.mxu0 %v506_v6 }
  0x29   : > { %465 = vmatprep.subr.bf16.mxu0 %v535_v2 }
  0x2c   : > { %466 = vmatpush3.bf16.msra.mxu0 %v507_v7 }
  0x2d   : > { %467 = vmatprep.subr.bf16.mxu0 %v535_v2 }
  0x30   : > { %468 = vmatpush3.bf16.msra.mxu0 %v508_v8 }
  0x31   : > { %469 = vmatprep.subr.bf16.mxu0 %v535_v2 }
  0x34   : > { %470 = vmatpush3.bf16.msra.mxu0 %v509_v9 }
  0x37   : > { %472 = vmatmul.mubr.bf16.vlgmr.msra.gmra.mrb[0].mxu0 %v220_v10 }
 0x107   : > { %330 = sbr.rel (%p442_p7) target bundleno = 278 (0x116), region = 36 }
 0x10a   : > { %v319_v12 = vpop.f32.mrb[0].mxu0 }
 0x10b   : > { %v325_v13 = vadd.f32 %v319_v12, %v219_v11  ;;  %v473_v14 = vpop.f32.mrb[1].mxu0 }
 0x10c   : > { %v322_v15 = vpop.f32.mrb[2].mxu0 }
 0x10d   : > { %326 = vst [vmem:[#allocation2] sm:$0xff] %v325_v13  ;;  %v474_v16 = vpop.f32.mrb[3].mxu0 }
 0x114   : > { %v331_v17 = vld [vmem:[#allocation2] sm:$0xff] }
 0x115   : > { %332 = vst [vmem:[%s600_s2] sm:$0xff] %v331_v17 }
 0x116 PF: > { %s12_s11 = sadd.s32 1, %s532_s11   ;;  %s601_s9 = smov %s528_s10 }
 0x117   : > { %p9_p8 = scmp.ge.s32.totalorder %s12_s11, 11   ;;  %s602_s10 = smov %s604_s12 }
 0x119   :  { %11 = sbr.rel (!%p9_p8) target bundleno = 2 (0x2), region = 69 }

// kernel: _encoder_forward.219
= control target key start
LH: loop header
LB: loop body
LE: loop exit
PB: predicated region body
PF: predicated region fallthrough
CT: control target
= control target key end

     0   :  { %s919_s21 = smov 0   ;;  %s921_s22 = smov 0   ;;  %s1010_s0 = inlined_call_operand.vmem [shape: f32[8,1280], index: 0, kind: input, shape index: {}]   ;;  %s1011_s1 = inlined_call_operand.vmem [shape: f32[1,1280], index: 1, kind: input, shape index: {}]   ;;  %s1012_s2 = inlined_call_operand.vmem [shape: f32[1,1280], index: 2, kind: input, shape index: {}]   ;;  %s1013_s3 = inlined_call_operand.vmem [shape: bf16[1280,128], index: 3, kind: input, shape index: {}]   ;;  %s1014_s4 = inlined_call_operand.vmem [shape: f32[1,128], index: 4, kind: input, shape index: {}]   ;;  %s1015_s5 = inlined_call_operand.vmem [shape: f32[1,128], index: 5, kind: input, shape index: {}]   ;;  %s1016_s6 = inlined_call_operand.vmem [shape: f32[8,128], index: 6, kind: output, shape index: {}]  }
   0x1   :  { %s923_s23 = smov 0  }
   0x2 LB: > { %s28_s24 = sadd.s32 1, %s877_s22  ;;  %p766_p0 = scmp.ge.s32.totalorder %s881_s23, 1  ;;  %s881_s23 = sphi %s923_s23, %s16_s23   ;;  %s877_s22 = sphi %s921_s22, %s1018_s22   ;;  %s873_s21 = sphi %s919_s21, %s1017_s21  }
   0x3   : > { %p29_p1 = scmp.ge.s32.totalorder %s28_s24, 5  ;;  %p292_p2 = scmp.lt.s32.totalorder %s881_s23, 6 }
   0x5   : > { %s1020_s24 = smov (%p29_p1, %s28_s24), 0  ;;  %p293_p3 = pnand %p766_p0, %p292_p2 }
   0x6   : > { %s767_s25 = sshll.u32 (!%p293_p3), %s873_s21, 1  ;;  %s771_s26 = sshll.u32 (!%p293_p3), %s873_s21, 5 }
   0x7   : > { %296 = sbr.rel (%p293_p3) target bundleno = 289 (0x121), region = 44  ;;  %p353_p4 = scmp.lt.s32.totalorder (!%p293_p3), %s767_s25, 9 }
   0x8   : > { %p371_p5 = scmp.lt.s32.totalorder (!%p293_p3), %s771_s26, 159  ;;  %p773_p6 = scmp.ne.s32.totalorder (!%p293_p3), %s873_s21, 0 }
   0xe   : > { %s1022_s25 = smov (!%p353_p4, %s767_s25), 9  ;;  %s1024_s26 = smov (!%p371_p5, %s771_s26), 159 }
   0xf   : > { %s768_s27 = sshll.u32 %s1022_s25, 3  ;;  %s363_s30 = scalar_lea.vmem %s1011_s1, %s1022_s25  ;;  %v883_v0 = vmov (!%p773_p6), 0.0  }
  0x10   : > { %s951_s9 = scalar_lea.vmem %s1010_s0, %s768_s27  ;;  %s368_s12 = scalar_lea.vmem %s1012_s2, %s1022_s25  ;;  %397 = vst [vmem:[#allocation2] sm:$0xff] (!%p773_p6), %v883_v0 }
  0x11   : > { %s772_s13 = sshll.u32 %s1024_s26, 2  ;;  %396 = sbr.rel (%p773_p6) target bundleno = 24 (0x18), region = 48 }
  0x12   : > { %s960_s16 = scalar_lea.vmem %s1013_s3, %s772_s13 }
  0x18 PF: > { %v843_v1 = vld [vmem:[%s960_s16 + $0x40] sm:$0xff]   ;;  %v845_v3 = vld [vmem:[%s960_s16 + $0x48] sm:$0xff]   ;;  %v847_v5 = vld [vmem:[%s960_s16 + $0x50] sm:$0xff]   ;;  %v402_v6 = vlaneseq  ;;  %p790_p7 = scmp.ne.s32.totalorder %s873_s21, 4 }
  0x19   : > { %v844_v2 = vld [vmem:[%s960_s16] sm:$0xff]   ;;  %796 = vmatprep.subr.bf16.mxu0 %v843_v1  ;;  %v846_v4 = vld [vmem:[%s960_s16 + $0x8] sm:$0xff]   ;;  %v848_v7 = vld [vmem:[%s960_s16 + $0x10] sm:$0xff]  }
  0x1a   : > { %797 = vmatpush3.bf16.msra.mxu0 %v844_v2  ;;  %v849_v8 = vld [vmem:[%s960_s16 + $0x58] sm:$0xff]   ;;  %v403_v9 = vshrl.u32 %v402_v6, 7  ;;  %v851_v11 = vld [vmem:[%s960_s16 + $0x60] sm:$0xff]   ;;  %v853_v15 = vld [vmem:[%s960_s16 + $0x68] sm:$0xff]  }
  0x1b   : > { %798 = vmatprep.subr.bf16.mxu0 %v845_v3  ;;  %v850_v10 = vld [vmem:[%s960_s16 + $0x18] sm:$0xff]   ;;  %v852_v14 = vld [vmem:[%s960_s16 + $0x20] sm:$0xff]   ;;  %v399_v16 = vld [vmem:[%s951_s9 + $0x8] sm:$0xff] }
  0x1c   : > { %v404_v12 = vsub.s32 0, %v403_v9  ;;  %v408_v13 = vsub.s32 1, %v403_v9  ;;  %v400_v17 = vld [vmem:[%s363_s30] sm:$0x3]  ;;  %v854_v24 = vld [vmem:[%s960_s16 + $0x28] sm:$0xff]   ;;  %v855_v27 = vld [vmem:[%s960_s16 + $0x70] sm:$0xff]  }
  0x1d   : > { %v414_v18 = vld [vmem:[%s368_s12] sm:$0x3]  ;;  %v856_v30 = vld [vmem:[%s960_s16 + $0x30] sm:$0xff]   ;;  %v857_v32 = vld [vmem:[%s960_s16 + $0x78] sm:$0xff]  }
  0x1e   : > { %799 = vmatpush3.bf16.msra.mxu0 %v846_v4  ;;  %v405_v19 = vrot.slane %v400_v17, %v404_v12  ;;  %v409_v20 = vrot.slane %v400_v17, %v408_v13  ;;  %v423_v21 = vrot.slane %v414_v18, %v408_v13  ;;  %v398_v22 = vld [vmem:[%s951_s9] sm:$0xff]  ;;  %v419_v23 = vrot.slane %v414_v18, %v404_v12  ;;  %v858_v35 = vld [vmem:[%s960_s16 + $0x38] sm:$0xff]  }
  0x1f   : > { %800 = vmatprep.subr.bf16.mxu0 %v847_v5  ;;  %v430_v38 = vld [vmem:[#allocation2] sm:$0xff] }
  0x20   : > { %v413_v25 = vmul.f32 %v409_v20, %v399_v16  ;;  %v412_v26 = vmul.f32 %v405_v19, %v398_v22  ;;  %v791_v45 = vld [vmem:[%s1014_s4] ss:$0 sm:$0xff] (!%p790_p7) }
  0x21   : > { %v792_v46 = vld [vmem:[%s1015_s5] ss:$0 sm:$0xff] (!%p790_p7) }
  0x22   : > { %801 = vmatpush3.bf16.msra.mxu0 %v848_v7  ;;  %v427_v28 = vadd.f32 %v423_v21, %v413_v25  ;;  %v426_v29 = vadd.f32 %v419_v23, %v412_v26 }
  0x23   : > { %802 = vmatprep.subr.bf16.mxu0 %v849_v8 }
  0x24   : > { %v429_v31 = vmax.f32 %v427_v28, 0.0  ;;  %v428_v34 = vmax.f32 %v426_v29, 0.0 }
  0x26   : > { %803 = vmatpush3.bf16.msra.mxu0 %v850_v10  ;;  %v432_v33 = vpack.c.bf16 %v429_v31, %v429_v31  ;;  %v431_v36 = vpack.c.bf16 %v428_v34, %v428_v34 }
  0x27   : > { %804 = vmatprep.subr.bf16.mxu0 %v851_v11 }
  0x28   : > { %593 = vmatprep.mubr.bf16.mxu0 %v432_v33 }
  0x2a   : > { %805 = vmatpush3.bf16.msra.mxu0 %v852_v14 }
  0x2b   : > { %806 = vmatprep.subr.bf16.mxu0 %v853_v15 }
  0x2e   : > { %807 = vmatpush3.bf16.msra.mxu0 %v854_v24 }
  0x2f   : > { %808 = vmatprep.subr.bf16.mxu0 %v855_v27 }
  0x32   : > { %809 = vmatpush3.bf16.msra.mxu0 %v856_v30 }
  0x33   : > { %810 = vmatprep.subr.bf16.mxu0 %v857_v32 }
  0x36   : > { %811 = vmatpush3.bf16.msra.mxu0 %v858_v35 }
  0x39   : > { %594 = vmatmul.mubr.bf16.vlgmr.msra.gmra.mrb[0].mxu0 %v431_v36 }
 0x10c   : > { %v812_v37 = vpop.f32.mrb[0].mxu0  ;;  %606 = sbr.rel (%p790_p7) target bundleno = 289 (0x121), region = 52 }
 0x10d   : > { %v813_v39 = vpop.f32.mrb[1].mxu0 }
 0x10e   : > { %v814_v40 = vadd.f32 %v813_v39, %v812_v37  ;;  %v815_v41 = vpop.f32.mrb[2].mxu0 }
 0x10f   : > { %v816_v42 = vpop.f32.mrb[3].mxu0 }
 0x110   : > { %v601_v43 = vadd.f32 %v814_v40, %v430_v38 }
 0x112   : > { %602 = vst [vmem:[#allocation2] sm:$0xff] %v601_v43 }
 0x119   : > { %v607_v44 = vld [vmem:[#allocation2] sm:$0xff] }
 0x11a   : > { %v615_v47 = vmul.f32 %v791_v45, %v607_v44 }
 0x11c   : > { %v623_v48 = vadd.f32 %v792_v46, %v615_v47 }
 0x11e   : > { %v624_v49 = vmax.f32 %v623_v48, 0.0 }
 0x120   : > { %625 = vst [vmem:[%s1016_s6] sm:$0xff] %v624_v49 }
 0x121 PF: > { %s16_s23 = sadd.s32 1, %s881_s23   ;;  %s1017_s21 = smov %s877_s22 }
 0x122   : > { %p13_p8 = scmp.ge.s32.totalorder %s16_s23, 7   ;;  %s1018_s22 = smov %s1020_s24 }
 0x124   :  { %15 = sbr.rel (!%p13_p8) target bundleno = 2 (0x2), region = 97 }

// kernel: _encoder_forward.222
= control target key start
LH: loop header
LB: loop body
LE: loop exit
PB: predicated region body
PF: predicated region fallthrough
CT: control target
= control target key end

     0   :  { %7 = vsyncpa [#allocation4], 0  ;;  %s795_s0 = inlined_call_operand.hbm [shape: bf16[8,1152], index: 0, kind: input, shape index: {}]   ;;  %s796_s1 = inlined_call_operand.vmem [shape: bf16[1152,128], index: 1, kind: input, shape index: {}]   ;;  %s797_s2 = inlined_call_operand.vmem [shape: f32[8,128], index: 2, kind: output, shape index: {}]  }
   0x1   :  { %9 = vsyncpa [#allocation4 + $0x1], 0  ;;  %s661_s9 = smov 0   ;;  %s663_s10 = smov 0  }
   0x2   :  { %s665_s11 = smov 0   ;;  %s667_s12 = smov 0  }
   0x3   :  { %s669_s13 = smov 0   ;;  %s671_s14 = smov 0  }
   0x4 LB: > { %s443_s15 = sadd.s32 4294967295, %s640_s14   ;;  %s27_s16 = sadd.s32 1, %s636_s13  ;;  %s640_s14 = sphi %s671_s14, %s15_s14   ;;  %s636_s13 = sphi %s669_s13, %s807_s13   ;;  %s632_s12 = sphi %s667_s12, %s806_s12   ;;  %s628_s11 = sphi %s665_s11, %s805_s11   ;;  %s624_s10 = sphi %s663_s10, %s804_s10   ;;  %s620_s9 = sphi %s661_s9, %s803_s9  }
   0x5   : > { %p28_p0 = scmp.ge.s32.totalorder %s27_s16, 9  ;;  %s43_s17 = sadd.s32 1, %s628_s11 }
   0x6   : > { %p50_p1 = scmp.ne.s32.totalorder %s628_s11, %s624_s10  ;;  %p51_p2 = scmp.eq.s32.totalorder %s640_s14, 0 }
   0x7   : > { %s809_s16 = smov (%p28_p0, %s27_s16), 0  ;;  %p56_p4 = scmp.ne.s32.totalorder %s624_s10, %s620_s9 }
   0x8   : > { %p697_p3 = por %p51_p2, %p50_p1  ;;  %s39_s19 = ssub.s32 %s636_s13, %s809_s16 }
   0x9   : > { %p57_p5 = scmp.eq.s32.totalorder %s443_s15, 0  ;;  %p41_p6 = scmp.eq.s32.totalorder %s39_s19, 0 }
   0xa   : > { %p500_p8 = scmp.lt.s32.totalorder %s640_s14, 9  ;;  %s136_s22 = sand.u32 1, %s628_s11  }
   0xb   : > { %p704_p7 = por %p57_p5, %p56_p4  ;;  %s447_s23 = sshll.u32 %s636_s13, 6 }
   0xc   : > { %s710_s21 = scalar_select %p41_p6, %s628_s11, %s43_s17  }
   0xd   : > { %s446_s24 = sshll.u32 %s136_s22, 2  ;;  %s717_s27 = scalar_lea.hbm %s795_s0, %s447_s23 }
   0xe   : > { %s140_s28 = scalar_lea.vmem [#allocation3], %s446_s24  ;;  %p721_p9 = pnand %p500_p8, %p697_p3 }
   0xf   : > { %s149_s29 = sshll.u32 %s140_s28, 4  ;;  %s137_s3 = scalar_lea.sflag [#allocation4], %s136_s22  ;;  %s725_s29 = int_to_ptr.vmem [resolvable:$true] %s149_s29 }
  0x10   : > { %s560_s4 = scalar_lea.hbm %s717_s27, 64  ;;  %p562_p13 = pneg %p721_p9 }
  0x11   : > { %p561_p12 = scmp.ne.s32.totalorder %s717_s27, %s560_s4  ;;  %s565_s7 = scalar_lea.hbm %s795_s0, 576 }
  0x12   : > { %p566_p2 = scmp.lt.u32.totalorder %s717_s27, %s795_s0  ;;  %p567_p3 = scmp.lt.u32.totalorder %s565_s7, %s560_s4 }
  0x13   : > { %p563_p0 = pnand %p562_p13, %p561_p12  ;;  %p569_p5 = scmp.lt.u32.totalorder %s560_s4, %s717_s27 }
  0x14   : > { %p568_p4 = por %p567_p3, %p566_p2 }
  0x15   : > { %p564_p1 = pneg %p563_p0 }
  0x16   : > { %p570_p6 = por %p569_p5, %p568_p4 }
  0x18   : > { %p571_p8 = pnand %p570_p6, %p564_p1 }
  0x1a   : > { %574 = shalt.err (!%p571_p8)
}
  0x1b   : > { %s575_s15 = scalar_lea.vmem %s725_s29, 64  ;;  %s642_s17 = smov [#allocation3]  }
  0x1c   : > { %p576_p12 = scmp.ne.s32.totalorder %s725_s29, %s575_s15  ;;  %s580_s18 = sshll.u32 %s642_s17, 4  ;;  %s581_s18 = int_to_ptr.vmem [resolvable:$false] %s580_s18 }
  0x1d   : > { %s582_s19 = scalar_lea.vmem %s581_s18, 128  ;;  %p583_p11 = scmp.lt.s32.totalorder %s725_s29, %s581_s18 }
  0x1e   : > { %p578_p0 = pnand %p576_p12, %p562_p13  ;;  %p584_p2 = scmp.lt.s32.totalorder %s582_s19, %s575_s15 }
  0x20   : > { %p579_p10 = pneg %p578_p0  ;;  %p585_p3 = por %p584_p2, %p583_p11 }
  0x22   : > { %p586_p4 = pnand %p585_p3, %p579_p10 }
  0x24   : > { %589 = shalt.err (!%p586_p4)
}
  0x25   : > { %499 = dma.hbm_to_vmem [thread:$0]  (!%p721_p9), %s717_s27, 64, %s725_s29, %s137_s3  }
  0x26   : > { %p801_p1 = scmp.lt.s32.totalorder %s640_s14, 10  ;;  %p802_p5 = scmp.ge.s32.totalorder %s640_s14, 1 }
  0x28   : > { %p167_p13 = pnand %p802_p5, %p801_p1 }
  0x29   : > { %s172_s22 = sand.u32 (!%p167_p13), 1, %s624_s10  }
  0x2a   : > { %170 = sbr.rel (%p167_p13) target bundleno = 315 (0x13b), region = 28  ;;  %s759_s23 = sshll.u32 (!%p167_p13), %s172_s22, 2 }
  0x2b   : > { %s173_s24 = scalar_lea.sflag (!%p167_p13), [#allocation4], %s172_s22  ;;  %s176_s25 = scalar_lea.vmem (!%p167_p13), [#allocation3], %s759_s23 }
  0x31   : > { %615 = dma.done.wait (%p704_p7), %s173_s24, 64  }
  0x32   : > { %617 = vsyncadd (%p704_p7), %s173_s24, 4294967232  ;;  %s450_s26 = sshll.u32 %s632_s12, 4  ;;  %p452_p10 = scmp.ne.s32.totalorder %s632_s12, 0 }
  0x33   : > { %p208_p9 = scmp.lt.s32.totalorder %s450_s26, 143  ;;  %v643_v0 = vmov (!%p452_p10), 0.0  }
  0x34   : > { %227 = sbr.rel (%p452_p10) target bundleno = 59 (0x3b), region = 36  ;;  %228 = vst [vmem:[#allocation2] sm:$0xff] (!%p452_p10), %v643_v0 }
  0x35   : > { %s811_s26 = smov (!%p208_p9, %s450_s26), 143 }
  0x36   : > { %s451_s27 = sshll.u32 %s811_s26, 2 }
  0x37   : > { %s214_s30 = scalar_lea.vmem %s796_s1, %s451_s27 }
  0x3b PF: > { %v552_v1 = vld [vmem:[%s214_s30] sm:$0xff]   ;;  %v644_v2 = vmov 0.0   ;;  %v553_v3 = vld [vmem:[%s214_s30 + $0x8] sm:$0xff]   ;;  %vm645_vm0 = vmmov 0   ;;  %v554_v4 = vld [vmem:[%s214_s30 + $0x10] sm:$0xff]   ;;  %p461_p7 = scmp.ne.s32.totalorder %s632_s12, 8 }
  0x3c   : > { %474 = vmatprep.subr.bf16.mxu0 %v644_v2  ;;  %490 = vmatprep.mubr.msk.bf16.mxu0 %vm645_vm0, %v644_v2  ;;  %v555_v5 = vld [vmem:[%s214_s30 + $0x18] sm:$0xff]   ;;  %v556_v6 = vld [vmem:[%s214_s30 + $0x20] sm:$0xff]   ;;  %v557_v7 = vld [vmem:[%s214_s30 + $0x28] sm:$0xff]  }
  0x3d   : > { %475 = vmatpush3.bf16.msra.mxu0 %v552_v1  ;;  %v558_v8 = vld [vmem:[%s214_s30 + $0x30] sm:$0xff]   ;;  %v559_v9 = vld [vmem:[%s214_s30 + $0x38] sm:$0xff]   ;;  %v230_v10 = vld [vmem:[%s176_s25] sm:$0xf] }
  0x3e   : > { %476 = vmatprep.subr.bf16.mxu0 %v644_v2  ;;  %v229_v11 = vld [vmem:[#allocation2] sm:$0xff] }
  0x41   : > { %477 = vmatpush3.bf16.msra.mxu0 %v553_v3 }
  0x42   : > { %478 = vmatprep.subr.bf16.mxu0 %v644_v2 }
  0x45   : > { %479 = vmatpush3.bf16.msra.mxu0 %v554_v4 }
  0x46   : > { %480 = vmatprep.subr.bf16.mxu0 %v644_v2 }
  0x49   : > { %481 = vmatpush3.bf16.msra.mxu0 %v555_v5 }
  0x4a   : > { %482 = vmatprep.subr.bf16.mxu0 %v644_v2 }
  0x4d   : > { %483 = vmatpush3.bf16.msra.mxu0 %v556_v6 }
  0x4e   : > { %484 = vmatprep.subr.bf16.mxu0 %v644_v2 }
  0x51   : > { %485 = vmatpush3.bf16.msra.mxu0 %v557_v7 }
  0x52   : > { %486 = vmatprep.subr.bf16.mxu0 %v644_v2 }
  0x55   : > { %487 = vmatpush3.bf16.msra.mxu0 %v558_v8 }
  0x56   : > { %488 = vmatprep.subr.bf16.mxu0 %v644_v2 }
  0x59   : > { %489 = vmatpush3.bf16.msra.mxu0 %v559_v9 }
  0x5c   : > { %491 = vmatmul.mubr.bf16.vlgmr.msra.gmra.mrb[0].mxu0 %v230_v10 }
 0x12c   : > { %340 = sbr.rel (%p461_p7) target bundleno = 315 (0x13b), region = 40 }
 0x12f   : > { %v329_v12 = vpop.f32.mrb[0].mxu0 }
 0x130   : > { %v335_v13 = vadd.f32 %v329_v12, %v229_v11  ;;  %v492_v14 = vpop.f32.mrb[1].mxu0 }
 0x131   : > { %v332_v15 = vpop.f32.mrb[2].mxu0 }
 0x132   : > { %336 = vst [vmem:[#allocation2] sm:$0xff] %v335_v13  ;;  %v493_v16 = vpop.f32.mrb[3].mxu0 }
 0x139   : > { %v341_v17 = vld [vmem:[#allocation2] sm:$0xff] }
 0x13a   : > { %342 = vst [vmem:[%s797_s2] sm:$0xff] %v341_v17 }
 0x13b PF: > { %s15_s14 = sadd.s32 1, %s640_s14   ;;  %s803_s9 = smov %s624_s10 }
 0x13c   : > { %p12_p11 = scmp.ge.s32.totalorder %s15_s14, 11   ;;  %s804_s10 = smov %s628_s11 }
 0x13d   : > { %s805_s11 = smov %s710_s21  ;;  %s806_s12 = smov %s636_s13 }
 0x13e   : > { %s807_s13 = smov %s809_s16  ;;  %14 = sbr.rel (!%p12_p11) target bundleno = 4 (0x4), region = 79 }
 0x145   :  { %368 = vsyncpa [#allocation4], 1 }
 0x146   :  { %370 = vsyncpa [#allocation4 + $0x1], 1 }

// kernel: _encoder_forward.284
= control target key start
LH: loop header
LB: loop body
LE: loop exit
PB: predicated region body
PF: predicated region fallthrough
CT: control target
= control target key end

     0   :  { %s160_s0 = inlined_call_operand.vmem [shape: f32[4,8,640], index: 0, kind: input, shape index: {}]   ;;  %s161_s1 = inlined_call_operand.vmem [shape: f32[8,640], index: 1, kind: output, shape index: {}]  }
   0x1   :  { %v8_v0 = vld [vmem:[%s160_s0] sm:$0xff]  ;;  %v60_v1 = vld [vmem:[%s160_s0 + $0x28] sm:$0xff]  ;;  %v65_v2 = vld [vmem:[%s160_s0 + $0x50] sm:$0xff] }
   0x2   :  { %v19_v3 = vadd.f32 %v60_v1, %v8_v0  ;;  %v9_v4 = vld [vmem:[%s160_s0 + $0x8] sm:$0xff]  ;;  %v61_v5 = vld [vmem:[%s160_s0 + $0x30] sm:$0xff]  ;;  %v70_v6 = vld [vmem:[%s160_s0 + $0x78] sm:$0xff] }
   0x3   :  { %v20_v7 = vadd.f32 %v61_v5, %v9_v4  ;;  %v66_v8 = vld [vmem:[%s160_s0 + $0x58] sm:$0xff]  ;;  %v10_v9 = vld [vmem:[%s160_s0 + $0x10] sm:$0xff]  ;;  %v71_v11 = vld [vmem:[%s160_s0 + $0x80] sm:$0xff] }
   0x4   :  { %v30_v10 = vadd.f32 %v65_v2, %v19_v3  ;;  %v62_v12 = vld [vmem:[%s160_s0 + $0x38] sm:$0xff]  ;;  %v67_v13 = vld [vmem:[%s160_s0 + $0x60] sm:$0xff]  ;;  %v68_v18 = vld [vmem:[%s160_s0 + $0x68] sm:$0xff] }
   0x5   :  { %v31_v14 = vadd.f32 %v66_v8, %v20_v7  ;;  %v21_v15 = vadd.f32 %v62_v12, %v10_v9  ;;  %v11_v16 = vld [vmem:[%s160_s0 + $0x18] sm:$0xff]  ;;  %v63_v17 = vld [vmem:[%s160_s0 + $0x40] sm:$0xff]  ;;  %v72_v20 = vld [vmem:[%s160_s0 + $0x88] sm:$0xff] }
   0x6   :  { %v41_v19 = vadd.f32 %v70_v6, %v30_v10  ;;  %v22_v21 = vadd.f32 %v63_v17, %v11_v16  ;;  %v12_v22 = vld [vmem:[%s160_s0 + $0x20] sm:$0xff]  ;;  %v64_v23 = vld [vmem:[%s160_s0 + $0x48] sm:$0xff]  ;;  %v73_v26 = vld [vmem:[%s160_s0 + $0x90] sm:$0xff] }
   0x7   :  { %v42_v24 = vadd.f32 %v71_v11, %v31_v14  ;;  %v32_v25 = vadd.f32 %v67_v13, %v21_v15  ;;  %v23_v27 = vadd.f32 %v64_v23, %v12_v22  ;;  %v69_v28 = vld [vmem:[%s160_s0 + $0x70] sm:$0xff]  ;;  %v74_v31 = vld [vmem:[%s160_s0 + $0x98] sm:$0xff] }
   0x8   :  { %v46_v29 = vmul.f32 0.25, %v41_v19  ;;  %v33_v30 = vadd.f32 %v68_v18, %v22_v21 }
   0x9   :  { %v47_v32 = vmul.f32 0.25, %v42_v24  ;;  %v43_v33 = vadd.f32 %v72_v20, %v32_v25  ;;  %v34_v34 = vadd.f32 %v69_v28, %v23_v27 }
   0xa   :  { %51 = vst [vmem:[%s161_s1] sm:$0xff] %v46_v29  ;;  %v44_v35 = vadd.f32 %v73_v26, %v33_v30 }
   0xb   :  { %52 = vst [vmem:[%s161_s1 + $0x8] sm:$0xff] %v47_v32  ;;  %v48_v36 = vmul.f32 0.25, %v43_v33  ;;  %v45_v37 = vadd.f32 %v74_v31, %v34_v34 }
   0xc   :  { %v49_v38 = vmul.f32 0.25, %v44_v35 }
   0xd   :  { %53 = vst [vmem:[%s161_s1 + $0x10] sm:$0xff] %v48_v36  ;;  %v50_v39 = vmul.f32 0.25, %v45_v37 }
   0xe   :  { %54 = vst [vmem:[%s161_s1 + $0x18] sm:$0xff] %v49_v38 }
   0xf   :  { %55 = vst [vmem:[%s161_s1 + $0x20] sm:$0xff] %v50_v39 }

// kernel: _encoder_forward.283
= control target key start
LH: loop header
LB: loop body
LE: loop exit
PB: predicated region body
PF: predicated region fallthrough
CT: control target
= control target key end

     0   :  { %s1027_s15 = smov 0   ;;  %s1029_s16 = smov 0   ;;  %s1236_s0 = inlined_call_operand.vmem [shape: f32[8,1280], index: 0, kind: input, shape index: {}]   ;;  %s1237_s1 = inlined_call_operand.vmem [shape: f32[1,1280], index: 1, kind: input, shape index: {}]   ;;  %s1238_s2 = inlined_call_operand.vmem [shape: f32[1,1280], index: 2, kind: input, shape index: {}]   ;;  %s1239_s3 = inlined_call_operand.vmem [shape: bf16[1280,640], index: 3, kind: input, shape index: {}]   ;;  %s1240_s4 = inlined_call_operand.vmem [shape: f32[8,640], index: 4, kind: output, shape index: {}]  }
   0x1   :  { %s1031_s17 = smov 0   ;;  %s1033_s18 = smov 0  }
   0x2   :  { %s1035_s19 = smov 0   ;;  %s1037_s20 = smov 0  }
   0x3   :  { %s1039_s21 = smov 0  }
   0x4 LB: > { %s26_s22 = sadd.s32 1, %s991_s19  ;;  %s29_s23 = sadd.s32 1, %s995_s20  ;;  %s999_s21 = sphi %s1039_s21, %s14_s21   ;;  %s995_s20 = sphi %s1037_s20, %s1246_s20   ;;  %s991_s19 = sphi %s1035_s19, %s1245_s19   ;;  %s987_s18 = sphi %s1033_s18, %s1244_s18   ;;  %s983_s17 = sphi %s1031_s17, %s1243_s17   ;;  %s979_s16 = sphi %s1029_s16, %s1242_s16   ;;  %s975_s15 = sphi %s1027_s15, %s1241_s15  }
   0x5   : > { %p27_p0 = scmp.ge.s32.totalorder %s26_s22, 5  ;;  %p129_p1 = scmp.ne.s32.totalorder %s979_s16, %s975_s15 }
   0x6   : > { %p130_p2 = scmp.eq.s32.totalorder %s999_s21, 0  ;;  %s122_s27 = sadd.s32 1, %s979_s16 }
   0x7   : > { %s1248_s22 = smov (%p27_p0, %s26_s22), 0  ;;  %s1250_s23 = smov (!%p27_p0, %s29_s23), %s995_s20 }
   0x8   : > { %p131_p3 = por %p130_p2, %p129_p1  ;;  %p31_p4 = scmp.ge.s32.totalorder %s1250_s23, 5 }
   0x9   : > { %s117_s24 = ssub.s32 %s991_s19, %s1248_s22  ;;  %p817_p6 = scmp.ge.s32.totalorder %s999_s21, 25 }
   0xa   : > { %s1252_s23 = smov (%p31_p4, %s1250_s23), 0 }
   0xb   : > { %s118_s25 = ssub.s32 %s995_s20, %s1252_s23  ;;  %183 = sbr.rel (%p817_p6) target bundleno = 46 (0x2e), region = 16 }
   0xc   : > { %s119_s26 = sor.u32 %s118_s25, %s117_s24 }
   0xd   : > { %p120_p5 = scmp.eq.s32.totalorder %s119_s26, 0 }
   0xf   : > { %s1078_s28 = scalar_select %p120_p5, %s979_s16, %s122_s27  }
  0x12   : > { %215 = sbr.rel (!%p131_p3) target bundleno = 46 (0x2e), region = 32  ;;  %s217_s29 = sand.u32 (%p131_p3), 1, %s979_s16  }
  0x13   : > { %s871_s30 = smul.u32 (%p131_p3), 160, %s991_s19  ;;  %s818_s5 = sshll.u32 (%p131_p3), %s217_s29, 7 }
  0x14   : > { %s1092_s11 = scalar_lea.vmem (%p131_p3), [#allocation3], %s818_s5 }
  0x15   : > { %s222_s6 = sadd.s32 (%p131_p3), %s995_s20, %s871_s30 }
  0x16   : > { %s821_s7 = sshll.u32 (%p131_p3), %s222_s6, 2 }
  0x17   : > { %s1087_s10 = scalar_lea.vmem (%p131_p3), %s1239_s3, %s821_s7 }
  0x18   : > { %v240_v0 = vld [vmem:[%s1087_s10] sm:$0xf] (%p131_p3)  ;;  %v242_v1 = vld [vmem:[%s1087_s10 + $0x14] sm:$0xf] (%p131_p3)  ;;  %v244_v2 = vld [vmem:[%s1087_s10 + $0x28] sm:$0xf] (%p131_p3) }
  0x19   : > { %241 = vst [vmem:[%s1092_s11] sm:$0xf] %v240_v0  ;;  %243 = vst [vmem:[%s1092_s11 + $0x4] sm:$0xf] %v242_v1  ;;  %v246_v3 = vld [vmem:[%s1087_s10 + $0x3c] sm:$0xf] }
  0x1a   : > { %245 = vst [vmem:[%s1092_s11 + $0x8] sm:$0xf] %v244_v2  ;;  %v248_v4 = vld [vmem:[%s1087_s10 + $0x50] sm:$0xf]  ;;  %v250_v5 = vld [vmem:[%s1087_s10 + $0x64] sm:$0xf] }
  0x1b   : > { %247 = vst [vmem:[%s1092_s11 + $0xc] sm:$0xf] %v246_v3  ;;  %249 = vst [vmem:[%s1092_s11 + $0x10] sm:$0xf] %v248_v4  ;;  %v252_v6 = vld [vmem:[%s1087_s10 + $0x78] sm:$0xf] }
  0x1c   : > { %251 = vst [vmem:[%s1092_s11 + $0x14] sm:$0xf] %v250_v5  ;;  %v254_v7 = vld [vmem:[%s1087_s10 + $0x8c] sm:$0xf]  ;;  %v256_v8 = vld [vmem:[%s1087_s10 + $0xa0] sm:$0xf] }
  0x1d   : > { %253 = vst [vmem:[%s1092_s11 + $0x18] sm:$0xf] %v252_v6  ;;  %255 = vst [vmem:[%s1092_s11 + $0x1c] sm:$0xf] %v254_v7  ;;  %v258_v9 = vld [vmem:[%s1087_s10 + $0xb4] sm:$0xf] }
  0x1e   : > { %257 = vst [vmem:[%s1092_s11 + $0x20] sm:$0xf] %v256_v8  ;;  %v260_v10 = vld [vmem:[%s1087_s10 + $0xc8] sm:$0xf]  ;;  %v262_v11 = vld [vmem:[%s1087_s10 + $0xdc] sm:$0xf] }
  0x1f   : > { %259 = vst [vmem:[%s1092_s11 + $0x24] sm:$0xf] %v258_v9  ;;  %261 = vst [vmem:[%s1092_s11 + $0x28] sm:$0xf] %v260_v10  ;;  %v264_v12 = vld [vmem:[%s1087_s10 + $0xf0] sm:$0xf] }
  0x20   : > { %263 = vst [vmem:[%s1092_s11 + $0x2c] sm:$0xf] %v262_v11  ;;  %v266_v13 = vld [vmem:[%s1087_s10 + $0x104] sm:$0xf]  ;;  %v268_v14 = vld [vmem:[%s1087_s10 + $0x118] sm:$0xf] }
  0x21   : > { %265 = vst [vmem:[%s1092_s11 + $0x30] sm:$0xf] %v264_v12  ;;  %267 = vst [vmem:[%s1092_s11 + $0x34] sm:$0xf] %v266_v13  ;;  %v270_v15 = vld [vmem:[%s1087_s10 + $0x12c] sm:$0xf] }
  0x22   : > { %269 = vst [vmem:[%s1092_s11 + $0x38] sm:$0xf] %v268_v14  ;;  %v272_v16 = vld [vmem:[%s1087_s10 + $0x140] sm:$0xf]  ;;  %v274_v17 = vld [vmem:[%s1087_s10 + $0x154] sm:$0xf] }
  0x23   : > { %271 = vst [vmem:[%s1092_s11 + $0x3c] sm:$0xf] %v270_v15  ;;  %273 = vst [vmem:[%s1092_s11 + $0x40] sm:$0xf] %v272_v16  ;;  %v276_v18 = vld [vmem:[%s1087_s10 + $0x168] sm:$0xf] }
  0x24   : > { %275 = vst [vmem:[%s1092_s11 + $0x44] sm:$0xf] %v274_v17  ;;  %v278_v19 = vld [vmem:[%s1087_s10 + $0x17c] sm:$0xf]  ;;  %v280_v20 = vld [vmem:[%s1087_s10 + $0x190] sm:$0xf] }
  0x25   : > { %277 = vst [vmem:[%s1092_s11 + $0x48] sm:$0xf] %v276_v18  ;;  %279 = vst [vmem:[%s1092_s11 + $0x4c] sm:$0xf] %v278_v19  ;;  %v282_v21 = vld [vmem:[%s1087_s10 + $0x1a4] sm:$0xf] }
  0x26   : > { %281 = vst [vmem:[%s1092_s11 + $0x50] sm:$0xf] %v280_v20  ;;  %v284_v22 = vld [vmem:[%s1087_s10 + $0x1b8] sm:$0xf]  ;;  %v286_v23 = vld [vmem:[%s1087_s10 + $0x1cc] sm:$0xf] }
  0x27   : > { %283 = vst [vmem:[%s1092_s11 + $0x54] sm:$0xf] %v282_v21  ;;  %285 = vst [vmem:[%s1092_s11 + $0x58] sm:$0xf] %v284_v22  ;;  %v288_v24 = vld [vmem:[%s1087_s10 + $0x1e0] sm:$0xf] }
  0x28   : > { %287 = vst [vmem:[%s1092_s11 + $0x5c] sm:$0xf] %v286_v23  ;;  %v290_v25 = vld [vmem:[%s1087_s10 + $0x1f4] sm:$0xf]  ;;  %v292_v26 = vld [vmem:[%s1087_s10 + $0x208] sm:$0xf] }
  0x29   : > { %289 = vst [vmem:[%s1092_s11 + $0x60] sm:$0xf] %v288_v24  ;;  %291 = vst [vmem:[%s1092_s11 + $0x64] sm:$0xf] %v290_v25  ;;  %v294_v27 = vld [vmem:[%s1087_s10 + $0x21c] sm:$0xf] }
  0x2a   : > { %293 = vst [vmem:[%s1092_s11 + $0x68] sm:$0xf] %v292_v26  ;;  %v296_v28 = vld [vmem:[%s1087_s10 + $0x230] sm:$0xf]  ;;  %v298_v29 = vld [vmem:[%s1087_s10 + $0x244] sm:$0xf] }
  0x2b   : > { %295 = vst [vmem:[%s1092_s11 + $0x6c] sm:$0xf] %v294_v27  ;;  %297 = vst [vmem:[%s1092_s11 + $0x70] sm:$0xf] %v296_v28  ;;  %v300_v30 = vld [vmem:[%s1087_s10 + $0x258] sm:$0xf] }
  0x2c   : > { %299 = vst [vmem:[%s1092_s11 + $0x74] sm:$0xf] %v298_v29  ;;  %v302_v31 = vld [vmem:[%s1087_s10 + $0x26c] sm:$0xf]  ;;  %301 = vst [vmem:[%s1092_s11 + $0x78] sm:$0xf] %v300_v30 }
  0x2d   : > { %303 = vst [vmem:[%s1092_s11 + $0x7c] sm:$0xf] %v302_v31 }
  0x2e PF: > { %p822_p7 = scmp.ge.s32.totalorder %s999_s21, 1  ;;  %p389_p8 = scmp.lt.s32.totalorder %s999_s21, 26 }
  0x30   : > { %p390_p9 = pnand %p822_p7, %p389_p8 }
  0x31   : > { %s396_s12 = sand.u32 (!%p390_p9), 1, %s975_s15   ;;  %s824_s13 = sshll.u32 (!%p390_p9), %s983_s17, 1 }
  0x32   : > { %393 = sbr.rel (%p390_p9) target bundleno = 326 (0x146), region = 73  ;;  %s823_s14 = sshll.u32 (!%p390_p9), %s396_s12, 7 }
  0x33   : > { %p444_p10 = scmp.lt.s32.totalorder (!%p390_p9), %s824_s13, 9  ;;  %p464_p11 = scmp.lt.s32.totalorder (!%p390_p9), %s987_s18, 4 }
  0x34   : > { %s1182_s12 = scalar_lea.vmem (!%p390_p9), [#allocation3], %s823_s14  ;;  %p829_p12 = scmp.ne.s32.totalorder (!%p390_p9), %s983_s17, 0 }
  0x39   : > { %s1254_s13 = smov (!%p444_p10, %s824_s13), 9  ;;  %s1256_s18 = smov (!%p464_p11, %s987_s18), 4 }
  0x3a   : > { %s825_s24 = sshll.u32 %s1254_s13, 3  ;;  %s454_s27 = scalar_lea.vmem %s1237_s1, %s1254_s13  ;;  %v1001_v32 = vmov (!%p829_p12), 0.0  }
  0x3b   : > { %s1171_s5 = scalar_lea.vmem %s1236_s0, %s825_s24  ;;  %s459_s7 = scalar_lea.vmem %s1238_s2, %s1254_s13  ;;  %475 = vst [vmem:[#allocation2] sm:$0xff] (!%p829_p12), %v1001_v32 }
  0x3c   : > { %s828_s8 = sshll.u32 %s1256_s18, 3  ;;  %474 = sbr.rel (%p829_p12) target bundleno = 67 (0x43), region = 81 }
  0x3d   : > { %s1180_s11 = scalar_lea.vmem %s1240_s4, %s828_s8 }
  0x43 PF: > { %v929_v33 = vld [vmem:[%s1182_s12 + $0x40] sm:$0xff]   ;;  %v931_v35 = vld [vmem:[%s1182_s12 + $0x48] sm:$0xff]   ;;  %v933_v37 = vld [vmem:[%s1182_s12 + $0x50] sm:$0xff]   ;;  %v480_v38 = vlaneseq  ;;  %p846_p13 = scmp.ne.s32.totalorder %s983_s17, 4 }
  0x44   : > { %v930_v34 = vld [vmem:[%s1182_s12] sm:$0xff]   ;;  %849 = vmatprep.subr.bf16.mxu0 %v929_v33  ;;  %v932_v36 = vld [vmem:[%s1182_s12 + $0x8] sm:$0xff]   ;;  %v934_v39 = vld [vmem:[%s1182_s12 + $0x10] sm:$0xff]  }
  0x45   : > { %850 = vmatpush3.bf16.msra.mxu0 %v930_v34  ;;  %v935_v40 = vld [vmem:[%s1182_s12 + $0x58] sm:$0xff]   ;;  %v481_v41 = vshrl.u32 %v480_v38, 7  ;;  %v937_v43 = vld [vmem:[%s1182_s12 + $0x60] sm:$0xff]   ;;  %v939_v47 = vld [vmem:[%s1182_s12 + $0x68] sm:$0xff]  }
  0x46   : > { %851 = vmatprep.subr.bf16.mxu0 %v931_v35  ;;  %v936_v42 = vld [vmem:[%s1182_s12 + $0x18] sm:$0xff]   ;;  %v938_v46 = vld [vmem:[%s1182_s12 + $0x20] sm:$0xff]   ;;  %v940_v56 = vld [vmem:[%s1182_s12 + $0x28] sm:$0xff]  }
  0x47   : > { %v482_v44 = vsub.s32 0, %v481_v41  ;;  %v486_v45 = vsub.s32 1, %v481_v41  ;;  %v477_v48 = vld [vmem:[%s1171_s5 + $0x8] sm:$0xff]  ;;  %v478_v49 = vld [vmem:[%s454_s27] sm:$0x3]  ;;  %v941_v59 = vld [vmem:[%s1182_s12 + $0x70] sm:$0xff]  }
  0x48   : > { %v492_v50 = vld [vmem:[%s459_s7] sm:$0x3]  ;;  %v942_v62 = vld [vmem:[%s1182_s12 + $0x30] sm:$0xff]  }
  0x49   : > { %852 = vmatpush3.bf16.msra.mxu0 %v932_v36  ;;  %v483_v51 = vrot.slane %v478_v49, %v482_v44  ;;  %v487_v52 = vrot.slane %v478_v49, %v486_v45  ;;  %v501_v53 = vrot.slane %v492_v50, %v486_v45  ;;  %v476_v54 = vld [vmem:[%s1171_s5] sm:$0xff]  ;;  %v497_v55 = vrot.slane %v492_v50, %v482_v44 }
  0x4a   : > { %853 = vmatprep.subr.bf16.mxu0 %v933_v37  ;;  %v943_v0 = vld [vmem:[%s1182_s12 + $0x78] sm:$0xff]  }
  0x4b   : > { %v491_v57 = vmul.f32 %v487_v52, %v477_v48  ;;  %v490_v58 = vmul.f32 %v483_v51, %v476_v54  ;;  %v944_v3 = vld [vmem:[%s1182_s12 + $0x38] sm:$0xff]  }
  0x4c   : > { %v508_v6 = vld [vmem:[#allocation2] sm:$0xff] }
  0x4d   : > { %854 = vmatpush3.bf16.msra.mxu0 %v934_v39  ;;  %v505_v60 = vadd.f32 %v501_v53, %v491_v57  ;;  %v504_v61 = vadd.f32 %v497_v55, %v490_v58 }
  0x4e   : > { %855 = vmatprep.subr.bf16.mxu0 %v935_v40 }
  0x4f   : > { %v507_v63 = vmax.f32 %v505_v60, 0.0  ;;  %v506_v2 = vmax.f32 %v504_v61, 0.0 }
  0x51   : > { %856 = vmatpush3.bf16.msra.mxu0 %v936_v42  ;;  %v510_v1 = vpack.c.bf16 %v507_v63, %v507_v63  ;;  %v509_v4 = vpack.c.bf16 %v506_v2, %v506_v2 }
  0x52   : > { %857 = vmatprep.subr.bf16.mxu0 %v937_v43 }
  0x53   : > { %671 = vmatprep.mubr.bf16.mxu0 %v510_v1 }
  0x55   : > { %858 = vmatpush3.bf16.msra.mxu0 %v938_v46 }
  0x56   : > { %859 = vmatprep.subr.bf16.mxu0 %v939_v47 }
  0x59   : > { %860 = vmatpush3.bf16.msra.mxu0 %v940_v56 }
  0x5a   : > { %861 = vmatprep.subr.bf16.mxu0 %v941_v59 }
  0x5d   : > { %862 = vmatpush3.bf16.msra.mxu0 %v942_v62 }
  0x5e   : > { %863 = vmatprep.subr.bf16.mxu0 %v943_v0 }
  0x61   : > { %864 = vmatpush3.bf16.msra.mxu0 %v944_v3 }
  0x64   : > { %672 = vmatmul.mubr.bf16.vlgmr.msra.gmra.mrb[0].mxu0 %v509_v4 }
 0x137   : > { %v865_v5 = vpop.f32.mrb[0].mxu0  ;;  %684 = sbr.rel (%p846_p13) target bundleno = 326 (0x146), region = 85 }
 0x138   : > { %v866_v7 = vpop.f32.mrb[1].mxu0 }
 0x139   : > { %v867_v8 = vadd.f32 %v866_v7, %v865_v5  ;;  %v868_v9 = vpop.f32.mrb[2].mxu0 }
 0x13a   : > { %v869_v10 = vpop.f32.mrb[3].mxu0 }
 0x13b   : > { %v679_v11 = vadd.f32 %v867_v8, %v508_v6 }
 0x13d   : > { %680 = vst [vmem:[#allocation2] sm:$0xff] %v679_v11 }
 0x144   : > { %v685_v12 = vld [vmem:[#allocation2] sm:$0xff] }
 0x145   : > { %686 = vst [vmem:[%s1180_s11] sm:$0xff] %v685_v12 }
 0x146 PF: > { %s14_s21 = sadd.s32 1, %s999_s21   ;;  %s1241_s15 = smov %s979_s16 }
 0x147   : > { %p11_p0 = scmp.ge.s32.totalorder %s14_s21, 27   ;;  %s1242_s16 = smov %s1078_s28 }
 0x148   : > { %s1243_s17 = smov %s991_s19  ;;  %s1244_s18 = smov %s995_s20 }
 0x149   : > { %s1245_s19 = smov %s1248_s22  ;;  %s1246_s20 = smov %s1252_s23 }
 0x14a   :  { %13 = sbr.rel (!%p11_p0) target bundleno = 4 (0x4), region = 129 }

// kernel: _encoder_forward.285
= control target key start
LH: loop header
LB: loop body
LE: loop exit
PB: predicated region body
PF: predicated region fallthrough
CT: control target
= control target key end

     0   :  { %s819_s21 = smov 0   ;;  %s821_s22 = smov 0   ;;  %s894_s0 = inlined_call_operand.vmem [shape: f32[8,1664], index: 0, kind: input, shape index: {}]   ;;  %s895_s1 = inlined_call_operand.vmem [shape: f32[1,1664], index: 1, kind: input, shape index: {}]   ;;  %s896_s2 = inlined_call_operand.vmem [shape: f32[1,1664], index: 2, kind: input, shape index: {}]   ;;  %s897_s3 = inlined_call_operand.vmem [shape: bf16[1664,128], index: 3, kind: input, shape index: {}]   ;;  %s898_s4 = inlined_call_operand.vmem [shape: f32[1,128], index: 4, kind: input, shape index: {}]   ;;  %s899_s5 = inlined_call_operand.vmem [shape: f32[1,128], index: 5, kind: input, shape index: {}]   ;;  %s900_s6 = inlined_call_operand.vmem [shape: f32[8,128], index: 6, kind: output, shape index: {}]  }
   0x1   :  { %s823_s23 = smov 0  }
   0x2 LB: > { %s28_s24 = sadd.s32 1, %s775_s22  ;;  %p672_p0 = scmp.ge.s32.totalorder %s779_s23, 1  ;;  %s779_s23 = sphi %s823_s23, %s16_s23   ;;  %s775_s22 = sphi %s821_s22, %s902_s22   ;;  %s771_s21 = sphi %s819_s21, %s901_s21  }
   0x3   : > { %p29_p1 = scmp.ge.s32.totalorder %s28_s24, 13  ;;  %p286_p2 = scmp.lt.s32.totalorder %s779_s23, 14 }
   0x5   : > { %s904_s24 = smov (%p29_p1, %s28_s24), 0  ;;  %p287_p3 = pnand %p672_p0, %p286_p2 }
   0x6   : > { %p343_p4 = scmp.lt.s32.totalorder (!%p287_p3), %s771_s21, 12  ;;  %s674_s25 = sshll.u32 (!%p287_p3), %s771_s21, 4 }
   0x7   : > { %290 = sbr.rel (%p287_p3) target bundleno = 284 (0x11c), region = 44  ;;  %p356_p5 = scmp.lt.s32.totalorder (!%p287_p3), %s674_s25, 207 }
   0x8   : > { %p676_p6 = scmp.ne.s32.totalorder (!%p287_p3), %s771_s21, 0 }
   0xe   : > { %s842_s26 = scalar_select %p343_p4, %s771_s21, 12 }
   0xf   : > { %s906_s25 = smov (!%p356_p5, %s674_s25), 207  ;;  %381 = sbr.rel (%p676_p6) target bundleno = 22 (0x16), region = 48 }
  0x10   : > { %s673_s27 = sshll.u32 %s842_s26, 3  ;;  %s351_s30 = scalar_lea.vmem %s895_s1, %s842_s26  ;;  %v781_v0 = vmov (!%p676_p6), 0.0  }
  0x11   : > { %s348_s9 = scalar_lea.vmem %s894_s0, %s673_s27  ;;  %s354_s12 = scalar_lea.vmem %s896_s2, %s842_s26  ;;  %382 = vst [vmem:[#allocation2] sm:$0xff] (!%p676_p6), %v781_v0 }
  0x12   : > { %s675_s13 = sshll.u32 %s906_s25, 2 }
  0x13   : > { %s859_s16 = scalar_lea.vmem %s897_s3, %s675_s13 }
  0x16 PF: > { %v749_v1 = vld [vmem:[%s859_s16] sm:$0xff]   ;;  %v782_v2 = vmov 0.0   ;;  %v750_v3 = vld [vmem:[%s859_s16 + $0x8] sm:$0xff]   ;;  %vm783_vm0 = vmmov 0   ;;  %v751_v4 = vld [vmem:[%s859_s16 + $0x10] sm:$0xff]   ;;  %p687_p7 = scmp.ne.s32.totalorder %s771_s21, 12 }
  0x17   : > { %702 = vmatprep.subr.bf16.mxu0 %v782_v2  ;;  %718 = vmatprep.mubr.msk.bf16.mxu0 %vm783_vm0, %v782_v2  ;;  %v752_v5 = vld [vmem:[%s859_s16 + $0x18] sm:$0xff]   ;;  %v753_v6 = vld [vmem:[%s859_s16 + $0x20] sm:$0xff]   ;;  %v754_v10 = vld [vmem:[%s859_s16 + $0x28] sm:$0xff]  }
  0x18   : > { %703 = vmatpush3.bf16.msra.mxu0 %v749_v1  ;;  %v383_v7 = vld [vmem:[%s348_s9] sm:$0xff]  ;;  %v755_v13 = vld [vmem:[%s859_s16 + $0x30] sm:$0xff]   ;;  %v756_v15 = vld [vmem:[%s859_s16 + $0x38] sm:$0xff]  }
  0x19   : > { %704 = vmatprep.subr.bf16.mxu0 %v782_v2  ;;  %v677_v8 = vld [vmem:[%s351_s30] ss:$0 sm:$0xff] }
  0x1a   : > { %v391_v9 = vmul.f32 %v677_v8, %v383_v7  ;;  %v678_v11 = vld [vmem:[%s354_s12] ss:$0 sm:$0xff] }
  0x1b   : > { %v401_v17 = vld [vmem:[#allocation2] sm:$0xff] }
  0x1c   : > { %705 = vmatpush3.bf16.msra.mxu0 %v750_v3  ;;  %v399_v12 = vadd.f32 %v678_v11, %v391_v9  ;;  %v688_v24 = vld [vmem:[%s898_s4] ss:$0 sm:$0xff] (!%p687_p7) }
  0x1d   : > { %706 = vmatprep.subr.bf16.mxu0 %v782_v2  ;;  %v689_v25 = vld [vmem:[%s899_s5] ss:$0 sm:$0xff] (!%p687_p7) }
  0x1e   : > { %v400_v14 = vmax.f32 %v399_v12, 0.0 }
  0x20   : > { %707 = vmatpush3.bf16.msra.mxu0 %v751_v4  ;;  %v402_v16 = vpack.c.bf16 %v400_v14, %v400_v14 }
  0x21   : > { %708 = vmatprep.subr.bf16.mxu0 %v782_v2 }
  0x24   : > { %709 = vmatpush3.bf16.msra.mxu0 %v752_v5 }
  0x25   : > { %710 = vmatprep.subr.bf16.mxu0 %v782_v2 }
  0x28   : > { %711 = vmatpush3.bf16.msra.mxu0 %v753_v6 }
  0x29   : > { %712 = vmatprep.subr.bf16.mxu0 %v782_v2 }
  0x2c   : > { %713 = vmatpush3.bf16.msra.mxu0 %v754_v10 }
  0x2d   : > { %714 = vmatprep.subr.bf16.mxu0 %v782_v2 }
  0x30   : > { %715 = vmatpush3.bf16.msra.mxu0 %v755_v13 }
  0x31   : > { %716 = vmatprep.subr.bf16.mxu0 %v782_v2 }
  0x34   : > { %717 = vmatpush3.bf16.msra.mxu0 %v756_v15 }
  0x37   : > { %719 = vmatmul.mubr.bf16.vlgmr.msra.gmra.mrb[0].mxu0 %v402_v16 }
 0x107   : > { %512 = sbr.rel (%p687_p7) target bundleno = 284 (0x11c), region = 52 }
 0x10a   : > { %v501_v18 = vpop.f32.mrb[0].mxu0 }
 0x10b   : > { %v507_v19 = vadd.f32 %v501_v18, %v401_v17  ;;  %v720_v20 = vpop.f32.mrb[1].mxu0 }
 0x10c   : > { %v504_v21 = vpop.f32.mrb[2].mxu0 }
 0x10d   : > { %508 = vst [vmem:[#allocation2] sm:$0xff] %v507_v19  ;;  %v721_v22 = vpop.f32.mrb[3].mxu0 }
 0x114   : > { %v513_v23 = vld [vmem:[#allocation2] sm:$0xff] }
 0x115   : > { %v521_v26 = vmul.f32 %v688_v24, %v513_v23 }
 0x117   : > { %v529_v27 = vadd.f32 %v689_v25, %v521_v26 }
 0x119   : > { %v530_v28 = vmax.f32 %v529_v27, 0.0 }
 0x11b   : > { %531 = vst [vmem:[%s900_s6] sm:$0xff] %v530_v28 }
 0x11c PF: > { %s16_s23 = sadd.s32 1, %s779_s23   ;;  %s901_s21 = smov %s775_s22 }
 0x11d   : > { %p13_p8 = scmp.ge.s32.totalorder %s16_s23, 15   ;;  %s902_s22 = smov %s904_s24 }
 0x11f   :  { %15 = sbr.rel (!%p13_p8) target bundleno = 2 (0x2), region = 97 }

// kernel: _encoder_forward.349
= control target key start
LH: loop header
LB: loop body
LE: loop exit
PB: predicated region body
PF: predicated region fallthrough
CT: control target
= control target key end

     0   :  { %v31_v0 = vlaneseq  ;;  %s348_s1 = inlined_call_operand.vmem [shape: f32[1,1664], index: 1, kind: input, shape index: {}]   ;;  %s349_s2 = inlined_call_operand.vmem [shape: f32[1,1664], index: 2, kind: input, shape index: {}]   ;;  %s350_s0 = inlined_call_operand.vmem [shape: f32[8,1664], index: 0, kind: input, shape index: {}]   ;;  %s351_s3 = inlined_call_operand.vmem [shape: f32[8,1664], index: 3, kind: output, shape index: {}]  }
   0x1   :  { %v27_v2 = vld [vmem:[%s348_s1] sm:$0xff]  ;;  %v15_v9 = vld [vmem:[%s350_s0 + $0x8] sm:$0xff]  ;;  %v16_v18 = vld [vmem:[%s350_s0 + $0x10] sm:$0xff] }
   0x2   :  { %v32_v1 = vshrl.u32 %v31_v0, 7  ;;  %v109_v3 = vld [vmem:[%s349_s2] sm:$0xff]  ;;  %v17_v19 = vld [vmem:[%s350_s0 + $0x18] sm:$0xff]  ;;  %v19_v29 = vld [vmem:[%s350_s0 + $0x28] sm:$0xff] }
   0x3   :  { %v14_v8 = vld [vmem:[%s350_s0] sm:$0xff]  ;;  %v20_v34 = vld [vmem:[%s350_s0 + $0x30] sm:$0xff]  ;;  %v28_v39 = vld [vmem:[%s348_s1 + $0x8] sm:$0x1f] }
   0x4   :  { %v234_v4 = vsub.s32 0, %v32_v1  ;;  %v236_v5 = vsub.s32 1, %v32_v1  ;;  %v238_v6 = vsub.s32 2, %v32_v1  ;;  %v240_v7 = vsub.s32 3, %v32_v1  ;;  %v18_v24 = vld [vmem:[%s350_s0 + $0x20] sm:$0xff]  ;;  %v21_v45 = vld [vmem:[%s350_s0 + $0x38] sm:$0xff] }
   0x5   :  { %v248_v10 = vsub.s32 4, %v32_v1  ;;  %v53_v11 = vsub.s32 5, %v32_v1  ;;  %v57_v12 = vsub.s32 6, %v32_v1  ;;  %v61_v13 = vsub.s32 7, %v32_v1  ;;  %v110_v40 = vld [vmem:[%s349_s2 + $0x8] sm:$0x1f] }
   0x6   :  { %v34_v14 = vrot.slane %v27_v2, %v234_v4  ;;  %v116_v15 = vrot.slane %v109_v3, %v234_v4  ;;  %v38_v16 = vrot.slane %v27_v2, %v236_v5  ;;  %v120_v17 = vrot.slane %v109_v3, %v236_v5  ;;  %v22_v50 = vld [vmem:[%s350_s0 + $0x40] sm:$0xff]  ;;  %v23_v51 = vld [vmem:[%s350_s0 + $0x48] sm:$0xff]  ;;  %v24_v56 = vld [vmem:[%s350_s0 + $0x50] sm:$0xff] }
   0x7   :  { %v42_v20 = vrot.slane %v27_v2, %v238_v6  ;;  %v124_v21 = vrot.slane %v109_v3, %v238_v6  ;;  %v46_v22 = vrot.slane %v27_v2, %v240_v7  ;;  %v128_v23 = vrot.slane %v109_v3, %v240_v7  ;;  %v25_v61 = vld [vmem:[%s350_s0 + $0x58] sm:$0xff] }
   0x8   :  { %v96_v25 = vmul.f32 %v34_v14, %v14_v8  ;;  %v97_v26 = vmul.f32 %v38_v16, %v15_v9  ;;  %v50_v27 = vrot.slane %v27_v2, %v248_v10  ;;  %v132_v28 = vrot.slane %v109_v3, %v248_v10 }
   0x9   :  { %v98_v30 = vmul.f32 %v42_v20, %v16_v18  ;;  %v99_v31 = vmul.f32 %v46_v22, %v17_v19  ;;  %v54_v32 = vrot.slane %v27_v2, %v53_v11  ;;  %v136_v33 = vrot.slane %v109_v3, %v53_v11 }
   0xa   :  { %v178_v35 = vadd.f32 %v116_v15, %v96_v25  ;;  %v179_v36 = vadd.f32 %v120_v17, %v97_v26  ;;  %v100_v37 = vmul.f32 %v50_v27, %v18_v24  ;;  %v58_v38 = vrot.slane %v27_v2, %v57_v12 }
   0xb   :  { %v180_v41 = vadd.f32 %v124_v21, %v98_v30  ;;  %v181_v42 = vadd.f32 %v128_v23, %v99_v31  ;;  %v101_v43 = vmul.f32 %v54_v32, %v19_v29  ;;  %v140_v44 = vrot.slane %v109_v3, %v57_v12 }
   0xc   :  { %191 = vst [vmem:[%s351_s3] sm:$0xff] %v178_v35  ;;  %192 = vst [vmem:[%s351_s3 + $0x8] sm:$0xff] %v179_v36  ;;  %v182_v46 = vadd.f32 %v132_v28, %v100_v37  ;;  %v102_v47 = vmul.f32 %v58_v38, %v20_v34  ;;  %v62_v48 = vrot.slane %v27_v2, %v61_v13  ;;  %v26_v2 = vld [vmem:[%s350_s0 + $0x60] sm:$0xff] }
   0xd   :  { %v144_v49 = vrot.slane %v109_v3, %v61_v13  ;;  %193 = vst [vmem:[%s351_s3 + $0x10] sm:$0xff] %v180_v41  ;;  %194 = vst [vmem:[%s351_s3 + $0x18] sm:$0xff] %v181_v42  ;;  %v183_v52 = vadd.f32 %v136_v33, %v101_v43  ;;  %v66_v53 = vrot.slane %v28_v39, %v234_v4 }
   0xe   :  { %v148_v54 = vrot.slane %v110_v40, %v234_v4  ;;  %v70_v55 = vrot.slane %v28_v39, %v236_v5  ;;  %195 = vst [vmem:[%s351_s3 + $0x20] sm:$0xff] %v182_v46  ;;  %v184_v57 = vadd.f32 %v140_v44, %v102_v47  ;;  %v103_v58 = vmul.f32 %v62_v48, %v21_v45 }
   0xf   :  { %v152_v59 = vrot.slane %v110_v40, %v236_v5  ;;  %v74_v60 = vrot.slane %v28_v39, %v238_v6  ;;  %196 = vst [vmem:[%s351_s3 + $0x28] sm:$0xff] %v183_v52  ;;  %v104_v62 = vmul.f32 %v66_v53, %v22_v50  ;;  %v156_v0 = vrot.slane %v110_v40, %v238_v6 }
  0x10   :  { %v105_v63 = vmul.f32 %v70_v55, %v23_v51  ;;  %v78_v1 = vrot.slane %v28_v39, %v240_v7  ;;  %197 = vst [vmem:[%s351_s3 + $0x30] sm:$0xff] %v184_v57  ;;  %v185_v3 = vadd.f32 %v144_v49, %v103_v58  ;;  %v160_v5 = vrot.slane %v110_v40, %v240_v7 }
  0x11   :  { %v106_v4 = vmul.f32 %v74_v60, %v24_v56  ;;  %v82_v8 = vrot.slane %v28_v39, %v248_v10  ;;  %v186_v9 = vadd.f32 %v148_v54, %v104_v62  ;;  %v164_v6 = vrot.slane %v110_v40, %v248_v10 }
  0x12   :  { %v187_v11 = vadd.f32 %v152_v59, %v105_v63  ;;  %v107_v12 = vmul.f32 %v78_v1, %v25_v61  ;;  %198 = vst [vmem:[%s351_s3 + $0x38] sm:$0xff] %v185_v3 }
  0x13   :  { %v188_v13 = vadd.f32 %v156_v0, %v106_v4  ;;  %v108_v14 = vmul.f32 %v82_v8, %v26_v2  ;;  %199 = vst [vmem:[%s351_s3 + $0x40] sm:$0xff] %v186_v9 }
  0x14   :  { %200 = vst [vmem:[%s351_s3 + $0x48] sm:$0xff] %v187_v11  ;;  %v189_v7 = vadd.f32 %v160_v5, %v107_v12 }
  0x15   :  { %201 = vst [vmem:[%s351_s3 + $0x50] sm:$0xff] %v188_v13  ;;  %v190_v10 = vadd.f32 %v164_v6, %v108_v14 }
  0x16   :  { %202 = vst [vmem:[%s351_s3 + $0x58] sm:$0xff] %v189_v7 }
  0x17   :  { %203 = vst [vmem:[%s351_s3 + $0x60] sm:$0xff] %v190_v10 }

</bundles_post_ra>
